<compile_context>
chip_gen: v6e
topology: v6e:2x2x1
jax: 0.10.0
libtpu: 0.0.40
codegen_flags: <defaults>
</compile_context>

<pallas_src>
import jax
import jax.numpy as jnp
from jax.experimental import pallas as pl
from jax.experimental.pallas import tpu as pltpu

LANE = 128   # channel width of every layer (and the TPU lane width)


def make_cnn_kernel(H, W, Nb):
    """Build the fused 4-block kernel for a (Nb, H, W) batch tile."""
    dims = []
    h, w = H, W
    for _ in range(4):
        dims.append((h, w))
        h //= 2
        w //= 2

    def kernel(lhs1_ref, w1_ref, w234_ref, scale_ref, shift_ref, o_ref,
               c1, c2, c3, c4, p2, p3, p4):
        convs = [c1, c2, c3, c4]          # per-layer conv+BN+ReLU activations (flat, f32)
        pads = [None, p2, p3, p4]         # per-layer zero-padded (with halo margin) inputs

        # Halo / margin rows must be zero; interiors are overwritten below every step.
        for p in (p2, p3, p4):
            p[...] = jnp.zeros_like(p)

        for li in range(4):
            Hl, Wl = dims[li]
            Hp, Wp = Hl + 2, Wl + 2
            R = Nb * Hp * Wp              # flat padded row count of this layer

            scale = scale_ref[li]         # (1, 128) folded BN scale
            shift = shift_ref[li]         # (1, 128) folded BN shift (incl. conv bias)

            # ---------------- Conv 3x3 (padding=1) ----------------
            if li == 0:
                # single small-K matmul on the wrapper-built im2col (no 1->128 channel pad)
                acc = jnp.dot(lhs1_ref[...], w1_ref[...],
                              preferred_element_type=jnp.float32)          # (R, 128) f32
            else:
                mrg = Wp + 1              # halo margin rows at the front of the buffer
                p_ref = pads[li]
                acc = jnp.zeros((R, LANE), jnp.float32)
                for dh in range(3):
                    for dw in range(3):
                        d = (dh - 1) * Wp + (dw - 1)
                        lhs = p_ref[pl.ds(mrg + d, R), :].astype(jnp.bfloat16)
                        acc = acc + jnp.dot(lhs, w234_ref[li - 1, dh * 3 + dw],
                                            preferred_element_type=jnp.float32)

            # BN (folded) + ReLU, applied once on the whole layer (broadcast hoisted).
            convs[li][...] = jnp.maximum(acc * scale + shift, 0.0)

            # ---------------- MaxPool 2x2 ----------------
            Ho, Wo = Hl // 2, Wl // 2
            src = convs[li]
            if li < 3:
                Hp2, Wp2 = Ho + 2, Wo + 2
                mrg2 = Wp2 + 1
                dst = pads[li + 1]
            for n in range(Nb):
                for i in range(Ho):
                    s0 = n * Hp * Wp + (2 * i + 1) * Wp + 1
                    s1 = s0 + Wp
                    t0 = src[pl.ds(s0, Wo, 2), :]
                    t1 = src[pl.ds(s0 + 1, Wo, 2), :]
                    b0 = src[pl.ds(s1, Wo, 2), :]
                    b1 = src[pl.ds(s1 + 1, Wo, 2), :]
                    row = jnp.maximum(jnp.maximum(t0, t1), jnp.maximum(b0, b1))  # (Wo,128)
                    if li < 3:
                        dbase = mrg2 + n * Hp2 * Wp2 + (i + 1) * Wp2 + 1
                        dst[pl.ds(dbase, Wo), :] = row
                    else:
                        o_ref[n, i] = row.astype(o_ref.dtype)

    return kernel


def cnn_forward(x, params, eps=1e-5):
    """x: (num_samples, seq_len, mel_bins) -> (num_samples, 128 * seq//16 * mel//16)."""
    N, H, W = x.shape
    assert H % 16 == 0 and W % 16 == 0, "spatial dims must be divisible by 16 (4x MaxPool2d(2))"
    C = LANE
    Nb = 2                                   # batch elements per grid step (keeps rows %8==0)

    # pad batch up to a multiple of Nb (sliced off at the end)
    Np = ((N + Nb - 1) // Nb) * Nb
    if Np != N:
        x = jnp.pad(x, ((0, Np - N), (0, 0), (0, 0)))

    Hp, Wp = H + 2, W + 2
    Hf, Wf = H // 16, W // 16

    # ---- layer-1 im2col (halo handled here once; taps zero-padded 9 -> 16) ----
    xpp = jnp.pad(x, ((0, 0), (2, 2), (2, 2)))
    taps = [xpp[:, dh:dh + Hp, dw:dw + Wp] for dh in range(3) for dw in range(3)]
    lhs1 = jnp.stack(taps, axis=-1)                                   # (Np, Hp, Wp, 9)
    lhs1 = jnp.pad(lhs1, ((0, 0), (0, 0), (0, 0), (0, 16 - 9)))
    lhs1 = lhs1.reshape(Np * Hp * Wp, 16).astype(jnp.bfloat16)

    # ---- fold BN (eval mode) + conv bias into per-channel scale/shift ----
    scales, shifts = [], []
    for p in params:
        s = p["gamma"] / jnp.sqrt(p["var"] + eps)
        scales.append(s)
        shifts.append((p["b"] - p["mean"]) * s + p["beta"])
    scale_all = jnp.stack(scales).astype(jnp.float32)[:, None, :]     # (4, 1, 128)
    shift_all = jnp.stack(shifts).astype(jnp.float32)[:, None, :]     # (4, 1, 128)

    # ---- weights: layer 1 as (16,128); layers 2-4 stacked (3, 9, 128, 128), bf16 ----
    w1 = params[0]["w"].reshape(9, C)
    w1 = jnp.pad(w1, ((0, 16 - 9), (0, 0))).astype(jnp.bfloat16)
    w234 = jnp.stack([params[i]["w"].reshape(9, C, C) for i in (1, 2, 3)]
                     ).astype(jnp.bfloat16)

    # ---- per-layer flat sizes + VMEM scratch ----
    sizes = []
    h, w = H, W
    for _ in range(4):
        sizes.append((h, w))
        h //= 2
        w //= 2
    R = [Nb * (hh + 2) * (ww + 2) for hh, ww in sizes]
    conv_scratch = [pltpu.VMEM((r, C), jnp.float32) for r in R]                 # c1..c4
    pad_scratch = [pltpu.VMEM((R[l] + 2 * (sizes[l][1] + 3), C), jnp.float32)   # p2..p4
                   for l in (1, 2, 3)]

    kernel = make_cnn_kernel(H, W, Nb)

    out = pl.pallas_call(
        kernel,
        out_shape=jax.ShapeDtypeStruct((Np, Hf, Wf, C), jnp.float32),
        grid_spec=pltpu.PrefetchScalarGridSpec(
            num_scalar_prefetch=0,
            grid=(Np // Nb,),
            in_specs=[
                pl.BlockSpec((Nb * Hp * Wp, 16), lambda n: (n, 0)),
                pl.BlockSpec((16, C), lambda n: (0, 0)),
                pl.BlockSpec((3, 9, C, C), lambda n: (0, 0, 0, 0)),
                pl.BlockSpec((4, 1, C), lambda n: (0, 0, 0)),
                pl.BlockSpec((4, 1, C), lambda n: (0, 0, 0)),
            ],
            out_specs=pl.BlockSpec((Nb, Hf, Wf, C), lambda n: (n, 0, 0, 0)),
            scratch_shapes=conv_scratch + pad_scratch,
        ),
        compiler_params=pltpu.CompilerParams(dimension_semantics=("parallel",)),
    )(lhs1, w1, w234, scale_all, shift_all)

    out = out[:N]                                                  # drop batch padding
    # match PyTorch flatten order: NCHW -> (N, C*H*W)
    return jnp.transpose(out, (0, 3, 1, 2)).reshape(N, -1)


def init_params(key, channels=(128, 128, 128, 128), cin0=1):
    """Deterministic synthetic parameters matching the PyTorch module's shapes."""
    params = []
    cin = cin0
    for i, cout in enumerate(channels):
        k = jax.random.fold_in(key, i)
        kw, kb, kg, kbe, km, kv = jax.random.split(k, 6)
        fan_in = cin * 9
        params.append(dict(
            w=jax.random.normal(kw, (3, 3, cin, cout), jnp.float32) / jnp.sqrt(fan_in),
            b=0.1 * jax.random.normal(kb, (cout,), jnp.float32),
            gamma=1.0 + 0.1 * jax.random.normal(kg, (cout,), jnp.float32),
            beta=0.1 * jax.random.normal(kbe, (cout,), jnp.float32),
            mean=0.1 * jax.random.normal(km, (cout,), jnp.float32),
            var=jnp.abs(1.0 + 0.1 * jax.random.normal(kv, (cout,), jnp.float32)),
        ))
        cin = cout
    return params


if __name__ == "__main__":
    key = jax.random.PRNGKey(0)
    N, S, M = 2, 16, 16                              # small shapes; divisible by 2**4
    x = jax.random.normal(key, (N, S, M), jnp.float32)
    params = init_params(jax.random.PRNGKey(1))

    out = jax.jit(cnn_forward)(x, params)
    out = jax.block_until_ready(out)

    expected = (N, 128 * (S // 16) * (M // 16))
    assert out.shape == expected, (out.shape, expected)
    assert jnp.all(jnp.isfinite(out))
    print("KERNEL_OK")
</pallas_src>

<mosaic_0001>
module attributes {stable_mosaic.version = 11 : i64} {
  func.func @kernel(%arg0: i32, %arg1: memref<648x16xbf16, #tpu.memory_space<vmem>>, %arg2: memref<16x128xbf16, #tpu.memory_space<vmem>>, %arg3: memref<3x9x128x128xbf16, #tpu.memory_space<vmem>>, %arg4: memref<4x1x128xf32, #tpu.memory_space<vmem>>, %arg5: memref<4x1x128xf32, #tpu.memory_space<vmem>>, %arg6: memref<2x1x1x128xf32, #tpu.memory_space<vmem>>, %arg7: memref<648x128xf32, #tpu.memory_space<vmem>>, %arg8: memref<200x128xf32, #tpu.memory_space<vmem>>, %arg9: memref<72x128xf32, #tpu.memory_space<vmem>>, %arg10: memref<32x128xf32, #tpu.memory_space<vmem>>, %arg11: memref<222x128xf32, #tpu.memory_space<vmem>>, %arg12: memref<86x128xf32, #tpu.memory_space<vmem>>, %arg13: memref<42x128xf32, #tpu.memory_space<vmem>>) attributes {dimension_semantics = [#tpu.dimension_semantics<parallel>], iteration_bounds = array<i64: 1>, scalar_prefetch = 0 : i64, scratch_operands = 7 : i64, tpu.core_type = #tpu.core_type<tc>, window_params = [{transform_indices = @transform_0, window_bounds = array<i64: 648, 16>}, {pipeline_mode = #tpu.pipeline_mode<synchronous>, transform_indices = @transform_1, window_bounds = array<i64: 16, 128>}, {pipeline_mode = #tpu.pipeline_mode<synchronous>, transform_indices = @transform_2, window_bounds = array<i64: 3, 9, 128, 128>}, {pipeline_mode = #tpu.pipeline_mode<synchronous>, transform_indices = @transform_3, window_bounds = array<i64: 4, 1, 128>}, {pipeline_mode = #tpu.pipeline_mode<synchronous>, transform_indices = @transform_4, window_bounds = array<i64: 4, 1, 128>}, {transform_indices = @transform_5, window_bounds = array<i64: 2, 1, 1, 128>}]} {
    %cst = arith.constant 0.000000e+00 : f32
    %0 = vector.broadcast %cst : f32 to vector<222x128xf32>
    %c0 = arith.constant 0 : index
    %c0_0 = arith.constant 0 : index
    %1 = vector.load %arg11[%c0, %c0_0] : memref<222x128xf32, #tpu.memory_space<vmem>>, vector<222x128xf32>
    tpu.vector_store %arg11[%c0, %c0_0], %0 {strides = array<i32>} : memref<222x128xf32, #tpu.memory_space<vmem>>, vector<222x128xf32>,
    %cst_1 = arith.constant 0.000000e+00 : f32
    %2 = vector.broadcast %cst_1 : f32 to vector<86x128xf32>
    %c0_2 = arith.constant 0 : index
    %c0_3 = arith.constant 0 : index
    %3 = vector.load %arg12[%c0_2, %c0_3] : memref<86x128xf32, #tpu.memory_space<vmem>>, vector<86x128xf32>
    tpu.vector_store %arg12[%c0_2, %c0_3], %2 {strides = array<i32>} : memref<86x128xf32, #tpu.memory_space<vmem>>, vector<86x128xf32>,
    %cst_4 = arith.constant 0.000000e+00 : f32
    %4 = vector.broadcast %cst_4 : f32 to vector<42x128xf32>
    %c0_5 = arith.constant 0 : index
    %c0_6 = arith.constant 0 : index
    %5 = vector.load %arg13[%c0_5, %c0_6] : memref<42x128xf32, #tpu.memory_space<vmem>>, vector<42x128xf32>
    tpu.vector_store %arg13[%c0_5, %c0_6], %4 {strides = array<i32>} : memref<42x128xf32, #tpu.memory_space<vmem>>, vector<42x128xf32>,
    %c0_7 = arith.constant 0 : index
    %c0_8 = arith.constant 0 : index
    %c0_9 = arith.constant 0 : index
    %6 = vector.load %arg4[%c0_7, %c0_8, %c0_9] : memref<4x1x128xf32, #tpu.memory_space<vmem>>, vector<1x1x128xf32>
    %7 = vector.shape_cast %6 : vector<1x1x128xf32> to vector<1x128xf32>
    %c0_10 = arith.constant 0 : index
    %c0_11 = arith.constant 0 : index
    %c0_12 = arith.constant 0 : index
    %8 = vector.load %arg5[%c0_10, %c0_11, %c0_12] : memref<4x1x128xf32, #tpu.memory_space<vmem>>, vector<1x1x128xf32>
    %9 = vector.shape_cast %8 : vector<1x1x128xf32> to vector<1x128xf32>
    %c0_13 = arith.constant 0 : index
    %c0_14 = arith.constant 0 : index
    %10 = vector.load %arg1[%c0_13, %c0_14] : memref<648x16xbf16, #tpu.memory_space<vmem>>, vector<648x16xbf16>
    %c0_15 = arith.constant 0 : index
    %c0_16 = arith.constant 0 : index
    %11 = vector.load %arg2[%c0_15, %c0_16] : memref<16x128xbf16, #tpu.memory_space<vmem>>, vector<16x128xbf16>
    %cst_17 = arith.constant dense<0.000000e+00> : vector<648x128xf32>
    %12 = tpu.matmul %10, %11, %cst_17 {dimension_numbers = #tpu.dot_dimension_numbers<[1], [0], [0], [1], [0, 0, 1, 1], [], []>} : vector<648x16xbf16>, vector<16x128xbf16>, vector<648x128xf32> -> vector<648x128xf32>
    %13 = vector.broadcast %7 : vector<1x128xf32> to vector<648x128xf32>
    %14 = arith.mulf %12, %13 : vector<648x128xf32>
    %15 = vector.broadcast %9 : vector<1x128xf32> to vector<648x128xf32>
    %16 = arith.addf %14, %15 : vector<648x128xf32>
    %cst_18 = arith.constant 0.000000e+00 : f32
    %17 = vector.broadcast %cst_18 : f32 to vector<648x128xf32>
    %18 = arith.maximumf %16, %17 : vector<648x128xf32>
    %c0_19 = arith.constant 0 : index
    %c0_20 = arith.constant 0 : index
    %19 = vector.load %arg7[%c0_19, %c0_20] : memref<648x128xf32, #tpu.memory_space<vmem>>, vector<648x128xf32>
    tpu.vector_store %arg7[%c0_19, %c0_20], %18 {strides = array<i32>} : memref<648x128xf32, #tpu.memory_space<vmem>>, vector<648x128xf32>,
    %c19 = arith.constant 19 : index
    %c0_21 = arith.constant 0 : index
    %20 = tpu.strided_load %arg7[%c19, %c0_21] {strides = array<i32: 2, 1>} : memref<648x128xf32, #tpu.memory_space<vmem>>, vector<8x128xf32>
    %c20 = arith.constant 20 : index
    %c0_22 = arith.constant 0 : index
    %21 = tpu.strided_load %arg7[%c20, %c0_22] {strides = array<i32: 2, 1>} : memref<648x128xf32, #tpu.memory_space<vmem>>, vector<8x128xf32>
    %c37 = arith.constant 37 : index
    %c0_23 = arith.constant 0 : index
    %22 = tpu.strided_load %arg7[%c37, %c0_23] {strides = array<i32: 2, 1>} : memref<648x128xf32, #tpu.memory_space<vmem>>, vector<8x128xf32>
    %c38 = arith.constant 38 : index
    %c0_24 = arith.constant 0 : index
    %23 = tpu.strided_load %arg7[%c38, %c0_24] {strides = array<i32: 2, 1>} : memref<648x128xf32, #tpu.memory_space<vmem>>, vector<8x128xf32>
    %24 = arith.maximumf %20, %21 : vector<8x128xf32>
    %25 = arith.maximumf %22, %23 : vector<8x128xf32>
    %26 = arith.maximumf %24, %25 : vector<8x128xf32>
    %c22 = arith.constant 22 : index
    %c0_25 = arith.constant 0 : index
    %27 = vector.load %arg11[%c22, %c0_25] : memref<222x128xf32, #tpu.memory_space<vmem>>, vector<8x128xf32>
    tpu.vector_store %arg11[%c22, %c0_25], %26 {strides = array<i32>} : memref<222x128xf32, #tpu.memory_space<vmem>>, vector<8x128xf32>,
    %c55 = arith.constant 55 : index
    %c0_26 = arith.constant 0 : index
    %28 = tpu.strided_load %arg7[%c55, %c0_26] {strides = array<i32: 2, 1>} : memref<648x128xf32, #tpu.memory_space<vmem>>, vector<8x128xf32>
    %c56 = arith.constant 56 : index
    %c0_27 = arith.constant 0 : index
    %29 = tpu.strided_load %arg7[%c56, %c0_27] {strides = array<i32: 2, 1>} : memref<648x128xf32, #tpu.memory_space<vmem>>, vector<8x128xf32>
    %c73 = arith.constant 73 : index
    %c0_28 = arith.constant 0 : index
    %30 = tpu.strided_load %arg7[%c73, %c0_28] {strides = array<i32: 2, 1>} : memref<648x128xf32, #tpu.memory_space<vmem>>, vector<8x128xf32>
    %c74 = arith.constant 74 : index
    %c0_29 = arith.constant 0 : index
    %31 = tpu.strided_load %arg7[%c74, %c0_29] {strides = array<i32: 2, 1>} : memref<648x128xf32, #tpu.memory_space<vmem>>, vector<8x128xf32>
    %32 = arith.maximumf %28, %29 : vector<8x128xf32>
    %33 = arith.maximumf %30, %31 : vector<8x128xf32>
    %34 = arith.maximumf %32, %33 : vector<8x128xf32>
    %c32 = arith.constant 32 : index
    %c0_30 = arith.constant 0 : index
    %35 = vector.load %arg11[%c32, %c0_30] : memref<222x128xf32, #tpu.memory_space<vmem>>, vector<8x128xf32>
    tpu.vector_store %arg11[%c32, %c0_30], %34 {strides = array<i32>} : memref<222x128xf32, #tpu.memory_space<vmem>>, vector<8x128xf32>,
    %c91 = arith.constant 91 : index
    %c0_31 = arith.constant 0 : index
    %36 = tpu.strided_load %arg7[%c91, %c0_31] {strides = array<i32: 2, 1>} : memref<648x128xf32, #tpu.memory_space<vmem>>, vector<8x128xf32>
    %c92 = arith.constant 92 : index
    %c0_32 = arith.constant 0 : index
    %37 = tpu.strided_load %arg7[%c92, %c0_32] {strides = array<i32: 2, 1>} : memref<648x128xf32, #tpu.memory_space<vmem>>, vector<8x128xf32>
    %c109 = arith.constant 109 : index
    %c0_33 = arith.constant 0 : index
    %38 = tpu.strided_load %arg7[%c109, %c0_33] {strides = array<i32: 2, 1>} : memref<648x128xf32, #tpu.memory_space<vmem>>, vector<8x128xf32>
    %c110 = arith.constant 110 : index
    %c0_34 = arith.constant 0 : index
    %39 = tpu.strided_load %arg7[%c110, %c0_34] {strides = array<i32: 2, 1>} : memref<648x128xf32, #tpu.memory_space<vmem>>, vector<8x128xf32>
    %40 = arith.maximumf %36, %37 : vector<8x128xf32>
    %41 = arith.maximumf %38, %39 : vector<8x128xf32>
    %42 = arith.maximumf %40, %41 : vector<8x128xf32>
    %c42 = arith.constant 42 : index
    %c0_35 = arith.constant 0 : index
    %43 = vector.load %arg11[%c42, %c0_35] : memref<222x128xf32, #tpu.memory_space<vmem>>, vector<8x128xf32>
    tpu.vector_store %arg11[%c42, %c0_35], %42 {strides = array<i32>} : memref<222x128xf32, #tpu.memory_space<vmem>>, vector<8x128xf32>,
    %c127 = arith.constant 127 : index
    %c0_36 = arith.constant 0 : index
    %44 = tpu.strided_load %arg7[%c127, %c0_36] {strides = array<i32: 2, 1>} : memref<648x128xf32, #tpu.memory_space<vmem>>, vector<8x128xf32>
    %c128 = arith.constant 128 : index
    %c0_37 = arith.constant 0 : index
    %45 = tpu.strided_load %arg7[%c128, %c0_37] {strides = array<i32: 2, 1>} : memref<648x128xf32, #tpu.memory_space<vmem>>, vector<8x128xf32>
    %c145 = arith.constant 145 : index
    %c0_38 = arith.constant 0 : index
    %46 = tpu.strided_load %arg7[%c145, %c0_38] {strides = array<i32: 2, 1>} : memref<648x128xf32, #tpu.memory_space<vmem>>, vector<8x128xf32>
    %c146 = arith.constant 146 : index
    %c0_39 = arith.constant 0 : index
    %47 = tpu.strided_load %arg7[%c146, %c0_39] {strides = array<i32: 2, 1>} : memref<648x128xf32, #tpu.memory_space<vmem>>, vector<8x128xf32>
    %48 = arith.maximumf %44, %45 : vector<8x128xf32>
    %49 = arith.maximumf %46, %47 : vector<8x128xf32>
    %50 = arith.maximumf %48, %49 : vector<8x128xf32>
    %c52 = arith.constant 52 : index
    %c0_40 = arith.constant 0 : index
    %51 = vector.load %arg11[%c52, %c0_40] : memref<222x128xf32, #tpu.memory_space<vmem>>, vector<8x128xf32>
    tpu.vector_store %arg11[%c52, %c0_40], %50 {strides = array<i32>} : memref<222x128xf32, #tpu.memory_space<vmem>>, vector<8x128xf32>,
    %c163 = arith.constant 163 : index
    %c0_41 = arith.constant 0 : index
    %52 = tpu.strided_load %arg7[%c163, %c0_41] {strides = array<i32: 2, 1>} : memref<648x128xf32, #tpu.memory_space<vmem>>, vector<8x128xf32>
    %c164 = arith.constant 164 : index
    %c0_42 = arith.constant 0 : index
    %53 = tpu.strided_load %arg7[%c164, %c0_42] {strides = array<i32: 2, 1>} : memref<648x128xf32, #tpu.memory_space<vmem>>, vector<8x128xf32>
    %c181 = arith.constant 181 : index
    %c0_43 = arith.constant 0 : index
    %54 = tpu.strided_load %arg7[%c181, %c0_43] {strides = array<i32: 2, 1>} : memref<648x128xf32, #tpu.memory_space<vmem>>, vector<8x128xf32>
    %c182 = arith.constant 182 : index
    %c0_44 = arith.constant 0 : index
    %55 = tpu.strided_load %arg7[%c182, %c0_44] {strides = array<i32: 2, 1>} : memref<648x128xf32, #tpu.memory_space<vmem>>, vector<8x128xf32>
    %56 = arith.maximumf %52, %53 : vector<8x128xf32>
    %57 = arith.maximumf %54, %55 : vector<8x128xf32>
    %58 = arith.maximumf %56, %57 : vector<8x128xf32>
    %c62 = arith.constant 62 : index
    %c0_45 = arith.constant 0 : index
    %59 = vector.load %arg11[%c62, %c0_45] : memref<222x128xf32, #tpu.memory_space<vmem>>, vector<8x128xf32>
    tpu.vector_store %arg11[%c62, %c0_45], %58 {strides = array<i32>} : memref<222x128xf32, #tpu.memory_space<vmem>>, vector<8x128xf32>,
    %c199 = arith.constant 199 : index
    %c0_46 = arith.constant 0 : index
    %60 = tpu.strided_load %arg7[%c199, %c0_46] {strides = array<i32: 2, 1>} : memref<648x128xf32, #tpu.memory_space<vmem>>, vector<8x128xf32>
    %c200 = arith.constant 200 : index
    %c0_47 = arith.constant 0 : index
    %61 = tpu.strided_load %arg7[%c200, %c0_47] {strides = array<i32: 2, 1>} : memref<648x128xf32, #tpu.memory_space<vmem>>, vector<8x128xf32>
    %c217 = arith.constant 217 : index
    %c0_48 = arith.constant 0 : index
    %62 = tpu.strided_load %arg7[%c217, %c0_48] {strides = array<i32: 2, 1>} : memref<648x128xf32, #tpu.memory_space<vmem>>, vector<8x128xf32>
    %c218 = arith.constant 218 : index
    %c0_49 = arith.constant 0 : index
    %63 = tpu.strided_load %arg7[%c218, %c0_49] {strides = array<i32: 2, 1>} : memref<648x128xf32, #tpu.memory_space<vmem>>, vector<8x128xf32>
    %64 = arith.maximumf %60, %61 : vector<8x128xf32>
    %65 = arith.maximumf %62, %63 : vector<8x128xf32>
    %66 = arith.maximumf %64, %65 : vector<8x128xf32>
    %c72 = arith.constant 72 : index
    %c0_50 = arith.constant 0 : index
    %67 = vector.load %arg11[%c72, %c0_50] : memref<222x128xf32, #tpu.memory_space<vmem>>, vector<8x128xf32>
    tpu.vector_store %arg11[%c72, %c0_50], %66 {strides = array<i32>} : memref<222x128xf32, #tpu.memory_space<vmem>>, vector<8x128xf32>,
    %c235 = arith.constant 235 : index
    %c0_51 = arith.constant 0 : index
    %68 = tpu.strided_load %arg7[%c235, %c0_51] {strides = array<i32: 2, 1>} : memref<648x128xf32, #tpu.memory_space<vmem>>, vector<8x128xf32>
    %c236 = arith.constant 236 : index
    %c0_52 = arith.constant 0 : index
    %69 = tpu.strided_load %arg7[%c236, %c0_52] {strides = array<i32: 2, 1>} : memref<648x128xf32, #tpu.memory_space<vmem>>, vector<8x128xf32>
    %c253 = arith.constant 253 : index
    %c0_53 = arith.constant 0 : index
    %70 = tpu.strided_load %arg7[%c253, %c0_53] {strides = array<i32: 2, 1>} : memref<648x128xf32, #tpu.memory_space<vmem>>, vector<8x128xf32>
    %c254 = arith.constant 254 : index
    %c0_54 = arith.constant 0 : index
    %71 = tpu.strided_load %arg7[%c254, %c0_54] {strides = array<i32: 2, 1>} : memref<648x128xf32, #tpu.memory_space<vmem>>, vector<8x128xf32>
    %72 = arith.maximumf %68, %69 : vector<8x128xf32>
    %73 = arith.maximumf %70, %71 : vector<8x128xf32>
    %74 = arith.maximumf %72, %73 : vector<8x128xf32>
    %c82 = arith.constant 82 : index
    %c0_55 = arith.constant 0 : index
    %75 = vector.load %arg11[%c82, %c0_55] : memref<222x128xf32, #tpu.memory_space<vmem>>, vector<8x128xf32>
    tpu.vector_store %arg11[%c82, %c0_55], %74 {strides = array<i32>} : memref<222x128xf32, #tpu.memory_space<vmem>>, vector<8x128xf32>,
    %c271 = arith.constant 271 : index
    %c0_56 = arith.constant 0 : index
    %76 = tpu.strided_load %arg7[%c271, %c0_56] {strides = array<i32: 2, 1>} : memref<648x128xf32, #tpu.memory_space<vmem>>, vector<8x128xf32>
    %c272 = arith.constant 272 : index
    %c0_57 = arith.constant 0 : index
    %77 = tpu.strided_load %arg7[%c272, %c0_57] {strides = array<i32: 2, 1>} : memref<648x128xf32, #tpu.memory_space<vmem>>, vector<8x128xf32>
    %c289 = arith.constant 289 : index
    %c0_58 = arith.constant 0 : index
    %78 = tpu.strided_load %arg7[%c289, %c0_58] {strides = array<i32: 2, 1>} : memref<648x128xf32, #tpu.memory_space<vmem>>, vector<8x128xf32>
    %c290 = arith.constant 290 : index
    %c0_59 = arith.constant 0 : index
    %79 = tpu.strided_load %arg7[%c290, %c0_59] {strides = array<i32: 2, 1>} : memref<648x128xf32, #tpu.memory_space<vmem>>, vector<8x128xf32>
    %80 = arith.maximumf %76, %77 : vector<8x128xf32>
    %81 = arith.maximumf %78, %79 : vector<8x128xf32>
    %82 = arith.maximumf %80, %81 : vector<8x128xf32>
    %c92_60 = arith.constant 92 : index
    %c0_61 = arith.constant 0 : index
    %83 = vector.load %arg11[%c92_60, %c0_61] : memref<222x128xf32, #tpu.memory_space<vmem>>, vector<8x128xf32>
    tpu.vector_store %arg11[%c92_60, %c0_61], %82 {strides = array<i32>} : memref<222x128xf32, #tpu.memory_space<vmem>>, vector<8x128xf32>,
    %c343 = arith.constant 343 : index
    %c0_62 = arith.constant 0 : index
    %84 = tpu.strided_load %arg7[%c343, %c0_62] {strides = array<i32: 2, 1>} : memref<648x128xf32, #tpu.memory_space<vmem>>, vector<8x128xf32>
    %c344 = arith.constant 344 : index
    %c0_63 = arith.constant 0 : index
    %85 = tpu.strided_load %arg7[%c344, %c0_63] {strides = array<i32: 2, 1>} : memref<648x128xf32, #tpu.memory_space<vmem>>, vector<8x128xf32>
    %c361 = arith.constant 361 : index
    %c0_64 = arith.constant 0 : index
    %86 = tpu.strided_load %arg7[%c361, %c0_64] {strides = array<i32: 2, 1>} : memref<648x128xf32, #tpu.memory_space<vmem>>, vector<8x128xf32>
    %c362 = arith.constant 362 : index
    %c0_65 = arith.constant 0 : index
    %87 = tpu.strided_load %arg7[%c362, %c0_65] {strides = array<i32: 2, 1>} : memref<648x128xf32, #tpu.memory_space<vmem>>, vector<8x128xf32>
    %88 = arith.maximumf %84, %85 : vector<8x128xf32>
    %89 = arith.maximumf %86, %87 : vector<8x128xf32>
    %90 = arith.maximumf %88, %89 : vector<8x128xf32>
    %c122 = arith.constant 122 : index
    %c0_66 = arith.constant 0 : index
    %91 = vector.load %arg11[%c122, %c0_66] : memref<222x128xf32, #tpu.memory_space<vmem>>, vector<8x128xf32>
    tpu.vector_store %arg11[%c122, %c0_66], %90 {strides = array<i32>} : memref<222x128xf32, #tpu.memory_space<vmem>>, vector<8x128xf32>,
    %c379 = arith.constant 379 : index
    %c0_67 = arith.constant 0 : index
    %92 = tpu.strided_load %arg7[%c379, %c0_67] {strides = array<i32: 2, 1>} : memref<648x128xf32, #tpu.memory_space<vmem>>, vector<8x128xf32>
    %c380 = arith.constant 380 : index
    %c0_68 = arith.constant 0 : index
    %93 = tpu.strided_load %arg7[%c380, %c0_68] {strides = array<i32: 2, 1>} : memref<648x128xf32, #tpu.memory_space<vmem>>, vector<8x128xf32>
    %c397 = arith.constant 397 : index
    %c0_69 = arith.constant 0 : index
    %94 = tpu.strided_load %arg7[%c397, %c0_69] {strides = array<i32: 2, 1>} : memref<648x128xf32, #tpu.memory_space<vmem>>, vector<8x128xf32>
    %c398 = arith.constant 398 : index
    %c0_70 = arith.constant 0 : index
    %95 = tpu.strided_load %arg7[%c398, %c0_70] {strides = array<i32: 2, 1>} : memref<648x128xf32, #tpu.memory_space<vmem>>, vector<8x128xf32>
    %96 = arith.maximumf %92, %93 : vector<8x128xf32>
    %97 = arith.maximumf %94, %95 : vector<8x128xf32>
    %98 = arith.maximumf %96, %97 : vector<8x128xf32>
    %c132 = arith.constant 132 : index
    %c0_71 = arith.constant 0 : index
    %99 = vector.load %arg11[%c132, %c0_71] : memref<222x128xf32, #tpu.memory_space<vmem>>, vector<8x128xf32>
    tpu.vector_store %arg11[%c132, %c0_71], %98 {strides = array<i32>} : memref<222x128xf32, #tpu.memory_space<vmem>>, vector<8x128xf32>,
    %c415 = arith.constant 415 : index
    %c0_72 = arith.constant 0 : index
    %100 = tpu.strided_load %arg7[%c415, %c0_72] {strides = array<i32: 2, 1>} : memref<648x128xf32, #tpu.memory_space<vmem>>, vector<8x128xf32>
    %c416 = arith.constant 416 : index
    %c0_73 = arith.constant 0 : index
    %101 = tpu.strided_load %arg7[%c416, %c0_73] {strides = array<i32: 2, 1>} : memref<648x128xf32, #tpu.memory_space<vmem>>, vector<8x128xf32>
    %c433 = arith.constant 433 : index
    %c0_74 = arith.constant 0 : index
    %102 = tpu.strided_load %arg7[%c433, %c0_74] {strides = array<i32: 2, 1>} : memref<648x128xf32, #tpu.memory_space<vmem>>, vector<8x128xf32>
    %c434 = arith.constant 434 : index
    %c0_75 = arith.constant 0 : index
    %103 = tpu.strided_load %arg7[%c434, %c0_75] {strides = array<i32: 2, 1>} : memref<648x128xf32, #tpu.memory_space<vmem>>, vector<8x128xf32>
    %104 = arith.maximumf %100, %101 : vector<8x128xf32>
    %105 = arith.maximumf %102, %103 : vector<8x128xf32>
    %106 = arith.maximumf %104, %105 : vector<8x128xf32>
    %c142 = arith.constant 142 : index
    %c0_76 = arith.constant 0 : index
    %107 = vector.load %arg11[%c142, %c0_76] : memref<222x128xf32, #tpu.memory_space<vmem>>, vector<8x128xf32>
    tpu.vector_store %arg11[%c142, %c0_76], %106 {strides = array<i32>} : memref<222x128xf32, #tpu.memory_space<vmem>>, vector<8x128xf32>,
    %c451 = arith.constant 451 : index
    %c0_77 = arith.constant 0 : index
    %108 = tpu.strided_load %arg7[%c451, %c0_77] {strides = array<i32: 2, 1>} : memref<648x128xf32, #tpu.memory_space<vmem>>, vector<8x128xf32>
    %c452 = arith.constant 452 : index
    %c0_78 = arith.constant 0 : index
    %109 = tpu.strided_load %arg7[%c452, %c0_78] {strides = array<i32: 2, 1>} : memref<648x128xf32, #tpu.memory_space<vmem>>, vector<8x128xf32>
    %c469 = arith.constant 469 : index
    %c0_79 = arith.constant 0 : index
    %110 = tpu.strided_load %arg7[%c469, %c0_79] {strides = array<i32: 2, 1>} : memref<648x128xf32, #tpu.memory_space<vmem>>, vector<8x128xf32>
    %c470 = arith.constant 470 : index
    %c0_80 = arith.constant 0 : index
    %111 = tpu.strided_load %arg7[%c470, %c0_80] {strides = array<i32: 2, 1>} : memref<648x128xf32, #tpu.memory_space<vmem>>, vector<8x128xf32>
    %112 = arith.maximumf %108, %109 : vector<8x128xf32>
    %113 = arith.maximumf %110, %111 : vector<8x128xf32>
    %114 = arith.maximumf %112, %113 : vector<8x128xf32>
    %c152 = arith.constant 152 : index
    %c0_81 = arith.constant 0 : index
    %115 = vector.load %arg11[%c152, %c0_81] : memref<222x128xf32, #tpu.memory_space<vmem>>, vector<8x128xf32>
    tpu.vector_store %arg11[%c152, %c0_81], %114 {strides = array<i32>} : memref<222x128xf32, #tpu.memory_space<vmem>>, vector<8x128xf32>,
    %c487 = arith.constant 487 : index
    %c0_82 = arith.constant 0 : index
    %116 = tpu.strided_load %arg7[%c487, %c0_82] {strides = array<i32: 2, 1>} : memref<648x128xf32, #tpu.memory_space<vmem>>, vector<8x128xf32>
    %c488 = arith.constant 488 : index
    %c0_83 = arith.constant 0 : index
    %117 = tpu.strided_load %arg7[%c488, %c0_83] {strides = array<i32: 2, 1>} : memref<648x128xf32, #tpu.memory_space<vmem>>, vector<8x128xf32>
    %c505 = arith.constant 505 : index
    %c0_84 = arith.constant 0 : index
    %118 = tpu.strided_load %arg7[%c505, %c0_84] {strides = array<i32: 2, 1>} : memref<648x128xf32, #tpu.memory_space<vmem>>, vector<8x128xf32>
    %c506 = arith.constant 506 : index
    %c0_85 = arith.constant 0 : index
    %119 = tpu.strided_load %arg7[%c506, %c0_85] {strides = array<i32: 2, 1>} : memref<648x128xf32, #tpu.memory_space<vmem>>, vector<8x128xf32>
    %120 = arith.maximumf %116, %117 : vector<8x128xf32>
    %121 = arith.maximumf %118, %119 : vector<8x128xf32>
    %122 = arith.maximumf %120, %121 : vector<8x128xf32>
    %c162 = arith.constant 162 : index
    %c0_86 = arith.constant 0 : index
    %123 = vector.load %arg11[%c162, %c0_86] : memref<222x128xf32, #tpu.memory_space<vmem>>, vector<8x128xf32>
    tpu.vector_store %arg11[%c162, %c0_86], %122 {strides = array<i32>} : memref<222x128xf32, #tpu.memory_space<vmem>>, vector<8x128xf32>,
    %c523 = arith.constant 523 : index
    %c0_87 = arith.constant 0 : index
    %124 = tpu.strided_load %arg7[%c523, %c0_87] {strides = array<i32: 2, 1>} : memref<648x128xf32, #tpu.memory_space<vmem>>, vector<8x128xf32>
    %c524 = arith.constant 524 : index
    %c0_88 = arith.constant 0 : index
    %125 = tpu.strided_load %arg7[%c524, %c0_88] {strides = array<i32: 2, 1>} : memref<648x128xf32, #tpu.memory_space<vmem>>, vector<8x128xf32>
    %c541 = arith.constant 541 : index
    %c0_89 = arith.constant 0 : index
    %126 = tpu.strided_load %arg7[%c541, %c0_89] {strides = array<i32: 2, 1>} : memref<648x128xf32, #tpu.memory_space<vmem>>, vector<8x128xf32>
    %c542 = arith.constant 542 : index
    %c0_90 = arith.constant 0 : index
    %127 = tpu.strided_load %arg7[%c542, %c0_90] {strides = array<i32: 2, 1>} : memref<648x128xf32, #tpu.memory_space<vmem>>, vector<8x128xf32>
    %128 = arith.maximumf %124, %125 : vector<8x128xf32>
    %129 = arith.maximumf %126, %127 : vector<8x128xf32>
    %130 = arith.maximumf %128, %129 : vector<8x128xf32>
    %c172 = arith.constant 172 : index
    %c0_91 = arith.constant 0 : index
    %131 = vector.load %arg11[%c172, %c0_91] : memref<222x128xf32, #tpu.memory_space<vmem>>, vector<8x128xf32>
    tpu.vector_store %arg11[%c172, %c0_91], %130 {strides = array<i32>} : memref<222x128xf32, #tpu.memory_space<vmem>>, vector<8x128xf32>,
    %c559 = arith.constant 559 : index
    %c0_92 = arith.constant 0 : index
    %132 = tpu.strided_load %arg7[%c559, %c0_92] {strides = array<i32: 2, 1>} : memref<648x128xf32, #tpu.memory_space<vmem>>, vector<8x128xf32>
    %c560 = arith.constant 560 : index
    %c0_93 = arith.constant 0 : index
    %133 = tpu.strided_load %arg7[%c560, %c0_93] {strides = array<i32: 2, 1>} : memref<648x128xf32, #tpu.memory_space<vmem>>, vector<8x128xf32>
    %c577 = arith.constant 577 : index
    %c0_94 = arith.constant 0 : index
    %134 = tpu.strided_load %arg7[%c577, %c0_94] {strides = array<i32: 2, 1>} : memref<648x128xf32, #tpu.memory_space<vmem>>, vector<8x128xf32>
    %c578 = arith.constant 578 : index
    %c0_95 = arith.constant 0 : index
    %135 = tpu.strided_load %arg7[%c578, %c0_95] {strides = array<i32: 2, 1>} : memref<648x128xf32, #tpu.memory_space<vmem>>, vector<8x128xf32>
    %136 = arith.maximumf %132, %133 : vector<8x128xf32>
    %137 = arith.maximumf %134, %135 : vector<8x128xf32>
    %138 = arith.maximumf %136, %137 : vector<8x128xf32>
    %c182_96 = arith.constant 182 : index
    %c0_97 = arith.constant 0 : index
    %139 = vector.load %arg11[%c182_96, %c0_97] : memref<222x128xf32, #tpu.memory_space<vmem>>, vector<8x128xf32>
    tpu.vector_store %arg11[%c182_96, %c0_97], %138 {strides = array<i32>} : memref<222x128xf32, #tpu.memory_space<vmem>>, vector<8x128xf32>,
    %c595 = arith.constant 595 : index
    %c0_98 = arith.constant 0 : index
    %140 = tpu.strided_load %arg7[%c595, %c0_98] {strides = array<i32: 2, 1>} : memref<648x128xf32, #tpu.memory_space<vmem>>, vector<8x128xf32>
    %c596 = arith.constant 596 : index
    %c0_99 = arith.constant 0 : index
    %141 = tpu.strided_load %arg7[%c596, %c0_99] {strides = array<i32: 2, 1>} : memref<648x128xf32, #tpu.memory_space<vmem>>, vector<8x128xf32>
    %c613 = arith.constant 613 : index
    %c0_100 = arith.constant 0 : index
    %142 = tpu.strided_load %arg7[%c613, %c0_100] {strides = array<i32: 2, 1>} : memref<648x128xf32, #tpu.memory_space<vmem>>, vector<8x128xf32>
    %c614 = arith.constant 614 : index
    %c0_101 = arith.constant 0 : index
    %143 = tpu.strided_load %arg7[%c614, %c0_101] {strides = array<i32: 2, 1>} : memref<648x128xf32, #tpu.memory_space<vmem>>, vector<8x128xf32>
    %144 = arith.maximumf %140, %141 : vector<8x128xf32>
    %145 = arith.maximumf %142, %143 : vector<8x128xf32>
    %146 = arith.maximumf %144, %145 : vector<8x128xf32>
    %c192 = arith.constant 192 : index
    %c0_102 = arith.constant 0 : index
    %147 = vector.load %arg11[%c192, %c0_102] : memref<222x128xf32, #tpu.memory_space<vmem>>, vector<8x128xf32>
    tpu.vector_store %arg11[%c192, %c0_102], %146 {strides = array<i32>} : memref<222x128xf32, #tpu.memory_space<vmem>>, vector<8x128xf32>,
    %c1 = arith.constant 1 : index
    %c0_103 = arith.constant 0 : index
    %c0_104 = arith.constant 0 : index
    %148 = vector.load %arg4[%c1, %c0_103, %c0_104] : memref<4x1x128xf32, #tpu.memory_space<vmem>>, vector<1x1x128xf32>
    %149 = vector.shape_cast %148 : vector<1x1x128xf32> to vector<1x128xf32>
    %c1_105 = arith.constant 1 : index
    %c0_106 = arith.constant 0 : index
    %c0_107 = arith.constant 0 : index
    %150 = vector.load %arg5[%c1_105, %c0_106, %c0_107] : memref<4x1x128xf32, #tpu.memory_space<vmem>>, vector<1x1x128xf32>
    %151 = vector.shape_cast %150 : vector<1x1x128xf32> to vector<1x128xf32>
    %cst_108 = arith.constant 0.000000e+00 : f32
    %152 = vector.broadcast %cst_108 : f32 to vector<200x128xf32>
    %c0_109 = arith.constant 0 : index
    %c0_110 = arith.constant 0 : index
    %153 = vector.load %arg11[%c0_109, %c0_110] : memref<222x128xf32, #tpu.memory_space<vmem>>, vector<200x128xf32>
    %154 = arith.truncf %153 : vector<200x128xf32> to vector<200x128xbf16>
    %c0_111 = arith.constant 0 : index
    %c0_112 = arith.constant 0 : index
    %c0_113 = arith.constant 0 : index
    %c0_114 = arith.constant 0 : index
    %155 = vector.load %arg3[%c0_111, %c0_112, %c0_113, %c0_114] : memref<3x9x128x128xbf16, #tpu.memory_space<vmem>>, vector<1x1x128x128xbf16>
    %156 = vector.shape_cast %155 : vector<1x1x128x128xbf16> to vector<128x128xbf16>
    %cst_115 = arith.constant dense<0.000000e+00> : vector<200x128xf32>
    %157 = tpu.matmul %154, %156, %cst_115 {dimension_numbers = #tpu.dot_dimension_numbers<[1], [0], [0], [1], [0, 0, 1, 1], [], []>} : vector<200x128xbf16>, vector<128x128xbf16>, vector<200x128xf32> -> vector<200x128xf32>
    %158 = arith.addf %152, %157 : vector<200x128xf32>
    %c1_116 = arith.constant 1 : index
    %c0_117 = arith.constant 0 : index
    %159 = vector.load %arg11[%c1_116, %c0_117] : memref<222x128xf32, #tpu.memory_space<vmem>>, vector<200x128xf32>
    %160 = arith.truncf %159 : vector<200x128xf32> to vector<200x128xbf16>
    %c0_118 = arith.constant 0 : index
    %c1_119 = arith.constant 1 : index
    %c0_120 = arith.constant 0 : index
    %c0_121 = arith.constant 0 : index
    %161 = vector.load %arg3[%c0_118, %c1_119, %c0_120, %c0_121] : memref<3x9x128x128xbf16, #tpu.memory_space<vmem>>, vector<1x1x128x128xbf16>
    %162 = vector.shape_cast %161 : vector<1x1x128x128xbf16> to vector<128x128xbf16>
    %cst_122 = arith.constant dense<0.000000e+00> : vector<200x128xf32>
    %163 = tpu.matmul %160, %162, %cst_122 {dimension_numbers = #tpu.dot_dimension_numbers<[1], [0], [0], [1], [0, 0, 1, 1], [], []>} : vector<200x128xbf16>, vector<128x128xbf16>, vector<200x128xf32> -> vector<200x128xf32>
    %164 = arith.addf %158, %163 : vector<200x128xf32>
    %c2 = arith.constant 2 : index
    %c0_123 = arith.constant 0 : index
    %165 = vector.load %arg11[%c2, %c0_123] : memref<222x128xf32, #tpu.memory_space<vmem>>, vector<200x128xf32>
    %166 = arith.truncf %165 : vector<200x128xf32> to vector<200x128xbf16>
    %c0_124 = arith.constant 0 : index
    %c2_125 = arith.constant 2 : index
    %c0_126 = arith.constant 0 : index
    %c0_127 = arith.constant 0 : index
    %167 = vector.load %arg3[%c0_124, %c2_125, %c0_126, %c0_127] : memref<3x9x128x128xbf16, #tpu.memory_space<vmem>>, vector<1x1x128x128xbf16>
    %168 = vector.shape_cast %167 : vector<1x1x128x128xbf16> to vector<128x128xbf16>
    %cst_128 = arith.constant dense<0.000000e+00> : vector<200x128xf32>
    %169 = tpu.matmul %166, %168, %cst_128 {dimension_numbers = #tpu.dot_dimension_numbers<[1], [0], [0], [1], [0, 0, 1, 1], [], []>} : vector<200x128xbf16>, vector<128x128xbf16>, vector<200x128xf32> -> vector<200x128xf32>
    %170 = arith.addf %164, %169 : vector<200x128xf32>
    %c10 = arith.constant 10 : index
    %c0_129 = arith.constant 0 : index
    %171 = vector.load %arg11[%c10, %c0_129] : memref<222x128xf32, #tpu.memory_space<vmem>>, vector<200x128xf32>
    %172 = arith.truncf %171 : vector<200x128xf32> to vector<200x128xbf16>
    %c0_130 = arith.constant 0 : index
    %c3 = arith.constant 3 : index
    %c0_131 = arith.constant 0 : index
    %c0_132 = arith.constant 0 : index
    %173 = vector.load %arg3[%c0_130, %c3, %c0_131, %c0_132] : memref<3x9x128x128xbf16, #tpu.memory_space<vmem>>, vector<1x1x128x128xbf16>
    %174 = vector.shape_cast %173 : vector<1x1x128x128xbf16> to vector<128x128xbf16>
    %cst_133 = arith.constant dense<0.000000e+00> : vector<200x128xf32>
    %175 = tpu.matmul %172, %174, %cst_133 {dimension_numbers = #tpu.dot_dimension_numbers<[1], [0], [0], [1], [0, 0, 1, 1], [], []>} : vector<200x128xbf16>, vector<128x128xbf16>, vector<200x128xf32> -> vector<200x128xf32>
    %176 = arith.addf %170, %175 : vector<200x128xf32>
    %c11 = arith.constant 11 : index
    %c0_134 = arith.constant 0 : index
    %177 = vector.load %arg11[%c11, %c0_134] : memref<222x128xf32, #tpu.memory_space<vmem>>, vector<200x128xf32>
    %178 = arith.truncf %177 : vector<200x128xf32> to vector<200x128xbf16>
    %c0_135 = arith.constant 0 : index
    %c4 = arith.constant 4 : index
    %c0_136 = arith.constant 0 : index
    %c0_137 = arith.constant 0 : index
    %179 = vector.load %arg3[%c0_135, %c4, %c0_136, %c0_137] : memref<3x9x128x128xbf16, #tpu.memory_space<vmem>>, vector<1x1x128x128xbf16>
    %180 = vector.shape_cast %179 : vector<1x1x128x128xbf16> to vector<128x128xbf16>
    %cst_138 = arith.constant dense<0.000000e+00> : vector<200x128xf32>
    %181 = tpu.matmul %178, %180, %cst_138 {dimension_numbers = #tpu.dot_dimension_numbers<[1], [0], [0], [1], [0, 0, 1, 1], [], []>} : vector<200x128xbf16>, vector<128x128xbf16>, vector<200x128xf32> -> vector<200x128xf32>
    %182 = arith.addf %176, %181 : vector<200x128xf32>
    %c12 = arith.constant 12 : index
    %c0_139 = arith.constant 0 : index
    %183 = vector.load %arg11[%c12, %c0_139] : memref<222x128xf32, #tpu.memory_space<vmem>>, vector<200x128xf32>
    %184 = arith.truncf %183 : vector<200x128xf32> to vector<200x128xbf16>
    %c0_140 = arith.constant 0 : index
    %c5 = arith.constant 5 : index
    %c0_141 = arith.constant 0 : index
    %c0_142 = arith.constant 0 : index
    %185 = vector.load %arg3[%c0_140, %c5, %c0_141, %c0_142] : memref<3x9x128x128xbf16, #tpu.memory_space<vmem>>, vector<1x1x128x128xbf16>
    %186 = vector.shape_cast %185 : vector<1x1x128x128xbf16> to vector<128x128xbf16>
    %cst_143 = arith.constant dense<0.000000e+00> : vector<200x128xf32>
    %187 = tpu.matmul %184, %186, %cst_143 {dimension_numbers = #tpu.dot_dimension_numbers<[1], [0], [0], [1], [0, 0, 1, 1], [], []>} : vector<200x128xbf16>, vector<128x128xbf16>, vector<200x128xf32> -> vector<200x128xf32>
    %188 = arith.addf %182, %187 : vector<200x128xf32>
    %c20_144 = arith.constant 20 : index
    %c0_145 = arith.constant 0 : index
    %189 = vector.load %arg11[%c20_144, %c0_145] : memref<222x128xf32, #tpu.memory_space<vmem>>, vector<200x128xf32>
    %190 = arith.truncf %189 : vector<200x128xf32> to vector<200x128xbf16>
    %c0_146 = arith.constant 0 : index
    %c6 = arith.constant 6 : index
    %c0_147 = arith.constant 0 : index
    %c0_148 = arith.constant 0 : index
    %191 = vector.load %arg3[%c0_146, %c6, %c0_147, %c0_148] : memref<3x9x128x128xbf16, #tpu.memory_space<vmem>>, vector<1x1x128x128xbf16>
    %192 = vector.shape_cast %191 : vector<1x1x128x128xbf16> to vector<128x128xbf16>
    %cst_149 = arith.constant dense<0.000000e+00> : vector<200x128xf32>
    %193 = tpu.matmul %190, %192, %cst_149 {dimension_numbers = #tpu.dot_dimension_numbers<[1], [0], [0], [1], [0, 0, 1, 1], [], []>} : vector<200x128xbf16>, vector<128x128xbf16>, vector<200x128xf32> -> vector<200x128xf32>
    %194 = arith.addf %188, %193 : vector<200x128xf32>
    %c21 = arith.constant 21 : index
    %c0_150 = arith.constant 0 : index
    %195 = vector.load %arg11[%c21, %c0_150] : memref<222x128xf32, #tpu.memory_space<vmem>>, vector<200x128xf32>
    %196 = arith.truncf %195 : vector<200x128xf32> to vector<200x128xbf16>
    %c0_151 = arith.constant 0 : index
    %c7 = arith.constant 7 : index
    %c0_152 = arith.constant 0 : index
    %c0_153 = arith.constant 0 : index
    %197 = vector.load %arg3[%c0_151, %c7, %c0_152, %c0_153] : memref<3x9x128x128xbf16, #tpu.memory_space<vmem>>, vector<1x1x128x128xbf16>
    %198 = vector.shape_cast %197 : vector<1x1x128x128xbf16> to vector<128x128xbf16>
    %cst_154 = arith.constant dense<0.000000e+00> : vector<200x128xf32>
    %199 = tpu.matmul %196, %198, %cst_154 {dimension_numbers = #tpu.dot_dimension_numbers<[1], [0], [0], [1], [0, 0, 1, 1], [], []>} : vector<200x128xbf16>, vector<128x128xbf16>, vector<200x128xf32> -> vector<200x128xf32>
    %200 = arith.addf %194, %199 : vector<200x128xf32>
    %c22_155 = arith.constant 22 : index
    %c0_156 = arith.constant 0 : index
    %201 = vector.load %arg11[%c22_155, %c0_156] : memref<222x128xf32, #tpu.memory_space<vmem>>, vector<200x128xf32>
    %202 = arith.truncf %201 : vector<200x128xf32> to vector<200x128xbf16>
    %c0_157 = arith.constant 0 : index
    %c8 = arith.constant 8 : index
    %c0_158 = arith.constant 0 : index
    %c0_159 = arith.constant 0 : index
    %203 = vector.load %arg3[%c0_157, %c8, %c0_158, %c0_159] : memref<3x9x128x128xbf16, #tpu.memory_space<vmem>>, vector<1x1x128x128xbf16>
    %204 = vector.shape_cast %203 : vector<1x1x128x128xbf16> to vector<128x128xbf16>
    %cst_160 = arith.constant dense<0.000000e+00> : vector<200x128xf32>
    %205 = tpu.matmul %202, %204, %cst_160 {dimension_numbers = #tpu.dot_dimension_numbers<[1], [0], [0], [1], [0, 0, 1, 1], [], []>} : vector<200x128xbf16>, vector<128x128xbf16>, vector<200x128xf32> -> vector<200x128xf32>
    %206 = arith.addf %200, %205 : vector<200x128xf32>
    %207 = vector.broadcast %149 : vector<1x128xf32> to vector<200x128xf32>
    %208 = arith.mulf %206, %207 : vector<200x128xf32>
    %209 = vector.broadcast %151 : vector<1x128xf32> to vector<200x128xf32>
    %210 = arith.addf %208, %209 : vector<200x128xf32>
    %cst_161 = arith.constant 0.000000e+00 : f32
    %211 = vector.broadcast %cst_161 : f32 to vector<200x128xf32>
    %212 = arith.maximumf %210, %211 : vector<200x128xf32>
    %c0_162 = arith.constant 0 : index
    %c0_163 = arith.constant 0 : index
    %213 = vector.load %arg8[%c0_162, %c0_163] : memref<200x128xf32, #tpu.memory_space<vmem>>, vector<200x128xf32>
    tpu.vector_store %arg8[%c0_162, %c0_163], %212 {strides = array<i32>} : memref<200x128xf32, #tpu.memory_space<vmem>>, vector<200x128xf32>,
    %c11_164 = arith.constant 11 : index
    %c0_165 = arith.constant 0 : index
    %214 = tpu.strided_load %arg8[%c11_164, %c0_165] {strides = array<i32: 2, 1>} : memref<200x128xf32, #tpu.memory_space<vmem>>, vector<4x128xf32>
    %c12_166 = arith.constant 12 : index
    %c0_167 = arith.constant 0 : index
    %215 = tpu.strided_load %arg8[%c12_166, %c0_167] {strides = array<i32: 2, 1>} : memref<200x128xf32, #tpu.memory_space<vmem>>, vector<4x128xf32>
    %c21_168 = arith.constant 21 : index
    %c0_169 = arith.constant 0 : index
    %216 = tpu.strided_load %arg8[%c21_168, %c0_169] {strides = array<i32: 2, 1>} : memref<200x128xf32, #tpu.memory_space<vmem>>, vector<4x128xf32>
    %c22_170 = arith.constant 22 : index
    %c0_171 = arith.constant 0 : index
    %217 = tpu.strided_load %arg8[%c22_170, %c0_171] {strides = array<i32: 2, 1>} : memref<200x128xf32, #tpu.memory_space<vmem>>, vector<4x128xf32>
    %218 = arith.maximumf %214, %215 : vector<4x128xf32>
    %219 = arith.maximumf %216, %217 : vector<4x128xf32>
    %220 = arith.maximumf %218, %219 : vector<4x128xf32>
    %c14 = arith.constant 14 : index
    %c0_172 = arith.constant 0 : index
    %221 = vector.load %arg12[%c14, %c0_172] : memref<86x128xf32, #tpu.memory_space<vmem>>, vector<4x128xf32>
    tpu.vector_store %arg12[%c14, %c0_172], %220 {strides = array<i32>} : memref<86x128xf32, #tpu.memory_space<vmem>>, vector<4x128xf32>,
    %c31 = arith.constant 31 : index
    %c0_173 = arith.constant 0 : index
    %222 = tpu.strided_load %arg8[%c31, %c0_173] {strides = array<i32: 2, 1>} : memref<200x128xf32, #tpu.memory_space<vmem>>, vector<4x128xf32>
    %c32_174 = arith.constant 32 : index
    %c0_175 = arith.constant 0 : index
    %223 = tpu.strided_load %arg8[%c32_174, %c0_175] {strides = array<i32: 2, 1>} : memref<200x128xf32, #tpu.memory_space<vmem>>, vector<4x128xf32>
    %c41 = arith.constant 41 : index
    %c0_176 = arith.constant 0 : index
    %224 = tpu.strided_load %arg8[%c41, %c0_176] {strides = array<i32: 2, 1>} : memref<200x128xf32, #tpu.memory_space<vmem>>, vector<4x128xf32>
    %c42_177 = arith.constant 42 : index
    %c0_178 = arith.constant 0 : index
    %225 = tpu.strided_load %arg8[%c42_177, %c0_178] {strides = array<i32: 2, 1>} : memref<200x128xf32, #tpu.memory_space<vmem>>, vector<4x128xf32>
    %226 = arith.maximumf %222, %223 : vector<4x128xf32>
    %227 = arith.maximumf %224, %225 : vector<4x128xf32>
    %228 = arith.maximumf %226, %227 : vector<4x128xf32>
    %c20_179 = arith.constant 20 : index
    %c0_180 = arith.constant 0 : index
    %229 = vector.load %arg12[%c20_179, %c0_180] : memref<86x128xf32, #tpu.memory_space<vmem>>, vector<4x128xf32>
    tpu.vector_store %arg12[%c20_179, %c0_180], %228 {strides = array<i32>} : memref<86x128xf32, #tpu.memory_space<vmem>>, vector<4x128xf32>,
    %c51 = arith.constant 51 : index
    %c0_181 = arith.constant 0 : index
    %230 = tpu.strided_load %arg8[%c51, %c0_181] {strides = array<i32: 2, 1>} : memref<200x128xf32, #tpu.memory_space<vmem>>, vector<4x128xf32>
    %c52_182 = arith.constant 52 : index
    %c0_183 = arith.constant 0 : index
    %231 = tpu.strided_load %arg8[%c52_182, %c0_183] {strides = array<i32: 2, 1>} : memref<200x128xf32, #tpu.memory_space<vmem>>, vector<4x128xf32>
    %c61 = arith.constant 61 : index
    %c0_184 = arith.constant 0 : index
    %232 = tpu.strided_load %arg8[%c61, %c0_184] {strides = array<i32: 2, 1>} : memref<200x128xf32, #tpu.memory_space<vmem>>, vector<4x128xf32>
    %c62_185 = arith.constant 62 : index
    %c0_186 = arith.constant 0 : index
    %233 = tpu.strided_load %arg8[%c62_185, %c0_186] {strides = array<i32: 2, 1>} : memref<200x128xf32, #tpu.memory_space<vmem>>, vector<4x128xf32>
    %234 = arith.maximumf %230, %231 : vector<4x128xf32>
    %235 = arith.maximumf %232, %233 : vector<4x128xf32>
    %236 = arith.maximumf %234, %235 : vector<4x128xf32>
    %c26 = arith.constant 26 : index
    %c0_187 = arith.constant 0 : index
    %237 = vector.load %arg12[%c26, %c0_187] : memref<86x128xf32, #tpu.memory_space<vmem>>, vector<4x128xf32>
    tpu.vector_store %arg12[%c26, %c0_187], %236 {strides = array<i32>} : memref<86x128xf32, #tpu.memory_space<vmem>>, vector<4x128xf32>,
    %c71 = arith.constant 71 : index
    %c0_188 = arith.constant 0 : index
    %238 = tpu.strided_load %arg8[%c71, %c0_188] {strides = array<i32: 2, 1>} : memref<200x128xf32, #tpu.memory_space<vmem>>, vector<4x128xf32>
    %c72_189 = arith.constant 72 : index
    %c0_190 = arith.constant 0 : index
    %239 = tpu.strided_load %arg8[%c72_189, %c0_190] {strides = array<i32: 2, 1>} : memref<200x128xf32, #tpu.memory_space<vmem>>, vector<4x128xf32>
    %c81 = arith.constant 81 : index
    %c0_191 = arith.constant 0 : index
    %240 = tpu.strided_load %arg8[%c81, %c0_191] {strides = array<i32: 2, 1>} : memref<200x128xf32, #tpu.memory_space<vmem>>, vector<4x128xf32>
    %c82_192 = arith.constant 82 : index
    %c0_193 = arith.constant 0 : index
    %241 = tpu.strided_load %arg8[%c82_192, %c0_193] {strides = array<i32: 2, 1>} : memref<200x128xf32, #tpu.memory_space<vmem>>, vector<4x128xf32>
    %242 = arith.maximumf %238, %239 : vector<4x128xf32>
    %243 = arith.maximumf %240, %241 : vector<4x128xf32>
    %244 = arith.maximumf %242, %243 : vector<4x128xf32>
    %c32_194 = arith.constant 32 : index
    %c0_195 = arith.constant 0 : index
    %245 = vector.load %arg12[%c32_194, %c0_195] : memref<86x128xf32, #tpu.memory_space<vmem>>, vector<4x128xf32>
    tpu.vector_store %arg12[%c32_194, %c0_195], %244 {strides = array<i32>} : memref<86x128xf32, #tpu.memory_space<vmem>>, vector<4x128xf32>,
    %c111 = arith.constant 111 : index
    %c0_196 = arith.constant 0 : index
    %246 = tpu.strided_load %arg8[%c111, %c0_196] {strides = array<i32: 2, 1>} : memref<200x128xf32, #tpu.memory_space<vmem>>, vector<4x128xf32>
    %c112 = arith.constant 112 : index
    %c0_197 = arith.constant 0 : index
    %247 = tpu.strided_load %arg8[%c112, %c0_197] {strides = array<i32: 2, 1>} : memref<200x128xf32, #tpu.memory_space<vmem>>, vector<4x128xf32>
    %c121 = arith.constant 121 : index
    %c0_198 = arith.constant 0 : index
    %248 = tpu.strided_load %arg8[%c121, %c0_198] {strides = array<i32: 2, 1>} : memref<200x128xf32, #tpu.memory_space<vmem>>, vector<4x128xf32>
    %c122_199 = arith.constant 122 : index
    %c0_200 = arith.constant 0 : index
    %249 = tpu.strided_load %arg8[%c122_199, %c0_200] {strides = array<i32: 2, 1>} : memref<200x128xf32, #tpu.memory_space<vmem>>, vector<4x128xf32>
    %250 = arith.maximumf %246, %247 : vector<4x128xf32>
    %251 = arith.maximumf %248, %249 : vector<4x128xf32>
    %252 = arith.maximumf %250, %251 : vector<4x128xf32>
    %c50 = arith.constant 50 : index
    %c0_201 = arith.constant 0 : index
    %253 = vector.load %arg12[%c50, %c0_201] : memref<86x128xf32, #tpu.memory_space<vmem>>, vector<4x128xf32>
    tpu.vector_store %arg12[%c50, %c0_201], %252 {strides = array<i32>} : memref<86x128xf32, #tpu.memory_space<vmem>>, vector<4x128xf32>,
    %c131 = arith.constant 131 : index
    %c0_202 = arith.constant 0 : index
    %254 = tpu.strided_load %arg8[%c131, %c0_202] {strides = array<i32: 2, 1>} : memref<200x128xf32, #tpu.memory_space<vmem>>, vector<4x128xf32>
    %c132_203 = arith.constant 132 : index
    %c0_204 = arith.constant 0 : index
    %255 = tpu.strided_load %arg8[%c132_203, %c0_204] {strides = array<i32: 2, 1>} : memref<200x128xf32, #tpu.memory_space<vmem>>, vector<4x128xf32>
    %c141 = arith.constant 141 : index
    %c0_205 = arith.constant 0 : index
    %256 = tpu.strided_load %arg8[%c141, %c0_205] {strides = array<i32: 2, 1>} : memref<200x128xf32, #tpu.memory_space<vmem>>, vector<4x128xf32>
    %c142_206 = arith.constant 142 : index
    %c0_207 = arith.constant 0 : index
    %257 = tpu.strided_load %arg8[%c142_206, %c0_207] {strides = array<i32: 2, 1>} : memref<200x128xf32, #tpu.memory_space<vmem>>, vector<4x128xf32>
    %258 = arith.maximumf %254, %255 : vector<4x128xf32>
    %259 = arith.maximumf %256, %257 : vector<4x128xf32>
    %260 = arith.maximumf %258, %259 : vector<4x128xf32>
    %c56_208 = arith.constant 56 : index
    %c0_209 = arith.constant 0 : index
    %261 = vector.load %arg12[%c56_208, %c0_209] : memref<86x128xf32, #tpu.memory_space<vmem>>, vector<4x128xf32>
    tpu.vector_store %arg12[%c56_208, %c0_209], %260 {strides = array<i32>} : memref<86x128xf32, #tpu.memory_space<vmem>>, vector<4x128xf32>,
    %c151 = arith.constant 151 : index
    %c0_210 = arith.constant 0 : index
    %262 = tpu.strided_load %arg8[%c151, %c0_210] {strides = array<i32: 2, 1>} : memref<200x128xf32, #tpu.memory_space<vmem>>, vector<4x128xf32>
    %c152_211 = arith.constant 152 : index
    %c0_212 = arith.constant 0 : index
    %263 = tpu.strided_load %arg8[%c152_211, %c0_212] {strides = array<i32: 2, 1>} : memref<200x128xf32, #tpu.memory_space<vmem>>, vector<4x128xf32>
    %c161 = arith.constant 161 : index
    %c0_213 = arith.constant 0 : index
    %264 = tpu.strided_load %arg8[%c161, %c0_213] {strides = array<i32: 2, 1>} : memref<200x128xf32, #tpu.memory_space<vmem>>, vector<4x128xf32>
    %c162_214 = arith.constant 162 : index
    %c0_215 = arith.constant 0 : index
    %265 = tpu.strided_load %arg8[%c162_214, %c0_215] {strides = array<i32: 2, 1>} : memref<200x128xf32, #tpu.memory_space<vmem>>, vector<4x128xf32>
    %266 = arith.maximumf %262, %263 : vector<4x128xf32>
    %267 = arith.maximumf %264, %265 : vector<4x128xf32>
    %268 = arith.maximumf %266, %267 : vector<4x128xf32>
    %c62_216 = arith.constant 62 : index
    %c0_217 = arith.constant 0 : index
    %269 = vector.load %arg12[%c62_216, %c0_217] : memref<86x128xf32, #tpu.memory_space<vmem>>, vector<4x128xf32>
    tpu.vector_store %arg12[%c62_216, %c0_217], %268 {strides = array<i32>} : memref<86x128xf32, #tpu.memory_space<vmem>>, vector<4x128xf32>,
    %c171 = arith.constant 171 : index
    %c0_218 = arith.constant 0 : index
    %270 = tpu.strided_load %arg8[%c171, %c0_218] {strides = array<i32: 2, 1>} : memref<200x128xf32, #tpu.memory_space<vmem>>, vector<4x128xf32>
    %c172_219 = arith.constant 172 : index
    %c0_220 = arith.constant 0 : index
    %271 = tpu.strided_load %arg8[%c172_219, %c0_220] {strides = array<i32: 2, 1>} : memref<200x128xf32, #tpu.memory_space<vmem>>, vector<4x128xf32>
    %c181_221 = arith.constant 181 : index
    %c0_222 = arith.constant 0 : index
    %272 = tpu.strided_load %arg8[%c181_221, %c0_222] {strides = array<i32: 2, 1>} : memref<200x128xf32, #tpu.memory_space<vmem>>, vector<4x128xf32>
    %c182_223 = arith.constant 182 : index
    %c0_224 = arith.constant 0 : index
    %273 = tpu.strided_load %arg8[%c182_223, %c0_224] {strides = array<i32: 2, 1>} : memref<200x128xf32, #tpu.memory_space<vmem>>, vector<4x128xf32>
    %274 = arith.maximumf %270, %271 : vector<4x128xf32>
    %275 = arith.maximumf %272, %273 : vector<4x128xf32>
    %276 = arith.maximumf %274, %275 : vector<4x128xf32>
    %c68 = arith.constant 68 : index
    %c0_225 = arith.constant 0 : index
    %277 = vector.load %arg12[%c68, %c0_225] : memref<86x128xf32, #tpu.memory_space<vmem>>, vector<4x128xf32>
    tpu.vector_store %arg12[%c68, %c0_225], %276 {strides = array<i32>} : memref<86x128xf32, #tpu.memory_space<vmem>>, vector<4x128xf32>,
    %c2_226 = arith.constant 2 : index
    %c0_227 = arith.constant 0 : index
    %c0_228 = arith.constant 0 : index
    %278 = vector.load %arg4[%c2_226, %c0_227, %c0_228] : memref<4x1x128xf32, #tpu.memory_space<vmem>>, vector<1x1x128xf32>
    %279 = vector.shape_cast %278 : vector<1x1x128xf32> to vector<1x128xf32>
    %c2_229 = arith.constant 2 : index
    %c0_230 = arith.constant 0 : index
    %c0_231 = arith.constant 0 : index
    %280 = vector.load %arg5[%c2_229, %c0_230, %c0_231] : memref<4x1x128xf32, #tpu.memory_space<vmem>>, vector<1x1x128xf32>
    %281 = vector.shape_cast %280 : vector<1x1x128xf32> to vector<1x128xf32>
    %cst_232 = arith.constant 0.000000e+00 : f32
    %282 = vector.broadcast %cst_232 : f32 to vector<72x128xf32>
    %c0_233 = arith.constant 0 : index
    %c0_234 = arith.constant 0 : index
    %283 = vector.load %arg12[%c0_233, %c0_234] : memref<86x128xf32, #tpu.memory_space<vmem>>, vector<72x128xf32>
    %284 = arith.truncf %283 : vector<72x128xf32> to vector<72x128xbf16>
    %c1_235 = arith.constant 1 : index
    %c0_236 = arith.constant 0 : index
    %c0_237 = arith.constant 0 : index
    %c0_238 = arith.constant 0 : index
    %285 = vector.load %arg3[%c1_235, %c0_236, %c0_237, %c0_238] : memref<3x9x128x128xbf16, #tpu.memory_space<vmem>>, vector<1x1x128x128xbf16>
    %286 = vector.shape_cast %285 : vector<1x1x128x128xbf16> to vector<128x128xbf16>
    %cst_239 = arith.constant dense<0.000000e+00> : vector<72x128xf32>
    %287 = tpu.matmul %284, %286, %cst_239 {dimension_numbers = #tpu.dot_dimension_numbers<[1], [0], [0], [1], [0, 0, 1, 1], [], []>} : vector<72x128xbf16>, vector<128x128xbf16>, vector<72x128xf32> -> vector<72x128xf32>
    %288 = arith.addf %282, %287 : vector<72x128xf32>
    %c1_240 = arith.constant 1 : index
    %c0_241 = arith.constant 0 : index
    %289 = vector.load %arg12[%c1_240, %c0_241] : memref<86x128xf32, #tpu.memory_space<vmem>>, vector<72x128xf32>
    %290 = arith.truncf %289 : vector<72x128xf32> to vector<72x128xbf16>
    %c1_242 = arith.constant 1 : index
    %c1_243 = arith.constant 1 : index
    %c0_244 = arith.constant 0 : index
    %c0_245 = arith.constant 0 : index
    %291 = vector.load %arg3[%c1_242, %c1_243, %c0_244, %c0_245] : memref<3x9x128x128xbf16, #tpu.memory_space<vmem>>, vector<1x1x128x128xbf16>
    %292 = vector.shape_cast %291 : vector<1x1x128x128xbf16> to vector<128x128xbf16>
    %cst_246 = arith.constant dense<0.000000e+00> : vector<72x128xf32>
    %293 = tpu.matmul %290, %292, %cst_246 {dimension_numbers = #tpu.dot_dimension_numbers<[1], [0], [0], [1], [0, 0, 1, 1], [], []>} : vector<72x128xbf16>, vector<128x128xbf16>, vector<72x128xf32> -> vector<72x128xf32>
    %294 = arith.addf %288, %293 : vector<72x128xf32>
    %c2_247 = arith.constant 2 : index
    %c0_248 = arith.constant 0 : index
    %295 = vector.load %arg12[%c2_247, %c0_248] : memref<86x128xf32, #tpu.memory_space<vmem>>, vector<72x128xf32>
    %296 = arith.truncf %295 : vector<72x128xf32> to vector<72x128xbf16>
    %c1_249 = arith.constant 1 : index
    %c2_250 = arith.constant 2 : index
    %c0_251 = arith.constant 0 : index
    %c0_252 = arith.constant 0 : index
    %297 = vector.load %arg3[%c1_249, %c2_250, %c0_251, %c0_252] : memref<3x9x128x128xbf16, #tpu.memory_space<vmem>>, vector<1x1x128x128xbf16>
    %298 = vector.shape_cast %297 : vector<1x1x128x128xbf16> to vector<128x128xbf16>
    %cst_253 = arith.constant dense<0.000000e+00> : vector<72x128xf32>
    %299 = tpu.matmul %296, %298, %cst_253 {dimension_numbers = #tpu.dot_dimension_numbers<[1], [0], [0], [1], [0, 0, 1, 1], [], []>} : vector<72x128xbf16>, vector<128x128xbf16>, vector<72x128xf32> -> vector<72x128xf32>
    %300 = arith.addf %294, %299 : vector<72x128xf32>
    %c6_254 = arith.constant 6 : index
    %c0_255 = arith.constant 0 : index
    %301 = vector.load %arg12[%c6_254, %c0_255] : memref<86x128xf32, #tpu.memory_space<vmem>>, vector<72x128xf32>
    %302 = arith.truncf %301 : vector<72x128xf32> to vector<72x128xbf16>
    %c1_256 = arith.constant 1 : index
    %c3_257 = arith.constant 3 : index
    %c0_258 = arith.constant 0 : index
    %c0_259 = arith.constant 0 : index
    %303 = vector.load %arg3[%c1_256, %c3_257, %c0_258, %c0_259] : memref<3x9x128x128xbf16, #tpu.memory_space<vmem>>, vector<1x1x128x128xbf16>
    %304 = vector.shape_cast %303 : vector<1x1x128x128xbf16> to vector<128x128xbf16>
    %cst_260 = arith.constant dense<0.000000e+00> : vector<72x128xf32>
    %305 = tpu.matmul %302, %304, %cst_260 {dimension_numbers = #tpu.dot_dimension_numbers<[1], [0], [0], [1], [0, 0, 1, 1], [], []>} : vector<72x128xbf16>, vector<128x128xbf16>, vector<72x128xf32> -> vector<72x128xf32>
    %306 = arith.addf %300, %305 : vector<72x128xf32>
    %c7_261 = arith.constant 7 : index
    %c0_262 = arith.constant 0 : index
    %307 = vector.load %arg12[%c7_261, %c0_262] : memref<86x128xf32, #tpu.memory_space<vmem>>, vector<72x128xf32>
    %308 = arith.truncf %307 : vector<72x128xf32> to vector<72x128xbf16>
    %c1_263 = arith.constant 1 : index
    %c4_264 = arith.constant 4 : index
    %c0_265 = arith.constant 0 : index
    %c0_266 = arith.constant 0 : index
    %309 = vector.load %arg3[%c1_263, %c4_264, %c0_265, %c0_266] : memref<3x9x128x128xbf16, #tpu.memory_space<vmem>>, vector<1x1x128x128xbf16>
    %310 = vector.shape_cast %309 : vector<1x1x128x128xbf16> to vector<128x128xbf16>
    %cst_267 = arith.constant dense<0.000000e+00> : vector<72x128xf32>
    %311 = tpu.matmul %308, %310, %cst_267 {dimension_numbers = #tpu.dot_dimension_numbers<[1], [0], [0], [1], [0, 0, 1, 1], [], []>} : vector<72x128xbf16>, vector<128x128xbf16>, vector<72x128xf32> -> vector<72x128xf32>
    %312 = arith.addf %306, %311 : vector<72x128xf32>
    %c8_268 = arith.constant 8 : index
    %c0_269 = arith.constant 0 : index
    %313 = vector.load %arg12[%c8_268, %c0_269] : memref<86x128xf32, #tpu.memory_space<vmem>>, vector<72x128xf32>
    %314 = arith.truncf %313 : vector<72x128xf32> to vector<72x128xbf16>
    %c1_270 = arith.constant 1 : index
    %c5_271 = arith.constant 5 : index
    %c0_272 = arith.constant 0 : index
    %c0_273 = arith.constant 0 : index
    %315 = vector.load %arg3[%c1_270, %c5_271, %c0_272, %c0_273] : memref<3x9x128x128xbf16, #tpu.memory_space<vmem>>, vector<1x1x128x128xbf16>
    %316 = vector.shape_cast %315 : vector<1x1x128x128xbf16> to vector<128x128xbf16>
    %cst_274 = arith.constant dense<0.000000e+00> : vector<72x128xf32>
    %317 = tpu.matmul %314, %316, %cst_274 {dimension_numbers = #tpu.dot_dimension_numbers<[1], [0], [0], [1], [0, 0, 1, 1], [], []>} : vector<72x128xbf16>, vector<128x128xbf16>, vector<72x128xf32> -> vector<72x128xf32>
    %318 = arith.addf %312, %317 : vector<72x128xf32>
    %c12_275 = arith.constant 12 : index
    %c0_276 = arith.constant 0 : index
    %319 = vector.load %arg12[%c12_275, %c0_276] : memref<86x128xf32, #tpu.memory_space<vmem>>, vector<72x128xf32>
    %320 = arith.truncf %319 : vector<72x128xf32> to vector<72x128xbf16>
    %c1_277 = arith.constant 1 : index
    %c6_278 = arith.constant 6 : index
    %c0_279 = arith.constant 0 : index
    %c0_280 = arith.constant 0 : index
    %321 = vector.load %arg3[%c1_277, %c6_278, %c0_279, %c0_280] : memref<3x9x128x128xbf16, #tpu.memory_space<vmem>>, vector<1x1x128x128xbf16>
    %322 = vector.shape_cast %321 : vector<1x1x128x128xbf16> to vector<128x128xbf16>
    %cst_281 = arith.constant dense<0.000000e+00> : vector<72x128xf32>
    %323 = tpu.matmul %320, %322, %cst_281 {dimension_numbers = #tpu.dot_dimension_numbers<[1], [0], [0], [1], [0, 0, 1, 1], [], []>} : vector<72x128xbf16>, vector<128x128xbf16>, vector<72x128xf32> -> vector<72x128xf32>
    %324 = arith.addf %318, %323 : vector<72x128xf32>
    %c13 = arith.constant 13 : index
    %c0_282 = arith.constant 0 : index
    %325 = vector.load %arg12[%c13, %c0_282] : memref<86x128xf32, #tpu.memory_space<vmem>>, vector<72x128xf32>
    %326 = arith.truncf %325 : vector<72x128xf32> to vector<72x128xbf16>
    %c1_283 = arith.constant 1 : index
    %c7_284 = arith.constant 7 : index
    %c0_285 = arith.constant 0 : index
    %c0_286 = arith.constant 0 : index
    %327 = vector.load %arg3[%c1_283, %c7_284, %c0_285, %c0_286] : memref<3x9x128x128xbf16, #tpu.memory_space<vmem>>, vector<1x1x128x128xbf16>
    %328 = vector.shape_cast %327 : vector<1x1x128x128xbf16> to vector<128x128xbf16>
    %cst_287 = arith.constant dense<0.000000e+00> : vector<72x128xf32>
    %329 = tpu.matmul %326, %328, %cst_287 {dimension_numbers = #tpu.dot_dimension_numbers<[1], [0], [0], [1], [0, 0, 1, 1], [], []>} : vector<72x128xbf16>, vector<128x128xbf16>, vector<72x128xf32> -> vector<72x128xf32>
    %330 = arith.addf %324, %329 : vector<72x128xf32>
    %c14_288 = arith.constant 14 : index
    %c0_289 = arith.constant 0 : index
    %331 = vector.load %arg12[%c14_288, %c0_289] : memref<86x128xf32, #tpu.memory_space<vmem>>, vector<72x128xf32>
    %332 = arith.truncf %331 : vector<72x128xf32> to vector<72x128xbf16>
    %c1_290 = arith.constant 1 : index
    %c8_291 = arith.constant 8 : index
    %c0_292 = arith.constant 0 : index
    %c0_293 = arith.constant 0 : index
    %333 = vector.load %arg3[%c1_290, %c8_291, %c0_292, %c0_293] : memref<3x9x128x128xbf16, #tpu.memory_space<vmem>>, vector<1x1x128x128xbf16>
    %334 = vector.shape_cast %333 : vector<1x1x128x128xbf16> to vector<128x128xbf16>
    %cst_294 = arith.constant dense<0.000000e+00> : vector<72x128xf32>
    %335 = tpu.matmul %332, %334, %cst_294 {dimension_numbers = #tpu.dot_dimension_numbers<[1], [0], [0], [1], [0, 0, 1, 1], [], []>} : vector<72x128xbf16>, vector<128x128xbf16>, vector<72x128xf32> -> vector<72x128xf32>
    %336 = arith.addf %330, %335 : vector<72x128xf32>
    %337 = vector.broadcast %279 : vector<1x128xf32> to vector<72x128xf32>
    %338 = arith.mulf %336, %337 : vector<72x128xf32>
    %339 = vector.broadcast %281 : vector<1x128xf32> to vector<72x128xf32>
    %340 = arith.addf %338, %339 : vector<72x128xf32>
    %cst_295 = arith.constant 0.000000e+00 : f32
    %341 = vector.broadcast %cst_295 : f32 to vector<72x128xf32>
    %342 = arith.maximumf %340, %341 : vector<72x128xf32>
    %c0_296 = arith.constant 0 : index
    %c0_297 = arith.constant 0 : index
    %343 = vector.load %arg9[%c0_296, %c0_297] : memref<72x128xf32, #tpu.memory_space<vmem>>, vector<72x128xf32>
    tpu.vector_store %arg9[%c0_296, %c0_297], %342 {strides = array<i32>} : memref<72x128xf32, #tpu.memory_space<vmem>>, vector<72x128xf32>,
    %c7_298 = arith.constant 7 : index
    %c0_299 = arith.constant 0 : index
    %344 = tpu.strided_load %arg9[%c7_298, %c0_299] {strides = array<i32: 2, 1>} : memref<72x128xf32, #tpu.memory_space<vmem>>, vector<2x128xf32>
    %c8_300 = arith.constant 8 : index
    %c0_301 = arith.constant 0 : index
    %345 = tpu.strided_load %arg9[%c8_300, %c0_301] {strides = array<i32: 2, 1>} : memref<72x128xf32, #tpu.memory_space<vmem>>, vector<2x128xf32>
    %c13_302 = arith.constant 13 : index
    %c0_303 = arith.constant 0 : index
    %346 = tpu.strided_load %arg9[%c13_302, %c0_303] {strides = array<i32: 2, 1>} : memref<72x128xf32, #tpu.memory_space<vmem>>, vector<2x128xf32>
    %c14_304 = arith.constant 14 : index
    %c0_305 = arith.constant 0 : index
    %347 = tpu.strided_load %arg9[%c14_304, %c0_305] {strides = array<i32: 2, 1>} : memref<72x128xf32, #tpu.memory_space<vmem>>, vector<2x128xf32>
    %348 = arith.maximumf %344, %345 : vector<2x128xf32>
    %349 = arith.maximumf %346, %347 : vector<2x128xf32>
    %350 = arith.maximumf %348, %349 : vector<2x128xf32>
    %c10_306 = arith.constant 10 : index
    %c0_307 = arith.constant 0 : index
    %351 = vector.load %arg13[%c10_306, %c0_307] : memref<42x128xf32, #tpu.memory_space<vmem>>, vector<2x128xf32>
    tpu.vector_store %arg13[%c10_306, %c0_307], %350 {strides = array<i32>} : memref<42x128xf32, #tpu.memory_space<vmem>>, vector<2x128xf32>,
    %c19_308 = arith.constant 19 : index
    %c0_309 = arith.constant 0 : index
    %352 = tpu.strided_load %arg9[%c19_308, %c0_309] {strides = array<i32: 2, 1>} : memref<72x128xf32, #tpu.memory_space<vmem>>, vector<2x128xf32>
    %c20_310 = arith.constant 20 : index
    %c0_311 = arith.constant 0 : index
    %353 = tpu.strided_load %arg9[%c20_310, %c0_311] {strides = array<i32: 2, 1>} : memref<72x128xf32, #tpu.memory_space<vmem>>, vector<2x128xf32>
    %c25 = arith.constant 25 : index
    %c0_312 = arith.constant 0 : index
    %354 = tpu.strided_load %arg9[%c25, %c0_312] {strides = array<i32: 2, 1>} : memref<72x128xf32, #tpu.memory_space<vmem>>, vector<2x128xf32>
    %c26_313 = arith.constant 26 : index
    %c0_314 = arith.constant 0 : index
    %355 = tpu.strided_load %arg9[%c26_313, %c0_314] {strides = array<i32: 2, 1>} : memref<72x128xf32, #tpu.memory_space<vmem>>, vector<2x128xf32>
    %356 = arith.maximumf %352, %353 : vector<2x128xf32>
    %357 = arith.maximumf %354, %355 : vector<2x128xf32>
    %358 = arith.maximumf %356, %357 : vector<2x128xf32>
    %c14_315 = arith.constant 14 : index
    %c0_316 = arith.constant 0 : index
    %359 = vector.load %arg13[%c14_315, %c0_316] : memref<42x128xf32, #tpu.memory_space<vmem>>, vector<2x128xf32>
    tpu.vector_store %arg13[%c14_315, %c0_316], %358 {strides = array<i32>} : memref<42x128xf32, #tpu.memory_space<vmem>>, vector<2x128xf32>,
    %c43 = arith.constant 43 : index
    %c0_317 = arith.constant 0 : index
    %360 = tpu.strided_load %arg9[%c43, %c0_317] {strides = array<i32: 2, 1>} : memref<72x128xf32, #tpu.memory_space<vmem>>, vector<2x128xf32>
    %c44 = arith.constant 44 : index
    %c0_318 = arith.constant 0 : index
    %361 = tpu.strided_load %arg9[%c44, %c0_318] {strides = array<i32: 2, 1>} : memref<72x128xf32, #tpu.memory_space<vmem>>, vector<2x128xf32>
    %c49 = arith.constant 49 : index
    %c0_319 = arith.constant 0 : index
    %362 = tpu.strided_load %arg9[%c49, %c0_319] {strides = array<i32: 2, 1>} : memref<72x128xf32, #tpu.memory_space<vmem>>, vector<2x128xf32>
    %c50_320 = arith.constant 50 : index
    %c0_321 = arith.constant 0 : index
    %363 = tpu.strided_load %arg9[%c50_320, %c0_321] {strides = array<i32: 2, 1>} : memref<72x128xf32, #tpu.memory_space<vmem>>, vector<2x128xf32>
    %364 = arith.maximumf %360, %361 : vector<2x128xf32>
    %365 = arith.maximumf %362, %363 : vector<2x128xf32>
    %366 = arith.maximumf %364, %365 : vector<2x128xf32>
    %c26_322 = arith.constant 26 : index
    %c0_323 = arith.constant 0 : index
    %367 = vector.load %arg13[%c26_322, %c0_323] : memref<42x128xf32, #tpu.memory_space<vmem>>, vector<2x128xf32>
    tpu.vector_store %arg13[%c26_322, %c0_323], %366 {strides = array<i32>} : memref<42x128xf32, #tpu.memory_space<vmem>>, vector<2x128xf32>,
    %c55_324 = arith.constant 55 : index
    %c0_325 = arith.constant 0 : index
    %368 = tpu.strided_load %arg9[%c55_324, %c0_325] {strides = array<i32: 2, 1>} : memref<72x128xf32, #tpu.memory_space<vmem>>, vector<2x128xf32>
    %c56_326 = arith.constant 56 : index
    %c0_327 = arith.constant 0 : index
    %369 = tpu.strided_load %arg9[%c56_326, %c0_327] {strides = array<i32: 2, 1>} : memref<72x128xf32, #tpu.memory_space<vmem>>, vector<2x128xf32>
    %c61_328 = arith.constant 61 : index
    %c0_329 = arith.constant 0 : index
    %370 = tpu.strided_load %arg9[%c61_328, %c0_329] {strides = array<i32: 2, 1>} : memref<72x128xf32, #tpu.memory_space<vmem>>, vector<2x128xf32>
    %c62_330 = arith.constant 62 : index
    %c0_331 = arith.constant 0 : index
    %371 = tpu.strided_load %arg9[%c62_330, %c0_331] {strides = array<i32: 2, 1>} : memref<72x128xf32, #tpu.memory_space<vmem>>, vector<2x128xf32>
    %372 = arith.maximumf %368, %369 : vector<2x128xf32>
    %373 = arith.maximumf %370, %371 : vector<2x128xf32>
    %374 = arith.maximumf %372, %373 : vector<2x128xf32>
    %c30 = arith.constant 30 : index
    %c0_332 = arith.constant 0 : index
    %375 = vector.load %arg13[%c30, %c0_332] : memref<42x128xf32, #tpu.memory_space<vmem>>, vector<2x128xf32>
    tpu.vector_store %arg13[%c30, %c0_332], %374 {strides = array<i32>} : memref<42x128xf32, #tpu.memory_space<vmem>>, vector<2x128xf32>,
    %c3_333 = arith.constant 3 : index
    %c0_334 = arith.constant 0 : index
    %c0_335 = arith.constant 0 : index
    %376 = vector.load %arg4[%c3_333, %c0_334, %c0_335] : memref<4x1x128xf32, #tpu.memory_space<vmem>>, vector<1x1x128xf32>
    %377 = vector.shape_cast %376 : vector<1x1x128xf32> to vector<1x128xf32>
    %c3_336 = arith.constant 3 : index
    %c0_337 = arith.constant 0 : index
    %c0_338 = arith.constant 0 : index
    %378 = vector.load %arg5[%c3_336, %c0_337, %c0_338] : memref<4x1x128xf32, #tpu.memory_space<vmem>>, vector<1x1x128xf32>
    %379 = vector.shape_cast %378 : vector<1x1x128xf32> to vector<1x128xf32>
    %cst_339 = arith.constant 0.000000e+00 : f32
    %380 = vector.broadcast %cst_339 : f32 to vector<32x128xf32>
    %c0_340 = arith.constant 0 : index
    %c0_341 = arith.constant 0 : index
    %381 = vector.load %arg13[%c0_340, %c0_341] : memref<42x128xf32, #tpu.memory_space<vmem>>, vector<32x128xf32>
    %382 = arith.truncf %381 : vector<32x128xf32> to vector<32x128xbf16>
    %c2_342 = arith.constant 2 : index
    %c0_343 = arith.constant 0 : index
    %c0_344 = arith.constant 0 : index
    %c0_345 = arith.constant 0 : index
    %383 = vector.load %arg3[%c2_342, %c0_343, %c0_344, %c0_345] : memref<3x9x128x128xbf16, #tpu.memory_space<vmem>>, vector<1x1x128x128xbf16>
    %384 = vector.shape_cast %383 : vector<1x1x128x128xbf16> to vector<128x128xbf16>
    %cst_346 = arith.constant dense<0.000000e+00> : vector<32x128xf32>
    %385 = tpu.matmul %382, %384, %cst_346 {dimension_numbers = #tpu.dot_dimension_numbers<[1], [0], [0], [1], [0, 0, 1, 1], [], []>} : vector<32x128xbf16>, vector<128x128xbf16>, vector<32x128xf32> -> vector<32x128xf32>
    %386 = arith.addf %380, %385 : vector<32x128xf32>
    %c1_347 = arith.constant 1 : index
    %c0_348 = arith.constant 0 : index
    %387 = vector.load %arg13[%c1_347, %c0_348] : memref<42x128xf32, #tpu.memory_space<vmem>>, vector<32x128xf32>
    %388 = arith.truncf %387 : vector<32x128xf32> to vector<32x128xbf16>
    %c2_349 = arith.constant 2 : index
    %c1_350 = arith.constant 1 : index
    %c0_351 = arith.constant 0 : index
    %c0_352 = arith.constant 0 : index
    %389 = vector.load %arg3[%c2_349, %c1_350, %c0_351, %c0_352] : memref<3x9x128x128xbf16, #tpu.memory_space<vmem>>, vector<1x1x128x128xbf16>
    %390 = vector.shape_cast %389 : vector<1x1x128x128xbf16> to vector<128x128xbf16>
    %cst_353 = arith.constant dense<0.000000e+00> : vector<32x128xf32>
    %391 = tpu.matmul %388, %390, %cst_353 {dimension_numbers = #tpu.dot_dimension_numbers<[1], [0], [0], [1], [0, 0, 1, 1], [], []>} : vector<32x128xbf16>, vector<128x128xbf16>, vector<32x128xf32> -> vector<32x128xf32>
    %392 = arith.addf %386, %391 : vector<32x128xf32>
    %c2_354 = arith.constant 2 : index
    %c0_355 = arith.constant 0 : index
    %393 = vector.load %arg13[%c2_354, %c0_355] : memref<42x128xf32, #tpu.memory_space<vmem>>, vector<32x128xf32>
    %394 = arith.truncf %393 : vector<32x128xf32> to vector<32x128xbf16>
    %c2_356 = arith.constant 2 : index
    %c2_357 = arith.constant 2 : index
    %c0_358 = arith.constant 0 : index
    %c0_359 = arith.constant 0 : index
    %395 = vector.load %arg3[%c2_356, %c2_357, %c0_358, %c0_359] : memref<3x9x128x128xbf16, #tpu.memory_space<vmem>>, vector<1x1x128x128xbf16>
    %396 = vector.shape_cast %395 : vector<1x1x128x128xbf16> to vector<128x128xbf16>
    %cst_360 = arith.constant dense<0.000000e+00> : vector<32x128xf32>
    %397 = tpu.matmul %394, %396, %cst_360 {dimension_numbers = #tpu.dot_dimension_numbers<[1], [0], [0], [1], [0, 0, 1, 1], [], []>} : vector<32x128xbf16>, vector<128x128xbf16>, vector<32x128xf32> -> vector<32x128xf32>
    %398 = arith.addf %392, %397 : vector<32x128xf32>
    %c4_361 = arith.constant 4 : index
    %c0_362 = arith.constant 0 : index
    %399 = vector.load %arg13[%c4_361, %c0_362] : memref<42x128xf32, #tpu.memory_space<vmem>>, vector<32x128xf32>
    %400 = arith.truncf %399 : vector<32x128xf32> to vector<32x128xbf16>
    %c2_363 = arith.constant 2 : index
    %c3_364 = arith.constant 3 : index
    %c0_365 = arith.constant 0 : index
    %c0_366 = arith.constant 0 : index
    %401 = vector.load %arg3[%c2_363, %c3_364, %c0_365, %c0_366] : memref<3x9x128x128xbf16, #tpu.memory_space<vmem>>, vector<1x1x128x128xbf16>
    %402 = vector.shape_cast %401 : vector<1x1x128x128xbf16> to vector<128x128xbf16>
    %cst_367 = arith.constant dense<0.000000e+00> : vector<32x128xf32>
    %403 = tpu.matmul %400, %402, %cst_367 {dimension_numbers = #tpu.dot_dimension_numbers<[1], [0], [0], [1], [0, 0, 1, 1], [], []>} : vector<32x128xbf16>, vector<128x128xbf16>, vector<32x128xf32> -> vector<32x128xf32>
    %404 = arith.addf %398, %403 : vector<32x128xf32>
    %c5_368 = arith.constant 5 : index
    %c0_369 = arith.constant 0 : index
    %405 = vector.load %arg13[%c5_368, %c0_369] : memref<42x128xf32, #tpu.memory_space<vmem>>, vector<32x128xf32>
    %406 = arith.truncf %405 : vector<32x128xf32> to vector<32x128xbf16>
    %c2_370 = arith.constant 2 : index
    %c4_371 = arith.constant 4 : index
    %c0_372 = arith.constant 0 : index
    %c0_373 = arith.constant 0 : index
    %407 = vector.load %arg3[%c2_370, %c4_371, %c0_372, %c0_373] : memref<3x9x128x128xbf16, #tpu.memory_space<vmem>>, vector<1x1x128x128xbf16>
    %408 = vector.shape_cast %407 : vector<1x1x128x128xbf16> to vector<128x128xbf16>
    %cst_374 = arith.constant dense<0.000000e+00> : vector<32x128xf32>
    %409 = tpu.matmul %406, %408, %cst_374 {dimension_numbers = #tpu.dot_dimension_numbers<[1], [0], [0], [1], [0, 0, 1, 1], [], []>} : vector<32x128xbf16>, vector<128x128xbf16>, vector<32x128xf32> -> vector<32x128xf32>
    %410 = arith.addf %404, %409 : vector<32x128xf32>
    %c6_375 = arith.constant 6 : index
    %c0_376 = arith.constant 0 : index
    %411 = vector.load %arg13[%c6_375, %c0_376] : memref<42x128xf32, #tpu.memory_space<vmem>>, vector<32x128xf32>
    %412 = arith.truncf %411 : vector<32x128xf32> to vector<32x128xbf16>
    %c2_377 = arith.constant 2 : index
    %c5_378 = arith.constant 5 : index
    %c0_379 = arith.constant 0 : index
    %c0_380 = arith.constant 0 : index
    %413 = vector.load %arg3[%c2_377, %c5_378, %c0_379, %c0_380] : memref<3x9x128x128xbf16, #tpu.memory_space<vmem>>, vector<1x1x128x128xbf16>
    %414 = vector.shape_cast %413 : vector<1x1x128x128xbf16> to vector<128x128xbf16>
    %cst_381 = arith.constant dense<0.000000e+00> : vector<32x128xf32>
    %415 = tpu.matmul %412, %414, %cst_381 {dimension_numbers = #tpu.dot_dimension_numbers<[1], [0], [0], [1], [0, 0, 1, 1], [], []>} : vector<32x128xbf16>, vector<128x128xbf16>, vector<32x128xf32> -> vector<32x128xf32>
    %416 = arith.addf %410, %415 : vector<32x128xf32>
    %c8_382 = arith.constant 8 : index
    %c0_383 = arith.constant 0 : index
    %417 = vector.load %arg13[%c8_382, %c0_383] : memref<42x128xf32, #tpu.memory_space<vmem>>, vector<32x128xf32>
    %418 = arith.truncf %417 : vector<32x128xf32> to vector<32x128xbf16>
    %c2_384 = arith.constant 2 : index
    %c6_385 = arith.constant 6 : index
    %c0_386 = arith.constant 0 : index
    %c0_387 = arith.constant 0 : index
    %419 = vector.load %arg3[%c2_384, %c6_385, %c0_386, %c0_387] : memref<3x9x128x128xbf16, #tpu.memory_space<vmem>>, vector<1x1x128x128xbf16>
    %420 = vector.shape_cast %419 : vector<1x1x128x128xbf16> to vector<128x128xbf16>
    %cst_388 = arith.constant dense<0.000000e+00> : vector<32x128xf32>
    %421 = tpu.matmul %418, %420, %cst_388 {dimension_numbers = #tpu.dot_dimension_numbers<[1], [0], [0], [1], [0, 0, 1, 1], [], []>} : vector<32x128xbf16>, vector<128x128xbf16>, vector<32x128xf32> -> vector<32x128xf32>
    %422 = arith.addf %416, %421 : vector<32x128xf32>
    %c9 = arith.constant 9 : index
    %c0_389 = arith.constant 0 : index
    %423 = vector.load %arg13[%c9, %c0_389] : memref<42x128xf32, #tpu.memory_space<vmem>>, vector<32x128xf32>
    %424 = arith.truncf %423 : vector<32x128xf32> to vector<32x128xbf16>
    %c2_390 = arith.constant 2 : index
    %c7_391 = arith.constant 7 : index
    %c0_392 = arith.constant 0 : index
    %c0_393 = arith.constant 0 : index
    %425 = vector.load %arg3[%c2_390, %c7_391, %c0_392, %c0_393] : memref<3x9x128x128xbf16, #tpu.memory_space<vmem>>, vector<1x1x128x128xbf16>
    %426 = vector.shape_cast %425 : vector<1x1x128x128xbf16> to vector<128x128xbf16>
    %cst_394 = arith.constant dense<0.000000e+00> : vector<32x128xf32>
    %427 = tpu.matmul %424, %426, %cst_394 {dimension_numbers = #tpu.dot_dimension_numbers<[1], [0], [0], [1], [0, 0, 1, 1], [], []>} : vector<32x128xbf16>, vector<128x128xbf16>, vector<32x128xf32> -> vector<32x128xf32>
    %428 = arith.addf %422, %427 : vector<32x128xf32>
    %c10_395 = arith.constant 10 : index
    %c0_396 = arith.constant 0 : index
    %429 = vector.load %arg13[%c10_395, %c0_396] : memref<42x128xf32, #tpu.memory_space<vmem>>, vector<32x128xf32>
    %430 = arith.truncf %429 : vector<32x128xf32> to vector<32x128xbf16>
    %c2_397 = arith.constant 2 : index
    %c8_398 = arith.constant 8 : index
    %c0_399 = arith.constant 0 : index
    %c0_400 = arith.constant 0 : index
    %431 = vector.load %arg3[%c2_397, %c8_398, %c0_399, %c0_400] : memref<3x9x128x128xbf16, #tpu.memory_space<vmem>>, vector<1x1x128x128xbf16>
    %432 = vector.shape_cast %431 : vector<1x1x128x128xbf16> to vector<128x128xbf16>
    %cst_401 = arith.constant dense<0.000000e+00> : vector<32x128xf32>
    %433 = tpu.matmul %430, %432, %cst_401 {dimension_numbers = #tpu.dot_dimension_numbers<[1], [0], [0], [1], [0, 0, 1, 1], [], []>} : vector<32x128xbf16>, vector<128x128xbf16>, vector<32x128xf32> -> vector<32x128xf32>
    %434 = arith.addf %428, %433 : vector<32x128xf32>
    %435 = vector.broadcast %377 : vector<1x128xf32> to vector<32x128xf32>
    %436 = arith.mulf %434, %435 : vector<32x128xf32>
    %437 = vector.broadcast %379 : vector<1x128xf32> to vector<32x128xf32>
    %438 = arith.addf %436, %437 : vector<32x128xf32>
    %cst_402 = arith.constant 0.000000e+00 : f32
    %439 = vector.broadcast %cst_402 : f32 to vector<32x128xf32>
    %440 = arith.maximumf %438, %439 : vector<32x128xf32>
    %c0_403 = arith.constant 0 : index
    %c0_404 = arith.constant 0 : index
    %441 = vector.load %arg10[%c0_403, %c0_404] : memref<32x128xf32, #tpu.memory_space<vmem>>, vector<32x128xf32>
    tpu.vector_store %arg10[%c0_403, %c0_404], %440 {strides = array<i32>} : memref<32x128xf32, #tpu.memory_space<vmem>>, vector<32x128xf32>,
    %c5_405 = arith.constant 5 : index
    %c0_406 = arith.constant 0 : index
    %442 = tpu.strided_load %arg10[%c5_405, %c0_406] {strides = array<i32: 2, 1>} : memref<32x128xf32, #tpu.memory_space<vmem>>, vector<1x128xf32>
    %c6_407 = arith.constant 6 : index
    %c0_408 = arith.constant 0 : index
    %443 = tpu.strided_load %arg10[%c6_407, %c0_408] {strides = array<i32: 2, 1>} : memref<32x128xf32, #tpu.memory_space<vmem>>, vector<1x128xf32>
    %c9_409 = arith.constant 9 : index
    %c0_410 = arith.constant 0 : index
    %444 = tpu.strided_load %arg10[%c9_409, %c0_410] {strides = array<i32: 2, 1>} : memref<32x128xf32, #tpu.memory_space<vmem>>, vector<1x128xf32>
    %c10_411 = arith.constant 10 : index
    %c0_412 = arith.constant 0 : index
    %445 = tpu.strided_load %arg10[%c10_411, %c0_412] {strides = array<i32: 2, 1>} : memref<32x128xf32, #tpu.memory_space<vmem>>, vector<1x128xf32>
    %446 = arith.maximumf %442, %443 : vector<1x128xf32>
    %447 = arith.maximumf %444, %445 : vector<1x128xf32>
    %448 = arith.maximumf %446, %447 : vector<1x128xf32>
    %c0_413 = arith.constant 0 : index
    %c0_414 = arith.constant 0 : index
    %c0_415 = arith.constant 0 : index
    %c0_416 = arith.constant 0 : index
    %449 = vector.load %arg6[%c0_413, %c0_414, %c0_415, %c0_416] : memref<2x1x1x128xf32, #tpu.memory_space<vmem>>, vector<1x1x1x128xf32>
    %450 = vector.shape_cast %449 : vector<1x1x1x128xf32> to vector<1x128xf32>
    %451 = vector.shape_cast %448 : vector<1x128xf32> to vector<1x1x1x128xf32>
    tpu.vector_store %arg6[%c0_413, %c0_414, %c0_415, %c0_416], %451 {strides = array<i32>} : memref<2x1x1x128xf32, #tpu.memory_space<vmem>>, vector<1x1x1x128xf32>,
    %c21_417 = arith.constant 21 : index
    %c0_418 = arith.constant 0 : index
    %452 = tpu.strided_load %arg10[%c21_417, %c0_418] {strides = array<i32: 2, 1>} : memref<32x128xf32, #tpu.memory_space<vmem>>, vector<1x128xf32>
    %c22_419 = arith.constant 22 : index
    %c0_420 = arith.constant 0 : index
    %453 = tpu.strided_load %arg10[%c22_419, %c0_420] {strides = array<i32: 2, 1>} : memref<32x128xf32, #tpu.memory_space<vmem>>, vector<1x128xf32>
    %c25_421 = arith.constant 25 : index
    %c0_422 = arith.constant 0 : index
    %454 = tpu.strided_load %arg10[%c25_421, %c0_422] {strides = array<i32: 2, 1>} : memref<32x128xf32, #tpu.memory_space<vmem>>, vector<1x128xf32>
    %c26_423 = arith.constant 26 : index
    %c0_424 = arith.constant 0 : index
    %455 = tpu.strided_load %arg10[%c26_423, %c0_424] {strides = array<i32: 2, 1>} : memref<32x128xf32, #tpu.memory_space<vmem>>, vector<1x128xf32>
    %456 = arith.maximumf %452, %453 : vector<1x128xf32>
    %457 = arith.maximumf %454, %455 : vector<1x128xf32>
    %458 = arith.maximumf %456, %457 : vector<1x128xf32>
    %c1_425 = arith.constant 1 : index
    %c0_426 = arith.constant 0 : index
    %c0_427 = arith.constant 0 : index
    %c0_428 = arith.constant 0 : index
    %459 = vector.load %arg6[%c1_425, %c0_426, %c0_427, %c0_428] : memref<2x1x1x128xf32, #tpu.memory_space<vmem>>, vector<1x1x1x128xf32>
    %460 = vector.shape_cast %459 : vector<1x1x1x128xf32> to vector<1x128xf32>
    %461 = vector.shape_cast %458 : vector<1x128xf32> to vector<1x1x1x128xf32>
    tpu.vector_store %arg6[%c1_425, %c0_426, %c0_427, %c0_428], %461 {strides = array<i32>} : memref<2x1x1x128xf32, #tpu.memory_space<vmem>>, vector<1x1x1x128xf32>,
    return
  }
  func.func @transform_0(%arg0: i32) -> (i32, i32) {
    %c0_i32 = arith.constant 0 : i32
    %c0_i32_0 = arith.constant 0 : i32
    return %arg0, %c0_i32 : i32, i32
  }
  func.func @transform_1(%arg0: i32) -> (i32, i32) {
    %c0_i32 = arith.constant 0 : i32
    %c0_i32_0 = arith.constant 0 : i32
    %c0_i32_1 = arith.constant 0 : i32
    return %c0_i32, %c0_i32_0 : i32, i32
  }
  func.func @transform_2(%arg0: i32) -> (i32, i32, i32, i32) {
    %c0_i32 = arith.constant 0 : i32
    %c0_i32_0 = arith.constant 0 : i32
    %c0_i32_1 = arith.constant 0 : i32
    %c0_i32_2 = arith.constant 0 : i32
    %c0_i32_3 = arith.constant 0 : i32
    return %c0_i32, %c0_i32_0, %c0_i32_1, %c0_i32_2 : i32, i32, i32, i32
  }
  func.func @transform_3(%arg0: i32) -> (i32, i32, i32) {
    %c0_i32 = arith.constant 0 : i32
    %c0_i32_0 = arith.constant 0 : i32
    %c0_i32_1 = arith.constant 0 : i32
    %c0_i32_2 = arith.constant 0 : i32
    return %c0_i32, %c0_i32_0, %c0_i32_1 : i32, i32, i32
  }
  func.func @transform_4(%arg0: i32) -> (i32, i32, i32) {
    %c0_i32 = arith.constant 0 : i32
    %c0_i32_0 = arith.constant 0 : i32
    %c0_i32_1 = arith.constant 0 : i32
    %c0_i32_2 = arith.constant 0 : i32
    return %c0_i32, %c0_i32_0, %c0_i32_1 : i32, i32, i32
  }
  func.func @transform_5(%arg0: i32) -> (i32, i32, i32, i32) {
    %c0_i32 = arith.constant 0 : i32
    %c0_i32_0 = arith.constant 0 : i32
    %c0_i32_1 = arith.constant 0 : i32
    %c0_i32_2 = arith.constant 0 : i32
    return %arg0, %c0_i32, %c0_i32_0, %c0_i32_1 : i32, i32, i32, i32
  }
}

</mosaic_0001>

<bundles_post_ra>
// kernel: cnn_forward.1
= control target key start
LH: loop header
LB: loop body
LE: loop exit
PB: predicated region body
PF: predicated region fallthrough
CT: control target
= control target key end

     0   :  { %v9356_v1 = vmov 0.0   ;;  %vm9357_vm0 = vmmov 0   ;;  %vm361_vm1 = vcmask 130048   ;;  %s11842_s0 = inlined_call_operand.vmem [shape: bf16[648,16], index: 0, kind: input, shape index: {}]   ;;  %s11843_s1 = inlined_call_operand.vmem [shape: bf16[16,128], index: 1, kind: input, shape index: {}]   ;;  %s11844_s2 = inlined_call_operand.vmem [shape: bf16[3,9,128,128], index: 2, kind: input, shape index: {}]   ;;  %s11845_s3 = inlined_call_operand.vmem [shape: f32[4,1,128], index: 3, kind: input, shape index: {}]   ;;  %s11846_s4 = inlined_call_operand.vmem [shape: f32[4,1,128], index: 4, kind: input, shape index: {}]   ;;  %s11847_s5 = inlined_call_operand.hbm [shape: f32[2,1,1,128], index: 5, kind: output, shape index: {}]  }
   0x1   :  { %v9067_v0 = vld [vmem:[%s11843_s1] sm:$0xff]   ;;  %7780 = vmatprep.subr.bf16.mxu0 %v9356_v1  ;;  %22 = vst [vmem:[#allocation6] sm:$0xff] %v9356_v1  ;;  %23 = vst [vmem:[#allocation6 + $0x8] sm:$0xff] %v9356_v1  ;;  %7946 = vmatprep.subr.bf16.mxu1 %v9356_v1  ;;  %v9069_v3 = vld [vmem:[%s11842_s0 + $0x8] sm:$0xff]  }
   0x2   :  { %24 = vst [vmem:[#allocation6 + $0x10] sm:$0xff] %v9356_v1  ;;  %25 = vst [vmem:[#allocation6 + $0x18] sm:$0xff] %v9356_v1  ;;  %v9068_v2 = vld [vmem:[%s11842_s0] sm:$0xff]   ;;  %7781 = vmatpush3.bf16.msra.mxu0 %v9067_v0  ;;  %7782 = vmatprep.mubr.msk.bf16.mxu0 %vm9357_vm0, %v9356_v1  ;;  %v9070_v4 = vld [vmem:[%s11842_s0 + $0x10] sm:$0xff]  }
   0x3   :  { %27 = vst [vmem:[#allocation6 + $0x28] sm:$0xff] %v9356_v1  ;;  %28 = vst [vmem:[#allocation6 + $0x30] sm:$0xff] %v9356_v1  ;;  %7962 = vmatprep.mubr.msk.bf16.mxu1 %vm9357_vm0, %v9356_v1  ;;  %8150 = vmatprep.subr.bf16.mxu0 %v9356_v1  ;;  %v9071_v5 = vld [vmem:[%s11842_s0 + $0x18] sm:$0xff]   ;;  %v9072_v6 = vld [vmem:[%s11842_s0 + $0x20] sm:$0xff]  }
   0x4   :  { %29 = vst [vmem:[#allocation6 + $0x38] sm:$0xff] %v9356_v1  ;;  %30 = vst [vmem:[#allocation6 + $0x40] sm:$0xff] %v9356_v1  ;;  %v9073_v7 = vld [vmem:[%s11842_s0 + $0x28] sm:$0xff]   ;;  %v9074_v8 = vld [vmem:[%s11842_s0 + $0x30] sm:$0xff]  }
   0x5   :  { %32 = vst [vmem:[#allocation6 + $0x50] sm:$0xff] %v9356_v1  ;;  %33 = vst [vmem:[#allocation6 + $0x58] sm:$0xff] %v9356_v1  ;;  %7783 = vmatmul.mubr.msk.bf16.vlgmr.msra.gmra.mxu0 %vm361_vm1, %v9068_v2  ;;  %v9075_v9 = vld [vmem:[%s11842_s0 + $0x38] sm:$0xff]   ;;  %v9076_v10 = vld [vmem:[%s11842_s0 + $0x40] sm:$0xff]  }
   0x6   :  { %34 = vst [vmem:[#allocation6 + $0x60] sm:$0xff] %v9356_v1  ;;  %35 = vst [vmem:[#allocation6 + $0x68] sm:$0xff] %v9356_v1  ;;  %7786 = vmatprep.mubr.msk.bf16.mxu0 %vm9357_vm0, %v9356_v1  ;;  %v9077_v11 = vld [vmem:[%s11842_s0 + $0x48] sm:$0xff]   ;;  %v9078_v12 = vld [vmem:[%s11842_s0 + $0x50] sm:$0xff]  }
   0x7   :  { %36 = vst [vmem:[#allocation6 + $0x70] sm:$0xff] %v9356_v1  ;;  %37 = vst [vmem:[#allocation6 + $0x78] sm:$0xff] %v9356_v1  ;;  %v9079_v13 = vld [vmem:[%s11842_s0 + $0x58] sm:$0xff]   ;;  %v9080_v14 = vld [vmem:[%s11842_s0 + $0x60] sm:$0xff]  }
   0x8   :  { %38 = vst [vmem:[#allocation6 + $0x80] sm:$0xff] %v9356_v1  ;;  %39 = vst [vmem:[#allocation6 + $0x88] sm:$0xff] %v9356_v1  ;;  %v9097_v15 = vld [vmem:[%s11844_s2 + $0x78] sm:$0xff]   ;;  %v9081_v16 = vld [vmem:[%s11842_s0 + $0x68] sm:$0xff]  }
   0x9   :  { %40 = vst [vmem:[#allocation6 + $0x90] sm:$0xff] %v9356_v1  ;;  %42 = vst [vmem:[#allocation6 + $0xa0] sm:$0xff] %v9356_v1  ;;  %7947 = vmatpush3.bf16.msra.mxu1 %v9097_v15  ;;  %v9098_v17 = vld [vmem:[%s11844_s2 + $0x70] sm:$0xff]   ;;  %v9100_v18 = vld [vmem:[%s11844_s2 + $0x68] sm:$0xff]  }
   0xa   :  { %43 = vst [vmem:[#allocation6 + $0xa8] sm:$0xff] %v9356_v1  ;;  %44 = vst [vmem:[#allocation6 + $0xb0] sm:$0xff] %v9356_v1  ;;  %7948 = vmatprep.subr.bf16.mxu1 %v9356_v1  ;;  %v9082_v19 = vld [vmem:[%s11842_s0 + $0x70] sm:$0xff]   ;;  %v9101_v20 = vld [vmem:[%s11844_s2 + $0x60] sm:$0xff]  }
   0xb   :  { %45 = vst [vmem:[#allocation6 + $0xb8] sm:$0xff] %v9356_v1  ;;  %47 = vst [vmem:[#allocation6 + $0xc8] sm:$0xff] %v9356_v1  ;;  %v9103_v21 = vld [vmem:[%s11844_s2 + $0x58] sm:$0xff]   ;;  %v9104_v23 = vld [vmem:[%s11844_s2 + $0x50] sm:$0xff]  }
   0xc   :  { %48 = vst [vmem:[#allocation6 + $0xd0] sm:$0xff] %v9356_v1  ;;  %49 = vst [vmem:[#allocation6 + $0xd8] sm:$0x3f] %v9356_v1  ;;  %v9083_v22 = vld [vmem:[%s11842_s0 + $0x78] sm:$0xff]   ;;  %v9106_v24 = vld [vmem:[%s11844_s2 + $0x48] sm:$0xff]  }
   0xd   :  { %50 = vst [vmem:[#allocation7] sm:$0xff] %v9356_v1  ;;  %51 = vst [vmem:[#allocation7 + $0x8] sm:$0xff] %v9356_v1  ;;  %7787 = vmatmul.mubr.msk.bf16.gmra.mxu0 %vm361_vm1, %v9069_v3  ;;  %7949 = vmatpush3.bf16.msra.mxu1 %v9098_v17  ;;  %v9084_v25 = vld [vmem:[%s11842_s0 + $0x80] sm:$0xff]   ;;  %v9085_v30 = vld [vmem:[%s11842_s0 + $0x88] sm:$0xff]  }
   0xe   :  { %52 = vst [vmem:[#allocation7 + $0x10] sm:$0xff] %v9356_v1  ;;  %53 = vst [vmem:[#allocation7 + $0x18] sm:$0xff] %v9356_v1  ;;  %7790 = vmatprep.mubr.msk.bf16.mxu0 %vm9357_vm0, %v9356_v1  ;;  %7950 = vmatprep.subr.bf16.mxu1 %v9356_v1  ;;  %v9107_v26 = vld [vmem:[%s11844_s2 + $0x40] sm:$0xff]   ;;  %v9086_v31 = vld [vmem:[%s11842_s0 + $0x90] sm:$0xff]  }
   0xf   :  { %54 = vst [vmem:[#allocation7 + $0x20] sm:$0xff] %v9356_v1  ;;  %55 = vst [vmem:[#allocation7 + $0x28] sm:$0xff] %v9356_v1  ;;  %v1431_v27 = vld [vmem:[#allocation6 + $0x1] sm:$0xff]  ;;  %v1432_v28 = vld [vmem:[#allocation6 + $0x9] sm:$0xff] }
  0x10   :  { %56 = vst [vmem:[#allocation7 + $0x30] sm:$0xff] %v9356_v1  ;;  %57 = vst [vmem:[#allocation7 + $0x38] sm:$0xff] %v9356_v1  ;;  %v1456_v29 = vpack.c.bf16 %v1432_v28, %v1431_v27  ;;  %v9588_v32 = vld [vmem:[#allocation6] sm:$0xff]  ;;  %v9088_v34 = vld [vmem:[%s11842_s0 + $0xa0] sm:$0xff]  }
  0x11   :  { %58 = vst [vmem:[#allocation7 + $0x40] sm:$0xff] %v9356_v1  ;;  %59 = vst [vmem:[#allocation7 + $0x48] sm:$0xff] %v9356_v1  ;;  %7951 = vmatpush3.bf16.msra.mxu1 %v9100_v18  ;;  %v9087_v33 = vld [vmem:[%s11842_s0 + $0x98] sm:$0xff]   ;;  %v9089_v35 = vld [vmem:[%s11842_s0 + $0xa8] sm:$0xff]  }
  0x12   :  { %60 = vst [vmem:[#allocation7 + $0x50] sm:$0x3f] %v9356_v1  ;;  %61 = vst [vmem:[#allocation8] sm:$0xff] %v9356_v1  ;;  %7952 = vmatprep.subr.bf16.mxu1 %v9356_v1  ;;  %v9114_v36 = vld [vmem:[%s11844_s2 + $0xf8] sm:$0xff]   ;;  %v9090_v37 = vld [vmem:[%s11842_s0 + $0xb0] sm:$0xff]  }
  0x13   :  { %62 = vst [vmem:[#allocation8 + $0x8] sm:$0xff] %v9356_v1  ;;  %63 = vst [vmem:[#allocation8 + $0x10] sm:$0xff] %v9356_v1  ;;  %8151 = vmatpush3.bf16.msra.mxu0 %v9114_v36  ;;  %v9115_v38 = vld [vmem:[%s11844_s2 + $0xf0] sm:$0xff]   ;;  %v9117_v39 = vld [vmem:[%s11844_s2 + $0xe8] sm:$0xff]  }
  0x14   :  { %64 = vst [vmem:[#allocation8 + $0x18] sm:$0xff] %v9356_v1  ;;  %65 = vst [vmem:[#allocation8 + $0x20] sm:$0xff] %v9356_v1  ;;  %8152 = vmatprep.subr.bf16.mxu0 %v9588_v32  ;;  %v9091_v40 = vld [vmem:[%s11842_s0 + $0xb8] sm:$0xff]   ;;  %v9118_v41 = vld [vmem:[%s11844_s2 + $0xe0] sm:$0xff]  }
  0x15   :  { %66 = vst [vmem:[#allocation8 + $0x28] sm:$0x3] %v9356_v1  ;;  %7791 = vmatmul.mubr.msk.bf16.gmra.mxu0 %vm361_vm1, %v9070_v4  ;;  %7953 = vmatpush3.bf16.msra.mxu1 %v9101_v20  ;;  %v9120_v42 = vld [vmem:[%s11844_s2 + $0xd8] sm:$0xff]   ;;  %v9121_v43 = vld [vmem:[%s11844_s2 + $0xd0] sm:$0xff]  }
  0x16   :  { %7794 = vmatprep.mubr.msk.bf16.mxu0 %vm9357_vm0, %v9356_v1  ;;  %7954 = vmatprep.subr.bf16.mxu1 %v9356_v1 }
  0x17   :  { %8153 = vmatpush3.bf16.msra.mxu0 %v9115_v38 }
  0x18   :  { %8154 = vmatprep.subr.bf16.mxu0 %v9588_v32 }
  0x19   :  { %7955 = vmatpush3.bf16.msra.mxu1 %v9103_v21 }
  0x1a   :  { %7956 = vmatprep.subr.bf16.mxu1 %v9356_v1 }
  0x1b   :  { %8155 = vmatpush3.bf16.msra.mxu0 %v9117_v39 }
  0x1c   :  { %8156 = vmatprep.subr.bf16.mxu0 %v9588_v32 }
  0x1d   :  { %7795 = vmatmul.mubr.msk.bf16.gmra.mxu0 %vm361_vm1, %v9071_v5  ;;  %7957 = vmatpush3.bf16.msra.mxu1 %v9104_v23 }
  0x1e   :  { %7798 = vmatprep.mubr.msk.bf16.mxu0 %vm9357_vm0, %v9356_v1  ;;  %7958 = vmatprep.subr.bf16.mxu1 %v9356_v1 }
  0x1f   :  { %8157 = vmatpush3.bf16.msra.mxu0 %v9118_v41 }
  0x20   :  { %8158 = vmatprep.subr.bf16.mxu0 %v9588_v32 }
  0x21   :  { %7959 = vmatpush3.bf16.msra.mxu1 %v9106_v24 }
  0x22   :  { %7960 = vmatprep.subr.bf16.mxu1 %v9356_v1 }
  0x23   :  { %8159 = vmatpush3.bf16.msra.mxu0 %v9120_v42 }
  0x24   :  { %8160 = vmatprep.subr.bf16.mxu0 %v9588_v32 }
  0x25   :  { %7799 = vmatmul.mubr.msk.bf16.gmra.mxu0 %vm361_vm1, %v9072_v6  ;;  %7961 = vmatpush3.bf16.msra.mxu1 %v9107_v26 }
  0x26   :  { %7802 = vmatprep.mubr.msk.bf16.mxu0 %vm9357_vm0, %v9356_v1  ;;  %8014 = vmatprep.subr.bf16.mxu1 %v9356_v1 }
  0x28   :  { %7963 = vmatmul.mubr.bf16.vlgmr.msra.gmra.mxu1 %v1456_v29 }
  0x29   :  { %7966 = vmatprep.mubr.msk.bf16.mxu1 %vm9357_vm0, %v9356_v1 }
  0x2d   :  { %7803 = vmatmul.mubr.msk.bf16.gmra.mxu0 %vm361_vm1, %v9073_v7 }
  0x2e   :  { %7806 = vmatprep.mubr.msk.bf16.mxu0 %vm9357_vm0, %v9356_v1 }
  0x35   :  { %7807 = vmatmul.mubr.msk.bf16.gmra.mxu0 %vm361_vm1, %v9074_v8 }
  0x36   :  { %7810 = vmatprep.mubr.msk.bf16.mxu0 %vm9357_vm0, %v9356_v1 }
  0x3d   :  { %7811 = vmatmul.mubr.msk.bf16.gmra.mxu0 %vm361_vm1, %v9075_v9 }
  0x3e   :  { %7814 = vmatprep.mubr.msk.bf16.mxu0 %vm9357_vm0, %v9356_v1 }
  0x45   :  { %7815 = vmatmul.mubr.msk.bf16.gmra.mxu0 %vm361_vm1, %v9076_v10 }
  0x46   :  { %7818 = vmatprep.mubr.msk.bf16.mxu0 %vm9357_vm0, %v9356_v1 }
  0x4d   :  { %7819 = vmatmul.mubr.msk.bf16.gmra.mxu0 %vm361_vm1, %v9077_v11 }
  0x4e   :  { %7822 = vmatprep.mubr.msk.bf16.mxu0 %vm9357_vm0, %v9356_v1 }
  0x55   :  { %7823 = vmatmul.mubr.msk.bf16.gmra.mxu0 %vm361_vm1, %v9078_v12 }
  0x56   :  { %7826 = vmatprep.mubr.msk.bf16.mxu0 %vm9357_vm0, %v9356_v1 }
  0x5d   :  { %7827 = vmatmul.mubr.msk.bf16.gmra.mxu0 %vm361_vm1, %v9079_v13 }
  0x5e   :  { %7830 = vmatprep.mubr.msk.bf16.mxu0 %vm9357_vm0, %v9356_v1 }
  0x65   :  { %7831 = vmatmul.mubr.msk.bf16.gmra.mxu0 %vm361_vm1, %v9080_v14 }
  0x66   :  { %7834 = vmatprep.mubr.msk.bf16.mxu0 %vm9357_vm0, %v9356_v1 }
  0x6d   :  { %7835 = vmatmul.mubr.msk.bf16.gmra.mxu0 %vm361_vm1, %v9081_v16 }
  0x6e   :  { %7838 = vmatprep.mubr.msk.bf16.mxu0 %vm9357_vm0, %v9356_v1 }
  0x75   :  { %7839 = vmatmul.mubr.msk.bf16.gmra.mxu0 %vm361_vm1, %v9082_v19 }
  0x76   :  { %7842 = vmatprep.mubr.msk.bf16.mxu0 %vm9357_vm0, %v9356_v1 }
  0x7d   :  { %7843 = vmatmul.mubr.msk.bf16.gmra.mxu0 %vm361_vm1, %v9083_v22 }
  0x7e   :  { %7846 = vmatprep.mubr.msk.bf16.mxu0 %vm9357_vm0, %v9356_v1 }
  0x85   :  { %7847 = vmatmul.mubr.msk.bf16.gmra.mxu0 %vm361_vm1, %v9084_v25 }
  0x86   :  { %7850 = vmatprep.mubr.msk.bf16.mxu0 %vm9357_vm0, %v9356_v1 }
  0x8d   :  { %7851 = vmatmul.mubr.msk.bf16.gmra.mxu0 %vm361_vm1, %v9085_v30 }
  0x8e   :  { %7854 = vmatprep.mubr.msk.bf16.mxu0 %vm9357_vm0, %v9356_v1 }
  0x95   :  { %7855 = vmatmul.mubr.msk.bf16.gmra.mxu0 %vm361_vm1, %v9086_v31 }
  0x96   :  { %7858 = vmatprep.mubr.msk.bf16.mxu0 %vm9357_vm0, %v9588_v32 }
  0x9d   :  { %7859 = vmatmul.mubr.msk.bf16.gmra.mxu0 %vm361_vm1, %v9087_v33 }
  0x9e   :  { %7862 = vmatprep.mubr.msk.bf16.mxu0 %vm9357_vm0, %v9588_v32 }
  0xa5   :  { %7863 = vmatmul.mubr.msk.bf16.gmra.mxu0 %vm361_vm1, %v9088_v34 }
  0xa6   :  { %7866 = vmatprep.mubr.msk.bf16.mxu0 %vm9357_vm0, %v9588_v32 }
  0xad   :  { %7867 = vmatmul.mubr.msk.bf16.gmra.mxu0 %vm361_vm1, %v9089_v35 }
  0xae   :  { %7870 = vmatprep.mubr.msk.bf16.mxu0 %vm9357_vm0, %v9588_v32 }
  0xb5   :  { %7871 = vmatmul.mubr.msk.bf16.gmra.mxu0 %vm361_vm1, %v9090_v37 }
  0xb6   :  { %7874 = vmatprep.mubr.msk.bf16.mxu0 %vm9357_vm0, %v9588_v32 }
  0xbd   :  { %7875 = vmatmul.mubr.msk.bf16.gmra.mxu0 %vm361_vm1, %v9091_v40 }
  0xbe   :  { %7878 = vmatprep.mubr.msk.bf16.mxu0 %vm9357_vm0, %v9588_v32 }
  0xbf   :  { %10 = vsyncpa [#allocation10], 0  ;;  %v9092_v44 = vld [vmem:[%s11842_s0 + $0xc0] sm:$0xff]   ;;  %8161 = vmatpush3.bf16.msra.mxu0 %v9121_v43  ;;  %v9123_v46 = vld [vmem:[%s11844_s2 + $0xc8] sm:$0xff]  }
  0xc0   :  { %v9651_v45 = vld [vmem:[%s11845_s3] ss:$0 sm:$0xff]  ;;  %8162 = vmatprep.subr.bf16.mxu0 %v9588_v32  ;;  %v9093_v52 = vld [vmem:[%s11842_s0 + $0xc8] sm:$0xff]   ;;  %v9094_v59 = vld [vmem:[%s11842_s0 + $0xd0] sm:$0xff]  }
  0xc1   :  { %v9660_v47 = vld [vmem:[%s11846_s4] ss:$0 sm:$0xff]  ;;  %v9095_v6 = vld [vmem:[%s11842_s0 + $0xd8] sm:$0xff]   ;;  %v9099_v30 = vld [vmem:[%s11842_s0 + $0xe8] sm:$0xff]  }
  0xc2   :  { %v9124_v50 = vld [vmem:[%s11844_s2 + $0xc0] sm:$0xff]  }
  0xc3   :  { %8163 = vmatpush3.bf16.msra.mxu0 %v9123_v46  ;;  %v9096_v17 = vld [vmem:[%s11842_s0 + $0xe0] sm:$0xff]  }
  0xc4   :  { %8164 = vmatprep.subr.bf16.mxu0 %v9588_v32 }
  0xc5   :  { %v519_v48 = vpop.f32.mrf.mxu0  ;;  %7879 = vmatmul.mubr.msk.bf16.gmra.mxu0 %vm361_vm1, %v9092_v44 }
  0xc6   :  { %7882 = vmatprep.mubr.msk.bf16.mxu0 %vm9357_vm0, %v9588_v32 }
  0xc7   :  { %v7784_v49 = vpop.f32.mrf.mxu0  ;;  %8165 = vmatpush3.bf16.msra.mxu0 %v9124_v50 }
  0xc8   :  { %8286 = vmatprep.subr.bf16.mxu0 %v9588_v32  ;;  %v9102_v49 = vld [vmem:[%s11842_s0 + $0xf0] sm:$0xff]  }
  0xc9   :  { %v522_v51 = vpop.f32.mrf.mxu0 }
  0xcb   :  { %v7785_v53 = vpop.f32.mrf.mxu0 }
  0xcd   :  { %v527_v54 = vpop.f32.mrf.mxu0  ;;  %7883 = vmatmul.mubr.msk.bf16.gmra.mxu0 %vm361_vm1, %v9093_v52 }
  0xce   :  { %v853_v55 = vmul.f32 %v9651_v45, %v527_v54  ;;  %7886 = vmatprep.mubr.msk.bf16.mxu0 %vm9357_vm0, %v9588_v32 }
  0xcf   :  { %v7788_v56 = vpop.f32.mrf.mxu0 }
  0xd0   :  { %v940_v57 = vadd.f32 %v9660_v47, %v853_v55 }
  0xd1   :  { %v530_v58 = vpop.f32.mrf.mxu0 }
  0xd2   :  { %v1021_v60 = vmax.f32 %v940_v57, 0.0  ;;  %v854_v61 = vmul.f32 %v9651_v45, %v530_v58 }
  0xd3   :  { %v7789_v62 = vpop.f32.mrf.mxu0 }
  0xd4   :  { %1102 = vst [vmem:[#allocation2 + $0x10] sm:$0xff] %v1021_v60  ;;  %v941_v63 = vadd.f32 %v9660_v47, %v854_v61  ;;  %v9105_v60 = vld [vmem:[%s11842_s0 + $0xf8] sm:$0xff]  }
  0xd5   :  { %v535_v0 = vpop.f32.mrf.mxu0  ;;  %7887 = vmatmul.mubr.msk.bf16.gmra.mxu0 %vm361_vm1, %v9094_v59 }
  0xd6   :  { %v1022_v1 = vmax.f32 %v941_v63, 0.0  ;;  %v855_v2 = vmul.f32 %v9651_v45, %v535_v0  ;;  %7890 = vmatprep.mubr.msk.bf16.mxu0 %vm9357_vm0, %v9588_v32 }
  0xd7   :  { %v7792_v3 = vpop.f32.mrf.mxu0 }
  0xd8   :  { %1103 = vst [vmem:[#allocation2 + $0x18] sm:$0xff] %v1022_v1  ;;  %v942_v4 = vadd.f32 %v9660_v47, %v855_v2 }
  0xd9   :  { %v538_v5 = vpop.f32.mrf.mxu0 }
  0xda   :  { %v1023_v7 = vmax.f32 %v942_v4, 0.0  ;;  %v856_v8 = vmul.f32 %v9651_v45, %v538_v5 }
  0xdb   :  { %v7793_v9 = vpop.f32.mrf.mxu0 }
  0xdc   :  { %1104 = vst [vmem:[#allocation2 + $0x20] sm:$0xff] %v1023_v7  ;;  %v943_v10 = vadd.f32 %v9660_v47, %v856_v8 }
  0xdd   :  { %v543_v11 = vpop.f32.mrf.mxu0  ;;  %7891 = vmatmul.mubr.msk.bf16.gmra.mxu0 %vm361_vm1, %v9095_v6 }
  0xde   :  { %v1024_v12 = vmax.f32 %v943_v10, 0.0  ;;  %v857_v13 = vmul.f32 %v9651_v45, %v543_v11  ;;  %7894 = vmatprep.mubr.msk.bf16.mxu0 %vm9357_vm0, %v9588_v32 }
  0xdf   :  { %v7796_v14 = vpop.f32.mrf.mxu0 }
  0xe0   :  { %1105 = vst [vmem:[#allocation2 + $0x28] sm:$0xff] %v1024_v12  ;;  %v944_v15 = vadd.f32 %v9660_v47, %v857_v13  ;;  %v9108_v13 = vld [vmem:[%s11842_s0 + $0x100] sm:$0xff]  }
  0xe1   :  { %v546_v16 = vpop.f32.mrf.mxu0 }
  0xe2   :  { %v1025_v18 = vmax.f32 %v944_v15, 0.0  ;;  %v858_v19 = vmul.f32 %v9651_v45, %v546_v16 }
  0xe3   :  { %v7797_v20 = vpop.f32.mrf.mxu0  ;;  %v1182_v27 = vld [vmem:[#allocation2 + $0x13] ss:$2 sm:$0xff]  ;;  %v1184_v28 = vld [vmem:[#allocation2 + $0x14] ss:$2 sm:$0xff] }
  0xe4   :  { %1106 = vst [vmem:[#allocation2 + $0x30] sm:$0xff] %v1025_v18  ;;  %v945_v21 = vadd.f32 %v9660_v47, %v858_v19  ;;  %v1189_v37 = vmax.f32 %v1182_v27, %v1184_v28 }
  0xe5   :  { %v551_v22 = vpop.f32.mrf.mxu0  ;;  %7895 = vmatmul.mubr.msk.bf16.gmra.mxu0 %vm361_vm1, %v9096_v17 }
  0xe6   :  { %v1026_v23 = vmax.f32 %v945_v21, 0.0  ;;  %v859_v24 = vmul.f32 %v9651_v45, %v551_v22  ;;  %7898 = vmatprep.mubr.msk.bf16.mxu0 %vm9357_vm0, %v9588_v32 }
  0xe7   :  { %v7800_v25 = vpop.f32.mrf.mxu0 }
  0xe8   :  { %1107 = vst [vmem:[#allocation2 + $0x38] sm:$0xff] %v1026_v23  ;;  %v946_v26 = vadd.f32 %v9660_v47, %v859_v24  ;;  %v9109_v25 = vld [vmem:[%s11842_s0 + $0x108] sm:$0xff]  }
  0xe9   :  { %v554_v29 = vpop.f32.mrf.mxu0 }
  0xea   :  { %v1027_v31 = vmax.f32 %v946_v26, 0.0  ;;  %v860_v33 = vmul.f32 %v9651_v45, %v554_v29 }
  0xeb   :  { %v1186_v34 = vld [vmem:[#allocation2 + $0x25] ss:$2 sm:$0xff]  ;;  %v1188_v35 = vld [vmem:[#allocation2 + $0x26] ss:$2 sm:$0xff]  ;;  %v7801_v36 = vpop.f32.mrf.mxu0 }
  0xec   :  { %v1190_v38 = vmax.f32 %v1186_v34, %v1188_v35  ;;  %1108 = vst [vmem:[#allocation2 + $0x40] sm:$0xff] %v1027_v31  ;;  %v947_v39 = vadd.f32 %v9660_v47, %v860_v33 }
  0xed   :  { %v559_v40 = vpop.f32.mrf.mxu0  ;;  %7899 = vmatmul.mubr.msk.bf16.gmra.mxu0 %vm361_vm1, %v9099_v30 }
  0xee   :  { %v1191_v41 = vmax.f32 %v1189_v37, %v1190_v38  ;;  %v1028_v42 = vmax.f32 %v947_v39, 0.0  ;;  %v861_v43 = vmul.f32 %v9651_v45, %v559_v40  ;;  %7902 = vmatprep.mubr.msk.bf16.mxu0 %vm9357_vm0, %v9588_v32 }
  0xef   :  { %v7804_v44 = vpop.f32.mrf.mxu0 }
  0xf0   :  { %1192 = vst [vmem:[#allocation6 + $0x16] sm:$0xff] %v1191_v41  ;;  %1109 = vst [vmem:[#allocation2 + $0x48] sm:$0xff] %v1028_v42  ;;  %v948_v46 = vadd.f32 %v9660_v47, %v861_v43 }
  0xf1   :  { %v562_v48 = vpop.f32.mrf.mxu0 }
  0xf2   :  { %v1029_v50 = vmax.f32 %v948_v46, 0.0  ;;  %v862_v51 = vmul.f32 %v9651_v45, %v562_v48  ;;  %v9110_v48 = vld [vmem:[%s11842_s0 + $0x110] sm:$0xff]  }
  0xf3   :  { %v7805_v52 = vpop.f32.mrf.mxu0  ;;  %v1194_v1 = vld [vmem:[#allocation2 + $0x37] ss:$2 sm:$0xff]  ;;  %v1196_v2 = vld [vmem:[#allocation2 + $0x38] ss:$2 sm:$0xff] }
  0xf4   :  { %1110 = vst [vmem:[#allocation2 + $0x50] sm:$0xff] %v1029_v50  ;;  %v949_v53 = vadd.f32 %v9660_v47, %v862_v51  ;;  %v1201_v9 = vmax.f32 %v1194_v1, %v1196_v2 }
  0xf5   :  { %v567_v54 = vpop.f32.mrf.mxu0  ;;  %7903 = vmatmul.mubr.msk.bf16.gmra.mxu0 %vm361_vm1, %v9102_v49 }
  0xf6   :  { %v1030_v55 = vmax.f32 %v949_v53, 0.0  ;;  %v863_v56 = vmul.f32 %v9651_v45, %v567_v54  ;;  %7906 = vmatprep.mubr.msk.bf16.mxu0 %vm9357_vm0, %v9588_v32 }
  0xf7   :  { %v7808_v57 = vpop.f32.mrf.mxu0  ;;  %v1433_v29 = vld [vmem:[#allocation6 + $0x11] sm:$0xff] }
  0xf8   :  { %1111 = vst [vmem:[#allocation2 + $0x58] sm:$0xff] %v1030_v55  ;;  %v950_v58 = vadd.f32 %v9660_v47, %v863_v56 }
  0xf9   :  { %v570_v59 = vpop.f32.mrf.mxu0 }
  0xfa   :  { %v1031_v61 = vmax.f32 %v950_v58, 0.0  ;;  %v864_v62 = vmul.f32 %v9651_v45, %v570_v59 }
  0xfb   :  { %v7809_v63 = vpop.f32.mrf.mxu0  ;;  %v1198_v6 = vld [vmem:[#allocation2 + $0x49] ss:$2 sm:$0xff] }
  0xfc   :  { %1112 = vst [vmem:[#allocation2 + $0x60] sm:$0xff] %v1031_v61  ;;  %v951_v0 = vadd.f32 %v9660_v47, %v864_v62 }
  0xfd   :  { %v575_v3 = vpop.f32.mrf.mxu0  ;;  %7907 = vmatmul.mubr.msk.bf16.gmra.mxu0 %vm361_vm1, %v9105_v60  ;;  %v9111_v60 = vld [vmem:[%s11842_s0 + $0x118] sm:$0xff]  }
  0xfe   :  { %v1032_v4 = vmax.f32 %v951_v0, 0.0  ;;  %v865_v5 = vmul.f32 %v9651_v45, %v575_v3  ;;  %7910 = vmatprep.mubr.msk.bf16.mxu0 %vm9357_vm0, %v9588_v32 }
  0xff   :  { %v1200_v7 = vld [vmem:[#allocation2 + $0x4a] ss:$2 sm:$0xff]  ;;  %v7812_v8 = vpop.f32.mrf.mxu0 }
 0x100   :  { %v1202_v10 = vmax.f32 %v1198_v6, %v1200_v7  ;;  %1113 = vst [vmem:[#allocation2 + $0x68] sm:$0xff] %v1032_v4  ;;  %v952_v11 = vadd.f32 %v9660_v47, %v865_v5 }
 0x101   :  { %v578_v12 = vpop.f32.mrf.mxu0 }
 0x102   :  { %v1203_v14 = vmax.f32 %v1201_v9, %v1202_v10  ;;  %v1033_v15 = vmax.f32 %v952_v11, 0.0  ;;  %v866_v16 = vmul.f32 %v9651_v45, %v578_v12  ;;  %v9112_v12 = vld [vmem:[%s11842_s0 + $0x120] sm:$0xff]  }
 0x103   :  { %v7813_v17 = vpop.f32.mrf.mxu0 }
 0x104   :  { %1204 = vst [vmem:[#allocation6 + $0x20] sm:$0xff] %v1203_v14  ;;  %1114 = vst [vmem:[#allocation2 + $0x70] sm:$0xff] %v1033_v15  ;;  %v953_v18 = vadd.f32 %v9660_v47, %v866_v16 }
 0x105   :  { %v583_v19 = vpop.f32.mrf.mxu0  ;;  %7911 = vmatmul.mubr.msk.bf16.gmra.mxu0 %vm361_vm1, %v9108_v13 }
 0x106   :  { %v1034_v20 = vmax.f32 %v953_v18, 0.0  ;;  %v867_v21 = vmul.f32 %v9651_v45, %v583_v19  ;;  %7914 = vmatprep.mubr.msk.bf16.mxu0 %vm9357_vm0, %v9588_v32 }
 0x107   :  { %v7816_v22 = vpop.f32.mrf.mxu0  ;;  %v1206_v34 = vld [vmem:[#allocation2 + $0x5b] ss:$2 sm:$0xff]  ;;  %v1208_v35 = vld [vmem:[#allocation2 + $0x5c] ss:$2 sm:$0xff] }
 0x108   :  { %1115 = vst [vmem:[#allocation2 + $0x78] sm:$0xff] %v1034_v20  ;;  %v954_v23 = vadd.f32 %v9660_v47, %v867_v21  ;;  %v1213_v42 = vmax.f32 %v1206_v34, %v1208_v35 }
 0x109   :  { %v586_v24 = vpop.f32.mrf.mxu0 }
 0x10a   :  { %v1035_v26 = vmax.f32 %v954_v23, 0.0  ;;  %v868_v27 = vmul.f32 %v9651_v45, %v586_v24 }
 0x10b   :  { %v7817_v28 = vpop.f32.mrf.mxu0  ;;  %v1434_v30 = vld [vmem:[#allocation6 + $0x19] sm:$0xff]  ;;  %v1435_v0 = vld [vmem:[#allocation6 + $0x21] sm:$0xff] }
 0x10c   :  { %1116 = vst [vmem:[#allocation2 + $0x80] sm:$0xff] %v1035_v26  ;;  %v955_v31 = vadd.f32 %v9660_v47, %v868_v27  ;;  %v1457_v33 = vpack.c.bf16 %v1434_v30, %v1433_v29  ;;  %v9113_v28 = vld [vmem:[%s11842_s0 + $0x128] sm:$0xff]  }
 0x10d   :  { %v591_v36 = vpop.f32.mrf.mxu0  ;;  %7915 = vmatmul.mubr.msk.bf16.gmra.mxu0 %vm361_vm1, %v9109_v25 }
 0x10e   :  { %v1036_v37 = vmax.f32 %v955_v31, 0.0  ;;  %v869_v38 = vmul.f32 %v9651_v45, %v591_v36  ;;  %7967 = vmatmul.mubr.bf16.gmra.mxu1 %v1457_v33  ;;  %7918 = vmatprep.mubr.msk.bf16.mxu0 %vm9357_vm0, %v9588_v32 }
 0x10f   :  { %v1210_v39 = vld [vmem:[#allocation2 + $0x6d] ss:$2 sm:$0xff]  ;;  %v1212_v40 = vld [vmem:[#allocation2 + $0x6e] ss:$2 sm:$0xff]  ;;  %v7820_v41 = vpop.f32.mrf.mxu0  ;;  %7970 = vmatprep.mubr.msk.bf16.mxu1 %vm9357_vm0, %v9588_v32 }
 0x110   :  { %v1214_v43 = vmax.f32 %v1210_v39, %v1212_v40  ;;  %1117 = vst [vmem:[#allocation2 + $0x88] sm:$0xff] %v1036_v37  ;;  %v956_v44 = vadd.f32 %v9660_v47, %v869_v38 }
 0x111   :  { %v594_v46 = vpop.f32.mrf.mxu0 }
 0x112   :  { %v9763_v49 = vmax.f32 %v1213_v42, %v1214_v43  ;;  %v1037_v50 = vmax.f32 %v956_v44, 0.0  ;;  %v870_v51 = vmul.f32 %v9651_v45, %v594_v46  ;;  %v9116_v42 = vld [vmem:[%s11842_s0 + $0x130] sm:$0xff]  }
 0x113   :  { %v7821_v52 = vpop.f32.mrf.mxu0 }
 0x114   :  { %1216 = vst [vmem:[#allocation6 + $0x2a] sm:$0xff] %v9763_v49  ;;  %1118 = vst [vmem:[#allocation2 + $0x90] sm:$0xff] %v1037_v50  ;;  %v957_v53 = vadd.f32 %v9660_v47, %v870_v51 }
 0x115   :  { %v599_v54 = vpop.f32.mrf.mxu0  ;;  %7919 = vmatmul.mubr.msk.bf16.gmra.mxu0 %vm361_vm1, %v9110_v48 }
 0x116   :  { %v1038_v55 = vmax.f32 %v957_v53, 0.0  ;;  %v871_v56 = vmul.f32 %v9651_v45, %v599_v54  ;;  %7922 = vmatprep.mubr.msk.bf16.mxu0 %vm9357_vm0, %v9588_v32 }
 0x117   :  { %v7824_v57 = vpop.f32.mrf.mxu0  ;;  %v1218_v9 = vld [vmem:[#allocation2 + $0x7f] ss:$2 sm:$0xff]  ;;  %v1220_v10 = vld [vmem:[#allocation2 + $0x80] ss:$2 sm:$0xff] }
 0x118   :  { %1119 = vst [vmem:[#allocation2 + $0x98] sm:$0xff] %v1038_v55  ;;  %v958_v58 = vadd.f32 %v9660_v47, %v871_v56  ;;  %v1225_v18 = vmax.f32 %v1218_v9, %v1220_v10 }
 0x119   :  { %v602_v59 = vpop.f32.mrf.mxu0 }
 0x11a   :  { %v1039_v61 = vmax.f32 %v958_v58, 0.0  ;;  %v872_v62 = vmul.f32 %v9651_v45, %v602_v59 }
 0x11b   :  { %v7825_v63 = vpop.f32.mrf.mxu0  ;;  %v1436_v1 = vld [vmem:[#allocation6 + $0x29] sm:$0xff] }
 0x11c   :  { %1120 = vst [vmem:[#allocation2 + $0xa0] sm:$0xff] %v1039_v61  ;;  %v959_v2 = vadd.f32 %v9660_v47, %v872_v62  ;;  %v1458_v3 = vpack.c.bf16 %v1436_v1, %v1435_v0  ;;  %v9119_v61 = vld [vmem:[%s11842_s0 + $0x138] sm:$0xff]  }
 0x11d   :  { %v607_v4 = vpop.f32.mrf.mxu0  ;;  %7923 = vmatmul.mubr.msk.bf16.gmra.mxu0 %vm361_vm1, %v9111_v60 }
 0x11e   :  { %v1040_v5 = vmax.f32 %v959_v2, 0.0  ;;  %v873_v6 = vmul.f32 %v9651_v45, %v607_v4  ;;  %7971 = vmatmul.mubr.bf16.gmra.mxu1 %v1458_v3  ;;  %7926 = vmatprep.mubr.msk.bf16.mxu0 %vm9357_vm0, %v9588_v32 }
 0x11f   :  { %v7828_v7 = vpop.f32.mrf.mxu0  ;;  %7974 = vmatprep.mubr.msk.bf16.mxu1 %vm9357_vm0, %v9588_v32  ;;  %v1222_v15 = vld [vmem:[#allocation2 + $0x91] ss:$2 sm:$0xff] }
 0x120   :  { %1121 = vst [vmem:[#allocation2 + $0xa8] sm:$0xff] %v1040_v5  ;;  %v960_v8 = vadd.f32 %v9660_v47, %v873_v6 }
 0x121   :  { %v610_v11 = vpop.f32.mrf.mxu0 }
 0x122   :  { %v1041_v13 = vmax.f32 %v960_v8, 0.0  ;;  %v874_v14 = vmul.f32 %v9651_v45, %v610_v11  ;;  %v9122_v11 = vld [vmem:[%s11842_s0 + $0x140] ss:$0 sps:$4 sm:$0xff]  }
 0x123   :  { %v1224_v16 = vld [vmem:[#allocation2 + $0x92] ss:$2 sm:$0xff]  ;;  %v7829_v17 = vpop.f32.mrf.mxu0 }
 0x124   :  { %v1226_v19 = vmax.f32 %v1222_v15, %v1224_v16  ;;  %1122 = vst [vmem:[#allocation2 + $0xb0] sm:$0xff] %v1041_v13  ;;  %v961_v20 = vadd.f32 %v9660_v47, %v874_v14 }
 0x125   :  { %v615_v21 = vpop.f32.mrf.mxu0  ;;  %7927 = vmatmul.mubr.msk.bf16.gmra.mxu0 %vm361_vm1, %v9112_v12 }
 0x126   :  { %v1227_v22 = vmax.f32 %v1225_v18, %v1226_v19  ;;  %v1042_v23 = vmax.f32 %v961_v20, 0.0  ;;  %v875_v24 = vmul.f32 %v9651_v45, %v615_v21  ;;  %7930 = vmatprep.mubr.msk.bf16.mxu0 %vm9357_vm0, %v9588_v32 }
 0x127   :  { %v7832_v25 = vpop.f32.mrf.mxu0 }
 0x128   :  { %1228 = vst [vmem:[#allocation6 + $0x34] sm:$0xff] %v1227_v22  ;;  %1123 = vst [vmem:[#allocation2 + $0xb8] sm:$0xff] %v1042_v23  ;;  %v962_v26 = vadd.f32 %v9660_v47, %v875_v24  ;;  %v1568_v24 = vpop.f32.mrf.mxu1 }
 0x129   :  { %v618_v27 = vpop.f32.mrf.mxu0 }
 0x12a   :  { %v1043_v29 = vmax.f32 %v962_v26, 0.0  ;;  %v876_v30 = vmul.f32 %v9651_v45, %v618_v27 }
 0x12b   :  { %v7833_v31 = vpop.f32.mrf.mxu0  ;;  %v1230_v39 = vld [vmem:[#allocation2 + $0xa3] ss:$2 sm:$0xff]  ;;  %v1232_v40 = vld [vmem:[#allocation2 + $0xa4] ss:$2 sm:$0xff] }
 0x12c   :  { %1124 = vst [vmem:[#allocation2 + $0xc0] sm:$0xff] %v1043_v29  ;;  %v963_v33 = vadd.f32 %v9660_v47, %v876_v30  ;;  %v1237_v51 = vmax.f32 %v1230_v39, %v1232_v40  ;;  %v2119_v29 = vld [vmem:[#allocation6 + $0x12] sm:$0xff]  ;;  %v7964_v31 = vpop.f32.mrf.mxu1  ;;  %v9125_v40 = vld [vmem:[%s11844_s2 + $0x38] sm:$0xff]  }
 0x12d   :  { %v623_v34 = vpop.f32.mrf.mxu0  ;;  %7931 = vmatmul.mubr.msk.bf16.gmra.mxu0 %vm361_vm1, %v9113_v28  ;;  %v2118_v28 = vld [vmem:[#allocation6 + $0xa] sm:$0xff]  ;;  %8015 = vmatpush3.bf16.msra.mxu1 %v9125_v40 }
 0x12e   :  { %v1044_v35 = vmax.f32 %v963_v33, 0.0  ;;  %v877_v36 = vmul.f32 %v9651_v45, %v623_v34  ;;  %7934 = vmatprep.mubr.msk.bf16.mxu0 %vm9357_vm0, %v9588_v32  ;;  %8016 = vmatprep.subr.bf16.mxu1 %v9588_v32 }
 0x12f   :  { %v7836_v37 = vpop.f32.mrf.mxu0  ;;  %v1437_v6 = vld [vmem:[#allocation6 + $0x31] sm:$0xff] }
 0x130   :  { %1125 = vst [vmem:[#allocation2 + $0xc8] sm:$0xff] %v1044_v35  ;;  %v964_v38 = vadd.f32 %v9660_v47, %v877_v36  ;;  %v2143_v37 = vpack.c.bf16 %v2119_v29, %v2118_v28 }
 0x131   :  { %v626_v41 = vpop.f32.mrf.mxu0 }
 0x132   :  { %v1045_v43 = vmax.f32 %v964_v38, 0.0  ;;  %v878_v44 = vmul.f32 %v9651_v45, %v626_v41  ;;  %v9838_v38 = vpop.f32.mrf.mxu1 }
 0x133   :  { %v1234_v46 = vld [vmem:[#allocation2 + $0xb5] ss:$2 sm:$0xff]  ;;  %v1236_v48 = vld [vmem:[#allocation2 + $0xb6] ss:$2 sm:$0xff]  ;;  %v7837_v50 = vpop.f32.mrf.mxu0 }
 0x134   :  { %v1238_v52 = vmax.f32 %v1234_v46, %v1236_v48  ;;  %1126 = vst [vmem:[#allocation2 + $0xd0] sm:$0xff] %v1045_v43  ;;  %v965_v53 = vadd.f32 %v9660_v47, %v878_v44  ;;  %v2120_v50 = vld [vmem:[#allocation6 + $0x1a] sm:$0xff] }
 0x135   :  { %v631_v54 = vpop.f32.mrf.mxu0  ;;  %7935 = vmatmul.mubr.msk.bf16.gmra.mxu0 %vm361_vm1, %v9116_v42  ;;  %v7965_v42 = vpop.f32.mrf.mxu1 }
 0x136   :  { %v1239_v55 = vmax.f32 %v1237_v51, %v1238_v52  ;;  %v1046_v56 = vmax.f32 %v965_v53, 0.0  ;;  %v879_v57 = vmul.f32 %v9651_v45, %v631_v54  ;;  %7938 = vmatprep.mubr.msk.bf16.mxu0 %vm9357_vm0, %v9588_v32  ;;  %v2121_v51 = vld [vmem:[#allocation6 + $0x22] sm:$0xff] }
 0x137   :  { %v7840_v58 = vpop.f32.mrf.mxu0 }
 0x138   :  { %1240 = vst [vmem:[#allocation6 + $0x3e] sm:$0xff] %v1239_v55  ;;  %1127 = vst [vmem:[#allocation2 + $0xd8] sm:$0xff] %v1046_v56  ;;  %v966_v59 = vadd.f32 %v9660_v47, %v879_v57  ;;  %v2144_v56 = vpack.c.bf16 %v2121_v51, %v2120_v50 }
 0x139   :  { %v634_v60 = vpop.f32.mrf.mxu0 }
 0x13a   :  { %v1047_v62 = vmax.f32 %v966_v59, 0.0  ;;  %v880_v63 = vmul.f32 %v9651_v45, %v634_v60 }
 0x13b   :  { %v7841_v0 = vpop.f32.mrf.mxu0  ;;  %v1242_v16 = vld [vmem:[#allocation2 + $0xc7] ss:$2 sm:$0xff]  ;;  %v1244_v17 = vld [vmem:[#allocation2 + $0xc8] ss:$2 sm:$0xff] }
 0x13c   :  { %1128 = vst [vmem:[#allocation2 + $0xe0] sm:$0xff] %v1047_v62  ;;  %v967_v1 = vadd.f32 %v9660_v47, %v880_v63  ;;  %v1249_v25 = vmax.f32 %v1242_v16, %v1244_v17  ;;  %v9126_v16 = vld [vmem:[%s11844_s2 + $0x30] sm:$0xff]  }
 0x13d   :  { %v639_v2 = vpop.f32.mrf.mxu0  ;;  %7939 = vmatmul.mubr.msk.bf16.gmra.mxu0 %vm361_vm1, %v9119_v61  ;;  %8017 = vmatpush3.bf16.msra.mxu1 %v9126_v16 }
 0x13e   :  { %v1048_v3 = vmax.f32 %v967_v1, 0.0  ;;  %v881_v4 = vmul.f32 %v9651_v45, %v639_v2  ;;  %7942 = vmatprep.mubr.msk.bf16.mxu0 %vm9357_vm0, %v9588_v32  ;;  %v9852_v1 = vld [vmem:[#allocation6] sm:$0xff] }
 0x13f   :  { %v7844_v5 = vpop.f32.mrf.mxu0  ;;  %v1438_v7 = vld [vmem:[#allocation6 + $0x39] sm:$0xff]  ;;  %8018 = vmatprep.subr.bf16.mxu1 %v9852_v1 }
 0x140   :  { %1129 = vst [vmem:[#allocation2 + $0xe8] sm:$0xff] %v1048_v3  ;;  %v968_v8 = vadd.f32 %v9660_v47, %v881_v4  ;;  %v1459_v9 = vpack.c.bf16 %v1438_v7, %v1437_v6  ;;  %v2124_v24 = vld [vmem:[#allocation6 + $0x3a] sm:$0xff] }
 0x141   :  { %v642_v10 = vpop.f32.mrf.mxu0 }
 0x142   :  { %v1049_v12 = vmax.f32 %v968_v8, 0.0  ;;  %v882_v13 = vmul.f32 %v9651_v45, %v642_v10  ;;  %7975 = vmatmul.mubr.bf16.gmra.mxu1 %v1459_v9  ;;  %v2123_v8 = vld [vmem:[#allocation6 + $0x32] sm:$0xff] }
 0x143   :  { %v7845_v14 = vpop.f32.mrf.mxu0  ;;  %7978 = vmatprep.mubr.msk.bf16.mxu1 %vm9357_vm0, %v9588_v32  ;;  %v1246_v21 = vld [vmem:[#allocation2 + $0xd9] ss:$2 sm:$0xff] }
 0x144   :  { %1130 = vst [vmem:[#allocation2 + $0xf0] sm:$0xff] %v1049_v12  ;;  %v969_v15 = vadd.f32 %v9660_v47, %v882_v13  ;;  %v2145_v14 = vpack.c.bf16 %v2123_v8, %v9763_v49  ;;  %v2131_v8 = vld [vmem:[#allocation6 + $0x72] sm:$0xff] }
 0x145   :  { %v647_v18 = vpop.f32.mrf.mxu0  ;;  %7943 = vmatmul.mubr.msk.bf16.gmra.mxu0 %vm361_vm1, %v9122_v11 }
 0x146   :  { %v1050_v19 = vmax.f32 %v969_v15, 0.0  ;;  %v883_v20 = vmul.f32 %v9651_v45, %v647_v18  ;;  %8166 = vmatprep.mubr.msk.bf16.mxu0 %vm9357_vm0, %v9588_v32 }
 0x147   :  { %v1248_v22 = vld [vmem:[#allocation2 + $0xda] ss:$2 sm:$0xff]  ;;  %v7848_v23 = vpop.f32.mrf.mxu0 }
 0x148   :  { %v1250_v26 = vmax.f32 %v1246_v21, %v1248_v22  ;;  %1131 = vst [vmem:[#allocation2 + $0xf8] sm:$0xff] %v1050_v19  ;;  %v970_v27 = vadd.f32 %v9660_v47, %v883_v20 }
 0x149   :  { %v650_v30 = vpop.f32.mrf.mxu0 }
 0x14a   :  { %v1251_v33 = vmax.f32 %v1249_v25, %v1250_v26  ;;  %v1051_v34 = vmax.f32 %v970_v27, 0.0  ;;  %v884_v35 = vmul.f32 %v9651_v45, %v650_v30 }
 0x14b   :  { %v7849_v36 = vpop.f32.mrf.mxu0 }
 0x14c   :  { %1252 = vst [vmem:[#allocation6 + $0x48] sm:$0xff] %v1251_v33  ;;  %1132 = vst [vmem:[#allocation2 + $0x100] sm:$0xff] %v1051_v34  ;;  %v971_v39 = vadd.f32 %v9660_v47, %v884_v35 }
 0x14d   :  { %v655_v41 = vpop.f32.mrf.mxu0  ;;  %8167 = vmatmul.mubr.bf16.vlgmr.msra.gmra.mxu0 %v2143_v37 }
 0x14e   :  { %v1052_v43 = vmax.f32 %v971_v39, 0.0  ;;  %v885_v44 = vmul.f32 %v9651_v45, %v655_v41  ;;  %8170 = vmatprep.mubr.msk.bf16.mxu0 %vm9357_vm0, %v9588_v32  ;;  %v9127_v41 = vld [vmem:[%s11844_s2 + $0x28] sm:$0xff]  }
 0x14f   :  { %v7852_v46 = vpop.f32.mrf.mxu0  ;;  %v1254_v61 = vld [vmem:[#allocation2 + $0xeb] ss:$2 sm:$0xff]  ;;  %v1256_v62 = vld [vmem:[#allocation2 + $0xec] ss:$2 sm:$0xff]  ;;  %8019 = vmatpush3.bf16.msra.mxu1 %v9127_v41 }
 0x150   :  { %1133 = vst [vmem:[#allocation2 + $0x108] sm:$0xff] %v1052_v43  ;;  %v972_v48 = vadd.f32 %v9660_v47, %v885_v44  ;;  %v1261_v5 = vmax.f32 %v1254_v61, %v1256_v62  ;;  %8020 = vmatprep.subr.bf16.mxu1 %v9852_v1 }
 0x151   :  { %v658_v52 = vpop.f32.mrf.mxu0 }
 0x152   :  { %v1053_v53 = vmax.f32 %v972_v48, 0.0  ;;  %v886_v54 = vmul.f32 %v9651_v45, %v658_v52 }
 0x153   :  { %v7853_v55 = vpop.f32.mrf.mxu0  ;;  %v1439_v57 = vld [vmem:[#allocation6 + $0x41] sm:$0xff]  ;;  %v1440_v58 = vld [vmem:[#allocation6 + $0x49] sm:$0xff] }
 0x154   :  { %1134 = vst [vmem:[#allocation2 + $0x110] sm:$0xff] %v1053_v53  ;;  %v973_v59 = vadd.f32 %v9660_v47, %v886_v54  ;;  %v1460_v60 = vpack.c.bf16 %v1440_v58, %v1439_v57  ;;  %v2125_v21 = vld [vmem:[#allocation6 + $0x42] sm:$0xff]  ;;  %v2126_v33 = vld [vmem:[#allocation6 + $0x4a] sm:$0xff] }
 0x155   :  { %v663_v32 = vpop.f32.mrf.mxu0  ;;  %8171 = vmatmul.mubr.bf16.gmra.mxu0 %v2144_v56  ;;  %v2146_v26 = vpack.c.bf16 %v2125_v21, %v2124_v24 }
 0x156   :  { %v1054_v63 = vmax.f32 %v973_v59, 0.0  ;;  %v887_v0 = vmul.f32 %v9651_v45, %v663_v32  ;;  %7979 = vmatmul.mubr.bf16.gmra.mxu1 %v1460_v60  ;;  %8174 = vmatprep.mubr.msk.bf16.mxu0 %vm9357_vm0, %v9852_v1 }
 0x157   :  { %v1258_v2 = vld [vmem:[#allocation2 + $0xfd] ss:$2 sm:$0xff]  ;;  %v1260_v3 = vld [vmem:[#allocation2 + $0xfe] ss:$2 sm:$0xff]  ;;  %v7856_v4 = vpop.f32.mrf.mxu0  ;;  %7982 = vmatprep.mubr.msk.bf16.mxu1 %vm9357_vm0, %v9852_v1 }
 0x158   :  { %v1262_v6 = vmax.f32 %v1258_v2, %v1260_v3  ;;  %1135 = vst [vmem:[#allocation2 + $0x118] sm:$0xff] %v1054_v63  ;;  %v974_v7 = vadd.f32 %v9660_v47, %v887_v0  ;;  %v9128_v2 = vld [vmem:[%s11844_s2 + $0x20] sm:$0xff]  }
 0x159   :  { %v666_v9 = vpop.f32.mrf.mxu0  ;;  %8021 = vmatpush3.bf16.msra.mxu1 %v9128_v2 }
 0x15a   :  { %v1263_v10 = vmax.f32 %v1261_v5, %v1262_v6  ;;  %v1055_v11 = vmax.f32 %v974_v7, 0.0  ;;  %v888_v12 = vmul.f32 %v9651_v45, %v666_v9  ;;  %v2130_v7 = vld [vmem:[#allocation6 + $0x6a] sm:$0xff]  ;;  %8022 = vmatprep.subr.bf16.mxu1 %v9852_v1 }
 0x15b   :  { %v7857_v13 = vpop.f32.mrf.mxu0 }
 0x15c   :  { %1264 = vst [vmem:[#allocation6 + $0x52] sm:$0xff] %v1263_v10  ;;  %1136 = vst [vmem:[#allocation2 + $0x120] sm:$0xff] %v1055_v11  ;;  %v975_v15 = vadd.f32 %v9660_v47, %v888_v12  ;;  %v2147_v37 = vpack.c.bf16 %v1263_v10, %v2126_v33  ;;  %v1444_v12 = vld [vmem:[#allocation6 + $0x69] sm:$0xff]  ;;  %v9131_v33 = vld [vmem:[%s11844_s2 + $0x178] sm:$0xff]  }
 0x15d   :  { %v671_v17 = vpop.f32.mrf.mxu0  ;;  %8175 = vmatmul.mubr.bf16.gmra.mxu0 %v2145_v14 }
 0x15e   :  { %v1056_v18 = vmax.f32 %v975_v15, 0.0  ;;  %v889_v19 = vmul.f32 %v9651_v45, %v671_v17  ;;  %8178 = vmatprep.mubr.msk.bf16.mxu0 %vm9357_vm0, %v9852_v1  ;;  %v2149_v15 = vpack.c.bf16 %v2131_v8, %v2130_v7  ;;  %8287 = vmatpush3.bf16.msra.mxu0 %v9131_v33  ;;  %v9136_v7 = vld [vmem:[%s11844_s2 + $0x158] sm:$0xff]  }
 0x15f   :  { %v7860_v20 = vpop.f32.mrf.mxu0  ;;  %v1266_v29 = vld [vmem:[#allocation2 + $0x10f] ss:$2 sm:$0xff]  ;;  %v1268_v30 = vld [vmem:[#allocation2 + $0x110] ss:$2 sm:$0xff]  ;;  %8288 = vmatprep.subr.bf16.mxu0 %v9852_v1 }
 0x160   :  { %1137 = vst [vmem:[#allocation2 + $0x128] sm:$0xff] %v1056_v18  ;;  %v976_v49 = vadd.f32 %v9660_v47, %v889_v19  ;;  %v1273_v39 = vmax.f32 %v1266_v29, %v1268_v30 }
 0x161   :  { %v674_v22 = vpop.f32.mrf.mxu0 }
 0x162   :  { %v1057_v23 = vmax.f32 %v976_v49, 0.0 }
 0x163   :  { %v7861_v25 = vpop.f32.mrf.mxu0  ;;  %v1441_v58 = vld [vmem:[#allocation6 + $0x51] sm:$0xff] }
 0x164   :  { %1138 = vst [vmem:[#allocation2 + $0x130] sm:$0xff] %v1057_v23  ;;  %v9129_v23 = vld [vmem:[%s11844_s2 + $0x18] sm:$0xff]  }
 0x165   :  { %v679_v27 = vpop.f32.mrf.mxu0  ;;  %8179 = vmatmul.mubr.bf16.gmra.mxu0 %v2146_v26  ;;  %8023 = vmatpush3.bf16.msra.mxu1 %v9129_v23 }
 0x166   :  { %8182 = vmatprep.mubr.msk.bf16.mxu0 %vm9357_vm0, %v9852_v1  ;;  %8024 = vmatprep.subr.bf16.mxu1 %v9852_v1 }
 0x167   :  { %v7864_v28 = vpop.f32.mrf.mxu0  ;;  %v1270_v34 = vld [vmem:[#allocation2 + $0x121] ss:$2 sm:$0xff] }
 0x169   :  { %v682_v31 = vpop.f32.mrf.mxu0 }
 0x16b   :  { %v1272_v35 = vld [vmem:[#allocation2 + $0x122] ss:$2 sm:$0xff]  ;;  %v7865_v36 = vpop.f32.mrf.mxu0 }
 0x16c   :  { %v1274_v40 = vmax.f32 %v1270_v34, %v1272_v35 }
 0x16d   :  { %v687_v42 = vpop.f32.mrf.mxu0  ;;  %8183 = vmatmul.mubr.bf16.gmra.mxu0 %v2147_v37 }
 0x16e   :  { %v1275_v43 = vmax.f32 %v1273_v39, %v1274_v40  ;;  %v893_v44 = vmul.f32 %v9651_v45, %v687_v42  ;;  %8186 = vmatprep.mubr.msk.bf16.mxu0 %vm9357_vm0, %v9852_v1  ;;  %v9132_v42 = vld [vmem:[%s11844_s2 + $0x170] sm:$0xff]  }
 0x16f   :  { %v7868_v46 = vpop.f32.mrf.mxu0  ;;  %8289 = vmatpush3.bf16.msra.mxu0 %v9132_v42 }
 0x170   :  { %1276 = vst [vmem:[#allocation6 + $0x5c] sm:$0xff] %v1275_v43  ;;  %v980_v48 = vadd.f32 %v9660_v47, %v893_v44  ;;  %8290 = vmatprep.subr.bf16.mxu0 %v9852_v1 }
 0x171   :  { %v690_v50 = vpop.f32.mrf.mxu0 }
 0x172   :  { %v1061_v51 = vmax.f32 %v980_v48, 0.0  ;;  %v894_v52 = vmul.f32 %v9651_v45, %v690_v50 }
 0x173   :  { %v7869_v53 = vpop.f32.mrf.mxu0 }
 0x174   :  { %1142 = vst [vmem:[#allocation2 + $0x150] sm:$0xff] %v1061_v51  ;;  %v981_v54 = vadd.f32 %v9660_v47, %v894_v52 }
 0x175   :  { %v695_v55 = vpop.f32.mrf.mxu0 }
 0x176   :  { %v1062_v56 = vmax.f32 %v981_v54, 0.0  ;;  %v895_v57 = vmul.f32 %v9651_v45, %v695_v55  ;;  %v9933_v55 = vld [vmem:[%s11845_s3] ss:$0 sm:$0xff] }
 0x177   :  { %v7872_v59 = vpop.f32.mrf.mxu0  ;;  %v1442_v60 = vld [vmem:[#allocation6 + $0x59] sm:$0xff]  ;;  %v2129_v62 = vld [vmem:[#allocation6 + $0x62] sm:$0xff] }
 0x178   :  { %v2128_v61 = vld [vmem:[#allocation6 + $0x5a] sm:$0xff]  ;;  %1143 = vst [vmem:[#allocation2 + $0x158] sm:$0xff] %v1062_v56  ;;  %v982_v32 = vadd.f32 %v9660_v47, %v895_v57  ;;  %v1461_v63 = vpack.c.bf16 %v1442_v60, %v1441_v58  ;;  %v9133_v57 = vld [vmem:[%s11844_s2 + $0x8] sm:$0xff]  }
 0x179   :  { %v2148_v0 = vpack.c.bf16 %v2129_v62, %v2128_v61  ;;  %v698_v3 = vpop.f32.mrf.mxu0  ;;  %v1443_v11 = vld [vmem:[#allocation6 + $0x61] sm:$0xff]  ;;  %v9134_v58 = vld [vmem:[%s11844_s2 + $0x168] sm:$0xff]  }
 0x17a   :  { %v1063_v4 = vmax.f32 %v982_v32, 0.0  ;;  %v896_v5 = vmul.f32 %v9651_v45, %v698_v3  ;;  %7983 = vmatmul.mubr.bf16.gmra.mxu1 %v1461_v63  ;;  %v1462_v18 = vpack.c.bf16 %v1444_v12, %v1443_v11  ;;  %8291 = vmatpush3.bf16.msra.mxu0 %v9134_v58  ;;  %v9135_v63 = vld [vmem:[%s11844_s2 + $0x160] sm:$0xff]  }
 0x17b   :  { %8187 = vmatmul.mubr.bf16.gmra.mxu0 %v2148_v0  ;;  %v7873_v6 = vpop.f32.mrf.mxu0  ;;  %7986 = vmatprep.mubr.msk.bf16.mxu1 %vm9357_vm0, %v9852_v1  ;;  %v9137_v12 = vld [vmem:[%s11844_s2] sm:$0xff]  }
 0x17c   :  { %8190 = vmatprep.mubr.msk.bf16.mxu0 %vm9357_vm0, %v9852_v1  ;;  %1144 = vst [vmem:[#allocation2 + $0x160] sm:$0xff] %v1063_v4  ;;  %v983_v9 = vadd.f32 %v9660_v47, %v896_v5  ;;  %8292 = vmatprep.subr.bf16.mxu0 %v9852_v1  ;;  %v1445_v4 = vld [vmem:[#allocation6 + $0x71] sm:$0xff] }
 0x17d   :  { %v703_v10 = vpop.f32.mrf.mxu0 }
 0x17e   :  { %v1064_v13 = vmax.f32 %v983_v9, 0.0  ;;  %v897_v14 = vmul.f32 %v9651_v45, %v703_v10  ;;  %8293 = vmatpush3.bf16.msra.mxu0 %v9135_v63 }
 0x17f   :  { %v7876_v16 = vpop.f32.mrf.mxu0  ;;  %8294 = vmatprep.subr.bf16.mxu0 %v9852_v1 }
 0x180   :  { %1145 = vst [vmem:[#allocation2 + $0x168] sm:$0xff] %v1064_v13  ;;  %v984_v17 = vadd.f32 %v9660_v47, %v897_v14 }
 0x181   :  { %v706_v19 = vpop.f32.mrf.mxu0 }
 0x182   :  { %v1065_v20 = vmax.f32 %v984_v17, 0.0  ;;  %v898_v49 = vmul.f32 %v9651_v45, %v706_v19  ;;  %7987 = vmatmul.mubr.bf16.gmra.mxu1 %v1462_v18  ;;  %8295 = vmatpush3.bf16.msra.mxu0 %v9136_v7  ;;  %v9138_v18 = vld [vmem:[%s11844_s2 + $0x150] sm:$0xff]  }
 0x183   :  { %8191 = vmatmul.mubr.bf16.gmra.mxu0 %v2149_v15  ;;  %v7877_v21 = vpop.f32.mrf.mxu0  ;;  %7990 = vmatprep.mubr.msk.bf16.mxu1 %vm9357_vm0, %v9852_v1  ;;  %v1278_v36 = vld [vmem:[#allocation2 + $0x157] ss:$2 sm:$0xff]  ;;  %v1280_v37 = vld [vmem:[#allocation2 + $0x158] ss:$2 sm:$0xff] }
 0x184   :  { %8194 = vmatprep.mubr.msk.bf16.mxu0 %vm9357_vm0, %v9852_v1  ;;  %1146 = vst [vmem:[#allocation2 + $0x170] sm:$0xff] %v1065_v20  ;;  %v985_v22 = vadd.f32 %v9660_v47, %v898_v49  ;;  %v1285_v48 = vmax.f32 %v1278_v36, %v1280_v37  ;;  %8296 = vmatprep.subr.bf16.mxu0 %v9852_v1 }
 0x185   :  { %v711_v24 = vpop.f32.mrf.mxu0 }
 0x186   :  { %v1066_v25 = vmax.f32 %v985_v22, 0.0  ;;  %v899_v26 = vmul.f32 %v9651_v45, %v711_v24  ;;  %8297 = vmatpush3.bf16.msra.mxu0 %v9138_v18 }
 0x187   :  { %v7880_v27 = vpop.f32.mrf.mxu0  ;;  %8298 = vmatprep.subr.bf16.mxu0 %v9852_v1 }
 0x188   :  { %1147 = vst [vmem:[#allocation2 + $0x178] sm:$0xff] %v1066_v25  ;;  %v986_v28 = vadd.f32 %v9660_v47, %v899_v26 }
 0x189   :  { %v714_v29 = vpop.f32.mrf.mxu0 }
 0x18a   :  { %v1067_v30 = vmax.f32 %v986_v28, 0.0  ;;  %v900_v31 = vmul.f32 %v9651_v45, %v714_v29  ;;  %v9139_v28 = vld [vmem:[%s11844_s2 + $0x148] sm:$0xff]  }
 0x18b   :  { %v7881_v34 = vpop.f32.mrf.mxu0  ;;  %v1282_v43 = vld [vmem:[#allocation2 + $0x169] ss:$2 sm:$0xff]  ;;  %8299 = vmatpush3.bf16.msra.mxu0 %v9139_v28 }
 0x18c   :  { %1148 = vst [vmem:[#allocation2 + $0x180] sm:$0xff] %v1067_v30  ;;  %v987_v35 = vadd.f32 %v9660_v47, %v900_v31  ;;  %v9921_v47 = vld [vmem:[%s11846_s4] ss:$0 sm:$0xff]  ;;  %8300 = vmatprep.subr.bf16.mxu0 %v9852_v1 }
 0x18d   :  { %v719_v39 = vpop.f32.mrf.mxu0 }
 0x18e   :  { %v1068_v40 = vmax.f32 %v987_v35, 0.0  ;;  %v901_v41 = vmul.f32 %v9651_v45, %v719_v39  ;;  %v9130_v45 = vld [vmem:[%s11844_s2 + $0x10] sm:$0xff]   ;;  %v9140_v35 = vld [vmem:[%s11844_s2 + $0x140] sm:$0xff]  }
 0x18f   :  { %v1284_v44 = vld [vmem:[#allocation2 + $0x16a] ss:$2 sm:$0xff]  ;;  %v7884_v46 = vpop.f32.mrf.mxu0  ;;  %8025 = vmatpush3.bf16.msra.mxu1 %v9130_v45  ;;  %8301 = vmatpush3.bf16.msra.mxu0 %v9140_v35 }
 0x190   :  { %v1286_v50 = vmax.f32 %v1282_v43, %v1284_v44  ;;  %1149 = vst [vmem:[#allocation2 + $0x188] sm:$0xff] %v1068_v40  ;;  %v988_v51 = vadd.f32 %v9921_v47, %v901_v41  ;;  %8026 = vmatprep.subr.bf16.mxu1 %v9852_v1  ;;  %8422 = vmatprep.subr.bf16.mxu0 %v9852_v1 }
 0x191   :  { %v722_v52 = vpop.f32.mrf.mxu0 }
 0x192   :  { %v9928_v53 = vmax.f32 %v1285_v48, %v1286_v50  ;;  %v1069_v54 = vmax.f32 %v988_v51, 0.0  ;;  %v902_v56 = vmul.f32 %v9933_v55, %v722_v52 }
 0x193   :  { %v7885_v59 = vpop.f32.mrf.mxu0  ;;  %8027 = vmatpush3.bf16.msra.mxu1 %v9133_v57 }
 0x194   :  { %1288 = vst [vmem:[#allocation6 + $0x7a] sm:$0xff] %v9928_v53  ;;  %1150 = vst [vmem:[#allocation2 + $0x190] sm:$0xff] %v1069_v54  ;;  %v989_v60 = vadd.f32 %v9921_v47, %v902_v56  ;;  %8028 = vmatprep.subr.bf16.mxu1 %v9852_v1 }
 0x195   :  { %v727_v61 = vpop.f32.mrf.mxu0 }
 0x196   :  { %v1070_v62 = vmax.f32 %v989_v60, 0.0  ;;  %v903_v32 = vmul.f32 %v9933_v55, %v727_v61 }
 0x197   :  { %v7888_v0 = vpop.f32.mrf.mxu0  ;;  %v1290_v13 = vld [vmem:[#allocation2 + $0x17b] ss:$2 sm:$0xff]  ;;  %v1292_v14 = vld [vmem:[#allocation2 + $0x17c] ss:$2 sm:$0xff]  ;;  %8029 = vmatpush3.bf16.msra.mxu1 %v9137_v12 }
 0x198   :  { %1151 = vst [vmem:[#allocation2 + $0x198] sm:$0xff] %v1070_v62  ;;  %v990_v2 = vadd.f32 %v9921_v47, %v903_v32  ;;  %v1297_v21 = vmax.f32 %v1290_v13, %v1292_v14  ;;  %8082 = vmatprep.subr.bf16.mxu1 %v9852_v1 }
 0x199   :  { %v730_v3 = vpop.f32.mrf.mxu0 }
 0x19a   :  { %v1071_v5 = vmax.f32 %v990_v2, 0.0  ;;  %v904_v6 = vmul.f32 %v9933_v55, %v730_v3 }
 0x19b   :  { %v7889_v8 = vpop.f32.mrf.mxu0  ;;  %v1446_v9 = vld [vmem:[#allocation6 + $0x79] sm:$0xff] }
 0x19c   :  { %1152 = vst [vmem:[#allocation2 + $0x1a0] sm:$0xff] %v1071_v5  ;;  %v991_v10 = vadd.f32 %v9921_v47, %v904_v6  ;;  %v1463_v11 = vpack.c.bf16 %v1446_v9, %v1445_v4 }
 0x19d   :  { %v735_v15 = vpop.f32.mrf.mxu0 }
 0x19e   :  { %v1072_v16 = vmax.f32 %v991_v10, 0.0  ;;  %v905_v17 = vmul.f32 %v9933_v55, %v735_v15  ;;  %7991 = vmatmul.mubr.bf16.gmra.mxu1 %v1463_v11 }
 0x19f   :  { %v1294_v19 = vld [vmem:[#allocation2 + $0x18d] ss:$2 sm:$0xff]  ;;  %v1296_v20 = vld [vmem:[#allocation2 + $0x18e] ss:$2 sm:$0xff]  ;;  %v7892_v49 = vpop.f32.mrf.mxu0  ;;  %7994 = vmatprep.mubr.msk.bf16.mxu1 %vm9357_vm0, %v9852_v1 }
 0x1a0   :  { %v1298_v22 = vmax.f32 %v1294_v19, %v1296_v20  ;;  %1153 = vst [vmem:[#allocation2 + $0x1a8] sm:$0xff] %v1072_v16  ;;  %v992_v23 = vadd.f32 %v9921_v47, %v905_v17 }
 0x1a1   :  { %v738_v24 = vpop.f32.mrf.mxu0 }
 0x1a2   :  { %v1299_v25 = vmax.f32 %v1297_v21, %v1298_v22  ;;  %v1073_v26 = vmax.f32 %v992_v23, 0.0  ;;  %v906_v27 = vmul.f32 %v9933_v55, %v738_v24 }
 0x1a3   :  { %v7893_v29 = vpop.f32.mrf.mxu0 }
 0x1a4   :  { %1300 = vst [vmem:[#allocation6 + $0x84] sm:$0xff] %v1299_v25  ;;  %1154 = vst [vmem:[#allocation2 + $0x1b0] sm:$0xff] %v1073_v26  ;;  %v993_v30 = vadd.f32 %v9921_v47, %v906_v27 }
 0x1a5   :  { %v743_v31 = vpop.f32.mrf.mxu0 }
 0x1a6   :  { %v1074_v33 = vmax.f32 %v993_v30, 0.0  ;;  %v907_v34 = vmul.f32 %v9933_v55, %v743_v31 }
 0x1a7   :  { %v7896_v36 = vpop.f32.mrf.mxu0  ;;  %v1302_v54 = vld [vmem:[#allocation2 + $0x19f] ss:$2 sm:$0xff]  ;;  %v1304_v56 = vld [vmem:[#allocation2 + $0x1a0] ss:$2 sm:$0xff] }
 0x1a8   :  { %1155 = vst [vmem:[#allocation2 + $0x1b8] sm:$0xff] %v1074_v33  ;;  %v994_v37 = vadd.f32 %v9921_v47, %v907_v34  ;;  %v1309_v62 = vmax.f32 %v1302_v54, %v1304_v56 }
 0x1a9   :  { %v746_v39 = vpop.f32.mrf.mxu0 }
 0x1aa   :  { %v1075_v40 = vmax.f32 %v994_v37, 0.0  ;;  %v908_v41 = vmul.f32 %v9933_v55, %v746_v39 }
 0x1ab   :  { %v7897_v42 = vpop.f32.mrf.mxu0  ;;  %v2133_v43 = vld [vmem:[#allocation6 + $0x82] sm:$0xff] }
 0x1ac   :  { %1156 = vst [vmem:[#allocation2 + $0x1c0] sm:$0xff] %v1075_v40  ;;  %v995_v44 = vadd.f32 %v9921_v47, %v908_v41  ;;  %v2150_v46 = vpack.c.bf16 %v2133_v43, %v9928_v53  ;;  %v1447_v16 = vld [vmem:[#allocation6 + $0x81] sm:$0xff] }
 0x1ad   :  { %v751_v48 = vpop.f32.mrf.mxu0 }
 0x1ae   :  { %v1076_v50 = vmax.f32 %v995_v44, 0.0  ;;  %v909_v51 = vmul.f32 %v9933_v55, %v751_v48  ;;  %8195 = vmatmul.mubr.bf16.gmra.mxu0 %v2150_v46 }
 0x1af   :  { %v7900_v45 = vpop.f32.mrf.mxu0  ;;  %8198 = vmatprep.mubr.msk.bf16.mxu0 %vm9357_vm0, %v9852_v1  ;;  %v1306_v60 = vld [vmem:[#allocation2 + $0x1b1] ss:$2 sm:$0xff] }
 0x1b0   :  { %1157 = vst [vmem:[#allocation2 + $0x1c8] sm:$0xff] %v1076_v50  ;;  %v996_v52 = vadd.f32 %v9921_v47, %v909_v51 }
 0x1b1   :  { %v754_v57 = vpop.f32.mrf.mxu0 }
 0x1b2   :  { %v1077_v58 = vmax.f32 %v996_v52, 0.0  ;;  %v910_v59 = vmul.f32 %v9933_v55, %v754_v57 }
 0x1b3   :  { %v1308_v53 = vld [vmem:[#allocation2 + $0x1b2] ss:$2 sm:$0xff]  ;;  %v7901_v61 = vpop.f32.mrf.mxu0 }
 0x1b4   :  { %v1310_v32 = vmax.f32 %v1306_v60, %v1308_v53  ;;  %1158 = vst [vmem:[#allocation2 + $0x1d0] sm:$0xff] %v1077_v58  ;;  %v997_v63 = vadd.f32 %v9921_v47, %v910_v59 }
 0x1b5   :  { %v759_v0 = vpop.f32.mrf.mxu0 }
 0x1b6   :  { %v1311_v2 = vmax.f32 %v1309_v62, %v1310_v32  ;;  %v1078_v3 = vmax.f32 %v997_v63, 0.0  ;;  %v911_v4 = vmul.f32 %v9933_v55, %v759_v0 }
 0x1b7   :  { %v7904_v5 = vpop.f32.mrf.mxu0 }
 0x1b8   :  { %1312 = vst [vmem:[#allocation6 + $0x8e] sm:$0xff] %v1311_v2  ;;  %1159 = vst [vmem:[#allocation2 + $0x1d8] sm:$0xff] %v1078_v3  ;;  %v998_v6 = vadd.f32 %v9921_v47, %v911_v4 }
 0x1b9   :  { %v762_v7 = vpop.f32.mrf.mxu0 }
 0x1ba   :  { %v1079_v8 = vmax.f32 %v998_v6, 0.0  ;;  %v912_v9 = vmul.f32 %v9933_v55, %v762_v7 }
 0x1bb   :  { %v7905_v10 = vpop.f32.mrf.mxu0  ;;  %v1314_v20 = vld [vmem:[#allocation2 + $0x1c3] ss:$2 sm:$0xff]  ;;  %v1316_v49 = vld [vmem:[#allocation2 + $0x1c4] ss:$2 sm:$0xff] }
 0x1bc   :  { %1160 = vst [vmem:[#allocation2 + $0x1e0] sm:$0xff] %v1079_v8  ;;  %v999_v11 = vadd.f32 %v9921_v47, %v912_v9  ;;  %v1321_v27 = vmax.f32 %v1314_v20, %v1316_v49 }
 0x1bd   :  { %v767_v12 = vpop.f32.mrf.mxu0 }
 0x1be   :  { %v1080_v13 = vmax.f32 %v999_v11, 0.0  ;;  %v913_v14 = vmul.f32 %v9933_v55, %v767_v12 }
 0x1bf   :  { %v7908_v15 = vpop.f32.mrf.mxu0  ;;  %v1448_v17 = vld [vmem:[#allocation6 + $0x89] sm:$0xff] }
 0x1c0   :  { %1161 = vst [vmem:[#allocation2 + $0x1e8] sm:$0xff] %v1080_v13  ;;  %v1000_v18 = vadd.f32 %v9921_v47, %v913_v14  ;;  %v1464_v19 = vpack.c.bf16 %v1448_v17, %v1447_v16  ;;  %v2134_v50 = vld [vmem:[#allocation6 + $0x8a] sm:$0xff] }
 0x1c1   :  { %v770_v21 = vpop.f32.mrf.mxu0 }
 0x1c2   :  { %v1081_v22 = vmax.f32 %v1000_v18, 0.0  ;;  %v914_v23 = vmul.f32 %v9933_v55, %v770_v21  ;;  %7995 = vmatmul.mubr.bf16.gmra.mxu1 %v1464_v19 }
 0x1c3   :  { %v1318_v24 = vld [vmem:[#allocation2 + $0x1d5] ss:$2 sm:$0xff]  ;;  %v1320_v25 = vld [vmem:[#allocation2 + $0x1d6] ss:$2 sm:$0xff]  ;;  %v7909_v26 = vpop.f32.mrf.mxu0  ;;  %7998 = vmatprep.mubr.msk.bf16.mxu1 %vm9357_vm0, %v9852_v1 }
 0x1c4   :  { %v1322_v28 = vmax.f32 %v1318_v24, %v1320_v25  ;;  %1162 = vst [vmem:[#allocation2 + $0x1f0] sm:$0xff] %v1081_v22  ;;  %v1001_v29 = vadd.f32 %v9921_v47, %v914_v23 }
 0x1c5   :  { %v775_v30 = vpop.f32.mrf.mxu0 }
 0x1c6   :  { %v10002_v31 = vmax.f32 %v1321_v27, %v1322_v28  ;;  %v1082_v33 = vmax.f32 %v1001_v29, 0.0  ;;  %v915_v34 = vmul.f32 %v9933_v55, %v775_v30 }
 0x1c7   :  { %v7912_v35 = vpop.f32.mrf.mxu0 }
 0x1c8   :  { %1324 = vst [vmem:[#allocation6 + $0x98] sm:$0xff] %v10002_v31  ;;  %1163 = vst [vmem:[#allocation2 + $0x1f8] sm:$0xff] %v1082_v33  ;;  %v1002_v36 = vadd.f32 %v9921_v47, %v915_v34 }
 0x1c9   :  { %v778_v37 = vpop.f32.mrf.mxu0 }
 0x1ca   :  { %v1083_v39 = vmax.f32 %v1002_v36, 0.0  ;;  %v916_v40 = vmul.f32 %v9933_v55, %v778_v37 }
 0x1cb   :  { %v7913_v41 = vpop.f32.mrf.mxu0  ;;  %v1326_v2 = vld [vmem:[#allocation2 + $0x1e7] ss:$2 sm:$0xff]  ;;  %v1328_v3 = vld [vmem:[#allocation2 + $0x1e8] ss:$2 sm:$0xff] }
 0x1cc   :  { %1164 = vst [vmem:[#allocation2 + $0x200] sm:$0xff] %v1083_v39  ;;  %v1003_v42 = vadd.f32 %v9921_v47, %v916_v40  ;;  %v1333_v10 = vmax.f32 %v1326_v2, %v1328_v3 }
 0x1cd   :  { %v783_v43 = vpop.f32.mrf.mxu0 }
 0x1ce   :  { %v1084_v44 = vmax.f32 %v1003_v42, 0.0  ;;  %v917_v46 = vmul.f32 %v9933_v55, %v783_v43  ;;  %v10010_v48 = vpop.f32.mrf.mxu1 }
 0x1cf   :  { %v7916_v51 = vpop.f32.mrf.mxu0  ;;  %v1449_v45 = vld [vmem:[#allocation6 + $0x91] sm:$0xff]  ;;  %v1450_v52 = vld [vmem:[#allocation6 + $0x99] sm:$0xff] }
 0x1d0   :  { %v2135_v54 = vld [vmem:[#allocation6 + $0x92] sm:$0xff]  ;;  %1165 = vst [vmem:[#allocation2 + $0x208] sm:$0xff] %v1084_v44  ;;  %v1004_v56 = vadd.f32 %v9921_v47, %v917_v46  ;;  %v7968_v57 = vpop.f32.mrf.mxu1  ;;  %v1465_v58 = vpack.c.bf16 %v1450_v52, %v1449_v45  ;;  %v2136_v18 = vld [vmem:[#allocation6 + $0x9a] sm:$0xff] }
 0x1d1   :  { %v2151_v59 = vpack.c.bf16 %v2135_v54, %v2134_v50  ;;  %v786_v60 = vpop.f32.mrf.mxu0 }
 0x1d2   :  { %v1085_v53 = vmax.f32 %v1004_v56, 0.0  ;;  %v918_v61 = vmul.f32 %v9933_v55, %v786_v60  ;;  %v10014_v62 = vpop.f32.mrf.mxu1  ;;  %7999 = vmatmul.mubr.bf16.gmra.mxu1 %v1465_v58 }
 0x1d3   :  { %8199 = vmatmul.mubr.bf16.gmra.mxu0 %v2151_v59  ;;  %v7917_v32 = vpop.f32.mrf.mxu0  ;;  %8002 = vmatprep.mubr.msk.bf16.mxu1 %vm9357_vm0, %v9852_v1  ;;  %v1330_v7 = vld [vmem:[#allocation2 + $0x1f9] ss:$2 sm:$0xff] }
 0x1d4   :  { %8202 = vmatprep.mubr.msk.bf16.mxu0 %vm9357_vm0, %v9852_v1  ;;  %1166 = vst [vmem:[#allocation2 + $0x210] sm:$0xff] %v1085_v53  ;;  %v1005_v63 = vadd.f32 %v9921_v47, %v918_v61  ;;  %v7969_v0 = vpop.f32.mrf.mxu1 }
 0x1d5   :  { %v791_v4 = vpop.f32.mrf.mxu0 }
 0x1d6   :  { %v1086_v5 = vmax.f32 %v1005_v63, 0.0  ;;  %v919_v6 = vmul.f32 %v9933_v55, %v791_v4 }
 0x1d7   :  { %v1332_v8 = vld [vmem:[#allocation2 + $0x1fa] ss:$2 sm:$0xff]  ;;  %v7920_v9 = vpop.f32.mrf.mxu0 }
 0x1d8   :  { %v1334_v11 = vmax.f32 %v1330_v7, %v1332_v8  ;;  %1167 = vst [vmem:[#allocation2 + $0x218] sm:$0xff] %v1086_v5  ;;  %v1006_v12 = vadd.f32 %v9921_v47, %v919_v6 }
 0x1d9   :  { %v794_v13 = vpop.f32.mrf.mxu0 }
 0x1da   :  { %v1335_v14 = vmax.f32 %v1333_v10, %v1334_v11  ;;  %v1087_v15 = vmax.f32 %v1006_v12, 0.0  ;;  %v920_v16 = vmul.f32 %v9933_v55, %v794_v13 }
 0x1db   :  { %v7921_v17 = vpop.f32.mrf.mxu0 }
 0x1dc   :  { %1336 = vst [vmem:[#allocation6 + $0xa2] sm:$0xff] %v1335_v14  ;;  %1168 = vst [vmem:[#allocation2 + $0x220] sm:$0xff] %v1087_v15  ;;  %v1007_v19 = vadd.f32 %v9921_v47, %v920_v16  ;;  %v2152_v20 = vpack.c.bf16 %v1335_v14, %v2136_v18 }
 0x1dd   :  { %v799_v49 = vpop.f32.mrf.mxu0 }
 0x1de   :  { %v1088_v21 = vmax.f32 %v1007_v19, 0.0  ;;  %v921_v22 = vmul.f32 %v9933_v55, %v799_v49  ;;  %v10026_v23 = vpop.f32.mrf.mxu1  ;;  %8203 = vmatmul.mubr.bf16.gmra.mxu0 %v2152_v20 }
 0x1df   :  { %v7924_v24 = vpop.f32.mrf.mxu0  ;;  %8206 = vmatprep.mubr.msk.bf16.mxu0 %vm9357_vm0, %v9852_v1  ;;  %v1338_v36 = vld [vmem:[#allocation2 + $0x20b] ss:$2 sm:$0xff]  ;;  %v1340_v37 = vld [vmem:[#allocation2 + $0x20c] ss:$2 sm:$0xff] }
 0x1e0   :  { %1169 = vst [vmem:[#allocation2 + $0x228] sm:$0xff] %v1088_v21  ;;  %v1008_v25 = vadd.f32 %v9921_v47, %v921_v22  ;;  %v7972_v26 = vpop.f32.mrf.mxu1  ;;  %v1345_v46 = vmax.f32 %v1338_v36, %v1340_v37 }
 0x1e1   :  { %v802_v27 = vpop.f32.mrf.mxu0 }
 0x1e2   :  { %v1089_v28 = vmax.f32 %v1008_v25, 0.0  ;;  %v922_v29 = vmul.f32 %v9933_v55, %v802_v27  ;;  %v10032_v30 = vpop.f32.mrf.mxu1 }
 0x1e3   :  { %v7925_v33 = vpop.f32.mrf.mxu0  ;;  %v1451_v4 = vld [vmem:[#allocation6 + $0xa1] sm:$0xff] }
 0x1e4   :  { %1170 = vst [vmem:[#allocation2 + $0x230] sm:$0xff] %v1089_v28  ;;  %v1009_v34 = vadd.f32 %v9921_v47, %v922_v29  ;;  %v7973_v35 = vpop.f32.mrf.mxu1 }
 0x1e5   :  { %v807_v39 = vpop.f32.mrf.mxu0 }
 0x1e6   :  { %v1090_v40 = vmax.f32 %v1009_v34, 0.0  ;;  %v923_v41 = vmul.f32 %v9933_v55, %v807_v39 }
 0x1e7   :  { %v1342_v42 = vld [vmem:[#allocation2 + $0x21d] ss:$2 sm:$0xff]  ;;  %v1344_v43 = vld [vmem:[#allocation2 + $0x21e] ss:$2 sm:$0xff]  ;;  %v7928_v44 = vpop.f32.mrf.mxu0 }
 0x1e8   :  { %v1346_v50 = vmax.f32 %v1342_v42, %v1344_v43  ;;  %1171 = vst [vmem:[#allocation2 + $0x238] sm:$0xff] %v1090_v40  ;;  %v1010_v51 = vadd.f32 %v9921_v47, %v923_v41 }
 0x1e9   :  { %v810_v45 = vpop.f32.mrf.mxu0 }
 0x1ea   :  { %v10037_v52 = vmax.f32 %v1345_v46, %v1346_v50  ;;  %v1091_v54 = vmax.f32 %v1010_v51, 0.0  ;;  %v924_v56 = vmul.f32 %v9933_v55, %v810_v45 }
 0x1eb   :  { %v7929_v57 = vpop.f32.mrf.mxu0 }
 0x1ec   :  { %1348 = vst [vmem:[#allocation6 + $0xac] sm:$0xff] %v10037_v52  ;;  %1172 = vst [vmem:[#allocation2 + $0x240] sm:$0xff] %v1091_v54  ;;  %v1011_v58 = vadd.f32 %v9921_v47, %v924_v56 }
 0x1ed   :  { %v815_v59 = vpop.f32.mrf.mxu0 }
 0x1ee   :  { %v1092_v60 = vmax.f32 %v1011_v58, 0.0  ;;  %v925_v53 = vmul.f32 %v9933_v55, %v815_v59 }
 0x1ef   :  { %v7932_v61 = vpop.f32.mrf.mxu0  ;;  %v1350_v13 = vld [vmem:[#allocation2 + $0x22f] ss:$2 sm:$0xff]  ;;  %v1352_v14 = vld [vmem:[#allocation2 + $0x230] ss:$2 sm:$0xff] }
 0x1f0   :  { %1173 = vst [vmem:[#allocation2 + $0x248] sm:$0xff] %v1092_v60  ;;  %v1012_v32 = vadd.f32 %v9921_v47, %v925_v53  ;;  %v1357_v49 = vmax.f32 %v1350_v13, %v1352_v14 }
 0x1f1   :  { %v818_v63 = vpop.f32.mrf.mxu0 }
 0x1f2   :  { %v1093_v0 = vmax.f32 %v1012_v32, 0.0  ;;  %v926_v2 = vmul.f32 %v9933_v55, %v818_v63 }
 0x1f3   :  { %v7933_v3 = vpop.f32.mrf.mxu0  ;;  %v1452_v5 = vld [vmem:[#allocation6 + $0xa9] sm:$0xff] }
 0x1f4   :  { %1174 = vst [vmem:[#allocation2 + $0x250] sm:$0xff] %v1093_v0  ;;  %v1013_v6 = vadd.f32 %v9921_v47, %v926_v2  ;;  %v1466_v7 = vpack.c.bf16 %v1452_v5, %v1451_v4  ;;  %v10058_v42 = vld [vmem:[#allocation6 + $0xaa] sm:$0xff] }
 0x1f5   :  { %v823_v8 = vpop.f32.mrf.mxu0 }
 0x1f6   :  { %v1094_v9 = vmax.f32 %v1013_v6, 0.0  ;;  %v927_v10 = vmul.f32 %v9933_v55, %v823_v8  ;;  %8003 = vmatmul.mubr.bf16.gmra.mxu1 %v1466_v7 }
 0x1f7   :  { %v7936_v11 = vpop.f32.mrf.mxu0  ;;  %8006 = vmatprep.mubr.msk.bf16.mxu1 %vm9357_vm0, %v9852_v1  ;;  %v1354_v18 = vld [vmem:[#allocation2 + $0x241] ss:$2 sm:$0xff] }
 0x1f8   :  { %1175 = vst [vmem:[#allocation2 + $0x258] sm:$0xff] %v1094_v9  ;;  %v1014_v12 = vadd.f32 %v9921_v47, %v927_v10 }
 0x1f9   :  { %v826_v15 = vpop.f32.mrf.mxu0 }
 0x1fa   :  { %v1095_v16 = vmax.f32 %v1014_v12, 0.0  ;;  %v928_v17 = vmul.f32 %v9933_v55, %v826_v15  ;;  %v2142_v12 = vld [vmem:[#allocation6 + $0xca] sm:$0xff] }
 0x1fb   :  { %v1356_v19 = vld [vmem:[#allocation2 + $0x242] ss:$2 sm:$0xff]  ;;  %v7937_v20 = vpop.f32.mrf.mxu0 }
 0x1fc   :  { %v1358_v21 = vmax.f32 %v1354_v18, %v1356_v19  ;;  %1176 = vst [vmem:[#allocation2 + $0x260] sm:$0xff] %v1095_v16  ;;  %v1015_v22 = vadd.f32 %v9921_v47, %v928_v17  ;;  %v2155_v16 = vpack.c.bf16 %v2142_v12, %v2142_v12 }
 0x1fd   :  { %v831_v24 = vpop.f32.mrf.mxu0 }
 0x1fe   :  { %v1359_v25 = vmax.f32 %v1357_v49, %v1358_v21  ;;  %v1096_v26 = vmax.f32 %v1015_v22, 0.0  ;;  %v929_v27 = vmul.f32 %v9933_v55, %v831_v24  ;;  %v10092_v49 = vld [vmem:[#allocation6] sm:$0xff]  ;;  %v2646_v22 = vld [vmem:[#allocation6 + $0xc] sm:$0xff]  ;;  %v2647_v24 = vld [vmem:[#allocation6 + $0x14] sm:$0xff] }
 0x1ff   :  { %v7940_v28 = vpop.f32.mrf.mxu0 }
 0x200   :  { %1360 = vst [vmem:[#allocation6 + $0xb6] sm:$0xff] %v1359_v25  ;;  %1177 = vst [vmem:[#allocation2 + $0x268] sm:$0xff] %v1096_v26  ;;  %v1016_v29 = vadd.f32 %v9921_v47, %v929_v27  ;;  %v1402_v25 = vpack.c.bf16 %v10092_v49, %v10092_v49  ;;  %v9141_v27 = vld [vmem:[%s11844_s2 + $0xb8] sm:$0xff]   ;;  %v2671_v28 = vpack.c.bf16 %v2647_v24, %v2646_v22  ;;  %v1383_v24 = vld [vmem:[#allocation6 + $0x30] sm:$0xff] }
 0x201   :  { %v834_v33 = vpop.f32.mrf.mxu0 }
 0x202   :  { %v1097_v34 = vmax.f32 %v1016_v29, 0.0  ;;  %v10054_v35 = vpop.f32.mrf.mxu1 }
 0x203   :  { %v7941_v36 = vpop.f32.mrf.mxu0  ;;  %v1362_v46 = vld [vmem:[#allocation2 + $0x253] ss:$2 sm:$0xff]  ;;  %v1364_v50 = vld [vmem:[#allocation2 + $0x254] ss:$2 sm:$0xff] }
 0x204   :  { %1178 = vst [vmem:[#allocation2 + $0x270] sm:$0xff] %v1097_v34  ;;  %v7976_v37 = vpop.f32.mrf.mxu1  ;;  %v1369_v56 = vmax.f32 %v1362_v46, %v1364_v50  ;;  %v9142_v34 = vld [vmem:[%s11844_s2 + $0xb0] sm:$0xff]   ;;  %v1379_v36 = vld [vmem:[#allocation6 + $0x10] sm:$0xff] }
 0x205   :  { %v839_v39 = vpop.f32.mrf.mxu0 }
 0x206   :  { %v10056_v40 = vpop.f32.mrf.mxu1  ;;  %v1380_v39 = vld [vmem:[#allocation6 + $0x18] sm:$0xff] }
 0x207   :  { %v7944_v41 = vpop.f32.mrf.mxu0  ;;  %v2139_v43 = vld [vmem:[#allocation6 + $0xb2] sm:$0xff]  ;;  %v1403_v46 = vpack.c.bf16 %v1380_v39, %v1379_v36 }
 0x208   :  { %v7977_v55 = vpop.f32.mrf.mxu1  ;;  %v2153_v44 = vpack.c.bf16 %v2139_v43, %v10058_v42  ;;  %v1453_v0 = vld [vmem:[#allocation6 + $0xb1] sm:$0xff]  ;;  %v2649_v41 = vld [vmem:[#allocation6 + $0x24] sm:$0xff] }
 0x209   :  { %v842_v47 = vpop.f32.mrf.mxu0  ;;  %v9148_v43 = vld [vmem:[%s11844_s2 + $0x1f0] sm:$0xff]  }
 0x20a   :  { %8207 = vmatmul.mubr.bf16.gmra.mxu0 %v2153_v44  ;;  %v2648_v44 = vld [vmem:[#allocation6 + $0x1c] sm:$0xff]  ;;  %v9143_v47 = vld [vmem:[%s11844_s2 + $0xa8] sm:$0xff]  }
 0x20b   :  { %v1366_v51 = vld [vmem:[#allocation2 + $0x265] ss:$2 sm:$0xff]  ;;  %v1368_v45 = vld [vmem:[#allocation2 + $0x266] ss:$2 sm:$0xff]  ;;  %v7945_v54 = vpop.f32.mrf.mxu0  ;;  %8210 = vmatprep.mubr.msk.bf16.mxu0 %vm9357_vm0, %v9852_v1  ;;  %v2672_v50 = vpack.c.bf16 %v2649_v41, %v2648_v44 }
 0x20c   :  { %v1370_v57 = vmax.f32 %v1366_v51, %v1368_v45  ;;  %v9150_v45 = vld [vmem:[%s11844_s2 + $0x1e8] sm:$0xff]   ;;  %v9153_v44 = vld [vmem:[%s11844_s2 + $0x80] sm:$0xff]  }
 0x20d   :  { %v2255_v58 = vpop.f32.mrf.mxu0 }
 0x20e   :  { %v10063_v59 = vmax.f32 %v1369_v56, %v1370_v57  ;;  %v9144_v56 = vld [vmem:[%s11844_s2 + $0xa0] sm:$0xff]   ;;  %v2651_v58 = vld [vmem:[#allocation6 + $0x34] sm:$0xff] }
 0x20f   :  { %v8168_v60 = vpop.f32.mrf.mxu0  ;;  %v1382_v57 = vld [vmem:[#allocation6 + $0x28] sm:$0xff] }
 0x210   :  { %1372 = vst [vmem:[#allocation6 + $0xc0] sm:$0xff] %v10063_v59  ;;  %v9151_v60 = vld [vmem:[%s11844_s2 + $0x1e0] sm:$0xff]  }
 0x211   :  { %v10066_v53 = vpop.f32.mrf.mxu0 }
 0x213   :  { %v8169_v61 = vpop.f32.mrf.mxu0 }
 0x214   :  { %v1381_v61 = vld [vmem:[#allocation6 + $0x20] sm:$0xff] }
 0x215   :  { %v10068_v32 = vpop.f32.mrf.mxu0 }
 0x216   :  { %v10070_v63 = vpop.f32.mrf.mxu1 }
 0x217   :  { %v8172_v2 = vpop.f32.mrf.mxu0  ;;  %v1454_v3 = vld [vmem:[#allocation6 + $0xb9] sm:$0xff]  ;;  %v10074_v5 = vld [vmem:[#allocation6 + $0xc2] sm:$0xff] }
 0x218   :  { %v10072_v4 = vld [vmem:[#allocation6 + $0xba] sm:$0xff]  ;;  %v7980_v6 = vpop.f32.mrf.mxu1  ;;  %v1467_v7 = vpack.c.bf16 %v1454_v3, %v1453_v0  ;;  %v2650_v0 = vld [vmem:[#allocation6 + $0x2c] sm:$0xff]  ;;  %v1404_v2 = vpack.c.bf16 %v1382_v57, %v1381_v61 }
 0x219   :  { %v2154_v8 = vpack.c.bf16 %v10074_v5, %v10072_v4  ;;  %v10078_v9 = vpop.f32.mrf.mxu0  ;;  %v1455_v15 = vld [vmem:[#allocation6 + $0xc1] sm:$0xff]  ;;  %v2673_v3 = vpack.c.bf16 %v2651_v58, %v2650_v0  ;;  %v1388_v0 = vld [vmem:[#allocation6 + $0x58] sm:$0xff] }
 0x21a   :  { %v10080_v10 = vpop.f32.mrf.mxu1  ;;  %8007 = vmatmul.mubr.bf16.gmra.mxu1 %v1467_v7  ;;  %v1468_v18 = vpack.c.bf16 %v1455_v15, %v1455_v15  ;;  %v9145_v6 = vld [vmem:[%s11844_s2 + $0x98] sm:$0xff]   ;;  %v9146_v15 = vld [vmem:[%s11844_s2 + $0x90] sm:$0xff]  }
 0x21b   :  { %8211 = vmatmul.mubr.bf16.gmra.mxu0 %v2154_v8  ;;  %v8173_v11 = vpop.f32.mrf.mxu0  ;;  %8010 = vmatprep.mubr.msk.bf16.mxu1 %vm9357_vm0, %v9852_v1  ;;  %v9152_v7 = vld [vmem:[%s11844_s2 + $0x1d8] sm:$0xff]  }
 0x21c   :  { %8214 = vmatprep.mubr.msk.bf16.mxu0 %vm9357_vm0, %v9852_v1  ;;  %v7981_v13 = vpop.f32.mrf.mxu1 }
 0x21d   :  { %v10086_v14 = vpop.f32.mrf.mxu0 }
 0x21f   :  { %v8176_v17 = vpop.f32.mrf.mxu0 }
 0x220   :  { %v2653_v17 = vld [vmem:[#allocation6 + $0x44] sm:$0xff] }
 0x221   :  { %v10088_v19 = vpop.f32.mrf.mxu0 }
 0x222   :  { %11848 = vst [vmem:[#allocation12_spill] sm:$0xff] %v10088_v19  ;;  %8011 = vmatmul.mubr.bf16.gmra.mxu1 %v1468_v18  ;;  %v9154_v18 = vld [vmem:[%s11844_s2 + $0x1d0] sm:$0xff]  }
 0x223   :  { %8215 = vmatmul.mubr.bf16.gmra.mxu0 %v2155_v16  ;;  %v8177_v20 = vpop.f32.mrf.mxu0  ;;  %8030 = vmatprep.mubr.msk.bf16.mxu1 %vm9357_vm0, %v9852_v1  ;;  %v9147_v1 = vld [vmem:[%s11844_s2 + $0x1f8] sm:$0xff]   ;;  %v1384_v16 = vld [vmem:[#allocation6 + $0x38] sm:$0xff] }
 0x224   :  { %8302 = vmatprep.mubr.msk.bf16.mxu0 %vm9357_vm0, %v10092_v49 }
 0x225   :  { %v10096_v21 = vpop.f32.mrf.mxu0 }
 0x226   :  { %11849 = vst [vmem:[#allocation13_spill] sm:$0xff] %v10096_v21 }
 0x227   :  { %v8180_v26 = vpop.f32.mrf.mxu0 }
 0x229   :  { %v10103_v29 = vpop.f32.mrf.mxu0 }
 0x22a   :  { %11850 = vst [vmem:[#allocation14_spill] sm:$0xff] %v10103_v29  ;;  %8031 = vmatmul.mubr.bf16.vlgmr.msra.gmra.mxu1 %v1402_v25  ;;  %v2652_v25 = vld [vmem:[#allocation6 + $0x3c] sm:$0xff] }
 0x22b   :  { %8303 = vmatmul.mubr.bf16.vlgmr.msra.gmra.mxu0 %v2671_v28  ;;  %8083 = vmatpush3.bf16.msra.mxu1 %v9141_v27  ;;  %v8181_v33 = vpop.f32.mrf.mxu0  ;;  %v1405_v28 = vpack.c.bf16 %v1384_v16, %v1383_v24  ;;  %v2659_v16 = vld [vmem:[#allocation6 + $0x74] sm:$0xff] }
 0x22c   :  { %8034 = vmatprep.mubr.msk.bf16.mxu1 %vm9357_vm0, %v10092_v49  ;;  %8306 = vmatprep.mubr.msk.bf16.mxu0 %vm9357_vm0, %v10092_v49  ;;  %v9149_v33 = vld [vmem:[%s11844_s2 + $0x88] sm:$0xff]   ;;  %v1392_v24 = vld [vmem:[#allocation6 + $0x78] sm:$0xff] }
 0x22d   :  { %8084 = vmatprep.subr.bf16.mxu1 %v10092_v49  ;;  %v10116_v37 = vpop.f32.mrf.mxu0  ;;  %8423 = vmatpush3.bf16.msra.mxu0 %v9147_v1  ;;  %v2674_v1 = vpack.c.bf16 %v2653_v17, %v2652_v25  ;;  %v2661_v25 = vld [vmem:[#allocation6 + $0x84] sm:$0xff] }
 0x22e   :  { %11851 = vst [vmem:[#allocation15_spill] sm:$0xff] %v10116_v37  ;;  %8424 = vmatprep.subr.bf16.mxu0 %v10092_v49 }
 0x22f   :  { %v8184_v55 = vpop.f32.mrf.mxu0  ;;  %8085 = vmatpush3.bf16.msra.mxu1 %v9142_v34  ;;  %v9155_v34 = vld [vmem:[%s11844_s2 + $0x1c8] sm:$0xff]  }
 0x230   :  { %8086 = vmatprep.subr.bf16.mxu1 %v10092_v49 }
 0x231   :  { %v10126_v51 = vpop.f32.mrf.mxu0  ;;  %8425 = vmatpush3.bf16.msra.mxu0 %v9148_v43  ;;  %v1386_v43 = vld [vmem:[#allocation6 + $0x48] sm:$0xff] }
 0x232   :  { %11852 = vst [vmem:[#allocation16_spill] sm:$0xff] %v10126_v51  ;;  %8035 = vmatmul.mubr.bf16.gmra.mxu1 %v1403_v46  ;;  %8426 = vmatprep.subr.bf16.mxu0 %v10092_v49  ;;  %v2654_v46 = vld [vmem:[#allocation6 + $0x4c] sm:$0xff] }
 0x233   :  { %8307 = vmatmul.mubr.bf16.gmra.mxu0 %v2672_v50  ;;  %v8185_v54 = vpop.f32.mrf.mxu0  ;;  %8038 = vmatprep.mubr.msk.bf16.mxu1 %vm9357_vm0, %v10092_v49  ;;  %v2655_v50 = vld [vmem:[#allocation6 + $0x54] sm:$0xff] }
 0x234   :  { %8310 = vmatprep.mubr.msk.bf16.mxu0 %vm9357_vm0, %v10092_v49  ;;  %8087 = vmatpush3.bf16.msra.mxu1 %v9143_v47  ;;  %v9156_v47 = vld [vmem:[%s11844_s2 + $0x1c0] sm:$0xff]  }
 0x235   :  { %8088 = vmatprep.subr.bf16.mxu1 %v10092_v49  ;;  %8427 = vmatpush3.bf16.msra.mxu0 %v9150_v45 }
 0x236   :  { %8428 = vmatprep.subr.bf16.mxu0 %v10092_v49 }
 0x238   :  { %8089 = vmatpush3.bf16.msra.mxu1 %v9144_v56  ;;  %v1385_v56 = vld [vmem:[#allocation6 + $0x40] sm:$0xff] }
 0x239   :  { %8090 = vmatprep.subr.bf16.mxu1 %v10092_v49  ;;  %8429 = vmatpush3.bf16.msra.mxu0 %v9151_v60  ;;  %v1406_v58 = vpack.c.bf16 %v1386_v43, %v1385_v56  ;;  %v2675_v60 = vpack.c.bf16 %v2655_v50, %v2654_v46  ;;  %v1393_v43 = vld [vmem:[#allocation6 + $0x80] sm:$0xff] }
 0x23a   :  { %v10151_v8 = vpop.f32.mrf.mxu1  ;;  %8039 = vmatmul.mubr.bf16.gmra.mxu1 %v1404_v2  ;;  %8430 = vmatprep.subr.bf16.mxu0 %v10092_v49  ;;  %v2656_v2 = vld [vmem:[#allocation6 + $0x5c] sm:$0xff] }
 0x23b   :  { %v10153_v11 = vpop.f32.mrf.mxu0  ;;  %8311 = vmatmul.mubr.bf16.gmra.mxu0 %v2673_v3  ;;  %8042 = vmatprep.mubr.msk.bf16.mxu1 %vm9357_vm0, %v10092_v49  ;;  %v2657_v3 = vld [vmem:[#allocation6 + $0x64] sm:$0xff]  ;;  %v2664_v50 = vld [vmem:[#allocation6 + $0x9c] sm:$0xff] }
 0x23c   :  { %11853 = vst [vmem:[#allocation17_spill] sm:$0xff] %v10153_v11  ;;  %8314 = vmatprep.mubr.msk.bf16.mxu0 %vm9357_vm0, %v10092_v49  ;;  %v7984_v12 = vpop.f32.mrf.mxu1  ;;  %8091 = vmatpush3.bf16.msra.mxu1 %v9145_v6  ;;  %v1387_v6 = vld [vmem:[#allocation6 + $0x50] sm:$0xff] }
 0x23d   :  { %v8188_v13 = vpop.f32.mrf.mxu0  ;;  %8092 = vmatprep.subr.bf16.mxu1 %v10092_v49  ;;  %8431 = vmatpush3.bf16.msra.mxu0 %v9152_v7  ;;  %v1407_v7 = vpack.c.bf16 %v1388_v0, %v1387_v6  ;;  %v2676_v12 = vpack.c.bf16 %v2657_v3, %v2656_v2  ;;  %v1398_v3 = vld [vmem:[#allocation6 + $0xa8] sm:$0xff]  ;;  %v2667_v6 = vld [vmem:[#allocation6 + $0xb4] sm:$0xff] }
 0x23e   :  { %v10167_v20 = vpop.f32.mrf.mxu1  ;;  %8432 = vmatprep.subr.bf16.mxu0 %v10092_v49  ;;  %v1389_v13 = vld [vmem:[#allocation6 + $0x60] sm:$0xff] }
 0x23f   :  { %v10169_v22 = vpop.f32.mrf.mxu0  ;;  %v1408_v17 = vpack.c.bf16 %v10092_v49, %v1389_v13  ;;  %v2681_v13 = vpack.c.bf16 %v2667_v6, %v10037_v52  ;;  %v2670_v52 = vld [vmem:[#allocation6 + $0xcc] sm:$0xff] }
 0x240   :  { %11854 = vst [vmem:[#allocation18_spill] sm:$0xff] %v10169_v22  ;;  %v7985_v26 = vpop.f32.mrf.mxu1  ;;  %8093 = vmatpush3.bf16.msra.mxu1 %v9146_v15  ;;  %v2658_v15 = vld [vmem:[#allocation6 + $0x6c] sm:$0xff] }
 0x241   :  { %v8189_v27 = vpop.f32.mrf.mxu0  ;;  %8094 = vmatprep.subr.bf16.mxu1 %v10092_v49  ;;  %8433 = vmatpush3.bf16.msra.mxu0 %v9154_v18  ;;  %v2677_v18 = vpack.c.bf16 %v2659_v16, %v2658_v15  ;;  %v1400_v15 = vld [vmem:[#allocation6 + $0xb8] sm:$0xff] }
 0x242   :  { %v1616_v36 = vpop.f32.mrf.mxu1  ;;  %8043 = vmatmul.mubr.bf16.gmra.mxu1 %v1405_v28  ;;  %8434 = vmatprep.subr.bf16.mxu0 %v10092_v49  ;;  %v2660_v27 = vld [vmem:[#allocation6 + $0x7c] sm:$0xff] }
 0x243   :  { %8315 = vmatmul.mubr.bf16.gmra.mxu0 %v2674_v1  ;;  %v2303_v39 = vpop.f32.mrf.mxu0  ;;  %8046 = vmatprep.mubr.msk.bf16.mxu1 %vm9357_vm0, %v10092_v49  ;;  %v1409_v1 = vpack.c.bf16 %v1392_v24, %v10092_v49  ;;  %v2668_v16 = vld [vmem:[#allocation6 + $0xbc] sm:$0xff] }
 0x244   :  { %8318 = vmatprep.mubr.msk.bf16.mxu0 %vm9357_vm0, %v10092_v49  ;;  %v7988_v41 = vpop.f32.mrf.mxu1  ;;  %8095 = vmatpush3.bf16.msra.mxu1 %v9149_v33  ;;  %v2678_v33 = vpack.c.bf16 %v2661_v25, %v2660_v27  ;;  %v1394_v39 = vld [vmem:[#allocation6 + $0x88] sm:$0xff] }
 0x245   :  { %v8192_v55 = vpop.f32.mrf.mxu0  ;;  %8096 = vmatprep.subr.bf16.mxu1 %v10092_v49  ;;  %8435 = vmatpush3.bf16.msra.mxu0 %v9155_v34  ;;  %v2663_v41 = vld [vmem:[#allocation6 + $0x94] sm:$0xff] }
 0x246   :  { %v10191_v45 = vpop.f32.mrf.mxu1  ;;  %8436 = vmatprep.subr.bf16.mxu0 %v10092_v49  ;;  %v2662_v55 = vld [vmem:[#allocation6 + $0x8c] sm:$0xff] }
 0x247   :  { %v10193_v54 = vpop.f32.mrf.mxu0  ;;  %v2679_v46 = vpack.c.bf16 %v2663_v41, %v2662_v55  ;;  %v1855_v41 = vld [vmem:[#allocation6 + $0xa] sm:$0xff] }
 0x248   :  { %11855 = vst [vmem:[#allocation19_spill] sm:$0xff] %v10193_v54  ;;  %v7989_v57 = vpop.f32.mrf.mxu1  ;;  %8097 = vmatpush3.bf16.msra.mxu1 %v9153_v44  ;;  %v1410_v44 = vpack.c.bf16 %v1394_v39, %v1393_v43  ;;  %v1854_v39 = vld [vmem:[#allocation6 + $0x2] sm:$0xff] }
 0x249   :  { %v8193_v61 = vpop.f32.mrf.mxu0  ;;  %8437 = vmatpush3.bf16.msra.mxu0 %v9156_v47  ;;  %8218 = vmatprep.subr.bf16.mxu1 %v10092_v49  ;;  %v2665_v47 = vld [vmem:[#allocation6 + $0xa4] sm:$0xff]  ;;  %v1395_v57 = vld [vmem:[#allocation6 + $0x90] sm:$0xff]  ;;  %v1879_v55 = vpack.c.bf16 %v1855_v41, %v1854_v39 }
 0x24a   :  { %8047 = vmatmul.mubr.bf16.gmra.mxu1 %v1406_v58  ;;  %8558 = vmatprep.subr.bf16.mxu0 %v10092_v49  ;;  %v2680_v61 = vpack.c.bf16 %v2665_v47, %v2664_v50  ;;  %v3175_v43 = vld [vmem:[#allocation6 + $0x1d] sm:$0xff] }
 0x24b   :  { %8319 = vmatmul.mubr.bf16.gmra.mxu0 %v2675_v60  ;;  %8050 = vmatprep.mubr.msk.bf16.mxu1 %vm9357_vm0, %v10092_v49  ;;  %v1411_v60 = vpack.c.bf16 %v10002_v31, %v1395_v57  ;;  %v1399_v31 = vld [vmem:[#allocation6 + $0xb0] sm:$0xff]  ;;  %v9158_v57 = vld [vmem:[%s11844_s2 + $0x130] sm:$0xff]   ;;  %v2401_v54 = vld [vmem:[#allocation6 + $0xa3] sm:$0xff] }
 0x24c   :  { %8322 = vmatprep.mubr.msk.bf16.mxu0 %vm9357_vm0, %v10092_v49 }
 0x252   :  { %8051 = vmatmul.mubr.bf16.gmra.mxu1 %v1407_v7  ;;  %v1397_v7 = vld [vmem:[#allocation6 + $0xa0] sm:$0xff] }
 0x253   :  { %8323 = vmatmul.mubr.bf16.gmra.mxu0 %v2676_v12  ;;  %8054 = vmatprep.mubr.msk.bf16.mxu1 %vm9357_vm0, %v10092_v49  ;;  %v1412_v12 = vpack.c.bf16 %v1398_v3, %v1397_v7  ;;  %v1856_v7 = vld [vmem:[#allocation6 + $0x12] sm:$0xff] }
 0x254   :  { %8326 = vmatprep.mubr.msk.bf16.mxu0 %vm9357_vm0, %v10092_v49 }
 0x25a   :  { %8055 = vmatmul.mubr.bf16.gmra.mxu1 %v1408_v17  ;;  %v2669_v17 = vld [vmem:[#allocation6 + $0xc4] sm:$0xff] }
 0x25b   :  { %8327 = vmatmul.mubr.bf16.gmra.mxu0 %v2677_v18  ;;  %8058 = vmatprep.mubr.msk.bf16.mxu1 %vm9357_vm0, %v10092_v49  ;;  %v1413_v18 = vpack.c.bf16 %v1400_v15, %v1399_v31  ;;  %v2682_v24 = vpack.c.bf16 %v2669_v17, %v2668_v16  ;;  %v9159_v17 = vld [vmem:[%s11844_s2 + $0x128] sm:$0xff]  }
 0x25c   :  { %8330 = vmatprep.mubr.msk.bf16.mxu0 %vm9357_vm0, %v10092_v49 }
 0x25e   :  { %v10211_v26 = vpop.f32.mrf.mxu1 }
 0x260   :  { %v7992_v28 = vpop.f32.mrf.mxu1 }
 0x262   :  { %v10214_v34 = vpop.f32.mrf.mxu1  ;;  %8059 = vmatmul.mubr.bf16.gmra.mxu1 %v1409_v1  ;;  %v2683_v1 = vpack.c.bf16 %v2670_v52, %v2670_v52  ;;  %v3179_v52 = vld [vmem:[#allocation6 + $0x3d] sm:$0xff] }
 0x263   :  { %8331 = vmatmul.mubr.bf16.gmra.mxu0 %v2678_v33  ;;  %8062 = vmatprep.mubr.msk.bf16.mxu1 %vm9357_vm0, %v10092_v49 }
 0x264   :  { %8334 = vmatprep.mubr.msk.bf16.mxu0 %vm9357_vm0, %v10092_v49  ;;  %v7993_v36 = vpop.f32.mrf.mxu1 }
 0x265   :  { %v1414_v36 = vpack.c.bf16 %v10063_v59, %v10063_v59 }
 0x26a   :  { %8063 = vmatmul.mubr.bf16.gmra.mxu1 %v1410_v44  ;;  %v9157_v44 = vld [vmem:[%s11844_s2 + $0x138] sm:$0xff]  }
 0x26b   :  { %8335 = vmatmul.mubr.bf16.gmra.mxu0 %v2679_v46  ;;  %8066 = vmatprep.mubr.msk.bf16.mxu1 %vm9357_vm0, %v10092_v49  ;;  %v3174_v46 = vld [vmem:[#allocation6 + $0x15] sm:$0xff] }
 0x26c   :  { %8338 = vmatprep.mubr.msk.bf16.mxu0 %vm9357_vm0, %v10092_v49  ;;  %v3199_v50 = vpack.c.bf16 %v3175_v43, %v3174_v46  ;;  %v9161_v43 = vld [vmem:[%s11844_s2 + $0x118] sm:$0xff]   ;;  %v9162_v46 = vld [vmem:[%s11844_s2 + $0x110] sm:$0xff]  }
 0x26e   :  { %v10224_v56 = vpop.f32.mrf.mxu0 }
 0x26f   :  { %11856 = vst [vmem:[#allocation20_spill] sm:$0xff] %v10224_v56 }
 0x270   :  { %v8196_v58 = vpop.f32.mrf.mxu0 }
 0x272   :  { %8067 = vmatmul.mubr.bf16.gmra.mxu1 %v1411_v60  ;;  %v10227_v0 = vpop.f32.mrf.mxu0 }
 0x273   :  { %11857 = vst [vmem:[#allocation21_spill] sm:$0xff] %v10227_v0  ;;  %8339 = vmatmul.mubr.bf16.gmra.mxu0 %v2680_v61  ;;  %8070 = vmatprep.mubr.msk.bf16.mxu1 %vm9357_vm0, %v10092_v49  ;;  %v1857_v61 = vld [vmem:[#allocation6 + $0x1a] sm:$0xff] }
 0x274   :  { %8342 = vmatprep.mubr.msk.bf16.mxu0 %vm9357_vm0, %v10092_v49  ;;  %v8197_v2 = vpop.f32.mrf.mxu0  ;;  %v1880_v15 = vpack.c.bf16 %v1857_v61, %v1856_v7  ;;  %v9163_v7 = vld [vmem:[%s11844_s2 + $0x108] sm:$0xff]   ;;  %v2396_v0 = vld [vmem:[#allocation6 + $0x7b] sm:$0xff] }
 0x275   :  { %v3177_v2 = vld [vmem:[#allocation6 + $0x2d] sm:$0xff] }
 0x27a   :  { %8071 = vmatmul.mubr.bf16.gmra.mxu1 %v1412_v12  ;;  %v3176_v12 = vld [vmem:[#allocation6 + $0x25] sm:$0xff] }
 0x27b   :  { %8343 = vmatmul.mubr.bf16.gmra.mxu0 %v2681_v13  ;;  %8074 = vmatprep.mubr.msk.bf16.mxu1 %vm9357_vm0, %v10092_v49  ;;  %v3200_v16 = vpack.c.bf16 %v3177_v2, %v3176_v12  ;;  %v1862_v12 = vld [vmem:[#allocation6 + $0x42] sm:$0xff] }
 0x27c   :  { %8346 = vmatprep.mubr.msk.bf16.mxu0 %vm9357_vm0, %v10092_v49 }
 0x282   :  { %v10238_v25 = vpop.f32.mrf.mxu1  ;;  %8075 = vmatmul.mubr.bf16.gmra.mxu1 %v1413_v18  ;;  %v9160_v18 = vld [vmem:[%s11844_s2 + $0x120] sm:$0xff]  }
 0x283   :  { %8347 = vmatmul.mubr.bf16.gmra.mxu0 %v2682_v24  ;;  %8078 = vmatprep.mubr.msk.bf16.mxu1 %vm9357_vm0, %v10092_v49  ;;  %v1859_v24 = vld [vmem:[#allocation6 + $0x2a] sm:$0xff] }
 0x284   :  { %8350 = vmatprep.mubr.msk.bf16.mxu0 %vm9357_vm0, %v10092_v49  ;;  %v7996_v27 = vpop.f32.mrf.mxu1 }
 0x286   :  { %v10244_v28 = vpop.f32.mrf.mxu1 }
 0x288   :  { %v7997_v33 = vpop.f32.mrf.mxu1 }
 0x289   :  { %v3178_v33 = vld [vmem:[#allocation6 + $0x35] sm:$0xff] }
 0x28a   :  { %8079 = vmatmul.mubr.bf16.gmra.mxu1 %v1414_v36  ;;  %v3201_v39 = vpack.c.bf16 %v3179_v52, %v3178_v33  ;;  %v3185_v52 = vld [vmem:[#allocation6 + $0x6d] sm:$0xff] }
 0x28b   :  { %8351 = vmatmul.mubr.bf16.gmra.mxu0 %v2683_v1  ;;  %8098 = vmatprep.mubr.msk.bf16.mxu1 %vm9357_vm0, %v10092_v49  ;;  %v1858_v1 = vld [vmem:[#allocation6 + $0x22] sm:$0xff] }
 0x28c   :  { %8438 = vmatprep.mubr.msk.bf16.mxu0 %vm9357_vm0, %v10092_v49  ;;  %v1881_v36 = vpack.c.bf16 %v1859_v24, %v1858_v1  ;;  %v3184_v24 = vld [vmem:[#allocation6 + $0x65] sm:$0xff]  ;;  %v1865_v1 = vld [vmem:[#allocation6 + $0x5a] sm:$0xff] }
 0x292   :  { %v10255_v47 = vpop.f32.mrf.mxu1  ;;  %8099 = vmatmul.mubr.bf16.vlgmr.msra.gmra.mxu1 %v1879_v55 }
 0x293   :  { %v10257_v59 = vpop.f32.mrf.mxu0  ;;  %8439 = vmatmul.mubr.bf16.vlgmr.msra.gmra.mxu0 %v3199_v50  ;;  %8219 = vmatpush3.bf16.msra.mxu1 %v9157_v44  ;;  %v1861_v50 = vld [vmem:[#allocation6 + $0x3a] sm:$0xff] }
 0x294   :  { %11858 = vst [vmem:[#allocation22_spill] sm:$0xff] %v10257_v59  ;;  %8102 = vmatprep.mubr.msk.bf16.mxu1 %vm9357_vm0, %v10092_v49  ;;  %v8000_v58 = vpop.f32.mrf.mxu1  ;;  %8442 = vmatprep.mubr.msk.bf16.mxu0 %vm9357_vm0, %v10092_v49 }
 0x295   :  { %v8200_v60 = vpop.f32.mrf.mxu0  ;;  %8220 = vmatprep.subr.bf16.mxu1 %v10092_v49  ;;  %v1860_v58 = vld [vmem:[#allocation6 + $0x32] sm:$0xff] }
 0x296   :  { %v10267_v3 = vpop.f32.mrf.mxu1  ;;  %v3180_v60 = vld [vmem:[#allocation6 + $0x45] sm:$0xff]  ;;  %v1882_v61 = vpack.c.bf16 %v1861_v50, %v1860_v58  ;;  %v3187_v58 = vld [vmem:[#allocation6 + $0x7d] sm:$0xff] }
 0x297   :  { %v10269_v6 = vpop.f32.mrf.mxu0  ;;  %8221 = vmatpush3.bf16.msra.mxu1 %v9158_v57  ;;  %v3181_v57 = vld [vmem:[#allocation6 + $0x4d] sm:$0xff]  ;;  %v1866_v50 = vld [vmem:[#allocation6 + $0x62] sm:$0xff] }
 0x298   :  { %11859 = vst [vmem:[#allocation23_spill] sm:$0xff] %v10269_v6  ;;  %v8001_v13 = vpop.f32.mrf.mxu1  ;;  %8222 = vmatprep.subr.bf16.mxu1 %v10092_v49  ;;  %v3202_v2 = vpack.c.bf16 %v3181_v57, %v3180_v60  ;;  %v1867_v57 = vld [vmem:[#allocation6 + $0x6a] sm:$0xff]  ;;  %v3186_v60 = vld [vmem:[#allocation6 + $0x75] sm:$0xff] }
 0x299   :  { %v8201_v31 = vpop.f32.mrf.mxu0  ;;  %v9164_v13 = vld [vmem:[%s11844_s2 + $0x100] sm:$0xff]  }
 0x29a   :  { %8103 = vmatmul.mubr.bf16.gmra.mxu1 %v1880_v15  ;;  %v1863_v31 = vld [vmem:[#allocation6 + $0x4a] sm:$0xff]  ;;  %v3182_v15 = vld [vmem:[#allocation6 + $0x55] sm:$0xff] }
 0x29b   :  { %8443 = vmatmul.mubr.bf16.gmra.mxu0 %v3200_v16  ;;  %8106 = vmatprep.mubr.msk.bf16.mxu1 %vm9357_vm0, %v10092_v49  ;;  %v3183_v16 = vld [vmem:[#allocation6 + $0x5d] sm:$0xff] }
 0x29c   :  { %8446 = vmatprep.mubr.msk.bf16.mxu0 %vm9357_vm0, %v10092_v49  ;;  %8223 = vmatpush3.bf16.msra.mxu1 %v9159_v17  ;;  %v1883_v17 = vpack.c.bf16 %v1863_v31, %v1862_v12  ;;  %v1869_v12 = vld [vmem:[#allocation6 + $0x7a] sm:$0xff]  ;;  %v3188_v31 = vld [vmem:[#allocation6 + $0x85] sm:$0xff] }
 0x29d   :  { %8224 = vmatprep.subr.bf16.mxu1 %v10092_v49 }
 0x29e   :  { %v10283_v27 = vpop.f32.mrf.mxu0 }
 0x29f   :  { %11860 = vst [vmem:[#allocation24_spill] sm:$0xff] %v10283_v27 }
 0x2a0   :  { %v8204_v41 = vpop.f32.mrf.mxu0  ;;  %8225 = vmatpush3.bf16.msra.mxu1 %v9160_v18  ;;  %v3203_v18 = vpack.c.bf16 %v3183_v16, %v3182_v15 }
 0x2a1   :  { %8226 = vmatprep.subr.bf16.mxu1 %v10092_v49 }
 0x2a2   :  { %8107 = vmatmul.mubr.bf16.gmra.mxu1 %v1881_v36  ;;  %v10289_v55 = vpop.f32.mrf.mxu0  ;;  %v3204_v36 = vpack.c.bf16 %v3185_v52, %v3184_v24  ;;  %v1871_v24 = vld [vmem:[#allocation6 + $0x8a] sm:$0xff]  ;;  %v3191_v52 = vld [vmem:[#allocation6 + $0x9d] sm:$0xff] }
 0x2a3   :  { %8447 = vmatmul.mubr.bf16.gmra.mxu0 %v3201_v39  ;;  %11861 = vst [vmem:[#allocation25_spill] sm:$0xff] %v10289_v55  ;;  %8110 = vmatprep.mubr.msk.bf16.mxu1 %vm9357_vm0, %v10092_v49  ;;  %v1864_v39 = vld [vmem:[#allocation6 + $0x52] sm:$0xff]  ;;  %v2393_v55 = vld [vmem:[#allocation6 + $0x63] sm:$0xff] }
 0x2a4   :  { %8450 = vmatprep.mubr.msk.bf16.mxu0 %vm9357_vm0, %v10092_v49  ;;  %v8205_v44 = vpop.f32.mrf.mxu0  ;;  %8227 = vmatpush3.bf16.msra.mxu1 %v9161_v43  ;;  %v1884_v43 = vpack.c.bf16 %v1865_v1, %v1864_v39  ;;  %v3190_v39 = vld [vmem:[#allocation6 + $0x95] sm:$0xff] }
 0x2a5   :  { %8228 = vmatprep.subr.bf16.mxu1 %v10092_v49 }
 0x2a8   :  { %8229 = vmatpush3.bf16.msra.mxu1 %v9162_v46 }
 0x2a9   :  { %8230 = vmatprep.subr.bf16.mxu1 %v10092_v49 }
 0x2aa   :  { %8111 = vmatmul.mubr.bf16.gmra.mxu1 %v1882_v61  ;;  %v1885_v61 = vpack.c.bf16 %v1867_v57, %v1866_v50  ;;  %v1872_v50 = vld [vmem:[#allocation6 + $0x92] sm:$0xff]  ;;  %v1873_v57 = vld [vmem:[#allocation6 + $0x9a] sm:$0xff] }
 0x2ab   :  { %8451 = vmatmul.mubr.bf16.gmra.mxu0 %v3202_v2  ;;  %8114 = vmatprep.mubr.msk.bf16.mxu1 %vm9357_vm0, %v10092_v49  ;;  %v3205_v2 = vpack.c.bf16 %v3187_v58, %v3186_v60  ;;  %v3192_v58 = vld [vmem:[#allocation6 + $0xa5] sm:$0xff]  ;;  %v3193_v60 = vld [vmem:[#allocation6 + $0xad] sm:$0xff] }
 0x2ac   :  { %8454 = vmatprep.mubr.msk.bf16.mxu0 %vm9357_vm0, %v10092_v49  ;;  %8231 = vmatpush3.bf16.msra.mxu1 %v9163_v7  ;;  %v1868_v7 = vld [vmem:[#allocation6 + $0x72] sm:$0xff] }
 0x2ad   :  { %8232 = vmatprep.subr.bf16.mxu1 %v10092_v49  ;;  %v1886_v15 = vpack.c.bf16 %v1869_v12, %v1868_v7 }
 0x2b0   :  { %8233 = vmatpush3.bf16.msra.mxu1 %v9164_v13  ;;  %v3189_v13 = vld [vmem:[#allocation6 + $0x8d] sm:$0xff] }
 0x2b1   :  { %8354 = vmatprep.subr.bf16.mxu1 %v10092_v49  ;;  %v3206_v16 = vpack.c.bf16 %v3189_v13, %v3188_v31 }
 0x2b2   :  { %8115 = vmatmul.mubr.bf16.gmra.mxu1 %v1883_v17 }
 0x2b3   :  { %8455 = vmatmul.mubr.bf16.gmra.mxu0 %v3203_v18  ;;  %8118 = vmatprep.mubr.msk.bf16.mxu1 %vm9357_vm0, %v10092_v49 }
 0x2b4   :  { %8458 = vmatprep.mubr.msk.bf16.mxu0 %vm9357_vm0, %v10092_v49 }
 0x2b6   :  { %v10316_v33 = vpop.f32.mrf.mxu1 }
 0x2b8   :  { %v8004_v41 = vpop.f32.mrf.mxu1 }
 0x2ba   :  { %v10318_v44 = vpop.f32.mrf.mxu1  ;;  %8119 = vmatmul.mubr.bf16.gmra.mxu1 %v1884_v43 }
 0x2bb   :  { %8459 = vmatmul.mubr.bf16.gmra.mxu0 %v3204_v36  ;;  %8122 = vmatprep.mubr.msk.bf16.mxu1 %vm9357_vm0, %v10092_v49  ;;  %v1870_v36 = vld [vmem:[#allocation6 + $0x82] sm:$0xff] }
 0x2bc   :  { %8462 = vmatprep.mubr.msk.bf16.mxu0 %vm9357_vm0, %v10092_v49  ;;  %v8005_v46 = vpop.f32.mrf.mxu1  ;;  %v1887_v43 = vpack.c.bf16 %v1871_v24, %v1870_v36  ;;  %v1874_v24 = vld [vmem:[#allocation6 + $0xa2] sm:$0xff] }
 0x2bd   :  { %v3207_v46 = vpack.c.bf16 %v3191_v52, %v3190_v39  ;;  %v3194_v52 = vld [vmem:[#allocation6 + $0xb5] sm:$0xff] }
 0x2c2   :  { %8123 = vmatmul.mubr.bf16.gmra.mxu1 %v1885_v61  ;;  %v1888_v61 = vpack.c.bf16 %v1873_v57, %v1872_v50 }
 0x2c3   :  { %8463 = vmatmul.mubr.bf16.gmra.mxu0 %v3205_v2  ;;  %8126 = vmatprep.mubr.msk.bf16.mxu1 %vm9357_vm0, %v10092_v49  ;;  %v3208_v2 = vpack.c.bf16 %v3193_v60, %v3192_v58  ;;  %v3196_v60 = vld [vmem:[#allocation6 + $0xc5] sm:$0xff] }
 0x2c4   :  { %8466 = vmatprep.mubr.msk.bf16.mxu0 %vm9357_vm0, %v10092_v49 }
 0x2ca   :  { %8127 = vmatmul.mubr.bf16.gmra.mxu1 %v1886_v15  ;;  %v10328_v17 = vpop.f32.mrf.mxu0  ;;  %v3195_v15 = vld [vmem:[#allocation6 + $0xbd] sm:$0xff] }
 0x2cb   :  { %11862 = vst [vmem:[#allocation26_spill] sm:$0xff] %v10328_v17  ;;  %8467 = vmatmul.mubr.bf16.gmra.mxu0 %v3206_v16  ;;  %8130 = vmatprep.mubr.msk.bf16.mxu1 %vm9357_vm0, %v10092_v49  ;;  %v2392_v17 = vld [vmem:[#allocation6 + $0x5b] sm:$0xff] }
 0x2cc   :  { %8470 = vmatprep.mubr.msk.bf16.mxu0 %vm9357_vm0, %v10092_v49  ;;  %v8208_v18 = vpop.f32.mrf.mxu0 }
 0x2ce   :  { %v10334_v1 = vpop.f32.mrf.mxu0 }
 0x2cf   :  { %11863 = vst [vmem:[#allocation27_spill] sm:$0xff] %v10334_v1 }
 0x2d0   :  { %v8209_v41 = vpop.f32.mrf.mxu0 }
 0x2d1   :  { %v1889_v41 = vpack.c.bf16 %v10058_v42, %v1874_v24 }
 0x2d2   :  { %8131 = vmatmul.mubr.bf16.gmra.mxu1 %v1887_v43  ;;  %v3209_v43 = vpack.c.bf16 %v3195_v15, %v3194_v52 }
 0x2d3   :  { %8471 = vmatmul.mubr.bf16.gmra.mxu0 %v3207_v46  ;;  %8134 = vmatprep.mubr.msk.bf16.mxu1 %vm9357_vm0, %v10092_v49 }
 0x2d4   :  { %8474 = vmatprep.mubr.msk.bf16.mxu0 %vm9357_vm0, %v10092_v49 }
 0x2da   :  { %v10340_v7 = vpop.f32.mrf.mxu1  ;;  %8135 = vmatmul.mubr.bf16.gmra.mxu1 %v1888_v61  ;;  %v3197_v61 = vld [vmem:[#allocation6 + $0xcd] sm:$0xff] }
 0x2db   :  { %v10342_v12 = vpop.f32.mrf.mxu0  ;;  %8475 = vmatmul.mubr.bf16.gmra.mxu0 %v3208_v2  ;;  %8138 = vmatprep.mubr.msk.bf16.mxu1 %vm9357_vm0, %v10092_v49  ;;  %v3210_v24 = vpack.c.bf16 %v3197_v61, %v3196_v60 }
 0x2dc   :  { %11864 = vst [vmem:[#allocation28_spill] sm:$0xff] %v10342_v12  ;;  %8478 = vmatprep.mubr.msk.bf16.mxu0 %vm9357_vm0, %v10092_v49  ;;  %v8008_v13 = vpop.f32.mrf.mxu1 }
 0x2dd   :  { %v8212_v31 = vpop.f32.mrf.mxu0 }
 0x2de   :  { %v10348_v16 = vpop.f32.mrf.mxu1  ;;  %v1876_v31 = vld [vmem:[#allocation6 + $0xb2] sm:$0xff] }
 0x2df   :  { %v10350_v18 = vpop.f32.mrf.mxu0  ;;  %v1890_v15 = vpack.c.bf16 %v10072_v4, %v1876_v31  ;;  %v1891_v4 = vpack.c.bf16 %v10074_v5, %v10074_v5  ;;  %v2382_v31 = vld [vmem:[#allocation6 + $0xb] sm:$0xff]  ;;  %v9165_v5 = vld [vmem:[%s11844_s2 + $0x1b8] sm:$0xff]  }
 0x2e0   :  { %11865 = vst [vmem:[#allocation29_spill] sm:$0xff] %v10350_v18  ;;  %v8009_v36 = vpop.f32.mrf.mxu1 }
 0x2e1   :  { %v8213_v39 = vpop.f32.mrf.mxu0 }
 0x2e2   :  { %v1664_v46 = vpop.f32.mrf.mxu1  ;;  %8139 = vmatmul.mubr.bf16.gmra.mxu1 %v1889_v41 }
 0x2e3   :  { %v2351_v50 = vpop.f32.mrf.mxu0  ;;  %8479 = vmatmul.mubr.bf16.gmra.mxu0 %v3209_v43  ;;  %8142 = vmatprep.mubr.msk.bf16.mxu1 %vm9357_vm0, %v10092_v49 }
 0x2e4   :  { %8482 = vmatprep.mubr.msk.bf16.mxu0 %vm9357_vm0, %v10092_v49  ;;  %v8012_v57 = vpop.f32.mrf.mxu1 }
 0x2e5   :  { %v8216_v58 = vpop.f32.mrf.mxu0 }
 0x2e6   :  { %v1667_v2 = vpop.f32.mrf.mxu1 }
 0x2e7   :  { %v2354_v13 = vpop.f32.mrf.mxu0 }
 0x2e8   :  { %v8013_v36 = vpop.f32.mrf.mxu1 }
 0x2e9   :  { %v8217_v42 = vpop.f32.mrf.mxu0  ;;  %v2383_v36 = vld [vmem:[#allocation6 + $0x13] sm:$0xff] }
 0x2ea   :  { %v1752_v52 = vpop.f32.mrf.mxu1  ;;  %8143 = vmatmul.mubr.bf16.gmra.mxu1 %v1890_v15 }
 0x2eb   :  { %v2783_v39 = vpop.f32.mrf.mxu0  ;;  %8483 = vmatmul.mubr.bf16.gmra.mxu0 %v3210_v24  ;;  %8146 = vmatprep.mubr.msk.bf16.mxu1 %vm9357_vm0, %v10092_v49 }
 0x2ec   :  { %8486 = vmatprep.mubr.msk.bf16.mxu0 %vm9357_vm0, %v10092_v49  ;;  %v8032_v41 = vpop.f32.mrf.mxu1  ;;  %v2407_v39 = vpack.c.bf16 %v2383_v36, %v2382_v31  ;;  %v2384_v36 = vld [vmem:[#allocation6 + $0x1b] sm:$0xff] }
 0x2ed   :  { %v8304_v43 = vpop.f32.mrf.mxu0 }
 0x2ee   :  { %v10362_v46 = vpop.f32.mrf.mxu1 }
 0x2ef   :  { %v10364_v50 = vpop.f32.mrf.mxu0 }
 0x2f0   :  { %11866 = vst [vmem:[#allocation30_spill] sm:$0xff] %v10364_v50  ;;  %v8033_v57 = vpop.f32.mrf.mxu1 }
 0x2f1   :  { %v8305_v58 = vpop.f32.mrf.mxu0  ;;  %v9166_v57 = vld [vmem:[%s11844_s2 + $0x1b0] sm:$0xff]  }
 0x2f2   :  { %v10368_v60 = vpop.f32.mrf.mxu1  ;;  %8147 = vmatmul.mubr.bf16.gmra.mxu1 %v1891_v4 }
 0x2f3   :  { %v10370_v61 = vpop.f32.mrf.mxu0  ;;  %8234 = vmatprep.mubr.msk.bf16.mxu1 %vm9357_vm0, %v10092_v49 }
 0x2f4   :  { %11867 = vst [vmem:[#allocation31_spill] sm:$0xff] %v10370_v61  ;;  %v8036_v2 = vpop.f32.mrf.mxu1 }
 0x2f5   :  { %v8308_v13 = vpop.f32.mrf.mxu0  ;;  %v2385_v2 = vld [vmem:[#allocation6 + $0x23] sm:$0xff] }
 0x2f6   :  { %v10374_v42 = vpop.f32.mrf.mxu1 }
 0x2f7   :  { %v10376_v15 = vpop.f32.mrf.mxu0 }
 0x2f8   :  { %11868 = vst [vmem:[#allocation32_spill] sm:$0xff] %v10376_v15  ;;  %v8037_v24 = vpop.f32.mrf.mxu1 }
 0x2f9   :  { %v8309_v52 = vpop.f32.mrf.mxu0 }
 0x2fa   :  { %v10381_v41 = vpop.f32.mrf.mxu1  ;;  %8235 = vmatmul.mubr.bf16.vlgmr.msra.gmra.mxu1 %v2407_v39  ;;  %v2408_v39 = vpack.c.bf16 %v2385_v2, %v2384_v36  ;;  %v2387_v2 = vld [vmem:[#allocation6 + $0x33] sm:$0xff] }
 0x2fb   :  { %v10383_v43 = vpop.f32.mrf.mxu0  ;;  %8355 = vmatpush3.bf16.msra.mxu1 %v9165_v5  ;;  %8238 = vmatprep.mubr.msk.bf16.mxu1 %vm9357_vm0, %v10092_v49  ;;  %v9167_v5 = vld [vmem:[%s11844_s2 + $0x1a8] sm:$0xff]  }
 0x2fc   :  { %11869 = vst [vmem:[#allocation33_spill] sm:$0xff] %v10383_v43  ;;  %v8040_v58 = vpop.f32.mrf.mxu1  ;;  %8356 = vmatprep.subr.bf16.mxu1 %v10092_v49 }
 0x2fd   :  { %v8312_v4 = vpop.f32.mrf.mxu0 }
 0x2fe   :  { %v10391_v13 = vpop.f32.mrf.mxu1 }
 0x2ff   :  { %v10393_v31 = vpop.f32.mrf.mxu0  ;;  %8357 = vmatpush3.bf16.msra.mxu1 %v9166_v57  ;;  %v9168_v57 = vld [vmem:[%s11844_s2 + $0x1a0] sm:$0xff]  }
 0x300   :  { %11870 = vst [vmem:[#allocation34_spill] sm:$0xff] %v10393_v31  ;;  %v8041_v24 = vpop.f32.mrf.mxu1  ;;  %8358 = vmatprep.subr.bf16.mxu1 %v10092_v49 }
 0x301   :  { %v8313_v52 = vpop.f32.mrf.mxu0 }
 0x302   :  { %v10399_v58 = vpop.f32.mrf.mxu1  ;;  %8239 = vmatmul.mubr.bf16.gmra.mxu1 %v2408_v39  ;;  %v2386_v52 = vld [vmem:[#allocation6 + $0x2b] sm:$0xff]  ;;  %v9169_v39 = vld [vmem:[%s11844_s2 + $0x198] sm:$0xff]  }
 0x303   :  { %v10401_v4 = vpop.f32.mrf.mxu0  ;;  %8242 = vmatprep.mubr.msk.bf16.mxu1 %vm9357_vm0, %v10092_v49  ;;  %8359 = vmatpush3.bf16.msra.mxu1 %v9167_v5  ;;  %v2409_v15 = vpack.c.bf16 %v2387_v2, %v2386_v52 }
 0x304   :  { %11871 = vst [vmem:[#allocation35_spill] sm:$0xff] %v10401_v4  ;;  %v8044_v31 = vpop.f32.mrf.mxu1  ;;  %8360 = vmatprep.subr.bf16.mxu1 %v10092_v49 }
 0x305   :  { %v8316_v43 = vpop.f32.mrf.mxu0 }
 0x306   :  { %v10409_v36 = vpop.f32.mrf.mxu1 }
 0x307   :  { %v10411_v24 = vpop.f32.mrf.mxu0  ;;  %8361 = vmatpush3.bf16.msra.mxu1 %v9168_v57  ;;  %v9170_v57 = vld [vmem:[%s11844_s2 + $0x190] sm:$0xff]  }
 0x308   :  { %11872 = vst [vmem:[#allocation36_spill] sm:$0xff] %v10411_v24  ;;  %v8045_v5 = vpop.f32.mrf.mxu1  ;;  %8362 = vmatprep.subr.bf16.mxu1 %v10092_v49 }
 0x309   :  { %v8317_v4 = vpop.f32.mrf.mxu0  ;;  %v9171_v5 = vld [vmem:[%s11844_s2 + $0x188] sm:$0xff]  }
 0x30a   :  { %v10417_v31 = vpop.f32.mrf.mxu1  ;;  %8243 = vmatmul.mubr.bf16.gmra.mxu1 %v2409_v15  ;;  %v2389_v4 = vld [vmem:[#allocation6 + $0x43] sm:$0xff]  ;;  %v2388_v15 = vld [vmem:[#allocation6 + $0x3b] sm:$0xff] }
 0x30b   :  { %v10419_v43 = vpop.f32.mrf.mxu0  ;;  %8246 = vmatprep.mubr.msk.bf16.mxu1 %vm9357_vm0, %v10092_v49  ;;  %8363 = vmatpush3.bf16.msra.mxu1 %v9169_v39  ;;  %v2410_v50 = vpack.c.bf16 %v2389_v4, %v2388_v15  ;;  %v2391_v4 = vld [vmem:[#allocation6 + $0x53] sm:$0xff] }
 0x30c   :  { %11873 = vst [vmem:[#allocation37_spill] sm:$0xff] %v10419_v43  ;;  %v8048_v24 = vpop.f32.mrf.mxu1  ;;  %8364 = vmatprep.subr.bf16.mxu1 %v10092_v49 }
 0x30d   :  { %v8320_v61 = vpop.f32.mrf.mxu0 }
 0x30e   :  { %v10427_v2 = vpop.f32.mrf.mxu1 }
 0x30f   :  { %v10429_v52 = vpop.f32.mrf.mxu0  ;;  %8365 = vmatpush3.bf16.msra.mxu1 %v9170_v57  ;;  %v9172_v57 = vld [vmem:[%s11844_s2 + $0x180] sm:$0xff]  }
 0x310   :  { %11874 = vst [vmem:[#allocation38_spill] sm:$0xff] %v10429_v52  ;;  %v8049_v39 = vpop.f32.mrf.mxu1  ;;  %8366 = vmatprep.subr.bf16.mxu1 %v10092_v49 }
 0x311   :  { %v8321_v43 = vpop.f32.mrf.mxu0 }
 0x312   :  { %v10435_v24 = vpop.f32.mrf.mxu1  ;;  %8247 = vmatmul.mubr.bf16.gmra.mxu1 %v2410_v50  ;;  %v2390_v43 = vld [vmem:[#allocation6 + $0x4b] sm:$0xff] }
 0x313   :  { %v10437_v61 = vpop.f32.mrf.mxu0  ;;  %8250 = vmatprep.mubr.msk.bf16.mxu1 %vm9357_vm0, %v10092_v49  ;;  %8367 = vmatpush3.bf16.msra.mxu1 %v9171_v5  ;;  %v2411_v12 = vpack.c.bf16 %v2391_v4, %v2390_v43 }
 0x314   :  { %11875 = vst [vmem:[#allocation39_spill] sm:$0xff] %v10437_v61  ;;  %v8052_v52 = vpop.f32.mrf.mxu1  ;;  %8368 = vmatprep.subr.bf16.mxu1 %v10092_v49 }
 0x315   :  { %v8324_v18 = vpop.f32.mrf.mxu0 }
 0x316   :  { %v10445_v15 = vpop.f32.mrf.mxu1 }
 0x317   :  { %v10447_v39 = vpop.f32.mrf.mxu0  ;;  %8369 = vmatpush3.bf16.msra.mxu1 %v9172_v57 }
 0x318   :  { %11876 = vst [vmem:[#allocation40_spill] sm:$0xff] %v10447_v39  ;;  %v8053_v50 = vpop.f32.mrf.mxu1  ;;  %8490 = vmatprep.subr.bf16.mxu1 %v10092_v49 }
 0x319   :  { %v8325_v61 = vpop.f32.mrf.mxu0 }
 0x31a   :  { %v1800_v5 = vpop.f32.mrf.mxu1  ;;  %8251 = vmatmul.mubr.bf16.gmra.mxu1 %v2411_v12  ;;  %v2412_v61 = vpack.c.bf16 %v2393_v55, %v2392_v17 }
 0x31b   :  { %v2831_v1 = vpop.f32.mrf.mxu0  ;;  %8254 = vmatprep.mubr.msk.bf16.mxu1 %vm9357_vm0, %v10092_v49  ;;  %v2394_v5 = vld [vmem:[#allocation6 + $0x6b] sm:$0xff] }
 0x31c   :  { %v8056_v18 = vpop.f32.mrf.mxu1 }
 0x31d   :  { %v8328_v52 = vpop.f32.mrf.mxu0  ;;  %v2395_v18 = vld [vmem:[#allocation6 + $0x73] sm:$0xff] }
 0x31e   :  { %v10452_v27 = vpop.f32.mrf.mxu1 }
 0x31f   :  { %v10454_v6 = vpop.f32.mrf.mxu0 }
 0x320   :  { %11877 = vst [vmem:[#allocation41_spill] sm:$0xff] %v10454_v6  ;;  %v8057_v57 = vpop.f32.mrf.mxu1 }
 0x321   :  { %v8329_v50 = vpop.f32.mrf.mxu0 }
 0x322   :  { %v10456_v43 = vpop.f32.mrf.mxu1  ;;  %8255 = vmatmul.mubr.bf16.gmra.mxu1 %v2412_v61  ;;  %v2413_v50 = vpack.c.bf16 %v2395_v18, %v2394_v5 }
 0x323   :  { %v10458_v4 = vpop.f32.mrf.mxu0  ;;  %8258 = vmatprep.mubr.msk.bf16.mxu1 %vm9357_vm0, %v10092_v49 }
 0x324   :  { %11878 = vst [vmem:[#allocation42_spill] sm:$0xff] %v10458_v4  ;;  %v8060_v1 = vpop.f32.mrf.mxu1 }
 0x325   :  { %v8332_v12 = vpop.f32.mrf.mxu0 }
 0x326   :  { %v10462_v52 = vpop.f32.mrf.mxu1  ;;  %v2397_v12 = vld [vmem:[#allocation6 + $0x83] sm:$0xff] }
 0x327   :  { %v10464_v39 = vpop.f32.mrf.mxu0 }
 0x328   :  { %11879 = vst [vmem:[#allocation43_spill] sm:$0xff] %v10464_v39  ;;  %v8061_v6 = vpop.f32.mrf.mxu1 }
 0x329   :  { %v8333_v57 = vpop.f32.mrf.mxu0 }
 0x32a   :  { %v10466_v55 = vpop.f32.mrf.mxu1  ;;  %8259 = vmatmul.mubr.bf16.gmra.mxu1 %v2413_v50  ;;  %v2414_v57 = vpack.c.bf16 %v2397_v12, %v2396_v0  ;;  %v10480_v50 = vld [vmem:[#allocation6] sm:$0xff] }
 0x32b   :  { %v10468_v17 = vpop.f32.mrf.mxu0  ;;  %8262 = vmatprep.mubr.msk.bf16.mxu1 %vm9357_vm0, %v10092_v49 }
 0x32c   :  { %11880 = vst [vmem:[#allocation44_spill] sm:$0xff] %v10468_v17  ;;  %v8064_v61 = vpop.f32.mrf.mxu1 }
 0x32d   :  { %v8336_v1 = vpop.f32.mrf.mxu0 }
 0x32e   :  { %v10472_v4 = vpop.f32.mrf.mxu1  ;;  %v2399_v1 = vld [vmem:[#allocation6 + $0x93] sm:$0xff] }
 0x32f   :  { %v10474_v59 = vpop.f32.mrf.mxu0 }
 0x330   :  { %11881 = vst [vmem:[#allocation45_spill] sm:$0xff] %v10474_v59  ;;  %v8065_v39 = vpop.f32.mrf.mxu1 }
 0x331   :  { %v8337_v6 = vpop.f32.mrf.mxu0  ;;  %v2398_v39 = vld [vmem:[#allocation6 + $0x8b] sm:$0xff] }
 0x332   :  { %v10476_v5 = vpop.f32.mrf.mxu1  ;;  %8263 = vmatmul.mubr.bf16.gmra.mxu1 %v2414_v57  ;;  %v2415_v12 = vpack.c.bf16 %v2399_v1, %v2398_v39 }
 0x333   :  { %v10478_v18 = vpop.f32.mrf.mxu0  ;;  %8266 = vmatprep.mubr.msk.bf16.mxu1 %vm9357_vm0, %v10480_v50 }
 0x334   :  { %11882 = vst [vmem:[#allocation46_spill] sm:$0xff] %v10478_v18  ;;  %v8068_v49 = vpop.f32.mrf.mxu1 }
 0x335   :  { %v8340_v61 = vpop.f32.mrf.mxu0 }
 0x336   :  { %v10484_v17 = vpop.f32.mrf.mxu1  ;;  %v2400_v61 = vld [vmem:[#allocation6 + $0x9b] sm:$0xff] }
 0x337   :  { %v10486_v59 = vpop.f32.mrf.mxu0 }
 0x338   :  { %11883 = vst [vmem:[#allocation47_spill] sm:$0xff] %v10486_v59  ;;  %v8069_v6 = vpop.f32.mrf.mxu1 }
 0x339   :  { %v8341_v0 = vpop.f32.mrf.mxu0 }
 0x33a   :  { %v10488_v56 = vpop.f32.mrf.mxu1  ;;  %8267 = vmatmul.mubr.bf16.gmra.mxu1 %v2415_v12  ;;  %v2416_v0 = vpack.c.bf16 %v2401_v54, %v2400_v61 }
 0x33b   :  { %v10490_v57 = vpop.f32.mrf.mxu0  ;;  %8270 = vmatprep.mubr.msk.bf16.mxu1 %vm9357_vm0, %v10480_v50 }
 0x33c   :  { %11884 = vst [vmem:[#allocation48_spill] sm:$0xff] %v10490_v57  ;;  %v8072_v18 = vpop.f32.mrf.mxu1  ;;  %v2403_v57 = vld [vmem:[#allocation6 + $0xb3] sm:$0xff] }
 0x33d   :  { %v8344_v49 = vpop.f32.mrf.mxu0 }
 0x33e   :  { %v10494_v22 = vpop.f32.mrf.mxu1  ;;  %v3198_v49 = vld [vmem:[#allocation6 + $0xd5] sm:$0xff] }
 0x33f   :  { %v10496_v11 = vpop.f32.mrf.mxu0  ;;  %v3211_v51 = vpack.c.bf16 %v3198_v49, %v3198_v49  ;;  %v2404_v49 = vld [vmem:[#allocation6 + $0xbb] sm:$0xff] }
 0x340   :  { %11885 = vst [vmem:[#allocation49_spill] sm:$0xff] %v10496_v11  ;;  %v8073_v59 = vpop.f32.mrf.mxu1  ;;  %v2405_v11 = vld [vmem:[#allocation6 + $0xc3] sm:$0xff] }
 0x341   :  { %v8345_v6 = vpop.f32.mrf.mxu0  ;;  %v2402_v59 = vld [vmem:[#allocation6 + $0xab] sm:$0xff]  ;;  %8487 = vmatmul.mubr.bf16.gmra.mxu0 %v3211_v51 }
 0x342   :  { %v10498_v1 = vpop.f32.mrf.mxu1  ;;  %8271 = vmatmul.mubr.bf16.gmra.mxu1 %v2416_v0  ;;  %v2417_v6 = vpack.c.bf16 %v2403_v57, %v2402_v59  ;;  %8574 = vmatprep.mubr.msk.bf16.mxu0 %vm9357_vm0, %v10480_v50  ;;  %v2406_v59 = vld [vmem:[#allocation6 + $0xcb] sm:$0xff] }
 0x343   :  { %v10500_v39 = vpop.f32.mrf.mxu0  ;;  %8274 = vmatprep.mubr.msk.bf16.mxu1 %vm9357_vm0, %v10480_v50 }
 0x344   :  { %11886 = vst [vmem:[#allocation50_spill] sm:$0xff] %v10500_v39  ;;  %v8076_v12 = vpop.f32.mrf.mxu1 }
 0x345   :  { %v8348_v18 = vpop.f32.mrf.mxu0 }
 0x346   :  { %v10504_v37 = vpop.f32.mrf.mxu1 }
 0x347   :  { %v10506_v29 = vpop.f32.mrf.mxu0 }
 0x348   :  { %11887 = vst [vmem:[#allocation51_spill] sm:$0xff] %v10506_v29  ;;  %v8077_v54 = vpop.f32.mrf.mxu1 }
 0x349   :  { %v8349_v61 = vpop.f32.mrf.mxu0  ;;  %v2418_v54 = vpack.c.bf16 %v2405_v11, %v2404_v49  ;;  %v1761_v49 = vadd.f32 %v10368_v60, %v10010_v48  ;;  %v2910_v48 = vld [vmem:[#allocation6 + $0x14] sm:$0xff]  ;;  %v9173_v60 = vld [vmem:[%s11844_s2 + $0x238] sm:$0xff]  }
 0x34a   :  { %v1848_v0 = vpop.f32.mrf.mxu1  ;;  %8275 = vmatmul.mubr.bf16.gmra.mxu1 %v2417_v6 }
 0x34b   :  { %v2879_v39 = vpop.f32.mrf.mxu0  ;;  %8278 = vmatprep.mubr.msk.bf16.mxu1 %vm9357_vm0, %v10480_v50  ;;  %v1756_v0 = vadd.f32 %v10362_v46, %v9838_v38 }
 0x34c   :  { %v8080_v12 = vpop.f32.mrf.mxu1 }
 0x34d   :  { %v8352_v18 = vpop.f32.mrf.mxu0 }
 0x34e   :  { %v1851_v21 = vpop.f32.mrf.mxu1 }
 0x34f   :  { %v2882_v29 = vpop.f32.mrf.mxu0  ;;  %v2419_v21 = vpack.c.bf16 %v2406_v59, %v2406_v59  ;;  %v2911_v59 = vld [vmem:[#allocation6 + $0x1c] sm:$0xff] }
 0x350   :  { %v8081_v19 = vpop.f32.mrf.mxu1 }
 0x351   :  { %v8353_v51 = vpop.f32.mrf.mxu0 }
 0x352   :  { %v1991_v61 = vpop.f32.mrf.mxu1  ;;  %8279 = vmatmul.mubr.bf16.gmra.mxu1 %v2418_v54 }
 0x353   :  { %v3311_v57 = vpop.f32.mrf.mxu0  ;;  %8282 = vmatprep.mubr.msk.bf16.mxu1 %vm9357_vm0, %v10480_v50 }
 0x354   :  { %v8100_v39 = vpop.f32.mrf.mxu1  ;;  %v1764_v57 = vadd.f32 %v10374_v42, %v10014_v62 }
 0x355   :  { %v8440_v6 = vpop.f32.mrf.mxu0 }
 0x356   :  { %v1994_v12 = vpop.f32.mrf.mxu1 }
 0x357   :  { %v10516_v18 = vpop.f32.mrf.mxu0  ;;  %v10518_v29 = vadd.f32 %v1994_v12, %v1756_v0 }
 0x358   :  { %v8101_v19 = vpop.f32.mrf.mxu1 }
 0x359   :  { %v8441_v11 = vpop.f32.mrf.mxu0  ;;  %v2935_v19 = vpack.c.bf16 %v2911_v59, %v2910_v48 }
 0x35a   :  { %v1999_v51 = vpop.f32.mrf.mxu1  ;;  %8283 = vmatmul.mubr.bf16.gmra.mxu1 %v2419_v21  ;;  %v1769_v11 = vadd.f32 %v10381_v41, %v10026_v23  ;;  %v1772_v23 = vadd.f32 %v10391_v13, %v10032_v30  ;;  %v2912_v41 = vld [vmem:[#allocation6 + $0x24] sm:$0xff]  ;;  %v1777_v30 = vadd.f32 %v10399_v58, %v10054_v35  ;;  %v1780_v35 = vadd.f32 %v10409_v36, %v10056_v40  ;;  %v2915_v58 = vld [vmem:[#allocation6 + $0x3c] sm:$0xff] }
 0x35b   :  { %v10522_v54 = vpop.f32.mrf.mxu0  ;;  %v10524_v61 = vadd.f32 %v1999_v51, %v1761_v49  ;;  %8370 = vmatprep.mubr.msk.bf16.mxu1 %vm9357_vm0, %v10480_v50  ;;  %v9174_v51 = vld [vmem:[%s11844_s2 + $0x230] sm:$0xff]   ;;  %v1785_v40 = vadd.f32 %v10417_v31, %v10070_v63  ;;  %v1788_v63 = vadd.f32 %v10427_v2, %v10080_v10  ;;  %v2917_v31 = vld [vmem:[#allocation6 + $0x4c] sm:$0xff]  ;;  %v1793_v10 = vadd.f32 %v10435_v24, %v10151_v8 }
 0x35c   :  { %v8104_v38 = vpop.f32.mrf.mxu1  ;;  %v1796_v8 = vadd.f32 %v10445_v15, %v10167_v20  ;;  %v2919_v24 = vld [vmem:[#allocation6 + $0x5c] sm:$0xff]  ;;  %v2920_v20 = vld [vmem:[#allocation6 + $0x64] sm:$0xff]  ;;  %v2921_v15 = vld [vmem:[#allocation6 + $0x6c] sm:$0xff] }
 0x35d   :  { %v8444_v46 = vpop.f32.mrf.mxu0 }
 0x35e   :  { %v2002_v39 = vpop.f32.mrf.mxu1 }
 0x35f   :  { %v10530_v6 = vpop.f32.mrf.mxu0  ;;  %v10532_v0 = vadd.f32 %v2002_v39, %v1764_v57  ;;  %v2913_v57 = vld [vmem:[#allocation6 + $0x2c] sm:$0xff] }
 0x360   :  { %v8105_v12 = vpop.f32.mrf.mxu1 }
 0x361   :  { %v8445_v21 = vpop.f32.mrf.mxu0 }
 0x362   :  { %v2007_v49 = vpop.f32.mrf.mxu1  ;;  %8371 = vmatmul.mubr.bf16.vlgmr.msra.gmra.mxu1 %v2935_v19  ;;  %v2936_v19 = vpack.c.bf16 %v2913_v57, %v2912_v41 }
 0x363   :  { %v10539_v62 = vpop.f32.mrf.mxu0  ;;  %v10541_v42 = vadd.f32 %v2007_v49, %v1769_v11  ;;  %8491 = vmatpush3.bf16.msra.mxu1 %v9173_v60  ;;  %8374 = vmatprep.mubr.msk.bf16.mxu1 %vm9357_vm0, %v10480_v50  ;;  %v9175_v60 = vld [vmem:[%s11844_s2 + $0x228] sm:$0xff]  }
 0x364   :  { %v8108_v38 = vpop.f32.mrf.mxu1  ;;  %8492 = vmatprep.subr.bf16.mxu1 %v10480_v50 }
 0x365   :  { %v8448_v46 = vpop.f32.mrf.mxu0 }
 0x366   :  { %v2010_v59 = vpop.f32.mrf.mxu1 }
 0x367   :  { %v10551_v39 = vpop.f32.mrf.mxu0  ;;  %v10553_v48 = vadd.f32 %v2010_v59, %v1772_v23  ;;  %8493 = vmatpush3.bf16.msra.mxu1 %v9174_v51  ;;  %v9176_v51 = vld [vmem:[%s11844_s2 + $0x220] sm:$0xff]   ;;  %v2914_v59 = vld [vmem:[#allocation6 + $0x34] sm:$0xff] }
 0x368   :  { %v8109_v12 = vpop.f32.mrf.mxu1  ;;  %8494 = vmatprep.subr.bf16.mxu1 %v10480_v50 }
 0x369   :  { %v8449_v21 = vpop.f32.mrf.mxu0 }
 0x36a   :  { %v2015_v13 = vpop.f32.mrf.mxu1  ;;  %8375 = vmatmul.mubr.bf16.gmra.mxu1 %v2936_v19  ;;  %v2937_v19 = vpack.c.bf16 %v2915_v58, %v2914_v59  ;;  %v2916_v59 = vld [vmem:[#allocation6 + $0x44] sm:$0xff] }
 0x36b   :  { %v10561_v11 = vpop.f32.mrf.mxu0  ;;  %v10563_v49 = vadd.f32 %v2015_v13, %v1777_v30  ;;  %8378 = vmatprep.mubr.msk.bf16.mxu1 %vm9357_vm0, %v10480_v50  ;;  %8495 = vmatpush3.bf16.msra.mxu1 %v9175_v60  ;;  %v9177_v60 = vld [vmem:[%s11844_s2 + $0x218] sm:$0xff]  }
 0x36c   :  { %v8112_v38 = vpop.f32.mrf.mxu1  ;;  %8496 = vmatprep.subr.bf16.mxu1 %v10480_v50 }
 0x36d   :  { %v8452_v46 = vpop.f32.mrf.mxu0 }
 0x36e   :  { %v2018_v23 = vpop.f32.mrf.mxu1 }
 0x36f   :  { %v10573_v41 = vpop.f32.mrf.mxu0  ;;  %v10575_v57 = vadd.f32 %v2018_v23, %v1780_v35  ;;  %8497 = vmatpush3.bf16.msra.mxu1 %v9176_v51  ;;  %v9178_v51 = vld [vmem:[%s11844_s2 + $0x210] sm:$0xff]  }
 0x370   :  { %v8113_v12 = vpop.f32.mrf.mxu1  ;;  %8498 = vmatprep.subr.bf16.mxu1 %v10480_v50 }
 0x371   :  { %v8453_v21 = vpop.f32.mrf.mxu0 }
 0x372   :  { %v2023_v36 = vpop.f32.mrf.mxu1  ;;  %8379 = vmatmul.mubr.bf16.gmra.mxu1 %v2937_v19  ;;  %v2938_v19 = vpack.c.bf16 %v2917_v31, %v2916_v59  ;;  %v2918_v59 = vld [vmem:[#allocation6 + $0x54] sm:$0xff] }
 0x373   :  { %v10583_v30 = vpop.f32.mrf.mxu0  ;;  %v10585_v13 = vadd.f32 %v2023_v36, %v1785_v40  ;;  %8382 = vmatprep.mubr.msk.bf16.mxu1 %vm9357_vm0, %v10480_v50  ;;  %8499 = vmatpush3.bf16.msra.mxu1 %v9177_v60  ;;  %v9179_v60 = vld [vmem:[%s11844_s2 + $0x208] sm:$0xff]  }
 0x374   :  { %v8116_v38 = vpop.f32.mrf.mxu1  ;;  %8500 = vmatprep.subr.bf16.mxu1 %v10480_v50 }
 0x375   :  { %v8456_v46 = vpop.f32.mrf.mxu0 }
 0x376   :  { %v2026_v35 = vpop.f32.mrf.mxu1 }
 0x377   :  { %v10595_v58 = vpop.f32.mrf.mxu0  ;;  %v10597_v23 = vadd.f32 %v2026_v35, %v1788_v63  ;;  %8501 = vmatpush3.bf16.msra.mxu1 %v9178_v51  ;;  %v9180_v51 = vld [vmem:[%s11844_s2 + $0x200] sm:$0xff]  }
 0x378   :  { %v8117_v12 = vpop.f32.mrf.mxu1  ;;  %8502 = vmatprep.subr.bf16.mxu1 %v10480_v50 }
 0x379   :  { %v8457_v21 = vpop.f32.mrf.mxu0 }
 0x37a   :  { %v2031_v2 = vpop.f32.mrf.mxu1  ;;  %8383 = vmatmul.mubr.bf16.gmra.mxu1 %v2938_v19  ;;  %v2939_v21 = vpack.c.bf16 %v2919_v24, %v2918_v59 }
 0x37b   :  { %v10605_v40 = vpop.f32.mrf.mxu0  ;;  %v10607_v36 = vadd.f32 %v2031_v2, %v1793_v10  ;;  %8386 = vmatprep.mubr.msk.bf16.mxu1 %vm9357_vm0, %v10480_v50  ;;  %8503 = vmatpush3.bf16.msra.mxu1 %v9179_v60 }
 0x37c   :  { %v8120_v38 = vpop.f32.mrf.mxu1  ;;  %8504 = vmatprep.subr.bf16.mxu1 %v10480_v50 }
 0x37d   :  { %v8460_v46 = vpop.f32.mrf.mxu0 }
 0x37e   :  { %v2034_v63 = vpop.f32.mrf.mxu1  ;;  %v1804_v46 = vadd.f32 %v10452_v27, %v10191_v45 }
 0x37f   :  { %v10617_v31 = vpop.f32.mrf.mxu0  ;;  %v10619_v35 = vadd.f32 %v2034_v63, %v1796_v8  ;;  %8505 = vmatpush3.bf16.msra.mxu1 %v9180_v51  ;;  %v2940_v63 = vpack.c.bf16 %v2921_v15, %v2920_v20  ;;  %v1812_v20 = vadd.f32 %v10462_v52, %v10214_v34  ;;  %v2922_v15 = vld [vmem:[#allocation6 + $0x74] sm:$0xff] }
 0x380   :  { %v8121_v60 = vpop.f32.mrf.mxu1  ;;  %8594 = vmatprep.subr.bf16.mxu1 %v10480_v50 }
 0x381   :  { %v8461_v12 = vpop.f32.mrf.mxu0 }
 0x382   :  { %v2039_v19 = vpop.f32.mrf.mxu1  ;;  %8387 = vmatmul.mubr.bf16.gmra.mxu1 %v2939_v21  ;;  %v1809_v12 = vadd.f32 %v10456_v43, %v10211_v26 }
 0x383   :  { %v3359_v10 = vpop.f32.mrf.mxu0  ;;  %8390 = vmatprep.mubr.msk.bf16.mxu1 %vm9357_vm0, %v10480_v50 }
 0x384   :  { %v8124_v2 = vpop.f32.mrf.mxu1 }
 0x385   :  { %v8464_v38 = vpop.f32.mrf.mxu0  ;;  %v2923_v2 = vld [vmem:[#allocation6 + $0x7c] sm:$0xff] }
 0x386   :  { %v2042_v8 = vpop.f32.mrf.mxu1 }
 0x387   :  { %v10626_v51 = vpop.f32.mrf.mxu0  ;;  %v10628_v24 = vadd.f32 %v2042_v8, %v1804_v46 }
 0x388   :  { %v8125_v59 = vpop.f32.mrf.mxu1 }
 0x389   :  { %v8465_v60 = vpop.f32.mrf.mxu0  ;;  %v1817_v59 = vadd.f32 %v10466_v55, %v10238_v25  ;;  %v2924_v25 = vld [vmem:[#allocation6 + $0x84] sm:$0xff] }
 0x38a   :  { %v2047_v21 = vpop.f32.mrf.mxu1  ;;  %8391 = vmatmul.mubr.bf16.gmra.mxu1 %v2940_v63  ;;  %v2941_v63 = vpack.c.bf16 %v2923_v2, %v2922_v15 }
 0x38b   :  { %v10632_v19 = vpop.f32.mrf.mxu0  ;;  %v10634_v10 = vadd.f32 %v2047_v21, %v1809_v12  ;;  %8394 = vmatprep.mubr.msk.bf16.mxu1 %vm9357_vm0, %v10480_v50 }
 0x38c   :  { %v8128_v45 = vpop.f32.mrf.mxu1 }
 0x38d   :  { %v8468_v27 = vpop.f32.mrf.mxu0  ;;  %v1820_v45 = vadd.f32 %v10472_v4, %v10244_v28 }
 0x38e   :  { %v2050_v38 = vpop.f32.mrf.mxu1  ;;  %v2925_v27 = vld [vmem:[#allocation6 + $0x8c] sm:$0xff] }
 0x38f   :  { %v10640_v46 = vpop.f32.mrf.mxu0  ;;  %v10642_v26 = vadd.f32 %v2050_v38, %v1812_v20 }
 0x390   :  { %v8129_v43 = vpop.f32.mrf.mxu1 }
 0x391   :  { %v8469_v8 = vpop.f32.mrf.mxu0  ;;  %v2942_v43 = vpack.c.bf16 %v2925_v27, %v2924_v25 }
 0x392   :  { %v2055_v60 = vpop.f32.mrf.mxu1  ;;  %8395 = vmatmul.mubr.bf16.gmra.mxu1 %v2941_v63  ;;  %v1825_v8 = vadd.f32 %v10476_v5, %v10255_v47  ;;  %v2926_v47 = vld [vmem:[#allocation6 + $0x94] sm:$0xff] }
 0x393   :  { %v10646_v12 = vpop.f32.mrf.mxu0  ;;  %v10648_v21 = vadd.f32 %v2055_v60, %v1817_v59  ;;  %8398 = vmatprep.mubr.msk.bf16.mxu1 %vm9357_vm0, %v10480_v50 }
 0x394   :  { %v8132_v34 = vpop.f32.mrf.mxu1 }
 0x395   :  { %v8472_v52 = vpop.f32.mrf.mxu0  ;;  %v1828_v34 = vadd.f32 %v10484_v17, %v10267_v3 }
 0x396   :  { %v2058_v20 = vpop.f32.mrf.mxu1  ;;  %v2927_v52 = vld [vmem:[#allocation6 + $0x9c] sm:$0xff] }
 0x397   :  { %v10654_v15 = vpop.f32.mrf.mxu0  ;;  %v10656_v2 = vadd.f32 %v2058_v20, %v1820_v45 }
 0x398   :  { %v8133_v55 = vpop.f32.mrf.mxu1 }
 0x399   :  { %v8473_v38 = vpop.f32.mrf.mxu0  ;;  %v2943_v55 = vpack.c.bf16 %v2927_v52, %v2926_v47 }
 0x39a   :  { %v2063_v63 = vpop.f32.mrf.mxu1  ;;  %8399 = vmatmul.mubr.bf16.gmra.mxu1 %v2942_v43  ;;  %v1833_v38 = vadd.f32 %v10488_v56, %v10316_v33  ;;  %v2928_v56 = vld [vmem:[#allocation6 + $0xa4] sm:$0xff] }
 0x39b   :  { %v10660_v59 = vpop.f32.mrf.mxu0  ;;  %v10662_v60 = vadd.f32 %v2063_v63, %v1825_v8  ;;  %8402 = vmatprep.mubr.msk.bf16.mxu1 %vm9357_vm0, %v10480_v50 }
 0x39c   :  { %v8136_v28 = vpop.f32.mrf.mxu1 }
 0x39d   :  { %v8476_v4 = vpop.f32.mrf.mxu0  ;;  %v1836_v28 = vadd.f32 %v10494_v22, %v10318_v44 }
 0x39e   :  { %v2066_v45 = vpop.f32.mrf.mxu1  ;;  %v2929_v4 = vld [vmem:[#allocation6 + $0xac] sm:$0xff] }
 0x39f   :  { %v10668_v27 = vpop.f32.mrf.mxu0  ;;  %v10670_v20 = vadd.f32 %v2066_v45, %v1828_v34 }
 0x3a0   :  { %v8137_v5 = vpop.f32.mrf.mxu1 }
 0x3a1   :  { %v8477_v25 = vpop.f32.mrf.mxu0  ;;  %v2944_v5 = vpack.c.bf16 %v2929_v4, %v2928_v56 }
 0x3a2   :  { %v2071_v43 = vpop.f32.mrf.mxu1  ;;  %8403 = vmatmul.mubr.bf16.gmra.mxu1 %v2943_v55  ;;  %v1841_v25 = vadd.f32 %v10498_v1, %v10340_v7  ;;  %v2930_v7 = vld [vmem:[#allocation6 + $0xb4] sm:$0xff] }
 0x3a3   :  { %v10674_v8 = vpop.f32.mrf.mxu0  ;;  %v10676_v63 = vadd.f32 %v2071_v43, %v1833_v38  ;;  %8406 = vmatprep.mubr.msk.bf16.mxu1 %vm9357_vm0, %v10480_v50 }
 0x3a4   :  { %v8140_v3 = vpop.f32.mrf.mxu1 }
 0x3a5   :  { %v8480_v17 = vpop.f32.mrf.mxu0  ;;  %v1844_v3 = vadd.f32 %v10504_v37, %v10348_v16 }
 0x3a6   :  { %v2074_v34 = vpop.f32.mrf.mxu1  ;;  %v2931_v17 = vld [vmem:[#allocation6 + $0xbc] sm:$0xff] }
 0x3a7   :  { %v10682_v52 = vpop.f32.mrf.mxu0  ;;  %v10684_v45 = vadd.f32 %v2074_v34, %v1836_v28 }
 0x3a8   :  { %v8141_v33 = vpop.f32.mrf.mxu1 }
 0x3a9   :  { %v8481_v47 = vpop.f32.mrf.mxu0  ;;  %v2945_v33 = vpack.c.bf16 %v2931_v17, %v2930_v7  ;;  %v2358_v17 = vadd.f32 %v10066_v53, %v10518_v29  ;;  %v3439_v53 = vld [vmem:[#allocation6 + $0x1e] sm:$0xff] }
 0x3aa   :  { %v2079_v55 = vpop.f32.mrf.mxu1  ;;  %8407 = vmatmul.mubr.bf16.gmra.mxu1 %v2944_v5 }
 0x3ab   :  { %v10688_v38 = vpop.f32.mrf.mxu0  ;;  %v10690_v43 = vadd.f32 %v2079_v55, %v1841_v25  ;;  %8410 = vmatprep.mubr.msk.bf16.mxu1 %vm9357_vm0, %v10480_v50  ;;  %v2932_v25 = vld [vmem:[#allocation6 + $0xc4] sm:$0xff]  ;;  %v2933_v55 = vld [vmem:[#allocation6 + $0xcc] sm:$0xff] }
 0x3ac   :  { %v8144_v22 = vpop.f32.mrf.mxu1  ;;  %v2946_v16 = vpack.c.bf16 %v2933_v55, %v2932_v25 }
 0x3ad   :  { %v8484_v44 = vpop.f32.mrf.mxu0 }
 0x3ae   :  { %v2082_v28 = vpop.f32.mrf.mxu1 }
 0x3af   :  { %v10696_v4 = vpop.f32.mrf.mxu0  ;;  %v10698_v34 = vadd.f32 %v2082_v28, %v1844_v3  ;;  %v2934_v3 = vld [vmem:[#allocation6 + $0xd4] sm:$0xff] }
 0x3b0   :  { %v8145_v1 = vpop.f32.mrf.mxu1 }
 0x3b1   :  { %v8485_v56 = vpop.f32.mrf.mxu0  ;;  %v2947_v1 = vpack.c.bf16 %v2934_v3, %v2934_v3 }
 0x3b2   :  { %v2087_v47 = vpop.f32.mrf.mxu1  ;;  %8411 = vmatmul.mubr.bf16.gmra.mxu1 %v2945_v33 }
 0x3b3   :  { %8414 = vmatprep.mubr.msk.bf16.mxu1 %vm9357_vm0, %v10480_v50  ;;  %v2359_v47 = vadd.f32 %v10068_v32, %v10524_v61  ;;  %v2361_v32 = vadd.f32 %v10086_v14, %v10541_v42  ;;  %v11889_v14 = vld [vmem:[#allocation13_spill] sm:$0xff] }
 0x3b4   :  { %v8148_v5 = vpop.f32.mrf.mxu1  ;;  %v2363_v42 = vadd.f32 %v11889_v14, %v10563_v49  ;;  %v11891_v49 = vld [vmem:[#allocation15_spill] sm:$0xff] }
 0x3b6   :  { %v2090_v22 = vpop.f32.mrf.mxu1 }
 0x3b7   :  { %v2360_v22 = vadd.f32 %v10078_v9, %v10532_v0  ;;  %v11888_v9 = vld [vmem:[#allocation12_spill] sm:$0xff] }
 0x3b8   :  { %v8149_v37 = vpop.f32.mrf.mxu1  ;;  %v2362_v0 = vadd.f32 %v11888_v9, %v10553_v48  ;;  %v11890_v48 = vld [vmem:[#allocation14_spill] sm:$0xff] }
 0x3ba   :  { %v2519_v44 = vpop.f32.mrf.mxu1  ;;  %8415 = vmatmul.mubr.bf16.gmra.mxu1 %v2946_v16  ;;  %v3438_v16 = vld [vmem:[#allocation6 + $0x16] sm:$0xff] }
 0x3bb   :  { %8418 = vmatprep.mubr.msk.bf16.mxu1 %vm9357_vm0, %v10480_v50  ;;  %v3463_v3 = vpack.c.bf16 %v3439_v53, %v3438_v16  ;;  %v2364_v16 = vadd.f32 %v11890_v48, %v10575_v57  ;;  %v11892_v57 = vld [vmem:[#allocation16_spill] sm:$0xff] }
 0x3bc   :  { %v8236_v28 = vpop.f32.mrf.mxu1 }
 0x3be   :  { %v2522_v7 = vpop.f32.mrf.mxu1 }
 0x3bf   :  { %v10706_v56 = vadd.f32 %v2522_v7, %v2358_v17  ;;  %v3441_v7 = vld [vmem:[#allocation6 + $0x2e] sm:$0xff] }
 0x3c0   :  { %v8237_v33 = vpop.f32.mrf.mxu1 }
 0x3c2   :  { %v2527_v5 = vpop.f32.mrf.mxu1  ;;  %8419 = vmatmul.mubr.bf16.gmra.mxu1 %v2947_v1 }
 0x3c3   :  { %v10710_v25 = vadd.f32 %v2527_v5, %v2359_v47  ;;  %8506 = vmatprep.mubr.msk.bf16.mxu1 %vm9357_vm0, %v10480_v50  ;;  %v3440_v47 = vld [vmem:[#allocation6 + $0x26] sm:$0xff] }
 0x3c4   :  { %v8240_v55 = vpop.f32.mrf.mxu1 }
 0x3c5   :  { %v3464_v55 = vpack.c.bf16 %v3441_v7, %v3440_v47 }
 0x3c6   :  { %v2530_v29 = vpop.f32.mrf.mxu1 }
 0x3c7   :  { %v10716_v37 = vadd.f32 %v2530_v29, %v2360_v22 }
 0x3c8   :  { %v8241_v44 = vpop.f32.mrf.mxu1 }
 0x3c9   :  { %v3443_v44 = vld [vmem:[#allocation6 + $0x3e] sm:$0xff] }
 0x3ca   :  { %v2535_v61 = vpop.f32.mrf.mxu1  ;;  %8507 = vmatmul.mubr.bf16.vlgmr.msra.gmra.mxu1 %v3463_v3 }
 0x3cb   :  { %v10720_v28 = vadd.f32 %v2535_v61, %v2361_v32  ;;  %8510 = vmatprep.mubr.msk.bf16.mxu1 %vm9357_vm0, %v10480_v50  ;;  %v3442_v61 = vld [vmem:[#allocation6 + $0x36] sm:$0xff] }
 0x3cc   :  { %v8244_v17 = vpop.f32.mrf.mxu1  ;;  %v3465_v9 = vpack.c.bf16 %v3443_v44, %v3442_v61 }
 0x3ce   :  { %v2538_v1 = vpop.f32.mrf.mxu1 }
 0x3cf   :  { %v10726_v33 = vadd.f32 %v2538_v1, %v2362_v0  ;;  %v2365_v0 = vadd.f32 %v11891_v49, %v10585_v13  ;;  %v11893_v13 = vld [vmem:[#allocation17_spill] sm:$0xff]  ;;  %v3447_v49 = vld [vmem:[#allocation6 + $0x5e] sm:$0xff] }
 0x3d0   :  { %v8245_v5 = vpop.f32.mrf.mxu1 }
 0x3d1   :  { %v2366_v5 = vadd.f32 %v11892_v57, %v10597_v23  ;;  %v11894_v23 = vld [vmem:[#allocation18_spill] sm:$0xff] }
 0x3d2   :  { %v2543_v22 = vpop.f32.mrf.mxu1  ;;  %8511 = vmatmul.mubr.bf16.gmra.mxu1 %v3464_v55  ;;  %v3445_v55 = vld [vmem:[#allocation6 + $0x4e] sm:$0xff] }
 0x3d3   :  { %v10730_v53 = vadd.f32 %v2543_v22, %v2363_v42  ;;  %8514 = vmatprep.mubr.msk.bf16.mxu1 %vm9357_vm0, %v10480_v50  ;;  %v3444_v22 = vld [vmem:[#allocation6 + $0x46] sm:$0xff] }
 0x3d4   :  { %v8248_v29 = vpop.f32.mrf.mxu1  ;;  %v3466_v48 = vpack.c.bf16 %v3445_v55, %v3444_v22  ;;  %v3449_v55 = vld [vmem:[#allocation6 + $0x6e] sm:$0xff]  ;;  %v11895_v22 = vld [vmem:[#allocation19_spill] sm:$0xff] }
 0x3d6   :  { %v2546_v3 = vpop.f32.mrf.mxu1 }
 0x3d7   :  { %v10736_v32 = vadd.f32 %v2546_v3, %v2364_v16  ;;  %v2367_v16 = vadd.f32 %v11893_v13, %v10607_v36  ;;  %v3448_v36 = vld [vmem:[#allocation6 + $0x66] sm:$0xff] }
 0x3d8   :  { %v8249_v17 = vpop.f32.mrf.mxu1 }
 0x3d9   :  { %v2368_v17 = vadd.f32 %v11894_v23, %v10619_v35  ;;  %v3468_v35 = vpack.c.bf16 %v3449_v55, %v3448_v36 }
 0x3da   :  { %v2551_v7 = vpop.f32.mrf.mxu1  ;;  %8515 = vmatmul.mubr.bf16.gmra.mxu1 %v3465_v9  ;;  %v3446_v9 = vld [vmem:[#allocation6 + $0x56] sm:$0xff] }
 0x3db   :  { %v10740_v1 = vadd.f32 %v2551_v7, %v2365_v0  ;;  %8518 = vmatprep.mubr.msk.bf16.mxu1 %vm9357_vm0, %v10480_v50  ;;  %v3467_v57 = vpack.c.bf16 %v3447_v49, %v3446_v9  ;;  %v11897_v49 = vld [vmem:[#allocation21_spill] sm:$0xff] }
 0x3dc   :  { %v8252_v47 = vpop.f32.mrf.mxu1 }
 0x3de   :  { %v2554_v14 = vpop.f32.mrf.mxu1 }
 0x3df   :  { %v10746_v42 = vadd.f32 %v2554_v14, %v2366_v5 }
 0x3e0   :  { %v8253_v29 = vpop.f32.mrf.mxu1 }
 0x3e1   :  { %v2370_v29 = vadd.f32 %v11895_v22, %v10628_v24  ;;  %v3451_v24 = vld [vmem:[#allocation6 + $0x7e] sm:$0xff] }
 0x3e2   :  { %v2559_v44 = vpop.f32.mrf.mxu1  ;;  %8519 = vmatmul.mubr.bf16.gmra.mxu1 %v3466_v48 }
 0x3e3   :  { %v10750_v3 = vadd.f32 %v2559_v44, %v2367_v16  ;;  %8522 = vmatprep.mubr.msk.bf16.mxu1 %vm9357_vm0, %v10480_v50  ;;  %v11896_v44 = vld [vmem:[#allocation20_spill] sm:$0xff] }
 0x3e4   :  { %v8256_v61 = vpop.f32.mrf.mxu1 }
 0x3e5   :  { %v2371_v61 = vadd.f32 %v11896_v44, %v10634_v10  ;;  %v11898_v10 = vld [vmem:[#allocation22_spill] sm:$0xff]  ;;  %v3453_v44 = vld [vmem:[#allocation6 + $0x8e] sm:$0xff] }
 0x3e6   :  { %v2562_v0 = vpop.f32.mrf.mxu1 }
 0x3e7   :  { %v10756_v7 = vadd.f32 %v2562_v0, %v2368_v17  ;;  %v2372_v0 = vadd.f32 %v11897_v49, %v10642_v26  ;;  %v9181_v26 = vld [vmem:[%s11844_s2 + $0x2b8] sm:$0xff]  }
 0x3e8   :  { %v8257_v47 = vpop.f32.mrf.mxu1  ;;  %8559 = vmatpush3.bf16.msra.mxu0 %v9181_v26 }
 0x3e9   :  { %8560 = vmatprep.subr.bf16.mxu0 %v10480_v50 }
 0x3ea   :  { %v2567_v5 = vpop.f32.mrf.mxu1  ;;  %8523 = vmatmul.mubr.bf16.gmra.mxu1 %v3467_v57 }
 0x3eb   :  { %8526 = vmatprep.mubr.msk.bf16.mxu1 %vm9357_vm0, %v10480_v50  ;;  %v3450_v5 = vld [vmem:[#allocation6 + $0x76] sm:$0xff] }
 0x3ec   :  { %v8260_v14 = vpop.f32.mrf.mxu1  ;;  %v3469_v55 = vpack.c.bf16 %v3451_v24, %v3450_v5 }
 0x3ed   :  { %v2373_v14 = vadd.f32 %v11898_v10, %v10648_v21  ;;  %v3452_v21 = vld [vmem:[#allocation6 + $0x86] sm:$0xff]  ;;  %v3455_v10 = vld [vmem:[#allocation6 + $0x9e] sm:$0xff] }
 0x3ee   :  { %v2570_v48 = vpop.f32.mrf.mxu1  ;;  %v3470_v49 = vpack.c.bf16 %v3453_v44, %v3452_v21 }
 0x3ef   :  { %v10762_v13 = vadd.f32 %v2570_v48, %v2370_v29 }
 0x3f0   :  { %v8261_v16 = vpop.f32.mrf.mxu1 }
 0x3f2   :  { %v2575_v23 = vpop.f32.mrf.mxu1  ;;  %8527 = vmatmul.mubr.bf16.gmra.mxu1 %v3468_v35  ;;  %v11899_v35 = vld [vmem:[#allocation23_spill] sm:$0xff] }
 0x3f3   :  { %v10766_v17 = vadd.f32 %v2575_v23, %v2371_v61  ;;  %8530 = vmatprep.mubr.msk.bf16.mxu1 %vm9357_vm0, %v10480_v50  ;;  %v2374_v16 = vadd.f32 %v11899_v35, %v10656_v2 }
 0x3f4   :  { %v8264_v9 = vpop.f32.mrf.mxu1 }
 0x3f6   :  { %v2578_v47 = vpop.f32.mrf.mxu1 }
 0x3f7   :  { %v10772_v57 = vadd.f32 %v2578_v47, %v2372_v0  ;;  %v11900_v0 = vld [vmem:[#allocation24_spill] sm:$0xff] }
 0x3f8   :  { %v8265_v36 = vpop.f32.mrf.mxu1  ;;  %v2375_v24 = vadd.f32 %v11900_v0, %v10662_v60  ;;  %v11902_v60 = vld [vmem:[#allocation26_spill] sm:$0xff]  ;;  %v11903_v0 = vld [vmem:[#allocation27_spill] sm:$0xff] }
 0x3f9   :  { %v11901_v36 = vld [vmem:[#allocation25_spill] sm:$0xff]  ;;  %v2377_v44 = vadd.f32 %v11902_v60, %v10676_v63 }
 0x3fa   :  { %v2583_v22 = vpop.f32.mrf.mxu1  ;;  %8531 = vmatmul.mubr.bf16.gmra.mxu1 %v3469_v55  ;;  %v2376_v55 = vadd.f32 %v11901_v36, %v10670_v20 }
 0x3fb   :  { %v10776_v29 = vadd.f32 %v2583_v22, %v2373_v14  ;;  %8534 = vmatprep.mubr.msk.bf16.mxu1 %vm9357_vm0, %v10480_v50 }
 0x3fc   :  { %v8268_v48 = vpop.f32.mrf.mxu1 }
 0x3fd   :  { %v3454_v48 = vld [vmem:[#allocation6 + $0x96] sm:$0xff] }
 0x3fe   :  { %v2586_v61 = vpop.f32.mrf.mxu1 }
 0x3ff   :  { %v10785_v23 = vadd.f32 %v2586_v61, %v2374_v16  ;;  %v3471_v16 = vpack.c.bf16 %v3455_v10, %v3454_v48  ;;  %v11904_v48 = vld [vmem:[#allocation28_spill] sm:$0xff] }
 0x400   :  { %v8269_v9 = vpop.f32.mrf.mxu1 }
 0x401   :  { %v3407_v26 = vpop.f32.mrf.mxu0 }
 0x402   :  { %v2591_v47 = vpop.f32.mrf.mxu1  ;;  %8535 = vmatmul.mubr.bf16.gmra.mxu1 %v3470_v49  ;;  %v2379_v26 = vadd.f32 %v11904_v48, %v10690_v43 }
 0x403   :  { %v10790_v5 = vadd.f32 %v2591_v47, %v2375_v24  ;;  %8538 = vmatprep.mubr.msk.bf16.mxu1 %vm9357_vm0, %v10480_v50  ;;  %v8488_v61 = vpop.f32.mrf.mxu0  ;;  %v2378_v24 = vadd.f32 %v11903_v0, %v10684_v45  ;;  %v3456_v47 = vld [vmem:[#allocation6 + $0xa6] sm:$0xff]  ;;  %v9182_v45 = vld [vmem:[%s11844_s2 + $0x2b0] sm:$0xff]  }
 0x404   :  { %v8272_v2 = vpop.f32.mrf.mxu1  ;;  %8561 = vmatpush3.bf16.msra.mxu0 %v9182_v45  ;;  %v9186_v45 = vld [vmem:[%s11844_s2 + $0x268] sm:$0xff]  }
 0x405   :  { %v3410_v20 = vpop.f32.mrf.mxu0  ;;  %v3457_v2 = vld [vmem:[#allocation6 + $0xae] sm:$0xff]  ;;  %8562 = vmatprep.subr.bf16.mxu0 %v10480_v50 }
 0x406   :  { %v2594_v14 = vpop.f32.mrf.mxu1 }
 0x407   :  { %v10796_v22 = vadd.f32 %v2594_v14, %v2376_v55  ;;  %v8489_v36 = vpop.f32.mrf.mxu0  ;;  %v3472_v14 = vpack.c.bf16 %v3457_v2, %v3456_v47  ;;  %v9183_v47 = vld [vmem:[%s11844_s2 + $0x278] sm:$0xff]  }
 0x408   :  { %v8273_v35 = vpop.f32.mrf.mxu1  ;;  %8595 = vmatpush3.bf16.msra.mxu1 %v9183_v47  ;;  %v3460_v36 = vld [vmem:[#allocation6 + $0xc6] sm:$0xff] }
 0x409   :  { %8596 = vmatprep.subr.bf16.mxu1 %v10480_v50 }
 0x40a   :  { %v2599_v21 = vpop.f32.mrf.mxu1  ;;  %8539 = vmatmul.mubr.bf16.gmra.mxu1 %v3471_v16 }
 0x40b   :  { %v10800_v9 = vadd.f32 %v2599_v21, %v2377_v44  ;;  %8542 = vmatprep.mubr.msk.bf16.mxu1 %vm9357_vm0, %v10480_v50  ;;  %v11905_v44 = vld [vmem:[#allocation29_spill] sm:$0xff]  ;;  %v3459_v21 = vld [vmem:[#allocation6 + $0xbe] sm:$0xff] }
 0x40c   :  { %v8276_v49 = vpop.f32.mrf.mxu1  ;;  %v2380_v61 = vadd.f32 %v11905_v44, %v10698_v34  ;;  %v3462_v44 = vld [vmem:[#allocation6 + $0xd6] sm:$0xff] }
 0x40d   :  { %v3458_v49 = vld [vmem:[#allocation6 + $0xb6] sm:$0xff]  ;;  %v3475_v47 = vpack.c.bf16 %v3462_v44, %v3462_v44 }
 0x40e   :  { %v2602_v55 = vpop.f32.mrf.mxu1 }
 0x40f   :  { %v10806_v10 = vadd.f32 %v2602_v55, %v2378_v24  ;;  %v3473_v24 = vpack.c.bf16 %v3459_v21, %v3458_v49  ;;  %v3461_v55 = vld [vmem:[#allocation6 + $0xce] sm:$0xff]  ;;  %v11906_v21 = vld [vmem:[#allocation30_spill] sm:$0xff] }
 0x410   :  { %v8277_v63 = vpop.f32.mrf.mxu1  ;;  %v9187_v49 = vld [vmem:[%s11844_s2 + $0x2a0] sm:$0xff]  }
 0x411   :  { %v9185_v63 = vld [vmem:[%s11844_s2 + $0x270] sm:$0xff]  }
 0x412   :  { %v2607_v35 = vpop.f32.mrf.mxu1  ;;  %8543 = vmatmul.mubr.bf16.gmra.mxu1 %v3472_v14 }
 0x413   :  { %v10810_v16 = vadd.f32 %v2607_v35, %v2379_v26  ;;  %8546 = vmatprep.mubr.msk.bf16.mxu1 %vm9357_vm0, %v10480_v50  ;;  %8597 = vmatpush3.bf16.msra.mxu1 %v9185_v63  ;;  %v3474_v26 = vpack.c.bf16 %v3461_v55, %v3460_v36  ;;  %v9184_v35 = vld [vmem:[%s11844_s2 + $0x2a8] sm:$0xff]   ;;  %v9189_v55 = vld [vmem:[%s11844_s2 + $0x298] sm:$0xff]  }
 0x414   :  { %v8280_v60 = vpop.f32.mrf.mxu1  ;;  %8598 = vmatprep.subr.bf16.mxu1 %v10480_v50  ;;  %8563 = vmatpush3.bf16.msra.mxu0 %v9184_v35  ;;  %v9190_v63 = vld [vmem:[%s11844_s2 + $0x258] sm:$0xff]  }
 0x415   :  { %8564 = vmatprep.subr.bf16.mxu0 %v10480_v50 }
 0x416   :  { %v2610_v20 = vpop.f32.mrf.mxu1 }
 0x417   :  { %v10820_v43 = vadd.f32 %v2610_v20, %v2380_v61  ;;  %8599 = vmatpush3.bf16.msra.mxu1 %v9186_v45  ;;  %v2886_v20 = vadd.f32 %v11906_v21, %v10706_v56  ;;  %v11907_v56 = vld [vmem:[#allocation31_spill] sm:$0xff]  ;;  %v9191_v45 = vld [vmem:[%s11844_s2 + $0x290] sm:$0xff]  }
 0x418   :  { %v8281_v0 = vpop.f32.mrf.mxu1  ;;  %8600 = vmatprep.subr.bf16.mxu1 %v10480_v50  ;;  %8565 = vmatpush3.bf16.msra.mxu0 %v9187_v49  ;;  %v2887_v36 = vadd.f32 %v11907_v56, %v10710_v25  ;;  %v11908_v25 = vld [vmem:[#allocation32_spill] sm:$0xff] }
 0x419   :  { %v9188_v0 = vld [vmem:[%s11844_s2 + $0x260] sm:$0xff]   ;;  %8566 = vmatprep.subr.bf16.mxu0 %v10480_v50  ;;  %v2888_v35 = vadd.f32 %v11908_v25, %v10716_v37  ;;  %v9193_v49 = vld [vmem:[%s11844_s2 + $0x288] sm:$0xff]  }
 0x41a   :  { %v2615_v2 = vpop.f32.mrf.mxu1  ;;  %8547 = vmatmul.mubr.bf16.gmra.mxu1 %v3473_v24 }
 0x41b   :  { %8550 = vmatprep.mubr.msk.bf16.mxu1 %vm9357_vm0, %v10480_v50  ;;  %8601 = vmatpush3.bf16.msra.mxu1 %v9188_v0  ;;  %v9194_v0 = vld [vmem:[%s11844_s2 + $0x248] sm:$0xff]  }
 0x41c   :  { %v8284_v34 = vpop.f32.mrf.mxu1  ;;  %8602 = vmatprep.subr.bf16.mxu1 %v10480_v50  ;;  %8567 = vmatpush3.bf16.msra.mxu0 %v9189_v55  ;;  %v9196_v55 = vld [vmem:[%s11844_s2 + $0x240] sm:$0xff]  }
 0x41d   :  { %8568 = vmatprep.subr.bf16.mxu0 %v10480_v50 }
 0x41e   :  { %v2618_v14 = vpop.f32.mrf.mxu1 }
 0x41f   :  { %8603 = vmatpush3.bf16.msra.mxu1 %v9190_v63 }
 0x420   :  { %v8285_v48 = vpop.f32.mrf.mxu1  ;;  %8604 = vmatprep.subr.bf16.mxu1 %v10480_v50  ;;  %8569 = vmatpush3.bf16.msra.mxu0 %v9191_v45 }
 0x422   :  { %v3047_v60 = vpop.f32.mrf.mxu1  ;;  %8551 = vmatmul.mubr.bf16.gmra.mxu1 %v3474_v26 }
 0x423   :  { %8554 = vmatprep.mubr.msk.bf16.mxu1 %vm9357_vm0, %v10480_v50  ;;  %v9192_v60 = vld [vmem:[%s11844_s2 + $0x250] sm:$0xff]  }
 0x424   :  { %v8372_v61 = vpop.f32.mrf.mxu1  ;;  %8605 = vmatpush3.bf16.msra.mxu1 %v9192_v60 }
 0x426   :  { %v3050_v24 = vpop.f32.mrf.mxu1 }
 0x427   :  { %v10850_v2 = vadd.f32 %v3050_v24, %v2886_v20  ;;  %v10878_v20 = vld [vmem:[#allocation6] sm:$0xff] }
 0x428   :  { %v8373_v34 = vpop.f32.mrf.mxu1  ;;  %8570 = vmatprep.subr.bf16.mxu0 %v10878_v20  ;;  %8606 = vmatprep.subr.bf16.mxu1 %v10878_v20 }
 0x429   :  { %8571 = vmatpush3.bf16.msra.mxu0 %v9193_v49  ;;  %8607 = vmatpush3.bf16.msra.mxu1 %v9194_v0  ;;  %v11913_v0 = vld [vmem:[#allocation37_spill] sm:$0xff] }
 0x42a   :  { %v3055_v14 = vpop.f32.mrf.mxu1  ;;  %8555 = vmatmul.mubr.bf16.gmra.mxu1 %v3475_v47  ;;  %8572 = vmatprep.subr.bf16.mxu0 %v10878_v20 }
 0x42b   :  { %v10862_v48 = vadd.f32 %v3055_v14, %v2887_v36  ;;  %8610 = vmatprep.mubr.msk.bf16.mxu1 %vm9357_vm0, %v10480_v50  ;;  %v11909_v50 = vld [vmem:[#allocation33_spill] sm:$0xff]  ;;  %8608 = vmatprep.subr.bf16.mxu1 %v10878_v20  ;;  %v9195_v36 = vld [vmem:[%s11844_s2 + $0x280] sm:$0xff]  }
 0x42c   :  { %v8376_v26 = vpop.f32.mrf.mxu1  ;;  %v2889_v37 = vadd.f32 %v11909_v50, %v10720_v28  ;;  %v11910_v28 = vld [vmem:[#allocation34_spill] sm:$0xff] }
 0x42d   :  { %v2890_v56 = vadd.f32 %v11910_v28, %v10726_v33  ;;  %8573 = vmatpush3.bf16.msra.mxu0 %v9195_v36  ;;  %8609 = vmatpush3.bf16.msra.mxu1 %v9196_v55  ;;  %v11911_v33 = vld [vmem:[#allocation35_spill] sm:$0xff] }
 0x42e   :  { %v3058_v44 = vpop.f32.mrf.mxu1  ;;  %8630 = vmatprep.subr.bf16.mxu0 %v10878_v20  ;;  %v2891_v25 = vadd.f32 %v11911_v33, %v10730_v53  ;;  %8666 = vmatprep.subr.bf16.mxu1 %v10878_v20 }
 0x42f   :  { %v10876_v61 = vadd.f32 %v3058_v44, %v2888_v35  ;;  %v11912_v44 = vld [vmem:[#allocation36_spill] sm:$0xff] }
 0x430   :  { %v8377_v21 = vpop.f32.mrf.mxu1 }
 0x431   :  { %v2892_v21 = vadd.f32 %v11912_v44, %v10736_v32  ;;  %v11915_v32 = vld [vmem:[#allocation39_spill] sm:$0xff] }
 0x432   :  { %v3063_v24 = vpop.f32.mrf.mxu1  ;;  %v2895_v33 = vadd.f32 %v11915_v32, %v10750_v3 }
 0x433   :  { %v10890_v47 = vadd.f32 %v3063_v24, %v2889_v37  ;;  %v2893_v24 = vadd.f32 %v11913_v0, %v10740_v1  ;;  %v11916_v1 = vld [vmem:[#allocation40_spill] sm:$0xff] }
 0x434   :  { %v8380_v34 = vpop.f32.mrf.mxu1  ;;  %v2896_v44 = vadd.f32 %v11916_v1, %v10756_v7 }
 0x436   :  { %v3066_v63 = vpop.f32.mrf.mxu1 }
 0x437   :  { %v10902_v14 = vadd.f32 %v3066_v63, %v2890_v56  ;;  %v11914_v56 = vld [vmem:[#allocation38_spill] sm:$0xff] }
 0x438   :  { %v8381_v26 = vpop.f32.mrf.mxu1  ;;  %v2894_v36 = vadd.f32 %v11914_v56, %v10746_v42 }
 0x43a   :  { %v3071_v35 = vpop.f32.mrf.mxu1 }
 0x43b   :  { %v10908_v45 = vadd.f32 %v3071_v35, %v2891_v25 }
 0x43c   :  { %v8384_v60 = vpop.f32.mrf.mxu1 }
 0x43e   :  { %v3074_v50 = vpop.f32.mrf.mxu1 }
 0x43f   :  { %v10912_v37 = vadd.f32 %v3074_v50, %v2892_v21 }
 0x440   :  { %v8385_v49 = vpop.f32.mrf.mxu1 }
 0x442   :  { %v3079_v34 = vpop.f32.mrf.mxu1 }
 0x443   :  { %v10916_v28 = vadd.f32 %v3079_v34, %v2893_v24  ;;  %v11917_v24 = vld [vmem:[#allocation41_spill] sm:$0xff] }
 0x444   :  { %v8388_v53 = vpop.f32.mrf.mxu1  ;;  %v2898_v34 = vadd.f32 %v11917_v24, %v10762_v13  ;;  %v11920_v13 = vld [vmem:[#allocation44_spill] sm:$0xff] }
 0x446   :  { %v3082_v55 = vpop.f32.mrf.mxu1 }
 0x447   :  { %v10920_v63 = vadd.f32 %v3082_v55, %v2894_v36  ;;  %v11918_v36 = vld [vmem:[#allocation42_spill] sm:$0xff] }
 0x448   :  { %v8389_v26 = vpop.f32.mrf.mxu1  ;;  %v2899_v55 = vadd.f32 %v11918_v36, %v10766_v17  ;;  %v11921_v17 = vld [vmem:[#allocation45_spill] sm:$0xff] }
 0x449   :  { %v2902_v24 = vadd.f32 %v11921_v17, %v10785_v23  ;;  %v11924_v23 = vld [vmem:[#allocation48_spill] sm:$0xff] }
 0x44a   :  { %v3087_v25 = vpop.f32.mrf.mxu1 }
 0x44b   :  { %v10924_v35 = vadd.f32 %v3087_v25, %v2895_v33  ;;  %v11919_v33 = vld [vmem:[#allocation43_spill] sm:$0xff] }
 0x44c   :  { %v8392_v60 = vpop.f32.mrf.mxu1  ;;  %v2900_v25 = vadd.f32 %v11919_v33, %v10772_v57  ;;  %v11922_v57 = vld [vmem:[#allocation46_spill] sm:$0xff] }
 0x44d   :  { %v2903_v36 = vadd.f32 %v11922_v57, %v10790_v5  ;;  %v11925_v5 = vld [vmem:[#allocation49_spill] sm:$0xff] }
 0x44e   :  { %v3090_v21 = vpop.f32.mrf.mxu1  ;;  %v2906_v17 = vadd.f32 %v11925_v5, %v10806_v10  ;;  %v10982_v5 = vld [vmem:[%s11846_s4 + $0x1] ss:$0 sm:$0xff] }
 0x44f   :  { %v10928_v50 = vadd.f32 %v3090_v21, %v2896_v44  ;;  %v2901_v21 = vadd.f32 %v11920_v13, %v10776_v29  ;;  %v11923_v29 = vld [vmem:[#allocation47_spill] sm:$0xff]  ;;  %v2905_v13 = vadd.f32 %v11924_v23, %v10800_v9 }
 0x450   :  { %v8393_v49 = vpop.f32.mrf.mxu1  ;;  %v2904_v33 = vadd.f32 %v11923_v29, %v10796_v22  ;;  %v11926_v22 = vld [vmem:[#allocation50_spill] sm:$0xff]  ;;  %v11927_v9 = vld [vmem:[#allocation51_spill] sm:$0xff] }
 0x451   :  { %v2907_v57 = vadd.f32 %v11926_v22, %v10810_v16  ;;  %v2908_v29 = vadd.f32 %v11927_v9, %v10820_v43 }
 0x452   :  { %v3095_v0 = vpop.f32.mrf.mxu1 }
 0x454   :  { %v8396_v42 = vpop.f32.mrf.mxu1 }
 0x456   :  { %v3098_v53 = vpop.f32.mrf.mxu1 }
 0x457   :  { %v10932_v56 = vadd.f32 %v3098_v53, %v2898_v34 }
 0x458   :  { %v8397_v3 = vpop.f32.mrf.mxu1 }
 0x45a   :  { %v3103_v26 = vpop.f32.mrf.mxu1 }
 0x45b   :  { %v10936_v32 = vadd.f32 %v3103_v26, %v2899_v55 }
 0x45c   :  { %v8400_v7 = vpop.f32.mrf.mxu1 }
 0x45e   :  { %v3106_v60 = vpop.f32.mrf.mxu1 }
 0x45f   :  { %v10940_v1 = vadd.f32 %v3106_v60, %v2900_v25 }
 0x460   :  { %v8401_v44 = vpop.f32.mrf.mxu1 }
 0x462   :  { %v3111_v49 = vpop.f32.mrf.mxu1 }
 0x463   :  { %v10944_v0 = vadd.f32 %v3111_v49, %v2901_v21 }
 0x464   :  { %v8404_v42 = vpop.f32.mrf.mxu1 }
 0x466   :  { %v3114_v34 = vpop.f32.mrf.mxu1 }
 0x467   :  { %v10948_v53 = vadd.f32 %v3114_v34, %v2902_v24 }
 0x468   :  { %v8405_v3 = vpop.f32.mrf.mxu1 }
 0x46a   :  { %v3119_v55 = vpop.f32.mrf.mxu1 }
 0x46b   :  { %v10952_v26 = vadd.f32 %v3119_v55, %v2903_v36 }
 0x46c   :  { %v8408_v7 = vpop.f32.mrf.mxu1 }
 0x46e   :  { %v3122_v25 = vpop.f32.mrf.mxu1 }
 0x46f   :  { %v10956_v60 = vadd.f32 %v3122_v25, %v2904_v33 }
 0x470   :  { %v8409_v44 = vpop.f32.mrf.mxu1 }
 0x472   :  { %v3127_v21 = vpop.f32.mrf.mxu1 }
 0x473   :  { %v10960_v49 = vadd.f32 %v3127_v21, %v2905_v13 }
 0x474   :  { %v8412_v42 = vpop.f32.mrf.mxu1 }
 0x475   :  { %v10977_v42 = vld [vmem:[%s11845_s3 + $0x1] ss:$0 sm:$0xff] }
 0x476   :  { %v3130_v24 = vpop.f32.mrf.mxu1 }
 0x477   :  { %v10964_v34 = vadd.f32 %v3130_v24, %v2906_v17  ;;  %v3414_v17 = vadd.f32 %v10516_v18, %v10850_v2 }
 0x478   :  { %v8413_v3 = vpop.f32.mrf.mxu1 }
 0x47a   :  { %v3135_v36 = vpop.f32.mrf.mxu1 }
 0x47b   :  { %v10968_v55 = vadd.f32 %v3135_v36, %v2907_v57  ;;  %v3415_v36 = vadd.f32 %v10522_v54, %v10862_v48  ;;  %v3417_v48 = vadd.f32 %v10539_v62, %v10890_v47  ;;  %v3419_v47 = vadd.f32 %v10561_v11, %v10908_v45 }
 0x47c   :  { %v8416_v7 = vpop.f32.mrf.mxu1 }
 0x47e   :  { %v3138_v33 = vpop.f32.mrf.mxu1 }
 0x47f   :  { %v10972_v25 = vadd.f32 %v3138_v33, %v2908_v29 }
 0x480   :  { %v8417_v44 = vpop.f32.mrf.mxu1 }
 0x482   :  { %v3143_v23 = vpop.f32.mrf.mxu1 }
 0x484   :  { %v8420_v10 = vpop.f32.mrf.mxu1 }
 0x485   :  { %v3416_v10 = vadd.f32 %v10530_v6, %v10876_v61  ;;  %v3418_v61 = vadd.f32 %v10551_v39, %v10902_v14 }
 0x486   :  { %v3146_v13 = vpop.f32.mrf.mxu1 }
 0x488   :  { %v8421_v21 = vpop.f32.mrf.mxu1 }
 0x48a   :  { %v3575_v16 = vpop.f32.mrf.mxu1 }
 0x48c   :  { %v8508_v43 = vpop.f32.mrf.mxu1 }
 0x48e   :  { %v3578_v24 = vpop.f32.mrf.mxu1 }
 0x48f   :  { %v3678_v3 = vadd.f32 %v3578_v24, %v3414_v17 }
 0x490   :  { %v8509_v22 = vpop.f32.mrf.mxu1 }
 0x491   :  { %v3709_v57 = vmul.f32 %v10977_v42, %v3678_v3 }
 0x492   :  { %v3583_v7 = vpop.f32.mrf.mxu1 }
 0x493   :  { %v3740_v9 = vadd.f32 %v10982_v5, %v3709_v57  ;;  %v3679_v29 = vadd.f32 %v3583_v7, %v3415_v36 }
 0x494   :  { %v8512_v33 = vpop.f32.mrf.mxu1 }
 0x495   :  { %v3765_v44 = vmax.f32 %v3740_v9, 0.0  ;;  %v3710_v23 = vmul.f32 %v10977_v42, %v3679_v29 }
 0x496   :  { %v3586_v18 = vpop.f32.mrf.mxu1 }
 0x497   :  { %3790 = vst [vmem:[#allocation3 + $0x8] sm:$0xff] %v3765_v44  ;;  %v3741_v2 = vadd.f32 %v10982_v5, %v3710_v23  ;;  %v3680_v13 = vadd.f32 %v3586_v18, %v3416_v10 }
 0x498   :  { %v8513_v21 = vpop.f32.mrf.mxu1 }
 0x499   :  { %v3766_v16 = vmax.f32 %v3741_v2, 0.0  ;;  %v3711_v54 = vmul.f32 %v10977_v42, %v3680_v13  ;;  %v3420_v13 = vadd.f32 %v10573_v41, %v10912_v37 }
 0x49a   :  { %v3591_v43 = vpop.f32.mrf.mxu1 }
 0x49b   :  { %3791 = vst [vmem:[#allocation3 + $0x10] sm:$0xff] %v3766_v16  ;;  %v3742_v17 = vadd.f32 %v10982_v5, %v3711_v54  ;;  %v3681_v24 = vadd.f32 %v3591_v43, %v3417_v48 }
 0x49c   :  { %v8516_v3 = vpop.f32.mrf.mxu1 }
 0x49d   :  { %v3767_v22 = vmax.f32 %v3742_v17, 0.0  ;;  %v3712_v6 = vmul.f32 %v10977_v42, %v3681_v24 }
 0x49e   :  { %v3594_v57 = vpop.f32.mrf.mxu1 }
 0x49f   :  { %3792 = vst [vmem:[#allocation3 + $0x18] sm:$0xff] %v3767_v22  ;;  %v3743_v36 = vadd.f32 %v10982_v5, %v3712_v6  ;;  %v3682_v7 = vadd.f32 %v3594_v57, %v3418_v61  ;;  %v3421_v6 = vadd.f32 %v10583_v30, %v10916_v28 }
 0x4a0   :  { %v8517_v9 = vpop.f32.mrf.mxu1 }
 0x4a1   :  { %v3768_v29 = vmax.f32 %v3743_v36, 0.0  ;;  %v3713_v62 = vmul.f32 %v10977_v42, %v3682_v7  ;;  %v3422_v9 = vadd.f32 %v10595_v58, %v10920_v63 }
 0x4a2   :  { %v3599_v33 = vpop.f32.mrf.mxu1  ;;  %v3815_v10 = vld [vmem:[#allocation3 + $0xb] ss:$2 sm:$0xf]  ;;  %v3817_v18 = vld [vmem:[#allocation3 + $0xc] ss:$2 sm:$0xf] }
 0x4a3   :  { %3793 = vst [vmem:[#allocation3 + $0x20] sm:$0xff] %v3768_v29  ;;  %v3744_v44 = vadd.f32 %v10982_v5, %v3713_v62  ;;  %v3683_v23 = vadd.f32 %v3599_v33, %v3419_v47  ;;  %v3822_v48 = vmax.f32 %v3815_v10, %v3817_v18 }
 0x4a4   :  { %v8520_v39 = vpop.f32.mrf.mxu1 }
 0x4a5   :  { %v3769_v14 = vmax.f32 %v3744_v44, 0.0  ;;  %v3714_v2 = vmul.f32 %v10977_v42, %v3683_v23  ;;  %v3945_v44 = vld [vmem:[#allocation7 + $0x1] sm:$0xff]  ;;  %v3423_v39 = vadd.f32 %v10605_v40, %v10924_v35 }
 0x4a6   :  { %v3819_v21 = vld [vmem:[#allocation3 + $0x15] ss:$2 sm:$0xf]  ;;  %v3821_v16 = vld [vmem:[#allocation3 + $0x16] ss:$2 sm:$0xf]  ;;  %v3602_v54 = vpop.f32.mrf.mxu1 }
 0x4a7   :  { %v3823_v43 = vmax.f32 %v3819_v21, %v3821_v16  ;;  %3794 = vst [vmem:[#allocation3 + $0x28] sm:$0xff] %v3769_v14  ;;  %v3745_v11 = vadd.f32 %v10982_v5, %v3714_v2  ;;  %v3684_v45 = vadd.f32 %v3602_v54, %v3420_v13  ;;  %v9199_v35 = vld [vmem:[%s11844_s2 + $0x338] sm:$0xff]  }
 0x4a8   :  { %v8521_v17 = vpop.f32.mrf.mxu1 }
 0x4a9   :  { %v3824_v24 = vmax.f32 %v3822_v48, %v3823_v43  ;;  %v3770_v3 = vmax.f32 %v3745_v11, 0.0  ;;  %v3715_v22 = vmul.f32 %v10977_v42, %v3684_v45  ;;  %v9197_v43 = vld [vmem:[%s11844_s2 + $0x2f8] sm:$0xff]  }
 0x4aa   :  { %v3607_v61 = vpop.f32.mrf.mxu1  ;;  %v3827_v62 = vld [vmem:[#allocation3 + $0x1f] ss:$2 sm:$0xf]  ;;  %v3829_v47 = vld [vmem:[#allocation3 + $0x20] ss:$2 sm:$0xf] }
 0x4ab   :  { %3825 = vst [vmem:[#allocation7 + $0xe] sm:$0xf] %v3824_v24  ;;  %3795 = vst [vmem:[#allocation3 + $0x30] sm:$0xff] %v3770_v3  ;;  %v3746_v41 = vadd.f32 %v10982_v5, %v3715_v22  ;;  %v3685_v37 = vadd.f32 %v3607_v61, %v3421_v6  ;;  %v3834_v14 = vmax.f32 %v3827_v62, %v3829_v47 }
 0x4ac   :  { %v8524_v57 = vpop.f32.mrf.mxu1  ;;  %v3424_v3 = vadd.f32 %v10617_v31, %v10928_v50  ;;  %v9201_v31 = vld [vmem:[%s11844_s2 + $0x330] sm:$0xff]  }
 0x4ad   :  { %v3771_v36 = vmax.f32 %v3746_v41, 0.0  ;;  %v3716_v7 = vmul.f32 %v10977_v42, %v3685_v37  ;;  %v9198_v41 = vld [vmem:[%s11844_s2 + $0x2f0] sm:$0xff]  }
 0x4ae   :  { %v3610_v29 = vpop.f32.mrf.mxu1  ;;  %v3831_v23 = vld [vmem:[#allocation3 + $0x29] ss:$2 sm:$0xf] }
 0x4af   :  { %3796 = vst [vmem:[#allocation3 + $0x38] sm:$0xff] %v3771_v36  ;;  %v3747_v33 = vadd.f32 %v10982_v5, %v3716_v7  ;;  %v3686_v30 = vadd.f32 %v3610_v29, %v3422_v9 }
 0x4b0   :  { %v8525_v28 = vpop.f32.mrf.mxu1 }
 0x4b1   :  { %v3772_v10 = vmax.f32 %v3747_v33, 0.0  ;;  %v3717_v18 = vmul.f32 %v10977_v42, %v3686_v30  ;;  %v9200_v28 = vld [vmem:[%s11844_s2 + $0x2e8] sm:$0xff]  }
 0x4b2   :  { %v3833_v2 = vld [vmem:[#allocation3 + $0x2a] ss:$2 sm:$0xf]  ;;  %v3615_v13 = vpop.f32.mrf.mxu1  ;;  %v3946_v58 = vld [vmem:[#allocation7 + $0x9] sm:$0xff] }
 0x4b3   :  { %v11021_v63 = vld [vmem:[#allocation7 + $0x8] sm:$0xff]  ;;  %v3835_v21 = vmax.f32 %v3831_v23, %v3833_v2  ;;  %3797 = vst [vmem:[#allocation3 + $0x40] sm:$0xff] %v3772_v10  ;;  %v3748_v16 = vadd.f32 %v10982_v5, %v3717_v18  ;;  %v3687_v54 = vadd.f32 %v3615_v13, %v3423_v39  ;;  %v3954_v48 = vpack.c.bf16 %v3946_v58, %v3945_v44  ;;  %v9203_v23 = vld [vmem:[%s11844_s2 + $0x328] sm:$0xff]  }
 0x4b4   :  { %v8528_v11 = vpop.f32.mrf.mxu1  ;;  %v3923_v40 = vpack.c.bf16 %v11021_v63, %v10878_v20  ;;  %v3426_v39 = vadd.f32 %v10626_v51, %v10932_v56  ;;  %v9202_v58 = vld [vmem:[%s11844_s2 + $0x2e0] sm:$0xff]  }
 0x4b5   :  { %v3836_v45 = vmax.f32 %v3834_v14, %v3835_v21  ;;  %v3773_v17 = vmax.f32 %v3748_v16, 0.0  ;;  %v3718_v24 = vmul.f32 %v10977_v42, %v3687_v54  ;;  %8575 = vmatmul.mubr.bf16.vlgmr.msra.gmra.mxu0 %v3954_v48  ;;  %v9205_v51 = vld [vmem:[%s11844_s2 + $0x320] sm:$0xff]   ;;  %v3427_v54 = vadd.f32 %v10632_v19, %v10936_v32  ;;  %v9207_v19 = vld [vmem:[%s11844_s2 + $0x318] sm:$0xff]  }
 0x4b6   :  { %8611 = vmatmul.mubr.bf16.vlgmr.msra.gmra.mxu1 %v3923_v40  ;;  %v3618_v22 = vpop.f32.mrf.mxu1  ;;  %8578 = vmatprep.mubr.msk.bf16.mxu0 %vm9357_vm0, %v10878_v20  ;;  %v3839_v50 = vld [vmem:[#allocation3 + $0x33] ss:$2 sm:$0xf]  ;;  %v3841_v37 = vld [vmem:[#allocation3 + $0x34] ss:$2 sm:$0xf] }
 0x4b7   :  { %3837 = vst [vmem:[#allocation7 + $0x14] sm:$0xf] %v3836_v45  ;;  %3798 = vst [vmem:[#allocation3 + $0x48] sm:$0xff] %v3773_v17  ;;  %v3749_v6 = vadd.f32 %v10982_v5, %v3718_v24  ;;  %v3688_v61 = vadd.f32 %v3618_v22, %v3424_v3  ;;  %8614 = vmatprep.mubr.msk.bf16.mxu1 %vm9357_vm0, %v10878_v20  ;;  %8631 = vmatpush3.bf16.msra.mxu0 %v9197_v43  ;;  %v9204_v43 = vld [vmem:[%s11844_s2 + $0x2d8] sm:$0xff]  }
 0x4b8   :  { %v8529_v57 = vpop.f32.mrf.mxu1  ;;  %8632 = vmatprep.subr.bf16.mxu0 %v10878_v20  ;;  %8667 = vmatpush3.bf16.msra.mxu1 %v9199_v35  ;;  %v3846_v47 = vmax.f32 %v3839_v50, %v3841_v37  ;;  %v3428_v22 = vadd.f32 %v10640_v46, %v10940_v1  ;;  %v9206_v46 = vld [vmem:[%s11844_s2 + $0x2d0] sm:$0xff]  }
 0x4b9   :  { %v3774_v36 = vmax.f32 %v3749_v6, 0.0  ;;  %v3719_v7 = vmul.f32 %v10977_v42, %v3688_v61  ;;  %8668 = vmatprep.subr.bf16.mxu1 %v10878_v20 }
 0x4ba   :  { %v3843_v9 = vld [vmem:[#allocation3 + $0x3d] ss:$2 sm:$0xf]  ;;  %v3845_v29 = vld [vmem:[#allocation3 + $0x3e] ss:$2 sm:$0xf]  ;;  %v3623_v62 = vpop.f32.mrf.mxu1 }
 0x4bb   :  { %v3847_v33 = vmax.f32 %v3843_v9, %v3845_v29  ;;  %3799 = vst [vmem:[#allocation3 + $0x50] sm:$0xff] %v3774_v36  ;;  %v3750_v30 = vadd.f32 %v10982_v5, %v3719_v7  ;;  %8633 = vmatpush3.bf16.msra.mxu0 %v9198_v41  ;;  %v9208_v29 = vld [vmem:[%s11844_s2 + $0x310] sm:$0xff]  }
 0x4bc   :  { %v8532_v44 = vpop.f32.mrf.mxu1  ;;  %8634 = vmatprep.subr.bf16.mxu0 %v10878_v20  ;;  %8669 = vmatpush3.bf16.msra.mxu1 %v9201_v31 }
 0x4bd   :  { %v3848_v10 = vmax.f32 %v3846_v47, %v3847_v33  ;;  %v3775_v18 = vmax.f32 %v3750_v30, 0.0  ;;  %8670 = vmatprep.subr.bf16.mxu1 %v10878_v20 }
 0x4be   :  { %v3626_v14 = vpop.f32.mrf.mxu1  ;;  %v11060_v13 = vld [vmem:[#allocation7 + $0x10] sm:$0xff]  ;;  %v3853_v40 = vld [vmem:[#allocation3 + $0x48] ss:$2 sm:$0xf] }
 0x4bf   :  { %3849 = vst [vmem:[#allocation7 + $0x1a] sm:$0xf] %v3848_v10  ;;  %3800 = vst [vmem:[#allocation3 + $0x58] sm:$0xff] %v3775_v18  ;;  %v3690_v2 = vadd.f32 %v3626_v14, %v3426_v39  ;;  %8635 = vmatpush3.bf16.msra.mxu0 %v9200_v28  ;;  %v4705_v56 = vpack.c.bf16 %v11060_v13, %v11021_v63  ;;  %v3851_v11 = vld [vmem:[#allocation3 + $0x47] ss:$2 sm:$0xf]  ;;  %v3429_v28 = vadd.f32 %v10646_v12, %v10944_v0 }
 0x4c0   :  { %v8533_v21 = vpop.f32.mrf.mxu1  ;;  %8636 = vmatprep.subr.bf16.mxu0 %v10878_v20  ;;  %8671 = vmatpush3.bf16.msra.mxu1 %v9203_v23  ;;  %v3858_v6 = vmax.f32 %v3851_v11, %v3853_v40  ;;  %v11097_v1 = vld [vmem:[#allocation7 + $0xe] sm:$0xff]  ;;  %v9233_v63 = vld [vmem:[%s11844_s2 + $0x430] sm:$0xff]  }
 0x4c1   :  { %v3721_v16 = vmul.f32 %v10977_v42, %v3690_v2  ;;  %8672 = vmatprep.subr.bf16.mxu1 %v10878_v20  ;;  %v9209_v18 = vld [vmem:[%s11844_s2 + $0x2c8] sm:$0xff]   ;;  %v3430_v2 = vadd.f32 %v10654_v15, %v10948_v53  ;;  %v9212_v15 = vld [vmem:[%s11844_s2 + $0x300] sm:$0xff]  }
 0x4c2   :  { %v3631_v48 = vpop.f32.mrf.mxu1  ;;  %v3855_v32 = vld [vmem:[#allocation3 + $0x51] ss:$2 sm:$0xf]  ;;  %v9210_v12 = vld [vmem:[%s11844_s2 + $0x308] sm:$0xff]  }
 0x4c3   :  { %v3752_v35 = vadd.f32 %v10982_v5, %v3721_v16  ;;  %v3691_v45 = vadd.f32 %v3631_v48, %v3427_v54  ;;  %8637 = vmatpush3.bf16.msra.mxu0 %v9202_v58  ;;  %v9211_v16 = vld [vmem:[%s11844_s2 + $0x2c0] sm:$0xff]  }
 0x4c4   :  { %v8536_v17 = vpop.f32.mrf.mxu1  ;;  %8638 = vmatprep.subr.bf16.mxu0 %v10878_v20  ;;  %8673 = vmatpush3.bf16.msra.mxu1 %v9205_v51 }
 0x4c5   :  { %v3777_v24 = vmax.f32 %v3752_v35, 0.0  ;;  %v3722_v3 = vmul.f32 %v10977_v42, %v3691_v45  ;;  %8674 = vmatprep.subr.bf16.mxu1 %v10878_v20  ;;  %v3947_v45 = vld [vmem:[#allocation7 + $0x11] sm:$0xff] }
 0x4c6   :  { %v3857_v61 = vld [vmem:[#allocation3 + $0x52] ss:$2 sm:$0xf]  ;;  %v3634_v41 = vpop.f32.mrf.mxu1  ;;  %v11087_v31 = vld [vmem:[#allocation7 + $0x18] sm:$0xff] }
 0x4c7   :  { %v11089_v50 = vld [vmem:[#allocation7 + $0x16] sm:$0xff]  ;;  %v3859_v37 = vmax.f32 %v3855_v32, %v3857_v61  ;;  %3802 = vst [vmem:[#allocation3 + $0x68] sm:$0xff] %v3777_v24  ;;  %v3753_v57 = vadd.f32 %v10982_v5, %v3722_v3  ;;  %v3692_v36 = vadd.f32 %v3634_v41, %v3428_v22  ;;  %v3924_v7 = vpack.c.bf16 %v11087_v31, %v11060_v13  ;;  %v11147_v61 = vld [vmem:[#allocation7 + $0x26] sm:$0xff] }
 0x4c8   :  { %8639 = vmatpush3.bf16.msra.mxu0 %v9204_v43  ;;  %v8537_v9 = vpop.f32.mrf.mxu1  ;;  %8675 = vmatpush3.bf16.msra.mxu1 %v9207_v19  ;;  %v5185_v62 = vpack.c.bf16 %v11089_v50, %v11097_v1  ;;  %v3431_v43 = vadd.f32 %v10660_v59, %v10952_v26  ;;  %v3432_v22 = vadd.f32 %v10668_v27, %v10956_v60  ;;  %v4538_v13 = vld [vmem:[#allocation7 + $0x17] sm:$0xff] }
 0x4c9   :  { %8640 = vmatprep.subr.bf16.mxu0 %v10878_v20  ;;  %v3860_v47 = vmax.f32 %v3858_v6, %v3859_v37  ;;  %v3778_v33 = vmax.f32 %v3753_v57, 0.0  ;;  %v3723_v30 = vmul.f32 %v10977_v42, %v3692_v36  ;;  %8615 = vmatmul.mubr.bf16.gmra.mxu1 %v3924_v7 }
 0x4ca   :  { %8676 = vmatprep.subr.bf16.mxu1 %v10878_v20  ;;  %v3639_v44 = vpop.f32.mrf.mxu1  ;;  %8618 = vmatprep.mubr.msk.bf16.mxu1 %vm9357_vm0, %v10878_v20 }
 0x4cb   :  { %3861 = vst [vmem:[#allocation7 + $0x20] sm:$0xf] %v3860_v47  ;;  %3803 = vst [vmem:[#allocation3 + $0x70] sm:$0xff] %v3778_v33  ;;  %v3754_v23 = vadd.f32 %v10982_v5, %v3723_v30  ;;  %v3693_v10 = vadd.f32 %v3639_v44, %v3429_v28  ;;  %v3433_v47 = vadd.f32 %v10674_v8, %v10960_v49  ;;  %v3950_v30 = vld [vmem:[#allocation7 + $0x29] sm:$0xff] }
 0x4cc   :  { %8641 = vmatpush3.bf16.msra.mxu0 %v9206_v46  ;;  %v8540_v39 = vpop.f32.mrf.mxu1  ;;  %8677 = vmatpush3.bf16.msra.mxu1 %v9208_v29  ;;  %v3434_v8 = vadd.f32 %v10682_v52, %v10964_v34 }
 0x4cd   :  { %8642 = vmatprep.subr.bf16.mxu0 %v10878_v20  ;;  %v3779_v0 = vmax.f32 %v3754_v23, 0.0  ;;  %v3724_v14 = vmul.f32 %v10977_v42, %v3693_v10  ;;  %8678 = vmatprep.subr.bf16.mxu1 %v10878_v20 }
 0x4ce   :  { %v3642_v58 = vpop.f32.mrf.mxu1 }
 0x4cf   :  { %3804 = vst [vmem:[#allocation3 + $0x78] sm:$0xff] %v3779_v0  ;;  %v3755_v21 = vadd.f32 %v10982_v5, %v3724_v14  ;;  %v3694_v51 = vadd.f32 %v3642_v58, %v3430_v2 }
 0x4d0   :  { %8643 = vmatpush3.bf16.msra.mxu0 %v9209_v18  ;;  %v8541_v54 = vpop.f32.mrf.mxu1  ;;  %8679 = vmatpush3.bf16.msra.mxu1 %v9210_v12 }
 0x4d1   :  { %8644 = vmatprep.subr.bf16.mxu0 %v10878_v20  ;;  %v3780_v53 = vmax.f32 %v3755_v21, 0.0  ;;  %v3725_v48 = vmul.f32 %v10977_v42, %v3694_v51  ;;  %8680 = vmatprep.subr.bf16.mxu1 %v10878_v20 }
 0x4d2   :  { %v3647_v11 = vpop.f32.mrf.mxu1  ;;  %v3948_v17 = vld [vmem:[#allocation7 + $0x19] sm:$0xff]  ;;  %v3949_v33 = vld [vmem:[#allocation7 + $0x21] sm:$0xff] }
 0x4d3   :  { %3805 = vst [vmem:[#allocation3 + $0x80] sm:$0xff] %v3780_v53  ;;  %v3756_v40 = vadd.f32 %v10982_v5, %v3725_v48  ;;  %v3695_v35 = vadd.f32 %v3647_v11, %v3431_v43  ;;  %v11136_v19 = vld [vmem:[#allocation7 + $0x20] sm:$0xff]  ;;  %v3955_v24 = vpack.c.bf16 %v3948_v17, %v3947_v45  ;;  %v3956_v14 = vpack.c.bf16 %v3950_v30, %v3949_v33 }
 0x4d4   :  { %8645 = vmatpush3.bf16.msra.mxu0 %v9211_v16  ;;  %v8544_v32 = vpop.f32.mrf.mxu1  ;;  %v3925_v3 = vpack.c.bf16 %v10878_v20, %v11136_v19  ;;  %8681 = vmatpush3.bf16.msra.mxu1 %v9212_v15  ;;  %v11144_v6 = vld [vmem:[#allocation7 + $0x1e] sm:$0xff]  ;;  %v4706_v37 = vpack.c.bf16 %v11136_v19, %v11087_v31  ;;  %v3435_v11 = vadd.f32 %v10688_v38, %v10968_v55 }
 0x4d5   :  { %8702 = vmatprep.subr.bf16.mxu0 %v10878_v20  ;;  %v3781_v59 = vmax.f32 %v3756_v40, 0.0  ;;  %v3726_v26 = vmul.f32 %v10977_v42, %v3695_v35  ;;  %8738 = vmatprep.subr.bf16.mxu1 %v10878_v20  ;;  %v3863_v27 = vld [vmem:[#allocation3 + $0x6f] ss:$2 sm:$0xf]  ;;  %v5186_v46 = vpack.c.bf16 %v11147_v61, %v11144_v6 }
 0x4d6   :  { %8579 = vmatmul.mubr.bf16.gmra.mxu0 %v3955_v24  ;;  %8619 = vmatmul.mubr.bf16.gmra.mxu1 %v3925_v3  ;;  %v3650_v41 = vpop.f32.mrf.mxu1  ;;  %v3865_v60 = vld [vmem:[#allocation3 + $0x70] ss:$2 sm:$0xf]  ;;  %v3867_v28 = vld [vmem:[#allocation3 + $0x79] ss:$2 sm:$0xf] }
 0x4d7   :  { %3806 = vst [vmem:[#allocation3 + $0x88] sm:$0xff] %v3781_v59  ;;  %v3757_v57 = vadd.f32 %v10982_v5, %v3726_v26  ;;  %v3696_v36 = vadd.f32 %v3650_v41, %v3432_v22  ;;  %8582 = vmatprep.mubr.msk.bf16.mxu0 %vm9357_vm0, %v10878_v20  ;;  %8622 = vmatprep.mubr.msk.bf16.mxu1 %vm9357_vm0, %v10878_v20  ;;  %v9236_v19 = vld [vmem:[%s11844_s2 + $0x3d8] sm:$0xff]  }
 0x4d8   :  { %v8545_v7 = vpop.f32.mrf.mxu1  ;;  %v3870_v10 = vmax.f32 %v3863_v27, %v3865_v60  ;;  %v3436_v22 = vadd.f32 %v10696_v4, %v10972_v25 }
 0x4d9   :  { %v3782_v9 = vmax.f32 %v3757_v57, 0.0  ;;  %v3727_v29 = vmul.f32 %v10977_v42, %v3696_v36 }
 0x4da   :  { %v3869_v44 = vld [vmem:[#allocation3 + $0x7a] ss:$2 sm:$0xf]  ;;  %v3655_v23 = vpop.f32.mrf.mxu1 }
 0x4db   :  { %v3871_v18 = vmax.f32 %v3867_v28, %v3869_v44  ;;  %3807 = vst [vmem:[#allocation3 + $0x90] sm:$0xff] %v3782_v9  ;;  %v3758_v39 = vadd.f32 %v10982_v5, %v3727_v29  ;;  %v3697_v12 = vadd.f32 %v3655_v23, %v3433_v47 }
 0x4dc   :  { %v8548_v0 = vpop.f32.mrf.mxu1 }
 0x4dd   :  { %v3872_v2 = vmax.f32 %v3870_v10, %v3871_v18  ;;  %v3783_v58 = vmax.f32 %v3758_v39, 0.0  ;;  %v3728_v21 = vmul.f32 %v10977_v42, %v3697_v12 }
 0x4de   :  { %8583 = vmatmul.mubr.bf16.gmra.mxu0 %v3956_v14  ;;  %v3658_v49 = vpop.f32.mrf.mxu1  ;;  %v3875_v54 = vld [vmem:[#allocation3 + $0x83] ss:$2 sm:$0xf]  ;;  %v3877_v15 = vld [vmem:[#allocation3 + $0x84] ss:$2 sm:$0xf] }
 0x4df   :  { %3873 = vst [vmem:[#allocation7 + $0x32] sm:$0xf] %v3872_v2  ;;  %3808 = vst [vmem:[#allocation3 + $0x98] sm:$0xff] %v3783_v58  ;;  %v3759_v51 = vadd.f32 %v10982_v5, %v3728_v21  ;;  %v3698_v16 = vadd.f32 %v3658_v49, %v3434_v8  ;;  %8586 = vmatprep.mubr.msk.bf16.mxu0 %vm9357_vm0, %v10878_v20  ;;  %v3882_v35 = vmax.f32 %v3875_v54, %v3877_v15 }
 0x4e0   :  { %v8549_v53 = vpop.f32.mrf.mxu1 }
 0x4e1   :  { %v3784_v48 = vmax.f32 %v3759_v51, 0.0  ;;  %v3729_v43 = vmul.f32 %v10977_v42, %v3698_v16 }
 0x4e2   :  { %v3879_v52 = vld [vmem:[#allocation3 + $0x8d] ss:$2 sm:$0xf]  ;;  %v3881_v34 = vld [vmem:[#allocation3 + $0x8e] ss:$2 sm:$0xf]  ;;  %v3663_v40 = vpop.f32.mrf.mxu1 }
 0x4e3   :  { %v3883_v45 = vmax.f32 %v3879_v52, %v3881_v34  ;;  %3809 = vst [vmem:[#allocation3 + $0xa0] sm:$0xff] %v3784_v48  ;;  %v3760_v17 = vadd.f32 %v10982_v5, %v3729_v43  ;;  %v3699_v32 = vadd.f32 %v3663_v40, %v3435_v11 }
 0x4e4   :  { %v8552_v24 = vpop.f32.mrf.mxu1 }
 0x4e5   :  { %v3884_v3 = vmax.f32 %v3882_v35, %v3883_v45  ;;  %v3785_v59 = vmax.f32 %v3760_v17, 0.0  ;;  %v3730_v26 = vmul.f32 %v10977_v42, %v3699_v32  ;;  %v4216_v45 = vld [vmem:[#allocation7 + $0x2] sm:$0xff]  ;;  %v4217_v17 = vld [vmem:[#allocation7 + $0xa] sm:$0xff] }
 0x4e6   :  { %v3666_v41 = vpop.f32.mrf.mxu1  ;;  %v3887_v9 = vld [vmem:[#allocation3 + $0x97] ss:$2 sm:$0xf]  ;;  %v3889_v29 = vld [vmem:[#allocation3 + $0x98] ss:$2 sm:$0xf] }
 0x4e7   :  { %3885 = vst [vmem:[#allocation7 + $0x38] sm:$0xf] %v3884_v3  ;;  %3810 = vst [vmem:[#allocation3 + $0xa8] sm:$0xff] %v3785_v59  ;;  %v3761_v38 = vadd.f32 %v10982_v5, %v3730_v26  ;;  %v3700_v55 = vadd.f32 %v3666_v41, %v3436_v22  ;;  %v3894_v28 = vmax.f32 %v3887_v9, %v3889_v29  ;;  %v11178_v23 = vld [vmem:[#allocation7 + $0x2e] sm:$0xff]  ;;  %v4376_v32 = vld [vmem:[#allocation7 + $0x6] sm:$0xff] }
 0x4e8   :  { %v8553_v57 = vpop.f32.mrf.mxu1  ;;  %v11184_v8 = vld [vmem:[#allocation7 + $0x30] sm:$0xff]  ;;  %v9213_v24 = vld [vmem:[%s11844_s2 + $0x378] sm:$0xff]   ;;  %v4225_v3 = vpack.c.bf16 %v4217_v17, %v4216_v45  ;;  %v4385_v59 = vpack.c.bf16 %v11097_v1, %v4376_v32  ;;  %v9214_v22 = vld [vmem:[%s11844_s2 + $0x370] sm:$0xff]  }
 0x4e9   :  { %v3786_v36 = vmax.f32 %v3761_v38, 0.0  ;;  %v3731_v27 = vmul.f32 %v10977_v42, %v3700_v55  ;;  %v9215_v26 = vld [vmem:[%s11844_s2 + $0x3b8] sm:$0xff]   ;;  %v9217_v38 = vld [vmem:[%s11844_s2 + $0x3b0] sm:$0xff]   ;;  %v9216_v57 = vld [vmem:[%s11844_s2 + $0x368] sm:$0xff]  }
 0x4ea   :  { %v3671_v60 = vpop.f32.mrf.mxu1  ;;  %v3891_v30 = vld [vmem:[#allocation3 + $0xa1] ss:$2 sm:$0xf]  ;;  %v4219_v41 = vld [vmem:[#allocation7 + $0x1a] sm:$0xff]  ;;  %v4220_v9 = vld [vmem:[#allocation7 + $0x22] sm:$0xff] }
 0x4eb   :  { %3811 = vst [vmem:[#allocation3 + $0xb0] sm:$0xff] %v3786_v36  ;;  %v3762_v7 = vadd.f32 %v10982_v5, %v3731_v27  ;;  %v4218_v55 = vld [vmem:[#allocation7 + $0x12] sm:$0xff]  ;;  %v4386_v27 = vpack.c.bf16 %v11144_v6, %v11089_v50  ;;  %v4221_v29 = vld [vmem:[#allocation7 + $0x2a] sm:$0xff]  ;;  %v4539_v17 = vld [vmem:[#allocation7 + $0x1f] sm:$0xff] }
 0x4ec   :  { %v8556_v47 = vpop.f32.mrf.mxu1  ;;  %v4226_v36 = vpack.c.bf16 %v4219_v41, %v4218_v55  ;;  %v9219_v60 = vld [vmem:[%s11844_s2 + $0x3a8] sm:$0xff]   ;;  %v9230_v45 = vld [vmem:[%s11844_s2 + $0x3f0] sm:$0xff]   ;;  %v4546_v32 = vpack.c.bf16 %v4539_v17, %v4538_v13 }
 0x4ed   :  { %v3787_v33 = vmax.f32 %v3762_v7, 0.0  ;;  %v9218_v7 = vld [vmem:[%s11844_s2 + $0x360] sm:$0xff]   ;;  %v11246_v47 = vld [vmem:[#allocation6] sm:$0xff]  ;;  %v9238_v41 = vld [vmem:[%s11844_s2 + $0x3d0] sm:$0xff]  }
 0x4ee   :  { %v3893_v4 = vld [vmem:[#allocation3 + $0xa2] ss:$2 sm:$0xf]  ;;  %v3674_v25 = vpop.f32.mrf.mxu1 }
 0x4ef   :  { %v3895_v44 = vmax.f32 %v3891_v30, %v3893_v4  ;;  %3812 = vst [vmem:[#allocation3 + $0xb8] sm:$0xff] %v3787_v33  ;;  %v11180_v10 = vld [vmem:[#allocation7 + $0x36] sm:$0xff]  ;;  %v9220_v33 = vld [vmem:[%s11844_s2 + $0x358] sm:$0xff]   ;;  %v9221_v30 = vld [vmem:[%s11844_s2 + $0x3a0] sm:$0xff]   ;;  %v4227_v4 = vpack.c.bf16 %v4221_v29, %v4220_v9 }
 0x4f0   :  { %v8557_v18 = vpop.f32.mrf.mxu1  ;;  %v5187_v42 = vpack.c.bf16 %v11180_v10, %v11178_v23  ;;  %v3951_v49 = vld [vmem:[#allocation7 + $0x31] sm:$0xff] }
 0x4f1   :  { %v3896_v39 = vmax.f32 %v3894_v28, %v3895_v44  ;;  %v9222_v25 = vld [vmem:[%s11844_s2 + $0x350] sm:$0xff]   ;;  %v9223_v28 = vld [vmem:[%s11844_s2 + $0x398] sm:$0xff]   ;;  %v4541_v31 = vld [vmem:[#allocation7 + $0x2f] sm:$0xff] }
 0x4f2   :  { %v3899_v5 = vld [vmem:[#allocation3 + $0xab] ss:$2 sm:$0xf]  ;;  %v3901_v12 = vld [vmem:[#allocation3 + $0xac] ss:$2 sm:$0xf] }
 0x4f3   :  { %3897 = vst [vmem:[#allocation7 + $0x3e] sm:$0xf] %v3896_v39  ;;  %v3906_v2 = vmax.f32 %v3899_v5, %v3901_v12  ;;  %v4222_v18 = vld [vmem:[#allocation7 + $0x32] sm:$0xff] }
 0x4f4   :  { %v9224_v39 = vld [vmem:[%s11844_s2 + $0x390] sm:$0xff]   ;;  %v9225_v5 = vld [vmem:[%s11844_s2 + $0x348] sm:$0xff]  }
 0x4f5   :  { %v4857_v29 = vld [vmem:[#allocation7 + $0x14] sm:$0xff] }
 0x4f6   :  { %v3903_v0 = vld [vmem:[#allocation3 + $0xb5] ss:$2 sm:$0xf]  ;;  %v3905_v14 = vld [vmem:[#allocation3 + $0xb6] ss:$2 sm:$0xf] }
 0x4f7   :  { %v3907_v58 = vmax.f32 %v3903_v0, %v3905_v14  ;;  %v9226_v14 = vld [vmem:[%s11844_s2 + $0x388] sm:$0xff]  }
 0x4f9   :  { %v3908_v21 = vmax.f32 %v3906_v2, %v3907_v58  ;;  %v9227_v2 = vld [vmem:[%s11844_s2 + $0x340] sm:$0xff]  }
 0x4fa   :  { %v3952_v51 = vld [vmem:[#allocation7 + $0x39] sm:$0xff] }
 0x4fb   :  { %v11186_v16 = vld [vmem:[#allocation7 + $0x38] sm:$0xff]  ;;  %3909 = vst [vmem:[#allocation7 + $0x44] sm:$0xf] %v3908_v21  ;;  %v3957_v54 = vpack.c.bf16 %v3952_v51, %v3951_v49  ;;  %v9228_v21 = vld [vmem:[%s11844_s2 + $0x380] sm:$0xff]  }
 0x4fc   :  { %v3926_v15 = vpack.c.bf16 %v11186_v16, %v11184_v8  ;;  %v4223_v44 = vld [vmem:[#allocation7 + $0x3a] sm:$0xff] }
 0x4fd   :  { %8587 = vmatmul.mubr.bf16.gmra.mxu0 %v3957_v54  ;;  %v4228_v12 = vpack.c.bf16 %v4223_v44, %v4222_v18  ;;  %v4537_v54 = vld [vmem:[#allocation7 + $0xf] sm:$0xff]  ;;  %v4542_v55 = vld [vmem:[#allocation7 + $0x37] sm:$0xff]  ;;  %v4859_v18 = vld [vmem:[#allocation7 + $0x24] sm:$0xff] }
 0x4fe   :  { %8623 = vmatmul.mubr.bf16.gmra.mxu1 %v3926_v15  ;;  %8590 = vmatprep.mubr.msk.bf16.mxu0 %vm9357_vm0, %v10878_v20  ;;  %v4536_v15 = vld [vmem:[#allocation7 + $0x7] sm:$0xff]  ;;  %v9246_v44 = vld [vmem:[%s11844_s2 + $0x470] sm:$0xff]  }
 0x4ff   :  { %8626 = vmatprep.mubr.msk.bf16.mxu1 %vm9357_vm0, %v10878_v20  ;;  %v4862_v13 = vld [vmem:[#allocation7 + $0x3c] sm:$0xff] }
 0x502   :  { %v3953_v53 = vld [vmem:[#allocation7 + $0x41] sm:$0xff] }
 0x503   :  { %v11194_v48 = vld [vmem:[#allocation7 + $0x40] sm:$0xff]  ;;  %v3958_v11 = vpack.c.bf16 %v3953_v53, %v3953_v53 }
 0x504   :  { %v11196_v43 = vld [vmem:[#allocation7 + $0x3e] sm:$0xff]  ;;  %v3927_v52 = vpack.c.bf16 %v11194_v48, %v11194_v48  ;;  %v11200_v34 = vld [vmem:[#allocation7 + $0x46] sm:$0xff]  ;;  %v4708_v40 = vpack.c.bf16 %v11194_v48, %v11186_v16  ;;  %v4709_v16 = vpack.c.bf16 %v11246_v47, %v11246_v47 }
 0x505   :  { %v5188_v35 = vpack.c.bf16 %v11200_v34, %v11196_v43  ;;  %8591 = vmatmul.mubr.bf16.gmra.mxu0 %v3958_v11  ;;  %v4388_v0 = vpack.c.bf16 %v11196_v43, %v11180_v10  ;;  %v4224_v58 = vld [vmem:[#allocation7 + $0x42] sm:$0xff]  ;;  %v4389_v51 = vpack.c.bf16 %v11200_v34, %v11200_v34  ;;  %v4545_v11 = vpack.c.bf16 %v4537_v54, %v4536_v15  ;;  %v5020_v54 = vld [vmem:[#allocation7 + $0x2d] sm:$0xff] }
 0x506   :  { %8627 = vmatmul.mubr.bf16.gmra.mxu1 %v3927_v52  ;;  %8646 = vmatprep.mubr.msk.bf16.mxu0 %vm9357_vm0, %v10878_v20  ;;  %v4229_v49 = vpack.c.bf16 %v4224_v58, %v4224_v58  ;;  %v9229_v53 = vld [vmem:[%s11844_s2 + $0x3f8] sm:$0xff]   ;;  %v9244_v48 = vld [vmem:[%s11844_s2 + $0x400] sm:$0xff]  }
 0x507   :  { %8682 = vmatprep.mubr.msk.bf16.mxu1 %vm9357_vm0, %v10878_v20  ;;  %v9231_v52 = vld [vmem:[%s11844_s2 + $0x438] sm:$0xff]   ;;  %v9248_v58 = vld [vmem:[%s11844_s2 + $0x460] sm:$0xff]  }
 0x508   :  { %v4544_v9 = vld [vmem:[#allocation7 + $0x47] sm:$0xff]  ;;  %v5022_v17 = vld [vmem:[#allocation7 + $0x3d] sm:$0xff] }
 0x509   :  { %v9249_v15 = vld [vmem:[%s11844_s2 + $0x458] sm:$0xff]  }
 0x50d   :  { %8647 = vmatmul.mubr.bf16.vlgmr.msra.gmra.mxu0 %v4225_v3  ;;  %v9234_v3 = vld [vmem:[%s11844_s2 + $0x3e0] sm:$0xff]  }
 0x50e   :  { %8683 = vmatmul.mubr.bf16.vlgmr.msra.gmra.mxu1 %v4385_v59  ;;  %8703 = vmatpush3.bf16.msra.mxu0 %v9213_v24  ;;  %v9235_v24 = vld [vmem:[%s11844_s2 + $0x428] sm:$0xff]   ;;  %v4540_v59 = vld [vmem:[#allocation7 + $0x27] sm:$0xff] }
 0x50f   :  { %8650 = vmatprep.mubr.msk.bf16.mxu0 %vm9357_vm0, %v10878_v20  ;;  %8704 = vmatprep.subr.bf16.mxu0 %v10878_v20 }
 0x510   :  { %8686 = vmatprep.mubr.msk.bf16.mxu1 %vm9357_vm0, %v10878_v20  ;;  %8739 = vmatpush3.bf16.msra.mxu1 %v9215_v26  ;;  %v4547_v26 = vpack.c.bf16 %v4541_v31, %v4540_v59  ;;  %v4864_v31 = vld [vmem:[#allocation7 + $0x4c] sm:$0xff] }
 0x511   :  { %8740 = vmatprep.subr.bf16.mxu1 %v10878_v20 }
 0x512   :  { %8705 = vmatpush3.bf16.msra.mxu0 %v9214_v22  ;;  %v4707_v22 = vpack.c.bf16 %v11184_v8, %v11246_v47  ;;  %v4543_v8 = vld [vmem:[#allocation7 + $0x3f] sm:$0xff] }
 0x513   :  { %8706 = vmatprep.subr.bf16.mxu0 %v10878_v20 }
 0x514   :  { %8741 = vmatpush3.bf16.msra.mxu1 %v9217_v38  ;;  %v9239_v38 = vld [vmem:[%s11844_s2 + $0x418] sm:$0xff]  }
 0x515   :  { %8651 = vmatmul.mubr.bf16.gmra.mxu0 %v4226_v36  ;;  %8742 = vmatprep.subr.bf16.mxu1 %v11246_v47  ;;  %v9241_v36 = vld [vmem:[%s11844_s2 + $0x3c8] sm:$0xff]  }
 0x516   :  { %8687 = vmatmul.mubr.bf16.gmra.mxu1 %v4386_v27  ;;  %8707 = vmatpush3.bf16.msra.mxu0 %v9216_v57  ;;  %v9240_v57 = vld [vmem:[%s11844_s2 + $0x410] sm:$0xff]   ;;  %v4548_v27 = vpack.c.bf16 %v4543_v8, %v4542_v55  ;;  %v4869_v8 = vpack.c.bf16 %v4864_v31, %v4864_v31 }
 0x517   :  { %8654 = vmatprep.mubr.msk.bf16.mxu0 %vm9357_vm0, %v10878_v20  ;;  %8708 = vmatprep.subr.bf16.mxu0 %v10878_v20 }
 0x518   :  { %8690 = vmatprep.mubr.msk.bf16.mxu1 %vm9357_vm0, %v10878_v20  ;;  %8743 = vmatpush3.bf16.msra.mxu1 %v9219_v60  ;;  %v4387_v20 = vpack.c.bf16 %v11178_v23, %v11147_v61  ;;  %v9242_v60 = vld [vmem:[%s11844_s2 + $0x408] sm:$0xff]  }
 0x519   :  { %8744 = vmatprep.subr.bf16.mxu1 %v11246_v47  ;;  %v5184_v23 = vld [vmem:[#allocation7 + $0x4e] sm:$0xff] }
 0x51a   :  { %8709 = vmatpush3.bf16.msra.mxu0 %v9218_v7  ;;  %v9243_v7 = vld [vmem:[%s11844_s2 + $0x3c0] sm:$0xff]  }
 0x51b   :  { %8710 = vmatprep.subr.bf16.mxu0 %v11246_v47 }
 0x51c   :  { %8745 = vmatpush3.bf16.msra.mxu1 %v9221_v30  ;;  %v4856_v30 = vld [vmem:[#allocation7 + $0xc] sm:$0xff] }
 0x51d   :  { %8655 = vmatmul.mubr.bf16.gmra.mxu0 %v4227_v4  ;;  %8746 = vmatprep.subr.bf16.mxu1 %v11246_v47  ;;  %v5016_v4 = vld [vmem:[#allocation7 + $0xd] sm:$0xff] }
 0x51e   :  { %8691 = vmatmul.mubr.bf16.gmra.mxu1 %v4387_v20  ;;  %8711 = vmatpush3.bf16.msra.mxu0 %v9220_v33  ;;  %v5017_v33 = vld [vmem:[#allocation7 + $0x15] sm:$0xff]  ;;  %v9245_v20 = vld [vmem:[%s11844_s2 + $0x478] sm:$0xff]  }
 0x51f   :  { %8658 = vmatprep.mubr.msk.bf16.mxu0 %vm9357_vm0, %v11246_v47  ;;  %8694 = vmatprep.mubr.msk.bf16.mxu1 %vm9357_vm0, %v11246_v47 }
 0x520   :  { %8712 = vmatprep.subr.bf16.mxu0 %v11246_v47  ;;  %8747 = vmatpush3.bf16.msra.mxu1 %v9223_v28  ;;  %v5025_v28 = vpack.c.bf16 %v5017_v33, %v5016_v4 }
 0x521   :  { %8748 = vmatprep.subr.bf16.mxu1 %v11246_v47 }
 0x522   :  { %8713 = vmatpush3.bf16.msra.mxu0 %v9222_v25  ;;  %v4865_v25 = vpack.c.bf16 %v4857_v29, %v4856_v30 }
 0x523   :  { %8714 = vmatprep.subr.bf16.mxu0 %v11246_v47 }
 0x524   :  { %8749 = vmatpush3.bf16.msra.mxu1 %v9224_v39  ;;  %v4858_v39 = vld [vmem:[#allocation7 + $0x1c] sm:$0xff] }
 0x525   :  { %8659 = vmatmul.mubr.bf16.gmra.mxu0 %v4228_v12  ;;  %8750 = vmatprep.subr.bf16.mxu1 %v11246_v47  ;;  %v5019_v12 = vld [vmem:[#allocation7 + $0x25] sm:$0xff] }
 0x526   :  { %8695 = vmatmul.mubr.bf16.gmra.mxu1 %v4388_v0  ;;  %8715 = vmatpush3.bf16.msra.mxu0 %v9225_v5  ;;  %v5018_v5 = vld [vmem:[#allocation7 + $0x1d] sm:$0xff]  ;;  %v9247_v0 = vld [vmem:[%s11844_s2 + $0x468] sm:$0xff]  }
 0x527   :  { %8662 = vmatprep.mubr.msk.bf16.mxu0 %vm9357_vm0, %v11246_v47  ;;  %8698 = vmatprep.mubr.msk.bf16.mxu1 %vm9357_vm0, %v11246_v47 }
 0x528   :  { %8716 = vmatprep.subr.bf16.mxu0 %v11246_v47  ;;  %8751 = vmatpush3.bf16.msra.mxu1 %v9226_v14  ;;  %v4866_v14 = vpack.c.bf16 %v4859_v18, %v4858_v39 }
 0x529   :  { %8752 = vmatprep.subr.bf16.mxu1 %v11246_v47 }
 0x52a   :  { %8717 = vmatpush3.bf16.msra.mxu0 %v9227_v2  ;;  %v5026_v2 = vpack.c.bf16 %v5019_v12, %v5018_v5 }
 0x52b   :  { %8774 = vmatprep.subr.bf16.mxu0 %v11246_v47 }
 0x52c   :  { %8753 = vmatpush3.bf16.msra.mxu1 %v9228_v21  ;;  %v4861_v21 = vld [vmem:[#allocation7 + $0x34] sm:$0xff] }
 0x52d   :  { %8663 = vmatmul.mubr.bf16.gmra.mxu0 %v4229_v49  ;;  %8810 = vmatprep.subr.bf16.mxu1 %v11246_v47  ;;  %v5021_v49 = vld [vmem:[#allocation7 + $0x35] sm:$0xff] }
 0x52e   :  { %8699 = vmatmul.mubr.bf16.gmra.mxu1 %v4389_v51  ;;  %8718 = vmatprep.mubr.msk.bf16.mxu0 %vm9357_vm0, %v11246_v47  ;;  %v4860_v51 = vld [vmem:[#allocation7 + $0x2c] sm:$0xff] }
 0x52f   :  { %8754 = vmatprep.mubr.msk.bf16.mxu1 %vm9357_vm0, %v11246_v47 }
 0x535   :  { %8719 = vmatmul.mubr.bf16.vlgmr.msra.gmra.mxu0 %v4545_v11  ;;  %v5027_v11 = vpack.c.bf16 %v5021_v49, %v5020_v54 }
 0x536   :  { %8755 = vmatmul.mubr.bf16.vlgmr.msra.gmra.mxu1 %v4705_v56  ;;  %8775 = vmatpush3.bf16.msra.mxu0 %v9229_v53  ;;  %v9232_v56 = vld [vmem:[%s11844_s2 + $0x3e8] sm:$0xff]   ;;  %v4867_v53 = vpack.c.bf16 %v4861_v21, %v4860_v51 }
 0x537   :  { %8722 = vmatprep.mubr.msk.bf16.mxu0 %vm9357_vm0, %v11246_v47  ;;  %8776 = vmatprep.subr.bf16.mxu0 %v11246_v47 }
 0x538   :  { %8758 = vmatprep.mubr.msk.bf16.mxu1 %vm9357_vm0, %v11246_v47  ;;  %8811 = vmatpush3.bf16.msra.mxu1 %v9231_v52  ;;  %v9250_v52 = vld [vmem:[%s11844_s2 + $0x450] sm:$0xff]  }
 0x539   :  { %8812 = vmatprep.subr.bf16.mxu1 %v11246_v47 }
 0x53a   :  { %8777 = vmatpush3.bf16.msra.mxu0 %v9230_v45  ;;  %v4863_v45 = vld [vmem:[#allocation7 + $0x44] sm:$0xff] }
 0x53b   :  { %8778 = vmatprep.subr.bf16.mxu0 %v11246_v47 }
 0x53c   :  { %8813 = vmatpush3.bf16.msra.mxu1 %v9233_v63  ;;  %v5023_v63 = vld [vmem:[#allocation7 + $0x45] sm:$0xff] }
 0x53d   :  { %8723 = vmatmul.mubr.bf16.gmra.mxu0 %v4546_v32  ;;  %8814 = vmatprep.subr.bf16.mxu1 %v11246_v47  ;;  %v4868_v32 = vpack.c.bf16 %v4863_v45, %v4862_v13 }
 0x53e   :  { %8759 = vmatmul.mubr.bf16.gmra.mxu1 %v4706_v37  ;;  %8779 = vmatpush3.bf16.msra.mxu0 %v9232_v56  ;;  %v9237_v37 = vld [vmem:[%s11844_s2 + $0x420] sm:$0xff]   ;;  %v9251_v56 = vld [vmem:[%s11844_s2 + $0x448] sm:$0xff]  }
 0x53f   :  { %8726 = vmatprep.mubr.msk.bf16.mxu0 %vm9357_vm0, %v11246_v47  ;;  %8780 = vmatprep.subr.bf16.mxu0 %v11246_v47 }
 0x540   :  { %8762 = vmatprep.mubr.msk.bf16.mxu1 %vm9357_vm0, %v11246_v47  ;;  %8815 = vmatpush3.bf16.msra.mxu1 %v9235_v24  ;;  %v5028_v24 = vpack.c.bf16 %v5023_v63, %v5022_v17 }
 0x541   :  { %8816 = vmatprep.subr.bf16.mxu1 %v11246_v47 }
 0x542   :  { %8781 = vmatpush3.bf16.msra.mxu0 %v9234_v3 }
 0x543   :  { %8782 = vmatprep.subr.bf16.mxu0 %v11246_v47 }
 0x544   :  { %8817 = vmatpush3.bf16.msra.mxu1 %v9237_v37  ;;  %v9252_v37 = vld [vmem:[%s11844_s2 + $0x440] sm:$0xff]  }
 0x545   :  { %8727 = vmatmul.mubr.bf16.gmra.mxu0 %v4547_v26  ;;  %8818 = vmatprep.subr.bf16.mxu1 %v11246_v47 }
 0x546   :  { %8763 = vmatmul.mubr.bf16.gmra.mxu1 %v4707_v22  ;;  %8783 = vmatpush3.bf16.msra.mxu0 %v9236_v19  ;;  %v5024_v19 = vld [vmem:[#allocation7 + $0x4d] sm:$0xff] }
 0x547   :  { %8730 = vmatprep.mubr.msk.bf16.mxu0 %vm9357_vm0, %v11246_v47  ;;  %8766 = vmatprep.mubr.msk.bf16.mxu1 %vm9357_vm0, %v11246_v47  ;;  %v5029_v55 = vpack.c.bf16 %v5024_v19, %v5024_v19 }
 0x548   :  { %8784 = vmatprep.subr.bf16.mxu0 %v11246_v47  ;;  %8819 = vmatpush3.bf16.msra.mxu1 %v9239_v38 }
 0x549   :  { %8820 = vmatprep.subr.bf16.mxu1 %v11246_v47 }
 0x54a   :  { %8785 = vmatpush3.bf16.msra.mxu0 %v9238_v41 }
 0x54b   :  { %8786 = vmatprep.subr.bf16.mxu0 %v11246_v47 }
 0x54c   :  { %8821 = vmatpush3.bf16.msra.mxu1 %v9240_v57 }
 0x54d   :  { %8731 = vmatmul.mubr.bf16.gmra.mxu0 %v4548_v27  ;;  %8822 = vmatprep.subr.bf16.mxu1 %v11246_v47 }
 0x54e   :  { %8767 = vmatmul.mubr.bf16.gmra.mxu1 %v4708_v40  ;;  %8787 = vmatpush3.bf16.msra.mxu0 %v9241_v36  ;;  %v4549_v40 = vpack.c.bf16 %v4544_v9, %v4544_v9 }
 0x54f   :  { %8734 = vmatprep.mubr.msk.bf16.mxu0 %vm9357_vm0, %v11246_v47  ;;  %8770 = vmatprep.mubr.msk.bf16.mxu1 %vm9357_vm0, %v11246_v47 }
 0x550   :  { %8788 = vmatprep.subr.bf16.mxu0 %v11246_v47  ;;  %8823 = vmatpush3.bf16.msra.mxu1 %v9242_v60 }
 0x551   :  { %8824 = vmatprep.subr.bf16.mxu1 %v11246_v47 }
 0x552   :  { %8789 = vmatpush3.bf16.msra.mxu0 %v9243_v7 }
 0x553   :  { %8846 = vmatprep.subr.bf16.mxu0 %v11246_v47 }
 0x554   :  { %8825 = vmatpush3.bf16.msra.mxu1 %v9244_v48 }
 0x555   :  { %8735 = vmatmul.mubr.bf16.gmra.mxu0 %v4549_v40 }
 0x556   :  { %8771 = vmatmul.mubr.bf16.gmra.mxu1 %v4709_v16  ;;  %8790 = vmatprep.mubr.msk.bf16.mxu0 %vm9357_vm0, %v11246_v47 }
 0x557   :  { %8826 = vmatprep.mubr.msk.bf16.mxu1 %vm9357_vm0, %v11246_v47 }
 0x55d   :  { %8791 = vmatmul.mubr.bf16.vlgmr.msra.gmra.mxu0 %v4865_v25 }
 0x55e   :  { %8827 = vmatmul.mubr.bf16.vlgmr.msra.gmra.mxu1 %v5025_v28  ;;  %8847 = vmatpush3.bf16.msra.mxu0 %v9245_v20 }
 0x55f   :  { %8794 = vmatprep.mubr.msk.bf16.mxu0 %vm9357_vm0, %v11246_v47  ;;  %8848 = vmatprep.subr.bf16.mxu0 %v11246_v47 }
 0x560   :  { %8830 = vmatprep.mubr.msk.bf16.mxu1 %vm9357_vm0, %v11246_v47 }
 0x562   :  { %8849 = vmatpush3.bf16.msra.mxu0 %v9246_v44 }
 0x563   :  { %8850 = vmatprep.subr.bf16.mxu0 %v11246_v47 }
 0x565   :  { %8795 = vmatmul.mubr.bf16.gmra.mxu0 %v4866_v14 }
 0x566   :  { %8831 = vmatmul.mubr.bf16.gmra.mxu1 %v5026_v2  ;;  %8851 = vmatpush3.bf16.msra.mxu0 %v9247_v0 }
 0x567   :  { %8798 = vmatprep.mubr.msk.bf16.mxu0 %vm9357_vm0, %v11246_v47  ;;  %8852 = vmatprep.subr.bf16.mxu0 %v11246_v47 }
 0x568   :  { %8834 = vmatprep.mubr.msk.bf16.mxu1 %vm9357_vm0, %v11246_v47 }
 0x56a   :  { %8853 = vmatpush3.bf16.msra.mxu0 %v9248_v58 }
 0x56b   :  { %8854 = vmatprep.subr.bf16.mxu0 %v11246_v47 }
 0x56d   :  { %8799 = vmatmul.mubr.bf16.gmra.mxu0 %v4867_v53 }
 0x56e   :  { %8835 = vmatmul.mubr.bf16.gmra.mxu1 %v5027_v11  ;;  %8855 = vmatpush3.bf16.msra.mxu0 %v9249_v15 }
 0x56f   :  { %8802 = vmatprep.mubr.msk.bf16.mxu0 %vm9357_vm0, %v11246_v47  ;;  %8838 = vmatprep.mubr.msk.bf16.mxu1 %vm9357_vm0, %v11246_v47 }
 0x570   :  { %8856 = vmatprep.subr.bf16.mxu0 %v11246_v47 }
 0x572   :  { %8857 = vmatpush3.bf16.msra.mxu0 %v9250_v52 }
 0x573   :  { %8858 = vmatprep.subr.bf16.mxu0 %v11246_v47 }
 0x575   :  { %v4058_v3 = vpop.f32.mrf.mxu0  ;;  %8803 = vmatmul.mubr.bf16.gmra.mxu0 %v4868_v32 }
 0x576   :  { %8839 = vmatmul.mubr.bf16.gmra.mxu1 %v5028_v24  ;;  %v4178_v59 = vpop.f32.mrf.mxu1  ;;  %8859 = vmatpush3.bf16.msra.mxu0 %v9251_v56 }
 0x577   :  { %8806 = vmatprep.mubr.msk.bf16.mxu0 %vm9357_vm0, %v11246_v47  ;;  %v11445_v26 = vadd.f32 %v4178_v59, %v4058_v3  ;;  %v8576_v22 = vpop.f32.mrf.mxu0  ;;  %8842 = vmatprep.mubr.msk.bf16.mxu1 %vm9357_vm0, %v11246_v47 }
 0x578   :  { %8860 = vmatprep.subr.bf16.mxu0 %v11246_v47  ;;  %v8612_v41 = vpop.f32.mrf.mxu1 }
 0x579   :  { %v4061_v38 = vpop.f32.mrf.mxu0 }
 0x57a   :  { %v4181_v57 = vpop.f32.mrf.mxu1  ;;  %8861 = vmatpush3.bf16.msra.mxu0 %v9252_v37 }
 0x57b   :  { %v11450_v36 = vadd.f32 %v4181_v57, %v4061_v38  ;;  %v8577_v27 = vpop.f32.mrf.mxu0 }
 0x57c   :  { %v8613_v60 = vpop.f32.mrf.mxu1 }
 0x57d   :  { %8807 = vmatmul.mubr.bf16.gmra.mxu0 %v4869_v8 }
 0x57e   :  { %8843 = vmatmul.mubr.bf16.gmra.mxu1 %v5029_v55  ;;  %8862 = vmatprep.mubr.msk.bf16.mxu0 %vm9357_vm0, %v11246_v47 }
 0x585   :  { %8863 = vmatmul.mubr.bf16.vlgmr.msra.gmra.mxu0 %v5185_v62 }
 0x586   :  { %8866 = vmatprep.mubr.msk.bf16.mxu0 %vm9357_vm0, %v11246_v47 }
 0x589   :  { %v4186_v7 = vpop.f32.mrf.mxu1 }
 0x58b   :  { %v8616_v9 = vpop.f32.mrf.mxu1 }
 0x58d   :  { %v4189_v16 = vpop.f32.mrf.mxu1  ;;  %8867 = vmatmul.mubr.bf16.gmra.mxu0 %v5186_v46 }
 0x58e   :  { %8870 = vmatprep.mubr.msk.bf16.mxu0 %vm9357_vm0, %v11246_v47 }
 0x58f   :  { %v8617_v48 = vpop.f32.mrf.mxu1 }
 0x595   :  { %8871 = vmatmul.mubr.bf16.gmra.mxu0 %v5187_v42  ;;  %v5189_v42 = vpack.c.bf16 %v5184_v23, %v5184_v23 }
 0x596   :  { %v4066_v50 = vpop.f32.mrf.mxu0  ;;  %v4194_v1 = vpop.f32.mrf.mxu1  ;;  %8874 = vmatprep.mubr.msk.bf16.mxu0 %vm9357_vm0, %v11246_v47 }
 0x597   :  { %v4187_v62 = vadd.f32 %v4186_v7, %v4066_v50 }
 0x598   :  { %v8580_v40 = vpop.f32.mrf.mxu0  ;;  %v8620_v29 = vpop.f32.mrf.mxu1 }
 0x59a   :  { %v4069_v33 = vpop.f32.mrf.mxu0  ;;  %v4197_v30 = vpop.f32.mrf.mxu1 }
 0x59b   :  { %v4190_v6 = vadd.f32 %v4189_v16, %v4069_v33 }
 0x59c   :  { %v8581_v61 = vpop.f32.mrf.mxu0  ;;  %v8621_v46 = vpop.f32.mrf.mxu1 }
 0x59d   :  { %8875 = vmatmul.mubr.bf16.gmra.mxu0 %v5188_v35 }
 0x59e   :  { %v4074_v4 = vpop.f32.mrf.mxu0  ;;  %8878 = vmatprep.mubr.msk.bf16.mxu0 %vm9357_vm0, %v11246_v47 }
 0x59f   :  { %v9255_v4 = vld [vmem:[%s11844_s2 + $0x4b8] sm:$0xff]  }
 0x5a0   :  { %v8584_v10 = vpop.f32.mrf.mxu0  ;;  %8902 = vmatprep.subr.bf16.mxu0 %v9255_v4 }
 0x5a1   :  { %8903 = vmatpush3.bf16.msra.mxu0 %v9255_v4 }
 0x5a2   :  { %v4077_v20 = vpop.f32.mrf.mxu0 }
 0x5a3   :  { %v4198_v25 = vadd.f32 %v4197_v30, %v4077_v20 }
 0x5a4   :  { %v8585_v28 = vpop.f32.mrf.mxu0 }
 0x5a5   :  { %8879 = vmatmul.mubr.bf16.gmra.mxu0 %v5189_v42 }
 0x5bd   :  { %v4082_v44 = vpop.f32.mrf.mxu0 }
 0x5be   :  { %v4202_v18 = vpop.f32.mrf.mxu1 }
 0x5bf   :  { %v4203_v39 = vadd.f32 %v4202_v18, %v4082_v44  ;;  %v8588_v5 = vpop.f32.mrf.mxu0  ;;  %v9254_v44 = vld [vmem:[%s11844_s2 + $0x4f0] sm:$0xff]  }
 0x5c0   :  { %v8624_v12 = vpop.f32.mrf.mxu1  ;;  %v9257_v18 = vld [vmem:[%s11844_s2 + $0x4b0] sm:$0xff]  }
 0x5c1   :  { %v4085_v0 = vpop.f32.mrf.mxu0  ;;  %8904 = vmatprep.subr.bf16.mxu0 %v9257_v18 }
 0x5c2   :  { %v4205_v14 = vpop.f32.mrf.mxu1  ;;  %8905 = vmatpush3.bf16.msra.mxu0 %v9257_v18 }
 0x5c3   :  { %v4206_v43 = vadd.f32 %v4205_v14, %v4085_v0  ;;  %v8589_v34 = vpop.f32.mrf.mxu0 }
 0x5c4   :  { %v8625_v35 = vpop.f32.mrf.mxu1  ;;  %v9256_v34 = vld [vmem:[%s11844_s2 + $0x4e8] sm:$0xff]  }
 0x5c5   :  { %v4090_v2 = vpop.f32.mrf.mxu0  ;;  %v9259_v35 = vld [vmem:[%s11844_s2 + $0x4a8] sm:$0xff]  }
 0x5c6   :  { %v4210_v58 = vpop.f32.mrf.mxu1  ;;  %8906 = vmatprep.subr.bf16.mxu0 %v9259_v35 }
 0x5c7   :  { %v11474_v47 = vadd.f32 %v4210_v58, %v4090_v2  ;;  %v8592_v21 = vpop.f32.mrf.mxu0  ;;  %8907 = vmatpush3.bf16.msra.mxu0 %v9259_v35 }
 0x5c8   :  { %v8628_v49 = vpop.f32.mrf.mxu1 }
 0x5c9   :  { %v4093_v51 = vpop.f32.mrf.mxu0 }
 0x5ca   :  { %v4213_v54 = vpop.f32.mrf.mxu1 }
 0x5cb   :  { %v8593_v15 = vpop.f32.mrf.mxu0  ;;  %v9261_v54 = vld [vmem:[%s11844_s2 + $0x4a0] sm:$0xff]  }
 0x5cc   :  { %v8629_v53 = vpop.f32.mrf.mxu1  ;;  %8908 = vmatprep.subr.bf16.mxu0 %v9261_v54 }
 0x5cd   :  { %v4329_v11 = vpop.f32.mrf.mxu0  ;;  %8909 = vmatpush3.bf16.msra.mxu0 %v9261_v54 }
 0x5ce   :  { %v4489_v52 = vpop.f32.mrf.mxu1  ;;  %v4367_v45 = vadd.f32 %v4329_v11, %v11445_v26 }
 0x5cf   :  { %v8648_v17 = vpop.f32.mrf.mxu0 }
 0x5d0   :  { %v8684_v63 = vpop.f32.mrf.mxu1  ;;  %v11477_v13 = vadd.f32 %v4489_v52, %v4367_v45  ;;  %v9260_v17 = vld [vmem:[%s11844_s2 + $0x4d8] sm:$0xff]  }
 0x5d1   :  { %v4332_v56 = vpop.f32.mrf.mxu0  ;;  %v9262_v63 = vld [vmem:[%s11844_s2 + $0x498] sm:$0xff]  }
 0x5d2   :  { %v4492_v32 = vpop.f32.mrf.mxu1  ;;  %v4368_v24 = vadd.f32 %v4332_v56, %v11450_v36  ;;  %8910 = vmatprep.subr.bf16.mxu0 %v9262_v63 }
 0x5d3   :  { %v8649_v3 = vpop.f32.mrf.mxu0  ;;  %8911 = vmatpush3.bf16.msra.mxu0 %v9262_v63 }
 0x5d4   :  { %v8685_v59 = vpop.f32.mrf.mxu1  ;;  %v11480_v31 = vadd.f32 %v4492_v32, %v4368_v24 }
 0x5d5   :  { %v4337_v19 = vpop.f32.mrf.mxu0 }
 0x5d6   :  { %v4497_v37 = vpop.f32.mrf.mxu1  ;;  %v4369_v22 = vadd.f32 %v4337_v19, %v4187_v62  ;;  %v9263_v19 = vld [vmem:[%s11844_s2 + $0x4d0] sm:$0xff]  }
 0x5d7   :  { %v8652_v41 = vpop.f32.mrf.mxu0 }
 0x5d8   :  { %v8688_v38 = vpop.f32.mrf.mxu1  ;;  %v11482_v8 = vadd.f32 %v4497_v37, %v4369_v22  ;;  %v9264_v37 = vld [vmem:[%s11844_s2 + $0x490] sm:$0xff]   ;;  %v9265_v22 = vld [vmem:[%s11844_s2 + $0x4c8] sm:$0xff]  }
 0x5d9   :  { %v4340_v26 = vpop.f32.mrf.mxu0  ;;  %8912 = vmatprep.subr.bf16.mxu0 %v9264_v37 }
 0x5da   :  { %v4500_v55 = vpop.f32.mrf.mxu1  ;;  %v4370_v57 = vadd.f32 %v4340_v26, %v4190_v6  ;;  %v9253_v6 = vld [vmem:[%s11844_s2 + $0x4f8] sm:$0xff]   ;;  %v9266_v26 = vld [vmem:[%s11844_s2 + $0x488] sm:$0xff]   ;;  %8913 = vmatpush3.bf16.msra.mxu0 %v9264_v37 }
 0x5db   :  { %v8653_v27 = vpop.f32.mrf.mxu0  ;;  %8882 = vmatprep.subr.bf16.mxu1 %v9253_v6  ;;  %8914 = vmatprep.subr.bf16.mxu0 %v9266_v26 }
 0x5dc   :  { %v8689_v60 = vpop.f32.mrf.mxu1  ;;  %v11484_v7 = vadd.f32 %v4500_v55, %v4370_v57  ;;  %8883 = vmatpush3.bf16.msra.mxu1 %v9253_v6 }
 0x5dd   :  { %v4345_v9 = vpop.f32.mrf.mxu0  ;;  %8884 = vmatprep.subr.bf16.mxu1 %v9254_v44  ;;  %v9267_v60 = vld [vmem:[%s11844_s2 + $0x4c0] sm:$0xff]  }
 0x5de   :  { %v4505_v36 = vpop.f32.mrf.mxu1  ;;  %v9268_v9 = vld [vmem:[%s11844_s2 + $0x480] sm:$0xff]   ;;  %8915 = vmatpush3.bf16.msra.mxu0 %v9266_v26 }
 0x5df   :  { %v8656_v16 = vpop.f32.mrf.mxu0  ;;  %8916 = vmatprep.subr.bf16.mxu0 %v9268_v9 }
 0x5e0   :  { %v8692_v48 = vpop.f32.mrf.mxu1  ;;  %8885 = vmatpush3.bf16.msra.mxu1 %v9254_v44 }
 0x5e1   :  { %v4348_v50 = vpop.f32.mrf.mxu0  ;;  %8886 = vmatprep.subr.bf16.mxu1 %v9256_v34 }
 0x5e2   :  { %v4508_v1 = vpop.f32.mrf.mxu1  ;;  %v4372_v40 = vadd.f32 %v4348_v50, %v4198_v25  ;;  %8917 = vmatpush3.bf16.msra.mxu0 %v9268_v9 }
 0x5e3   :  { %v8657_v29 = vpop.f32.mrf.mxu0 }
 0x5e4   :  { %v8693_v62 = vpop.f32.mrf.mxu1  ;;  %v11486_v33 = vadd.f32 %v4508_v1, %v4372_v40  ;;  %8887 = vmatpush3.bf16.msra.mxu1 %v9256_v34  ;;  %v11556_v40 = vld [vmem:[%s11844_s2 + $0x538] sm:$0xff]  }
 0x5e5   :  { %v4353_v30 = vpop.f32.mrf.mxu0  ;;  %v11561_v29 = vld [vmem:[%s11844_s2 + $0x578] sm:$0xff]  }
 0x5e6   :  { %v4513_v61 = vpop.f32.mrf.mxu1  ;;  %v4373_v46 = vadd.f32 %v4353_v30, %v4203_v39  ;;  %8942 = vmatprep.subr.bf16.mxu0 %v11561_v29 }
 0x5e7   :  { %v8660_v23 = vpop.f32.mrf.mxu0 }
 0x5e8   :  { %v8696_v10 = vpop.f32.mrf.mxu1  ;;  %v11494_v42 = vadd.f32 %v4513_v61, %v4373_v46 }
 0x5e9   :  { %v4356_v20 = vpop.f32.mrf.mxu0 }
 0x5ea   :  { %v4516_v25 = vpop.f32.mrf.mxu1  ;;  %v4374_v28 = vadd.f32 %v4356_v20, %v4206_v43 }
 0x5eb   :  { %v8661_v39 = vpop.f32.mrf.mxu0 }
 0x5ec   :  { %v8697_v5 = vpop.f32.mrf.mxu1  ;;  %v11502_v12 = vadd.f32 %v4516_v25, %v4374_v28 }
 0x5ed   :  { %v4361_v0 = vpop.f32.mrf.mxu0 }
 0x5ee   :  { %v4521_v14 = vpop.f32.mrf.mxu1  ;;  %v4375_v43 = vadd.f32 %v4361_v0, %v11474_v47  ;;  %v9258_v47 = vld [vmem:[%s11844_s2 + $0x4e0] sm:$0xff]  }
 0x5ef   :  { %v8664_v2 = vpop.f32.mrf.mxu0  ;;  %8888 = vmatprep.subr.bf16.mxu1 %v9258_v47 }
 0x5f0   :  { %v8700_v58 = vpop.f32.mrf.mxu1  ;;  %v11511_v21 = vadd.f32 %v4521_v14, %v4375_v43  ;;  %8889 = vmatpush3.bf16.msra.mxu1 %v9258_v47 }
 0x5f1   :  { %v4364_v49 = vpop.f32.mrf.mxu0  ;;  %8890 = vmatprep.subr.bf16.mxu1 %v9260_v17 }
 0x5f2   :  { %v4524_v51 = vpop.f32.mrf.mxu1 }
 0x5f3   :  { %v8665_v15 = vpop.f32.mrf.mxu0 }
 0x5f4   :  { %v8701_v53 = vpop.f32.mrf.mxu1  ;;  %8891 = vmatpush3.bf16.msra.mxu1 %v9260_v17 }
 0x5f5   :  { %v4649_v11 = vpop.f32.mrf.mxu0  ;;  %8892 = vmatprep.subr.bf16.mxu1 %v9263_v19 }
 0x5f6   :  { %v4809_v52 = vpop.f32.mrf.mxu1  ;;  %v4687_v45 = vadd.f32 %v4649_v11, %v11477_v13 }
 0x5f7   :  { %v8720_v56 = vpop.f32.mrf.mxu0 }
 0x5f8   :  { %v8756_v32 = vpop.f32.mrf.mxu1  ;;  %v11526_v24 = vadd.f32 %v4809_v52, %v4687_v45  ;;  %8893 = vmatpush3.bf16.msra.mxu1 %v9263_v19 }
 0x5f9   :  { %v4652_v3 = vpop.f32.mrf.mxu0  ;;  %8894 = vmatprep.subr.bf16.mxu1 %v9265_v22 }
 0x5fa   :  { %v4812_v59 = vpop.f32.mrf.mxu1  ;;  %v4688_v13 = vadd.f32 %v4652_v3, %v11480_v31 }
 0x5fb   :  { %v8721_v41 = vpop.f32.mrf.mxu0 }
 0x5fc   :  { %v8757_v38 = vpop.f32.mrf.mxu1  ;;  %v11541_v55 = vadd.f32 %v4812_v59, %v4688_v13  ;;  %8895 = vmatpush3.bf16.msra.mxu1 %v9265_v22 }
 0x5fd   :  { %v4657_v31 = vpop.f32.mrf.mxu0  ;;  %8896 = vmatprep.subr.bf16.mxu1 %v9267_v60 }
 0x5fe   :  { %v4817_v57 = vpop.f32.mrf.mxu1  ;;  %v4689_v27 = vadd.f32 %v4657_v31, %v11482_v8 }
 0x5ff   :  { %v8724_v36 = vpop.f32.mrf.mxu0 }
 0x600   :  { %v8760_v16 = vpop.f32.mrf.mxu1  ;;  %v11550_v48 = vadd.f32 %v4817_v57, %v4689_v27  ;;  %8897 = vmatpush3.bf16.msra.mxu1 %v9267_v60 }
 0x601   :  { %v4660_v50 = vpop.f32.mrf.mxu0  ;;  %8922 = vmatprep.subr.bf16.mxu1 %v11556_v40 }
 0x602   :  { %v4820_v1 = vpop.f32.mrf.mxu1  ;;  %v4690_v8 = vadd.f32 %v4660_v50, %v11484_v7 }
 0x603   :  { %v8725_v62 = vpop.f32.mrf.mxu0 }
 0x604   :  { %v8761_v30 = vpop.f32.mrf.mxu1  ;;  %v11563_v61 = vadd.f32 %v4820_v1, %v4690_v8 }
 0x605   :  { %v4665_v46 = vpop.f32.mrf.mxu0 }
 0x606   :  { %v4825_v6 = vpop.f32.mrf.mxu1 }
 0x607   :  { %v8728_v7 = vpop.f32.mrf.mxu0 }
 0x608   :  { %v8764_v4 = vpop.f32.mrf.mxu1 }
 0x609   :  { %v4668_v23 = vpop.f32.mrf.mxu0 }
 0x60a   :  { %v4828_v10 = vpop.f32.mrf.mxu1  ;;  %v4692_v20 = vadd.f32 %v4668_v23, %v11486_v33 }
 0x60b   :  { %v8729_v25 = vpop.f32.mrf.mxu0 }
 0x60c   :  { %v8765_v28 = vpop.f32.mrf.mxu1  ;;  %v11568_v44 = vadd.f32 %v4828_v10, %v4692_v20 }
 0x60d   :  { %v4673_v18 = vpop.f32.mrf.mxu0 }
 0x60e   :  { %v4833_v39 = vpop.f32.mrf.mxu1  ;;  %v4693_v5 = vadd.f32 %v4673_v18, %v11494_v42 }
 0x60f   :  { %v8732_v0 = vpop.f32.mrf.mxu0 }
 0x610   :  { %v8768_v14 = vpop.f32.mrf.mxu1  ;;  %v11571_v43 = vadd.f32 %v4833_v39, %v4693_v5 }
 0x611   :  { %v4676_v34 = vpop.f32.mrf.mxu0 }
 0x612   :  { %v4836_v35 = vpop.f32.mrf.mxu1  ;;  %v4694_v2 = vadd.f32 %v4676_v34, %v11502_v12 }
 0x613   :  { %v8733_v58 = vpop.f32.mrf.mxu0 }
 0x614   :  { %v8769_v49 = vpop.f32.mrf.mxu1  ;;  %v11574_v51 = vadd.f32 %v4836_v35, %v4694_v2  ;;  %v11592_v58 = vld [vmem:[%s11845_s3 + $0x2] ss:$0 sm:$0xff] }
 0x615   :  { %v4681_v33 = vpop.f32.mrf.mxu0 }
 0x616   :  { %v4841_v47 = vpop.f32.mrf.mxu1  ;;  %v4695_v54 = vadd.f32 %v4681_v33, %v11511_v21 }
 0x617   :  { %v8736_v15 = vpop.f32.mrf.mxu0 }
 0x618   :  { %v8772_v53 = vpop.f32.mrf.mxu1  ;;  %v11577_v11 = vadd.f32 %v4841_v47, %v4695_v54  ;;  %v11597_v47 = vld [vmem:[%s11846_s4 + $0x2] ss:$0 sm:$0xff] }
 0x619   :  { %v4684_v42 = vpop.f32.mrf.mxu0 }
 0x61a   :  { %v4844_v52 = vpop.f32.mrf.mxu1 }
 0x61b   :  { %v8737_v45 = vpop.f32.mrf.mxu0 }
 0x61c   :  { %v8773_v17 = vpop.f32.mrf.mxu1 }
 0x61d   :  { %v4969_v63 = vpop.f32.mrf.mxu0 }
 0x61e   :  { %v5129_v56 = vpop.f32.mrf.mxu1  ;;  %v5007_v39 = vadd.f32 %v4969_v63, %v11526_v24 }
 0x61f   :  { %v8792_v32 = vpop.f32.mrf.mxu0 }
 0x620   :  { %v8828_v12 = vpop.f32.mrf.mxu1  ;;  %v5167_v35 = vadd.f32 %v5129_v56, %v5007_v39 }
 0x621   :  { %v4972_v3 = vpop.f32.mrf.mxu0 }
 0x622   :  { %v5132_v59 = vpop.f32.mrf.mxu1  ;;  %v5008_v2 = vadd.f32 %v4972_v3, %v11541_v55 }
 0x623   :  { %v8793_v13 = vpop.f32.mrf.mxu0 }
 0x624   :  { %v8829_v19 = vpop.f32.mrf.mxu1  ;;  %v5168_v54 = vadd.f32 %v5132_v59, %v5008_v2 }
 0x625   :  { %v4977_v37 = vpop.f32.mrf.mxu0 }
 0x626   :  { %v5137_v22 = vpop.f32.mrf.mxu1  ;;  %v5009_v15 = vadd.f32 %v4977_v37, %v11550_v48 }
 0x627   :  { %v8796_v41 = vpop.f32.mrf.mxu0 }
 0x628   :  { %v8832_v21 = vpop.f32.mrf.mxu1  ;;  %v5169_v17 = vadd.f32 %v5137_v22, %v5009_v15 }
 0x629   :  { %v4980_v38 = vpop.f32.mrf.mxu0 }
 0x62a   :  { %v5140_v26 = vpop.f32.mrf.mxu1  ;;  %v5010_v63 = vadd.f32 %v4980_v38, %v11563_v61 }
 0x62b   :  { %v8797_v31 = vpop.f32.mrf.mxu0 }
 0x62c   :  { %v8833_v57 = vpop.f32.mrf.mxu1  ;;  %v5170_v48 = vadd.f32 %v5140_v26, %v5010_v63 }
 0x62d   :  { %v4985_v27 = vpop.f32.mrf.mxu0 }
 0x62e   :  { %v5145_v60 = vpop.f32.mrf.mxu1 }
 0x62f   :  { %v8800_v9 = vpop.f32.mrf.mxu0 }
 0x630   :  { %v8836_v36 = vpop.f32.mrf.mxu1 }
 0x631   :  { %v4988_v16 = vpop.f32.mrf.mxu0 }
 0x632   :  { %v5148_v50 = vpop.f32.mrf.mxu1  ;;  %v5012_v61 = vadd.f32 %v4988_v16, %v11568_v44 }
 0x633   :  { %v8801_v1 = vpop.f32.mrf.mxu0 }
 0x634   :  { %v8837_v8 = vpop.f32.mrf.mxu1  ;;  %v5172_v26 = vadd.f32 %v5148_v50, %v5012_v61 }
 0x635   :  { %v4993_v62 = vpop.f32.mrf.mxu0 }
 0x636   :  { %v11579_v30 = vpop.f32.mrf.mxu1  ;;  %v5013_v36 = vadd.f32 %v4993_v62, %v11571_v43 }
 0x637   :  { %v8804_v46 = vpop.f32.mrf.mxu0 }
 0x638   :  { %v8840_v6 = vpop.f32.mrf.mxu1  ;;  %v5173_v16 = vadd.f32 %v11579_v30, %v5013_v36 }
 0x639   :  { %v4996_v7 = vpop.f32.mrf.mxu0 }
 0x63a   :  { %v11581_v4 = vpop.f32.mrf.mxu1  ;;  %v5014_v6 = vadd.f32 %v4996_v7, %v11574_v51 }
 0x63b   :  { %v8805_v23 = vpop.f32.mrf.mxu0 }
 0x63c   :  { %v8841_v10 = vpop.f32.mrf.mxu1 }
 0x63d   :  { %v11583_v20 = vpop.f32.mrf.mxu0 }
 0x63e   :  { %v11585_v25 = vpop.f32.mrf.mxu1  ;;  %v5015_v7 = vadd.f32 %v11583_v20, %v11577_v11 }
 0x63f   :  { %v8808_v28 = vpop.f32.mrf.mxu0 }
 0x640   :  { %v8844_v18 = vpop.f32.mrf.mxu1 }
 0x641   :  { %v5004_v5 = vpop.f32.mrf.mxu0 }
 0x642   :  { %v5164_v0 = vpop.f32.mrf.mxu1 }
 0x643   :  { %v8809_v14 = vpop.f32.mrf.mxu0 }
 0x644   :  { %v8845_v34 = vpop.f32.mrf.mxu1  ;;  %v5174_v14 = vadd.f32 %v11581_v4, %v5014_v6 }
 0x645   :  { %v5289_v49 = vpop.f32.mrf.mxu0 }
 0x646   :  { %v5327_v33 = vadd.f32 %v5289_v49, %v5167_v35 }
 0x647   :  { %v8864_v24 = vpop.f32.mrf.mxu0 }
 0x648   :  { %v5342_v53 = vmul.f32 %v11592_v58, %v5327_v33 }
 0x649   :  { %v5292_v42 = vpop.f32.mrf.mxu0 }
 0x64a   :  { %v5357_v55 = vadd.f32 %v11597_v47, %v5342_v53  ;;  %v5328_v52 = vadd.f32 %v5292_v42, %v5168_v54 }
 0x64b   :  { %v8865_v45 = vpop.f32.mrf.mxu0 }
 0x64c   :  { %v5366_v56 = vmax.f32 %v5357_v55, 0.0  ;;  %v5343_v32 = vmul.f32 %v11592_v58, %v5328_v52  ;;  %v5175_v52 = vadd.f32 %v11585_v25, %v5015_v7  ;;  %v9273_v7 = vld [vmem:[%s11844_s2 + $0x528] sm:$0xff]  }
 0x64d   :  { %v5297_v12 = vpop.f32.mrf.mxu0 }
 0x64e   :  { %5375 = vst [vmem:[#allocation4] sm:$0xff] %v5366_v56  ;;  %v5358_v3 = vadd.f32 %v11597_v47, %v5343_v32  ;;  %v5329_v59 = vadd.f32 %v5297_v12, %v5169_v17 }
 0x64f   :  { %v8868_v13 = vpop.f32.mrf.mxu0 }
 0x650   :  { %v5367_v19 = vmax.f32 %v5358_v3, 0.0  ;;  %v5344_v37 = vmul.f32 %v11592_v58, %v5329_v59 }
 0x651   :  { %v5300_v41 = vpop.f32.mrf.mxu0 }
 0x652   :  { %5376 = vst [vmem:[#allocation4 + $0x8] sm:$0xff] %v5367_v19  ;;  %v5359_v21 = vadd.f32 %v11597_v47, %v5344_v37  ;;  %v5330_v22 = vadd.f32 %v5300_v41, %v5170_v48  ;;  %v5459_v41 = vld [vmem:[#allocation8 + $0x1] sm:$0xff] }
 0x653   :  { %v8869_v31 = vpop.f32.mrf.mxu0 }
 0x654   :  { %v5368_v38 = vmax.f32 %v5359_v21, 0.0  ;;  %v5345_v57 = vmul.f32 %v11592_v58, %v5330_v22  ;;  %v11625_v21 = vld [vmem:[#allocation8 + $0x11] sm:$0xff] }
 0x655   :  { %v5305_v27 = vpop.f32.mrf.mxu0  ;;  %v11627_v22 = vld [vmem:[#allocation8 + $0x12] sm:$0xff] }
 0x656   :  { %5377 = vst [vmem:[#allocation4 + $0x10] sm:$0xff] %v5368_v38  ;;  %v5360_v60 = vadd.f32 %v11597_v47, %v5345_v57 }
 0x657   :  { %v8872_v9 = vpop.f32.mrf.mxu0 }
 0x658   :  { %v5369_v1 = vmax.f32 %v5360_v60, 0.0  ;;  %v11636_v9 = vld [vmem:[#allocation6] sm:$0xff] }
 0x659   :  { %v5308_v8 = vpop.f32.mrf.mxu0  ;;  %v5385_v23 = vld [vmem:[#allocation4 + $0x7] ss:$2 sm:$0x3]  ;;  %v5387_v10 = vld [vmem:[#allocation4 + $0x8] ss:$2 sm:$0x3] }
 0x65a   :  { %5378 = vst [vmem:[#allocation4 + $0x18] sm:$0xff] %v5369_v1  ;;  %v5332_v46 = vadd.f32 %v5308_v8, %v5172_v26  ;;  %v5389_v18 = vld [vmem:[#allocation4 + $0xd] ss:$2 sm:$0x3]  ;;  %v5392_v0 = vmax.f32 %v5385_v23, %v5387_v10 }
 0x65b   :  { %v8873_v44 = vpop.f32.mrf.mxu0 }
 0x65c   :  { %v5347_v28 = vmul.f32 %v11592_v58, %v5332_v46 }
 0x65d   :  { %v5391_v39 = vld [vmem:[#allocation4 + $0xe] ss:$2 sm:$0x3]  ;;  %v5313_v5 = vpop.f32.mrf.mxu0  ;;  %v5397_v34 = vld [vmem:[#allocation4 + $0x13] ss:$2 sm:$0x3] }
 0x65e   :  { %v5393_v50 = vmax.f32 %v5389_v18, %v5391_v39  ;;  %v5362_v43 = vadd.f32 %v11597_v47, %v5347_v28  ;;  %v5333_v62 = vadd.f32 %v5313_v5, %v5173_v16  ;;  %v5399_v35 = vld [vmem:[#allocation4 + $0x14] ss:$2 sm:$0x3]  ;;  %v5676_v18 = vld [vmem:[#allocation8 + $0x2] sm:$0xff] }
 0x65f   :  { %v8876_v51 = vpop.f32.mrf.mxu0  ;;  %v5404_v15 = vmax.f32 %v5397_v34, %v5399_v35  ;;  %v9272_v34 = vld [vmem:[%s11844_s2 + $0x570] sm:$0xff]  }
 0x660   :  { %v5371_v2 = vmax.f32 %v5362_v43, 0.0  ;;  %v5348_v30 = vmul.f32 %v11592_v58, %v5333_v62  ;;  %v5394_v49 = vmax.f32 %v5392_v0, %v5393_v50 }
 0x661   :  { %v5401_v33 = vld [vmem:[#allocation4 + $0x19] ss:$2 sm:$0x3]  ;;  %v5403_v24 = vld [vmem:[#allocation4 + $0x1a] ss:$2 sm:$0x3]  ;;  %v5316_v54 = vpop.f32.mrf.mxu0 }
 0x662   :  { %v5405_v53 = vmax.f32 %v5401_v33, %v5403_v24  ;;  %5380 = vst [vmem:[#allocation4 + $0x28] sm:$0xff] %v5371_v2  ;;  %v5363_v42 = vadd.f32 %v11597_v47, %v5348_v30  ;;  %v5334_v55 = vadd.f32 %v5316_v54, %v5174_v14  ;;  %5395 = vst [vmem:[#allocation8 + $0xa] sm:$0x3] %v5394_v49  ;;  %v9271_v14 = vld [vmem:[%s11844_s2 + $0x530] sm:$0xff]   ;;  %v9274_v2 = vld [vmem:[%s11844_s2 + $0x568] sm:$0xff]  }
 0x663   :  { %v8877_v4 = vpop.f32.mrf.mxu0  ;;  %v9277_v30 = vld [vmem:[%s11844_s2 + $0x518] sm:$0xff]   ;;  %v9279_v33 = vld [vmem:[%s11844_s2 + $0x510] sm:$0xff]   ;;  %v9281_v54 = vld [vmem:[%s11844_s2 + $0x508] sm:$0xff]  }
 0x664   :  { %v5372_v45 = vmax.f32 %v5363_v42, 0.0  ;;  %v5349_v11 = vmul.f32 %v11592_v58, %v5334_v55  ;;  %v5406_v20 = vmax.f32 %v5404_v15, %v5405_v53  ;;  %v9278_v49 = vld [vmem:[%s11844_s2 + $0x558] sm:$0xff]   ;;  %v9280_v24 = vld [vmem:[%s11844_s2 + $0x550] sm:$0xff]   ;;  %v9282_v15 = vld [vmem:[%s11844_s2 + $0x548] sm:$0xff]  }
 0x665   :  { %v5321_v17 = vpop.f32.mrf.mxu0  ;;  %v9283_v53 = vld [vmem:[%s11844_s2 + $0x500] sm:$0xff]   ;;  %v9285_v55 = vld [vmem:[%s11844_s2 + $0x5b8] sm:$0xff]  }
 0x666   :  { %5381 = vst [vmem:[#allocation4 + $0x30] sm:$0xff] %v5372_v45  ;;  %v5364_v63 = vadd.f32 %v11597_v47, %v5349_v11  ;;  %v5335_v56 = vadd.f32 %v5321_v17, %v5175_v52  ;;  %5407 = vst [vmem:[#allocation8 + $0xe] sm:$0x3] %v5406_v20  ;;  %v9284_v42 = vld [vmem:[%s11844_s2 + $0x540] sm:$0xff]   ;;  %v9286_v4 = vld [vmem:[%s11844_s2 + $0x5f8] sm:$0xff]  }
 0x667   :  { %v8880_v32 = vpop.f32.mrf.mxu0 }
 0x668   :  { %v5373_v12 = vmax.f32 %v5364_v63, 0.0  ;;  %v5350_v3 = vmul.f32 %v11592_v58, %v5335_v56 }
 0x669   :  { %v5324_v59 = vpop.f32.mrf.mxu0  ;;  %v5409_v48 = vld [vmem:[#allocation4 + $0x2b] ss:$2 sm:$0x3]  ;;  %v5411_v25 = vld [vmem:[#allocation4 + $0x2c] ss:$2 sm:$0x3] }
 0x66a   :  { %5382 = vst [vmem:[#allocation4 + $0x38] sm:$0xff] %v5373_v12  ;;  %v5365_v13 = vadd.f32 %v11597_v47, %v5350_v3  ;;  %v5416_v38 = vmax.f32 %v5409_v48, %v5411_v25  ;;  %v5800_v62 = vld [vmem:[#allocation8 + $0x4] sm:$0xff]  ;;  %v9289_v25 = vld [vmem:[%s11844_s2 + $0x5a8] sm:$0xff]  }
 0x66b   :  { %v8881_v19 = vpop.f32.mrf.mxu0  ;;  %v5924_v32 = vld [vmem:[#allocation8 + $0x5] sm:$0xff] }
 0x66c   :  { %v5374_v37 = vmax.f32 %v5365_v13, 0.0  ;;  %v6048_v3 = vld [vmem:[#allocation8 + $0x6] sm:$0xff]  ;;  %v9290_v19 = vld [vmem:[%s11844_s2 + $0x5e8] sm:$0xff]  }
 0x66d   :  { %v5413_v31 = vld [vmem:[#allocation4 + $0x31] ss:$2 sm:$0x3]  ;;  %v5415_v61 = vld [vmem:[#allocation4 + $0x32] ss:$2 sm:$0x3] }
 0x66e   :  { %v5417_v57 = vmax.f32 %v5413_v31, %v5415_v61  ;;  %5383 = vst [vmem:[#allocation4 + $0x40] sm:$0xff] %v5374_v37  ;;  %v11629_v27 = vld [vmem:[#allocation8 + $0x9] sm:$0xff]  ;;  %v9287_v59 = vld [vmem:[%s11844_s2 + $0x5b0] sm:$0xff]  }
 0x66f   :  { %v11631_v58 = vld [vmem:[#allocation8 + $0x8] sm:$0xff]  ;;  %v5463_v47 = vpack.c.bf16 %v11629_v27, %v5459_v41  ;;  %v6300_v1 = vpack.c.bf16 %v11625_v21, %v11629_v27  ;;  %v9288_v13 = vld [vmem:[%s11844_s2 + $0x5f0] sm:$0xff]   ;;  %v9291_v37 = vld [vmem:[%s11844_s2 + $0x5a0] sm:$0xff]  }
 0x670   :  { %v11633_v60 = vld [vmem:[#allocation8 + $0xa] sm:$0xff]  ;;  %v5440_v26 = vpack.c.bf16 %v11631_v58, %v11636_v9  ;;  %v5418_v36 = vmax.f32 %v5416_v38, %v5417_v57  ;;  %v9295_v38 = vld [vmem:[%s11844_s2 + $0x590] sm:$0xff]  }
 0x671   :  { %8898 = vmatprep.mubr.bf16.mxu1 %v5463_v47  ;;  %v6424_v8 = vpack.c.bf16 %v11627_v22, %v11633_v60  ;;  %v5421_v46 = vld [vmem:[#allocation4 + $0x37] ss:$2 sm:$0x3]  ;;  %v5423_v6 = vld [vmem:[#allocation4 + $0x38] ss:$2 sm:$0x3]  ;;  %v5680_v35 = vpack.c.bf16 %v11633_v60, %v5676_v18 }
 0x672   :  { %8918 = vmatprep.mubr.bf16.mxu0 %v5440_v26  ;;  %5419 = vst [vmem:[#allocation8 + $0x1a] sm:$0x3] %v5418_v36  ;;  %v5425_v23 = vld [vmem:[#allocation4 + $0x3d] ss:$2 sm:$0x3]  ;;  %v5428_v44 = vmax.f32 %v5421_v46, %v5423_v6  ;;  %v5801_v0 = vld [vmem:[#allocation8 + $0xc] sm:$0xff] }
 0x673   :  { %v5804_v51 = vpack.c.bf16 %v5801_v0, %v5800_v62  ;;  %v5925_v11 = vld [vmem:[#allocation8 + $0xd] sm:$0xff]  ;;  %v9296_v57 = vld [vmem:[%s11844_s2 + $0x5d0] sm:$0xff]   ;;  %v9297_v47 = vld [vmem:[%s11844_s2 + $0x588] sm:$0xff]  }
 0x674   :  { %v6049_v17 = vld [vmem:[#allocation8 + $0xe] sm:$0xff]  ;;  %v5928_v12 = vpack.c.bf16 %v5925_v11, %v5924_v32  ;;  %v9298_v26 = vld [vmem:[%s11844_s2 + $0x5c8] sm:$0xff]   ;;  %v9304_v62 = vld [vmem:[%s11844_s2 + $0x670] sm:$0xff]  }
 0x675   :  { %v5427_v10 = vld [vmem:[#allocation4 + $0x3e] ss:$2 sm:$0x3]  ;;  %v6052_v48 = vpack.c.bf16 %v6049_v17, %v6048_v3  ;;  %v9292_v41 = vld [vmem:[%s11844_s2 + $0x5e0] sm:$0xff]   ;;  %v9293_v31 = vld [vmem:[%s11844_s2 + $0x598] sm:$0xff]  }
 0x676   :  { %v5429_v16 = vmax.f32 %v5425_v23, %v5427_v10  ;;  %v9294_v61 = vld [vmem:[%s11844_s2 + $0x5d8] sm:$0xff]   ;;  %v9299_v36 = vld [vmem:[%s11844_s2 + $0x580] sm:$0xff]   ;;  %v9323_v60 = vld [vmem:[%s11844_s2 + $0x688] sm:$0xff]  }
 0x677   :  { %v9300_v46 = vld [vmem:[%s11844_s2 + $0x5c0] sm:$0xff]   ;;  %v9301_v6 = vld [vmem:[%s11844_s2 + $0x638] sm:$0xff]  }
 0x678   :  { %v5430_v28 = vmax.f32 %v5428_v44, %v5429_v16  ;;  %v9302_v10 = vld [vmem:[%s11844_s2 + $0x678] sm:$0xff]  }
 0x679   :  { %v5802_v20 = vld [vmem:[#allocation8 + $0x14] sm:$0xff]  ;;  %v9310_v27 = vld [vmem:[%s11844_s2 + $0x658] sm:$0xff]  }
 0x67a   :  { %5431 = vst [vmem:[#allocation8 + $0x1e] sm:$0x3] %v5430_v28  ;;  %v5926_v16 = vld [vmem:[#allocation8 + $0x15] sm:$0xff] }
 0x67b   :  { %v6050_v18 = vld [vmem:[#allocation8 + $0x16] sm:$0xff] }
 0x681   :  { %v11644_v39 = vld [vmem:[#allocation8 + $0x19] sm:$0xff] }
 0x682   :  { %v11646_v5 = vld [vmem:[#allocation8 + $0x18] sm:$0xff]  ;;  %v5464_v50 = vpack.c.bf16 %v11644_v39, %v11625_v21  ;;  %v9309_v21 = vld [vmem:[%s11844_s2 + $0x618] sm:$0xff]  }
 0x683   :  { %v5441_v43 = vpack.c.bf16 %v11646_v5, %v11636_v9  ;;  %v11703_v52 = vld [vmem:[#allocation8 + $0x1a] sm:$0xff] }
 0x684   :  { %8899 = vmatmul.mubr.bf16.vlgmr.msra.gmra.mxu1 %v5464_v50  ;;  %v5803_v45 = vld [vmem:[#allocation8 + $0x1c] sm:$0xff]  ;;  %v5681_v63 = vpack.c.bf16 %v11703_v52, %v11627_v22 }
 0x685   :  { %8919 = vmatmul.mubr.bf16.vlgmr.msra.gmra.mxu0 %v5441_v43  ;;  %8923 = vmatpush3.bf16.msra.mxu1 %v11556_v40  ;;  %v9275_v40 = vld [vmem:[%s11844_s2 + $0x520] sm:$0xff]   ;;  %v5805_v56 = vpack.c.bf16 %v5803_v45, %v5802_v20  ;;  %v5927_v23 = vld [vmem:[#allocation8 + $0x1d] sm:$0xff]  ;;  %v6176_v43 = vpack.c.bf16 %v11636_v9, %v11631_v58 }
 0x686   :  { %8943 = vmatpush3.bf16.msra.mxu0 %v11561_v29  ;;  %8938 = vmatprep.mubr.bf16.mxu1 %v5680_v35  ;;  %v9276_v29 = vld [vmem:[%s11844_s2 + $0x560] sm:$0xff]   ;;  %v6051_v44 = vld [vmem:[#allocation8 + $0x1e] sm:$0xff]  ;;  %v5929_v28 = vpack.c.bf16 %v5927_v23, %v5926_v16 }
 0x687   :  { %8958 = vmatprep.mubr.bf16.mxu0 %v5804_v51  ;;  %8924 = vmatprep.subr.bf16.mxu1 %v9271_v14  ;;  %v6053_v0 = vpack.c.bf16 %v6051_v44, %v6050_v18  ;;  %v9303_v50 = vld [vmem:[%s11844_s2 + $0x630] sm:$0xff]   ;;  %v9306_v58 = vld [vmem:[%s11844_s2 + $0x668] sm:$0xff]   ;;  %v9308_v35 = vld [vmem:[%s11844_s2 + $0x660] sm:$0xff]  }
 0x688   :  { %8944 = vmatprep.subr.bf16.mxu0 %v9272_v34  ;;  %v9312_v51 = vld [vmem:[%s11844_s2 + $0x650] sm:$0xff]  }
 0x689   :  { %8925 = vmatpush3.bf16.msra.mxu1 %v9271_v14  ;;  %v9305_v14 = vld [vmem:[%s11844_s2 + $0x628] sm:$0xff]   ;;  %v9322_v22 = vld [vmem:[%s11844_s2 + $0x690] sm:$0xff]  }
 0x68a   :  { %8945 = vmatpush3.bf16.msra.mxu0 %v9272_v34  ;;  %8926 = vmatprep.subr.bf16.mxu1 %v9273_v7  ;;  %v9307_v34 = vld [vmem:[%s11844_s2 + $0x620] sm:$0xff]  }
 0x68b   :  { %8946 = vmatprep.subr.bf16.mxu0 %v9274_v2 }
 0x68d   :  { %8927 = vmatpush3.bf16.msra.mxu1 %v9273_v7  ;;  %v9313_v7 = vld [vmem:[%s11844_s2 + $0x608] sm:$0xff]  }
 0x68e   :  { %8947 = vmatpush3.bf16.msra.mxu0 %v9274_v2  ;;  %8928 = vmatprep.subr.bf16.mxu1 %v9275_v40  ;;  %v9314_v2 = vld [vmem:[%s11844_s2 + $0x648] sm:$0xff]  }
 0x68f   :  { %8948 = vmatprep.subr.bf16.mxu0 %v9276_v29 }
 0x691   :  { %8929 = vmatpush3.bf16.msra.mxu1 %v9275_v40  ;;  %v9315_v40 = vld [vmem:[%s11844_s2 + $0x600] sm:$0xff]  }
 0x692   :  { %8949 = vmatpush3.bf16.msra.mxu0 %v9276_v29  ;;  %8930 = vmatprep.subr.bf16.mxu1 %v9277_v30  ;;  %v9316_v29 = vld [vmem:[%s11844_s2 + $0x640] sm:$0xff]  }
 0x693   :  { %8950 = vmatprep.subr.bf16.mxu0 %v9278_v49 }
 0x695   :  { %8931 = vmatpush3.bf16.msra.mxu1 %v9277_v30  ;;  %v9317_v30 = vld [vmem:[%s11844_s2 + $0x6b8] sm:$0xff]  }
 0x696   :  { %8951 = vmatpush3.bf16.msra.mxu0 %v9278_v49  ;;  %8932 = vmatprep.subr.bf16.mxu1 %v9279_v33  ;;  %v6299_v49 = vld [vmem:[#allocation8 + $0x21] sm:$0xff] }
 0x697   :  { %8952 = vmatprep.subr.bf16.mxu0 %v9280_v24 }
 0x699   :  { %8933 = vmatpush3.bf16.msra.mxu1 %v9279_v33  ;;  %v6177_v33 = vpack.c.bf16 %v11636_v9, %v11646_v5  ;;  %v9320_v9 = vld [vmem:[%s11844_s2 + $0x6a0] sm:$0xff]   ;;  %v6423_v5 = vld [vmem:[#allocation8 + $0x22] sm:$0xff] }
 0x69a   :  { %8953 = vmatpush3.bf16.msra.mxu0 %v9280_v24  ;;  %8934 = vmatprep.subr.bf16.mxu1 %v9281_v54  ;;  %v9318_v24 = vld [vmem:[%s11844_s2 + $0x6b0] sm:$0xff]  }
 0x69b   :  { %8954 = vmatprep.subr.bf16.mxu0 %v9282_v15 }
 0x69d   :  { %8935 = vmatpush3.bf16.msra.mxu1 %v9281_v54  ;;  %v6301_v54 = vpack.c.bf16 %v6299_v49, %v11644_v39  ;;  %v9321_v39 = vld [vmem:[%s11844_s2 + $0x698] sm:$0xff]  }
 0x69e   :  { %8955 = vmatpush3.bf16.msra.mxu0 %v9282_v15  ;;  %8936 = vmatprep.subr.bf16.mxu1 %v9283_v53  ;;  %v9319_v15 = vld [vmem:[%s11844_s2 + $0x6a8] sm:$0xff]  }
 0x69f   :  { %8956 = vmatprep.subr.bf16.mxu0 %v9284_v42 }
 0x6a1   :  { %8937 = vmatpush3.bf16.msra.mxu1 %v9283_v53  ;;  %v6425_v53 = vpack.c.bf16 %v6423_v5, %v11703_v52 }
 0x6a2   :  { %8957 = vmatpush3.bf16.msra.mxu0 %v9284_v42  ;;  %8962 = vmatprep.subr.bf16.mxu1 %v9285_v55 }
 0x6a3   :  { %8982 = vmatprep.subr.bf16.mxu0 %v9286_v4 }
 0x6a4   :  { %8939 = vmatmul.mubr.bf16.vlgmr.msra.gmra.mxu1 %v5681_v63 }
 0x6a5   :  { %8959 = vmatmul.mubr.bf16.vlgmr.msra.gmra.mxu0 %v5805_v56  ;;  %8963 = vmatpush3.bf16.msra.mxu1 %v9285_v55 }
 0x6a6   :  { %8978 = vmatprep.mubr.bf16.mxu1 %v5928_v12  ;;  %8983 = vmatpush3.bf16.msra.mxu0 %v9286_v4 }
 0x6a7   :  { %8998 = vmatprep.mubr.bf16.mxu0 %v6052_v48  ;;  %8964 = vmatprep.subr.bf16.mxu1 %v9287_v59 }
 0x6a8   :  { %8984 = vmatprep.subr.bf16.mxu0 %v9288_v13 }
 0x6a9   :  { %8965 = vmatpush3.bf16.msra.mxu1 %v9287_v59 }
 0x6aa   :  { %8985 = vmatpush3.bf16.msra.mxu0 %v9288_v13  ;;  %8966 = vmatprep.subr.bf16.mxu1 %v9289_v25 }
 0x6ab   :  { %8986 = vmatprep.subr.bf16.mxu0 %v9290_v19 }
 0x6ad   :  { %8967 = vmatpush3.bf16.msra.mxu1 %v9289_v25 }
 0x6ae   :  { %8987 = vmatpush3.bf16.msra.mxu0 %v9290_v19  ;;  %8968 = vmatprep.subr.bf16.mxu1 %v9291_v37 }
 0x6af   :  { %8988 = vmatprep.subr.bf16.mxu0 %v9292_v41 }
 0x6b1   :  { %8969 = vmatpush3.bf16.msra.mxu1 %v9291_v37 }
 0x6b2   :  { %8989 = vmatpush3.bf16.msra.mxu0 %v9292_v41  ;;  %8970 = vmatprep.subr.bf16.mxu1 %v9293_v31 }
 0x6b3   :  { %8990 = vmatprep.subr.bf16.mxu0 %v9294_v61 }
 0x6b5   :  { %8971 = vmatpush3.bf16.msra.mxu1 %v9293_v31 }
 0x6b6   :  { %8991 = vmatpush3.bf16.msra.mxu0 %v9294_v61  ;;  %8972 = vmatprep.subr.bf16.mxu1 %v9295_v38 }
 0x6b7   :  { %8992 = vmatprep.subr.bf16.mxu0 %v9296_v57 }
 0x6b9   :  { %8973 = vmatpush3.bf16.msra.mxu1 %v9295_v38 }
 0x6ba   :  { %8993 = vmatpush3.bf16.msra.mxu0 %v9296_v57  ;;  %8974 = vmatprep.subr.bf16.mxu1 %v9297_v47 }
 0x6bb   :  { %8994 = vmatprep.subr.bf16.mxu0 %v9298_v26 }
 0x6bd   :  { %8975 = vmatpush3.bf16.msra.mxu1 %v9297_v47 }
 0x6be   :  { %8995 = vmatpush3.bf16.msra.mxu0 %v9298_v26  ;;  %8976 = vmatprep.subr.bf16.mxu1 %v9299_v36 }
 0x6bf   :  { %8996 = vmatprep.subr.bf16.mxu0 %v9300_v46 }
 0x6c1   :  { %8977 = vmatpush3.bf16.msra.mxu1 %v9299_v36 }
 0x6c2   :  { %8997 = vmatpush3.bf16.msra.mxu0 %v9300_v46  ;;  %9002 = vmatprep.subr.bf16.mxu1 %v9301_v6 }
 0x6c3   :  { %9022 = vmatprep.subr.bf16.mxu0 %v9302_v10 }
 0x6c4   :  { %8979 = vmatmul.mubr.bf16.vlgmr.msra.gmra.mxu1 %v5929_v28 }
 0x6c5   :  { %8999 = vmatmul.mubr.bf16.vlgmr.msra.gmra.mxu0 %v6053_v0  ;;  %9003 = vmatpush3.bf16.msra.mxu1 %v9301_v6 }
 0x6c6   :  { %9018 = vmatprep.mubr.bf16.mxu1 %v6176_v43  ;;  %9023 = vmatpush3.bf16.msra.mxu0 %v9302_v10 }
 0x6c7   :  { %9038 = vmatprep.mubr.bf16.mxu0 %v6300_v1  ;;  %9004 = vmatprep.subr.bf16.mxu1 %v9303_v50  ;;  %v9311_v1 = vld [vmem:[%s11844_s2 + $0x610] sm:$0xff]  }
 0x6c8   :  { %9024 = vmatprep.subr.bf16.mxu0 %v9304_v62 }
 0x6c9   :  { %9005 = vmatpush3.bf16.msra.mxu1 %v9303_v50 }
 0x6ca   :  { %9025 = vmatpush3.bf16.msra.mxu0 %v9304_v62  ;;  %9006 = vmatprep.subr.bf16.mxu1 %v9305_v14 }
 0x6cb   :  { %9026 = vmatprep.subr.bf16.mxu0 %v9306_v58 }
 0x6cd   :  { %9007 = vmatpush3.bf16.msra.mxu1 %v9305_v14 }
 0x6ce   :  { %9027 = vmatpush3.bf16.msra.mxu0 %v9306_v58  ;;  %9008 = vmatprep.subr.bf16.mxu1 %v9307_v34 }
 0x6cf   :  { %9028 = vmatprep.subr.bf16.mxu0 %v9308_v35 }
 0x6d1   :  { %9009 = vmatpush3.bf16.msra.mxu1 %v9307_v34 }
 0x6d2   :  { %9029 = vmatpush3.bf16.msra.mxu0 %v9308_v35  ;;  %9010 = vmatprep.subr.bf16.mxu1 %v9309_v21 }
 0x6d3   :  { %9030 = vmatprep.subr.bf16.mxu0 %v9310_v27 }
 0x6d5   :  { %9011 = vmatpush3.bf16.msra.mxu1 %v9309_v21 }
 0x6d6   :  { %9031 = vmatpush3.bf16.msra.mxu0 %v9310_v27  ;;  %9012 = vmatprep.subr.bf16.mxu1 %v9311_v1 }
 0x6d7   :  { %9032 = vmatprep.subr.bf16.mxu0 %v9312_v51 }
 0x6d9   :  { %9013 = vmatpush3.bf16.msra.mxu1 %v9311_v1 }
 0x6da   :  { %9033 = vmatpush3.bf16.msra.mxu0 %v9312_v51  ;;  %9014 = vmatprep.subr.bf16.mxu1 %v9313_v7 }
 0x6db   :  { %9034 = vmatprep.subr.bf16.mxu0 %v9314_v2 }
 0x6dd   :  { %9015 = vmatpush3.bf16.msra.mxu1 %v9313_v7 }
 0x6de   :  { %9035 = vmatpush3.bf16.msra.mxu0 %v9314_v2  ;;  %9016 = vmatprep.subr.bf16.mxu1 %v9315_v40 }
 0x6df   :  { %9036 = vmatprep.subr.bf16.mxu0 %v9316_v29 }
 0x6e1   :  { %9017 = vmatpush3.bf16.msra.mxu1 %v9315_v40 }
 0x6e2   :  { %9037 = vmatpush3.bf16.msra.mxu0 %v9316_v29  ;;  %9042 = vmatprep.subr.bf16.mxu1 %v9317_v30 }
 0x6e4   :  { %9019 = vmatmul.mubr.bf16.vlgmr.msra.gmra.mxu1 %v6177_v33 }
 0x6e5   :  { %9039 = vmatmul.mubr.bf16.vlgmr.msra.gmra.mxu0 %v6301_v54  ;;  %9043 = vmatpush3.bf16.msra.mxu1 %v9317_v30  ;;  %v7340_v54 = vld [vmem:[%s11845_s3 + $0x3] ss:$0 sm:$0xff]  ;;  %s9358_s3 = smov [#allocation9]  }
 0x6e6   :  { %9058 = vmatprep.mubr.bf16.mxu1 %v6424_v8  ;;  %9044 = vmatprep.subr.bf16.mxu1 %v9318_v24  ;;  %v9324_v8 = vld [vmem:[%s11844_s2 + $0x680] sm:$0xff]  }
 0x6e9   :  { %9045 = vmatpush3.bf16.msra.mxu1 %v9318_v24 }
 0x6ea   :  { %9046 = vmatprep.subr.bf16.mxu1 %v9319_v15 }
 0x6ed   :  { %9047 = vmatpush3.bf16.msra.mxu1 %v9319_v15 }
 0x6ee   :  { %9048 = vmatprep.subr.bf16.mxu1 %v9320_v9 }
 0x6f1   :  { %9049 = vmatpush3.bf16.msra.mxu1 %v9320_v9 }
 0x6f2   :  { %9050 = vmatprep.subr.bf16.mxu1 %v9321_v39 }
 0x6f5   :  { %9051 = vmatpush3.bf16.msra.mxu1 %v9321_v39 }
 0x6f6   :  { %9052 = vmatprep.subr.bf16.mxu1 %v9322_v22 }
 0x6f9   :  { %9053 = vmatpush3.bf16.msra.mxu1 %v9322_v22 }
 0x6fa   :  { %9054 = vmatprep.subr.bf16.mxu1 %v9323_v60 }
 0x6fd   :  { %9055 = vmatpush3.bf16.msra.mxu1 %v9323_v60  ;;  %v7341_v60 = vld [vmem:[%s11846_s4 + $0x3] ss:$0 sm:$0xff]  ;;  %s6602_s4 = sshll.u32 %s9358_s3, 4  ;;  %s6603_s4 = int_to_ptr.vmem [resolvable:$true] %s6602_s4 }
 0x6fe   :  { %9056 = vmatprep.subr.bf16.mxu1 %v9324_v8  ;;  %s9334_s17 = scalar_lea.vmem %s6603_s4, 32  ;;  %p9339_p1 = scmp.lt.s32.totalorder %s6603_s4, %s6603_s4 }
 0x6ff   :  { %p9335_p0 = scmp.ne.s32.totalorder %s6603_s4, %s9334_s17  ;;  %p9340_p2 = scmp.lt.s32.totalorder %s9334_s17, %s9334_s17 }
 0x701   :  { %9057 = vmatpush3.bf16.msra.mxu1 %v9324_v8  ;;  %p9341_p3 = por %p9340_p2, %p9339_p1 }
 0x703   :  { %p9342_p4 = pnand %p9341_p3, %p9335_p0 }
 0x704   :  { %9059 = vmatmul.mubr.bf16.vlgmr.msra.gmra.mxu1 %v6425_v53 }
 0x744   :  { %v8900_v42 = vpop.f32.mrf.mxu1 }
 0x745   :  { %v8920_v4 = vpop.f32.mrf.mxu0 }
 0x746   :  { %v5564_v55 = vpop.f32.mrf.mxu1  ;;  %v5670_v31 = vadd.f32 %v8920_v4, %v8900_v42 }
 0x747   :  { %v5661_v11 = vpop.f32.mrf.mxu0 }
 0x748   :  { %v8901_v45 = vpop.f32.mrf.mxu1  ;;  %v5662_v38 = vadd.f32 %v5661_v11, %v5564_v55 }
 0x749   :  { %v8921_v17 = vpop.f32.mrf.mxu0 }
 0x74a   :  { %v5567_v20 = vpop.f32.mrf.mxu1  ;;  %v5673_v26 = vadd.f32 %v8921_v17, %v8901_v45 }
 0x74b   :  { %v5664_v56 = vpop.f32.mrf.mxu0 }
 0x74c   :  { %v5665_v23 = vadd.f32 %v5664_v56, %v5567_v20 }
 0x764   :  { %v8940_v63 = vpop.f32.mrf.mxu1 }
 0x765   :  { %v8960_v12 = vpop.f32.mrf.mxu0  ;;  %v5798_v57 = vadd.f32 %v8940_v63, %v5670_v31 }
 0x766   :  { %v5781_v32 = vpop.f32.mrf.mxu1 }
 0x767   :  { %v5905_v59 = vpop.f32.mrf.mxu0  ;;  %v5796_v36 = vadd.f32 %v5781_v32, %v5662_v38  ;;  %v5922_v10 = vadd.f32 %v8960_v12, %v5798_v57 }
 0x768   :  { %v8941_v3 = vpop.f32.mrf.mxu1 }
 0x769   :  { %v8961_v48 = vpop.f32.mrf.mxu0  ;;  %v5799_v44 = vadd.f32 %v8941_v3, %v5673_v26  ;;  %v5920_v16 = vadd.f32 %v5905_v59, %v5796_v36 }
 0x76a   :  { %v5784_v13 = vpop.f32.mrf.mxu1 }
 0x76b   :  { %v5908_v19 = vpop.f32.mrf.mxu0  ;;  %v5797_v28 = vadd.f32 %v5784_v13, %v5665_v23  ;;  %v5923_v43 = vadd.f32 %v8961_v48, %v5799_v44 }
 0x76d   :  { %v5921_v58 = vadd.f32 %v5908_v19, %v5797_v28 }
 0x784   :  { %v8980_v25 = vpop.f32.mrf.mxu1 }
 0x785   :  { %v9000_v52 = vpop.f32.mrf.mxu0  ;;  %v6046_v18 = vadd.f32 %v8980_v25, %v5922_v10 }
 0x786   :  { %v6029_v37 = vpop.f32.mrf.mxu1 }
 0x787   :  { %v6153_v61 = vpop.f32.mrf.mxu0  ;;  %v6044_v62 = vadd.f32 %v6029_v37, %v5920_v16  ;;  %v6170_v34 = vadd.f32 %v9000_v52, %v6046_v18 }
 0x788   :  { %v8981_v41 = vpop.f32.mrf.mxu1 }
 0x789   :  { %v9001_v46 = vpop.f32.mrf.mxu0  ;;  %v6047_v35 = vadd.f32 %v8981_v41, %v5923_v43  ;;  %v6168_v27 = vadd.f32 %v6153_v61, %v6044_v62 }
 0x78a   :  { %v6032_v47 = vpop.f32.mrf.mxu1 }
 0x78b   :  { %v6156_v0 = vpop.f32.mrf.mxu0  ;;  %v6045_v1 = vadd.f32 %v6032_v47, %v5921_v58  ;;  %v6171_v2 = vadd.f32 %v9001_v46, %v6047_v35 }
 0x78d   :  { %v6169_v30 = vadd.f32 %v6156_v0, %v6045_v1 }
 0x7a4   :  { %v9020_v6 = vpop.f32.mrf.mxu1 }
 0x7a5   :  { %v9040_v14 = vpop.f32.mrf.mxu0  ;;  %v6294_v51 = vadd.f32 %v9020_v6, %v6170_v34 }
 0x7a6   :  { %v6277_v50 = vpop.f32.mrf.mxu1 }
 0x7a7   :  { %v6401_v7 = vpop.f32.mrf.mxu0  ;;  %v6292_v40 = vadd.f32 %v6277_v50, %v6168_v27  ;;  %v6418_v49 = vadd.f32 %v9040_v14, %v6294_v51 }
 0x7a8   :  { %v9021_v21 = vpop.f32.mrf.mxu1 }
 0x7a9   :  { %v6295_v33 = vadd.f32 %v9021_v21, %v6171_v2  ;;  %v9041_v24 = vpop.f32.mrf.mxu0  ;;  %v6416_v9 = vadd.f32 %v6401_v7, %v6292_v40 }
 0x7aa   :  { %v6280_v29 = vpop.f32.mrf.mxu1 }
 0x7ab   :  { %v6293_v39 = vadd.f32 %v6280_v29, %v6169_v30  ;;  %v6419_v5 = vadd.f32 %v9041_v24, %v6295_v33  ;;  %v6404_v55 = vpop.f32.mrf.mxu0 }
 0x7ad   :  { %v6417_v45 = vadd.f32 %v6404_v55, %v6293_v39 }
 0x7c4   :  { %v9060_v15 = vpop.f32.mrf.mxu1 }
 0x7c5   :  { %v6542_v22 = vadd.f32 %v9060_v15, %v6418_v49 }
 0x7c6   :  { %v6525_v8 = vpop.f32.mrf.mxu1 }
 0x7c7   :  { %v6552_v53 = vmul.f32 %v7340_v54, %v6542_v22  ;;  %v6540_v42 = vadd.f32 %v6525_v8, %v6416_v9 }
 0x7c8   :  { %v9061_v4 = vpop.f32.mrf.mxu1 }
 0x7c9   :  { %v6562_v11 = vadd.f32 %v7341_v60, %v6552_v53  ;;  %v6550_v20 = vmul.f32 %v7340_v54, %v6540_v42  ;;  %v6543_v17 = vadd.f32 %v9061_v4, %v6419_v5 }
 0x7ca   :  { %v6528_v63 = vpop.f32.mrf.mxu1 }
 0x7cb   :  { %v6566_v56 = vmax.f32 %v6562_v11, 0.0  ;;  %v6560_v32 = vadd.f32 %v7341_v60, %v6550_v20  ;;  %v6553_v12 = vmul.f32 %v7340_v54, %v6543_v17  ;;  %v6541_v3 = vadd.f32 %v6528_v63, %v6417_v45 }
 0x7cd   :  { %6570 = vst [vmem:[#allocation5 + $0x10] sm:$0xff] %v6566_v56  ;;  %v6564_v59 = vmax.f32 %v6560_v32, 0.0  ;;  %v6563_v13 = vadd.f32 %v7341_v60, %v6553_v12  ;;  %v6551_v48 = vmul.f32 %v7340_v54, %v6541_v3 }
 0x7cf   :  { %6568 = vst [vmem:[#allocation5] sm:$0xff] %v6564_v59  ;;  %v6567_v25 = vmax.f32 %v6563_v13, 0.0  ;;  %v6561_v19 = vadd.f32 %v7341_v60, %v6551_v48 }
 0x7d1   :  { %6571 = vst [vmem:[#allocation5 + $0x18] sm:$0xff] %v6567_v25  ;;  %v6565_v37 = vmax.f32 %v6561_v19, 0.0 }
 0x7d3   :  { %6569 = vst [vmem:[#allocation5 + $0x8] sm:$0xff] %v6565_v37 }
 0x7d4   :  { %v6585_v52 = vld [vmem:[#allocation5 + $0x15] ss:$2 sm:$0x1]  ;;  %v6587_v41 = vld [vmem:[#allocation5 + $0x16] ss:$2 sm:$0x1] }
 0x7d5   :  { %v6592_v47 = vmax.f32 %v6585_v52, %v6587_v41 }
 0x7d6   :  { %v6573_v31 = vld [vmem:[#allocation5 + $0x5] ss:$2 sm:$0x1]  ;;  %v6575_v61 = vld [vmem:[#allocation5 + $0x6] ss:$2 sm:$0x1] }
 0x7d7   :  { %v6580_v6 = vmax.f32 %v6573_v31, %v6575_v61 }
 0x7d8   :  { %v6589_v38 = vld [vmem:[#allocation5 + $0x19] ss:$2 sm:$0x1]  ;;  %v6591_v57 = vld [vmem:[#allocation5 + $0x1a] ss:$2 sm:$0x1] }
 0x7d9   :  { %v6593_v26 = vmax.f32 %v6589_v38, %v6591_v57 }
 0x7da   :  { %v6577_v36 = vld [vmem:[#allocation5 + $0x9] ss:$2 sm:$0x1]  ;;  %v6579_v46 = vld [vmem:[#allocation5 + $0xa] ss:$2 sm:$0x1] }
 0x7db   :  { %v6581_v23 = vmax.f32 %v6577_v36, %v6579_v46  ;;  %v6594_v10 = vmax.f32 %v6592_v47, %v6593_v26 }
 0x7dd   :  { %v6582_v44 = vmax.f32 %v6580_v6, %v6581_v23  ;;  %6596 = vst [vmem:[#allocation9 + $0x1] sm:$0x1] %v6594_v10 }
 0x7df   :  { %6583 = vst [vmem:[#allocation9] sm:$0x1] %v6582_v44 }
 0x7e0   :  { %9345 = shalt.err (!%p9342_p4)
}
 0x7e1   :  { %s9359_s18 = smov 16   ;;  %s9360_s19 = smov 1  }
 0x7e2   :  { %6608 = dma.vmem_to_hbm [thread:$0]  %s6603_s4, 32, %s11847_s5, [#allocation10], %s9359_s18, %s9359_s18, %s9360_s19  }
 0x7e3   :  { %9354 = dma.done.wait [#allocation10], 32  }
 0x7e4   :  { %9355 = vsyncadd [#allocation10], 4294967264 }
 0x7e5   :  { %6612 = vsyncpa [#allocation10], 1 }

</bundles_post_ra>
